<compile_context>
chip_gen: v7x
topology: tpu7x:2x2x1
jax: 0.10.0
libtpu: 0.0.40
codegen_flags: <defaults>
</compile_context>

<pallas_src>
import functools

import jax
import jax.numpy as jnp
from jax.experimental import pallas as pl
from jax.experimental.pallas import tpu as pltpu


# ---------------------------------------------------------------------------
# Pallas kernel: single-shot GEMM (full K) + bias + activation
# ---------------------------------------------------------------------------
def _matmul_bias_act_kernel(x_ref, w_ref, b_ref, o_ref, *, act):
    r = jnp.dot(x_ref[...], w_ref[...], preferred_element_type=jnp.float32)
    r = r + b_ref[...]
    if act == "relu":
        r = jnp.maximum(r, 0.0)
    elif act == "sigmoid":
        r = jax.nn.sigmoid(r)
    o_ref[...] = r.astype(o_ref.dtype)


# ---------------------------------------------------------------------------
# Wrapper
# ---------------------------------------------------------------------------
def _round_up(x, m):
    return ((x + m - 1) // m) * m


def _choose_tm(M):
    """Pick an M tile (multiple of 8, or full-M when tiny) and padded M."""
    if M <= 8:
        return M, M                      # full-extent block, no padding
    Mp = _round_up(M, 8)
    if Mp <= 512:
        return Mp, Mp                    # single M tile
    half = Mp // 2
    if half % 8 == 0 and half <= 1024:
        return half, Mp                  # two M tiles (feeds both TCs on v7x)
    return 128, _round_up(M, 128)


def matmul_bias_act(x, w, b, act="none", out_dtype=jnp.float32):
    """y = act(x @ w + b).  x:(M,K) any float, w:(K,N) bf16, b:(1,N) f32.

    N must already be a multiple of 128 (weights are pre-padded once in
    prepare_params).  K is consumed as one full-extent block (max K here is
    5120 -> per-block VMEM stays far below even v5e's 16 MiB scoped default).
    """
    M, K = x.shape
    K2, N = w.shape
    assert K == K2 and N % 128 == 0 and b.shape == (1, N)

    tn = 256 if N % 256 == 0 else 128    # 256-wide N tiles match v6e/v7x MXU
    tm, Mp = _choose_tm(M)

    xb = x.astype(jnp.bfloat16)
    if Mp != M:
        xb = jnp.pad(xb, ((0, Mp - M), (0, 0)))

    grid = (Mp // tm, N // tn)
    out = pl.pallas_call(
        functools.partial(_matmul_bias_act_kernel, act=act),
        out_shape=jax.ShapeDtypeStruct((Mp, N), out_dtype),
        grid_spec=pltpu.PrefetchScalarGridSpec(
            num_scalar_prefetch=0,
            grid=grid,
            in_specs=[
                pl.BlockSpec((tm, K), lambda i, j: (i, 0)),
                pl.BlockSpec((K, tn), lambda i, j: (0, j)),
                pl.BlockSpec((1, tn), lambda i, j: (0, j)),
            ],
            out_specs=pl.BlockSpec((tm, tn), lambda i, j: (i, j)),
        ),
        compiler_params=pltpu.CompilerParams(
            dimension_semantics=("parallel", "parallel")
        ),
    )(xb, w, b)
    if Mp != M:
        out = out[:M]
    return out


# ---------------------------------------------------------------------------
# Conv / pooling glue (plain JAX around the Pallas GEMM)
# ---------------------------------------------------------------------------
def maxpool2d(x, ph, pw):
    """MaxPool2d((ph, pw)), stride == kernel, floor mode.  x: NHWC."""
    N, H, W, C = x.shape
    Ho, Wo = H // ph, W // pw
    x = x[:, : Ho * ph, : Wo * pw, :]
    return x.reshape(N, Ho, ph, Wo, pw, C).max(axis=(2, 4))


def _im2col(x, kh, kw):
    """x: NHWC -> patches (N*Ho*Wo, kh*kw*C), column order (kh, kw, C)."""
    N, H, W, C = x.shape
    Ho, Wo = H - kh + 1, W - kw + 1
    cols = []
    for di in range(kh):
        for dj in range(kw):
            cols.append(x[:, di : di + Ho, dj : dj + Wo, :])
    patches = jnp.concatenate(cols, axis=-1)  # (N, Ho, Wo, kh*kw*C)
    return patches.reshape(N * Ho * Wo, kh * kw * C), (N, Ho, Wo)


def conv2d_relu(x, wmat, b, kh, kw):
    """Valid conv (stride 1) + ReLU via im2col + Pallas GEMM.

    wmat: pre-laid-out (kh*kw*C_act, out_c_padded) bf16 weight matrix whose
    row order matches the im2col column order of the (possibly channel-padded)
    activation.  Output stays bf16 and lane-dense (out_c_padded % 128 == 0).
    """
    patches, (N, Ho, Wo) = _im2col(x, kh, kw)
    out_c = wmat.shape[1]
    y = matmul_bias_act(patches, wmat, b, act="relu", out_dtype=jnp.bfloat16)
    return y.reshape(N, Ho, Wo, out_c)


# ---------------------------------------------------------------------------
# Parameters
# ---------------------------------------------------------------------------
def init_params(key):
    """PyTorch-layout parameters (Conv2d: (out,in,kh,kw); Linear: (out,in))."""
    def uniform(key, shape, fan_in):
        k = 1.0 / jnp.sqrt(jnp.float32(fan_in))
        return jax.random.uniform(key, shape, jnp.float32, -k, k)

    keys = jax.random.split(key, 12)
    p = {}
    p["conv1_w"] = uniform(keys[0], (64, 50, 3, 3), 50 * 3 * 3)
    p["conv1_b"] = uniform(keys[1], (64,), 50 * 3 * 3)
    p["conv2_w"] = uniform(keys[2], (128, 64, 3, 1), 64 * 3 * 1)
    p["conv2_b"] = uniform(keys[3], (128,), 64 * 3 * 1)
    p["conv3_w"] = uniform(keys[4], (256, 128, 3, 1), 128 * 3 * 1)
    p["conv3_b"] = uniform(keys[5], (256,), 128 * 3 * 1)
    p["fc1_w"] = uniform(keys[6], (1024, 256 * 20), 256 * 20)
    p["fc1_b"] = uniform(keys[7], (1024,), 256 * 20)
    p["fc2_w"] = uniform(keys[8], (512, 1024), 1024)
    p["fc2_b"] = uniform(keys[9], (512,), 1024)
    p["fc3_w"] = uniform(keys[10], (103, 512), 512)
    p["fc3_b"] = uniform(keys[11], (103,), 512)
    return p


def prepare_params(p):
    """One-time layout pass: GEMM-ready, lane-padded, bf16 weights."""
    def conv_wmat(w, b, c_act):
        out_c, in_c, kh, kw = w.shape
        wm = jnp.transpose(w, (2, 3, 1, 0)).reshape(kh * kw, in_c, out_c)
        if c_act > in_c:  # activation channels were padded in the prev layer
            wm = jnp.pad(wm, ((0, 0), (0, c_act - in_c), (0, 0)))
        wm = wm.reshape(kh * kw * c_act, out_c)
        out_p = _round_up(out_c, 128)
        bb = b
        if out_p > out_c:  # lane-dense output channels (zero weights/bias)
            wm = jnp.pad(wm, ((0, 0), (0, out_p - out_c)))
            bb = jnp.pad(b, (0, out_p - out_c))
        return wm.astype(jnp.bfloat16), bb.astype(jnp.float32).reshape(1, out_p)

    def fc_wmat(w, b):
        out_f, _ = w.shape
        out_p = _round_up(out_f, 128)
        wm = jnp.transpose(w, (1, 0))
        bb = b
        if out_p > out_f:
            wm = jnp.pad(wm, ((0, 0), (0, out_p - out_f)))
            bb = jnp.pad(b, (0, out_p - out_f))
        return wm.astype(jnp.bfloat16), bb.astype(jnp.float32).reshape(1, out_p)

    g = {}
    g["conv1_w"], g["conv1_b"] = conv_wmat(p["conv1_w"], p["conv1_b"], 50)
    g["conv2_w"], g["conv2_b"] = conv_wmat(p["conv2_w"], p["conv2_b"], 128)
    g["conv3_w"], g["conv3_b"] = conv_wmat(p["conv3_w"], p["conv3_b"], 128)
    g["fc1_w"], g["fc1_b"] = fc_wmat(p["fc1_w"], p["fc1_b"])
    g["fc2_w"], g["fc2_b"] = fc_wmat(p["fc2_w"], p["fc2_b"])
    g["fc3_w"], g["fc3_b"] = fc_wmat(p["fc3_w"], p["fc3_b"])
    return g


# ---------------------------------------------------------------------------
# CapsuleNet forward
# ---------------------------------------------------------------------------
@jax.jit
def capsule_net_forward(x_nchw, gp):
    # NCHW -> NHWC, bf16 activations through the conv/GEMM pipeline.
    x = jnp.transpose(x_nchw, (0, 2, 3, 1)).astype(jnp.bfloat16)

    x = conv2d_relu(x, gp["conv1_w"], gp["conv1_b"], 3, 3)   # relu(conv1), C=128 (64 real)
    x = maxpool2d(x, 2, 1)                                   # pooling1
    x = conv2d_relu(x, gp["conv2_w"], gp["conv2_b"], 3, 1)   # relu(conv2), C=128
    x = maxpool2d(x, 2, 2)                                   # pooling2
    x = conv2d_relu(x, gp["conv3_w"], gp["conv3_b"], 3, 1)   # relu(conv3), C=256
    x = maxpool2d(x, 2, 2)                                   # pooling3

    # flatten in PyTorch's NCHW order: (N, C, H, W) -> (N, C*H*W) = (N, 5120)
    n = x.shape[0]
    x = jnp.transpose(x, (0, 3, 1, 2)).reshape(n, -1)

    x = matmul_bias_act(x, gp["fc1_w"], gp["fc1_b"], act="relu",
                        out_dtype=jnp.bfloat16)
    x = matmul_bias_act(x, gp["fc2_w"], gp["fc2_b"], act="relu",
                        out_dtype=jnp.bfloat16)
    classes = matmul_bias_act(x, gp["fc3_w"], gp["fc3_b"], act="sigmoid",
                              out_dtype=jnp.float32)
    return classes[:, :103]


if __name__ == "__main__":
    key = jax.random.PRNGKey(0)
    k_param, k_input = jax.random.split(key)

    # Input shape implied by the forward pass: after the conv/pool stack the
    # flattened feature must be 256*20, which (N, 50, 54, 18) satisfies:
    # 54x18 -> 52x16 -> 26x16 -> 24x16 -> 12x8 -> 10x8 -> 5x4 (=20 spatial).
    x = jax.random.normal(k_input, (2, 50, 54, 18), jnp.float32)

    params = init_params(k_param)
    gparams = prepare_params(params)   # one-time weight layout / bf16 / pad

    out = capsule_net_forward(x, gparams)
    out = jax.block_until_ready(out)

    assert out.shape == (2, 103), out.shape
    assert bool(jnp.all(jnp.isfinite(out)))
    assert bool(jnp.all((out >= 0.0) & (out <= 1.0)))  # sigmoid range
    print("KERNEL_OK")
</pallas_src>

<mosaic_0001>
module attributes {stable_mosaic.version = 11 : i64} {
  func.func @_matmul_bias_act_kernel(%arg0: i32, %arg1: i32, %arg2: memref<832x450xbf16, #tpu.memory_space<vmem>>, %arg3: memref<450x128xbf16, #tpu.memory_space<vmem>>, %arg4: memref<1x128xf32, #tpu.memory_space<vmem>>, %arg5: memref<832x128xbf16, #tpu.memory_space<vmem>>) attributes {dimension_semantics = [#tpu.dimension_semantics<parallel>, #tpu.dimension_semantics<parallel>], iteration_bounds = array<i64: 2, 1>, scalar_prefetch = 0 : i64, scratch_operands = 0 : i64, tpu.core_type = #tpu.core_type<tc>, window_params = [{transform_indices = @transform_0, window_bounds = array<i64: 832, 450>}, {transform_indices = @transform_1, window_bounds = array<i64: 450, 128>}, {transform_indices = @transform_2, window_bounds = array<i64: 1, 128>}, {transform_indices = @transform_3, window_bounds = array<i64: 832, 128>}]} {
    %c0 = arith.constant 0 : index
    %c0_0 = arith.constant 0 : index
    %0 = vector.load %arg2[%c0, %c0_0] : memref<832x450xbf16, #tpu.memory_space<vmem>>, vector<832x450xbf16>
    %c0_1 = arith.constant 0 : index
    %c0_2 = arith.constant 0 : index
    %1 = vector.load %arg3[%c0_1, %c0_2] : memref<450x128xbf16, #tpu.memory_space<vmem>>, vector<450x128xbf16>
    %cst = arith.constant dense<0.000000e+00> : vector<832x128xf32>
    %2 = tpu.matmul %0, %1, %cst {dimension_numbers = #tpu.dot_dimension_numbers<[1], [0], [0], [1], [0, 0, 1, 1], [], []>} : vector<832x450xbf16>, vector<450x128xbf16>, vector<832x128xf32> -> vector<832x128xf32>
    %c0_3 = arith.constant 0 : index
    %c0_4 = arith.constant 0 : index
    %3 = vector.load %arg4[%c0_3, %c0_4] : memref<1x128xf32, #tpu.memory_space<vmem>>, vector<1x128xf32>
    %4 = vector.broadcast %3 : vector<1x128xf32> to vector<832x128xf32>
    %5 = arith.addf %2, %4 : vector<832x128xf32>
    %cst_5 = arith.constant 0.000000e+00 : f32
    %6 = vector.broadcast %cst_5 : f32 to vector<832x128xf32>
    %7 = arith.maximumf %5, %6 : vector<832x128xf32>
    %8 = arith.truncf %7 : vector<832x128xf32> to vector<832x128xbf16>
    %c0_6 = arith.constant 0 : index
    %c0_7 = arith.constant 0 : index
    %9 = vector.load %arg5[%c0_6, %c0_7] : memref<832x128xbf16, #tpu.memory_space<vmem>>, vector<832x128xbf16>
    tpu.vector_store %arg5[%c0_6, %c0_7], %8 {strides = array<i32>} : memref<832x128xbf16, #tpu.memory_space<vmem>>, vector<832x128xbf16>,
    return
  }
  func.func @transform_0(%arg0: i32, %arg1: i32) -> (i32, i32) {
    %c0_i32 = arith.constant 0 : i32
    %c0_i32_0 = arith.constant 0 : i32
    return %arg0, %c0_i32 : i32, i32
  }
  func.func @transform_1(%arg0: i32, %arg1: i32) -> (i32, i32) {
    %c0_i32 = arith.constant 0 : i32
    %c0_i32_0 = arith.constant 0 : i32
    return %c0_i32, %arg1 : i32, i32
  }
  func.func @transform_2(%arg0: i32, %arg1: i32) -> (i32, i32) {
    %c0_i32 = arith.constant 0 : i32
    %c0_i32_0 = arith.constant 0 : i32
    return %c0_i32, %arg1 : i32, i32
  }
  func.func @transform_3(%arg0: i32, %arg1: i32) -> (i32, i32) {
    %c0_i32 = arith.constant 0 : i32
    return %arg0, %arg1 : i32, i32
  }
}

module attributes {stable_mosaic.version = 11 : i64} {
  func.func @_matmul_bias_act_kernel(%arg0: i32, %arg1: i32, %arg2: memref<384x384xbf16, #tpu.memory_space<vmem>>, %arg3: memref<384x128xbf16, #tpu.memory_space<vmem>>, %arg4: memref<1x128xf32, #tpu.memory_space<vmem>>, %arg5: memref<384x128xbf16, #tpu.memory_space<vmem>>) attributes {dimension_semantics = [#tpu.dimension_semantics<parallel>, #tpu.dimension_semantics<parallel>], iteration_bounds = array<i64: 2, 1>, scalar_prefetch = 0 : i64, scratch_operands = 0 : i64, tpu.core_type = #tpu.core_type<tc>, window_params = [{transform_indices = @transform_0, window_bounds = array<i64: 384, 384>}, {transform_indices = @transform_1, window_bounds = array<i64: 384, 128>}, {transform_indices = @transform_2, window_bounds = array<i64: 1, 128>}, {transform_indices = @transform_3, window_bounds = array<i64: 384, 128>}]} {
    %c0 = arith.constant 0 : index
    %c0_0 = arith.constant 0 : index
    %0 = vector.load %arg2[%c0, %c0_0] : memref<384x384xbf16, #tpu.memory_space<vmem>>, vector<384x384xbf16>
    %c0_1 = arith.constant 0 : index
    %c0_2 = arith.constant 0 : index
    %1 = vector.load %arg3[%c0_1, %c0_2] : memref<384x128xbf16, #tpu.memory_space<vmem>>, vector<384x128xbf16>
    %cst = arith.constant dense<0.000000e+00> : vector<384x128xf32>
    %2 = tpu.matmul %0, %1, %cst {dimension_numbers = #tpu.dot_dimension_numbers<[1], [0], [0], [1], [0, 0, 1, 1], [], []>} : vector<384x384xbf16>, vector<384x128xbf16>, vector<384x128xf32> -> vector<384x128xf32>
    %c0_3 = arith.constant 0 : index
    %c0_4 = arith.constant 0 : index
    %3 = vector.load %arg4[%c0_3, %c0_4] : memref<1x128xf32, #tpu.memory_space<vmem>>, vector<1x128xf32>
    %4 = vector.broadcast %3 : vector<1x128xf32> to vector<384x128xf32>
    %5 = arith.addf %2, %4 : vector<384x128xf32>
    %cst_5 = arith.constant 0.000000e+00 : f32
    %6 = vector.broadcast %cst_5 : f32 to vector<384x128xf32>
    %7 = arith.maximumf %5, %6 : vector<384x128xf32>
    %8 = arith.truncf %7 : vector<384x128xf32> to vector<384x128xbf16>
    %c0_6 = arith.constant 0 : index
    %c0_7 = arith.constant 0 : index
    %9 = vector.load %arg5[%c0_6, %c0_7] : memref<384x128xbf16, #tpu.memory_space<vmem>>, vector<384x128xbf16>
    tpu.vector_store %arg5[%c0_6, %c0_7], %8 {strides = array<i32>} : memref<384x128xbf16, #tpu.memory_space<vmem>>, vector<384x128xbf16>,
    return
  }
  func.func @transform_0(%arg0: i32, %arg1: i32) -> (i32, i32) {
    %c0_i32 = arith.constant 0 : i32
    %c0_i32_0 = arith.constant 0 : i32
    return %arg0, %c0_i32 : i32, i32
  }
  func.func @transform_1(%arg0: i32, %arg1: i32) -> (i32, i32) {
    %c0_i32 = arith.constant 0 : i32
    %c0_i32_0 = arith.constant 0 : i32
    return %c0_i32, %arg1 : i32, i32
  }
  func.func @transform_2(%arg0: i32, %arg1: i32) -> (i32, i32) {
    %c0_i32 = arith.constant 0 : i32
    %c0_i32_0 = arith.constant 0 : i32
    return %c0_i32, %arg1 : i32, i32
  }
  func.func @transform_3(%arg0: i32, %arg1: i32) -> (i32, i32) {
    %c0_i32 = arith.constant 0 : i32
    return %arg0, %arg1 : i32, i32
  }
}

module attributes {stable_mosaic.version = 11 : i64} {
  func.func @_matmul_bias_act_kernel(%arg0: i32, %arg1: i32, %arg2: memref<160x384xbf16, #tpu.memory_space<vmem>>, %arg3: memref<384x256xbf16, #tpu.memory_space<vmem>>, %arg4: memref<1x256xf32, #tpu.memory_space<vmem>>, %arg5: memref<160x256xbf16, #tpu.memory_space<vmem>>) attributes {dimension_semantics = [#tpu.dimension_semantics<parallel>, #tpu.dimension_semantics<parallel>], iteration_bounds = array<i64: 1, 1>, scalar_prefetch = 0 : i64, scratch_operands = 0 : i64, tpu.core_type = #tpu.core_type<tc>, window_params = [{transform_indices = @transform_0, window_bounds = array<i64: 160, 384>}, {transform_indices = @transform_1, window_bounds = array<i64: 384, 256>}, {transform_indices = @transform_2, window_bounds = array<i64: 1, 256>}, {transform_indices = @transform_3, window_bounds = array<i64: 160, 256>}]} {
    %c0 = arith.constant 0 : index
    %c0_0 = arith.constant 0 : index
    %0 = vector.load %arg2[%c0, %c0_0] : memref<160x384xbf16, #tpu.memory_space<vmem>>, vector<160x384xbf16>
    %c0_1 = arith.constant 0 : index
    %c0_2 = arith.constant 0 : index
    %1 = vector.load %arg3[%c0_1, %c0_2] : memref<384x256xbf16, #tpu.memory_space<vmem>>, vector<384x256xbf16>
    %cst = arith.constant dense<0.000000e+00> : vector<160x256xf32>
    %2 = tpu.matmul %0, %1, %cst {dimension_numbers = #tpu.dot_dimension_numbers<[1], [0], [0], [1], [0, 0, 1, 1], [], []>} : vector<160x384xbf16>, vector<384x256xbf16>, vector<160x256xf32> -> vector<160x256xf32>
    %c0_3 = arith.constant 0 : index
    %c0_4 = arith.constant 0 : index
    %3 = vector.load %arg4[%c0_3, %c0_4] : memref<1x256xf32, #tpu.memory_space<vmem>>, vector<1x256xf32>
    %4 = vector.broadcast %3 : vector<1x256xf32> to vector<160x256xf32>
    %5 = arith.addf %2, %4 : vector<160x256xf32>
    %cst_5 = arith.constant 0.000000e+00 : f32
    %6 = vector.broadcast %cst_5 : f32 to vector<160x256xf32>
    %7 = arith.maximumf %5, %6 : vector<160x256xf32>
    %8 = arith.truncf %7 : vector<160x256xf32> to vector<160x256xbf16>
    %c0_6 = arith.constant 0 : index
    %c0_7 = arith.constant 0 : index
    %9 = vector.load %arg5[%c0_6, %c0_7] : memref<160x256xbf16, #tpu.memory_space<vmem>>, vector<160x256xbf16>
    tpu.vector_store %arg5[%c0_6, %c0_7], %8 {strides = array<i32>} : memref<160x256xbf16, #tpu.memory_space<vmem>>, vector<160x256xbf16>,
    return
  }
  func.func @transform_0(%arg0: i32, %arg1: i32) -> (i32, i32) {
    %c0_i32 = arith.constant 0 : i32
    %c0_i32_0 = arith.constant 0 : i32
    return %arg0, %c0_i32 : i32, i32
  }
  func.func @transform_1(%arg0: i32, %arg1: i32) -> (i32, i32) {
    %c0_i32 = arith.constant 0 : i32
    %c0_i32_0 = arith.constant 0 : i32
    return %c0_i32, %arg1 : i32, i32
  }
  func.func @transform_2(%arg0: i32, %arg1: i32) -> (i32, i32) {
    %c0_i32 = arith.constant 0 : i32
    %c0_i32_0 = arith.constant 0 : i32
    return %c0_i32, %arg1 : i32, i32
  }
  func.func @transform_3(%arg0: i32, %arg1: i32) -> (i32, i32) {
    %c0_i32 = arith.constant 0 : i32
    return %arg0, %arg1 : i32, i32
  }
}

module attributes {stable_mosaic.version = 11 : i64} {
  func.func @_matmul_bias_act_kernel(%arg0: i32, %arg1: i32, %arg2: memref<2x5120xbf16, #tpu.memory_space<vmem>>, %arg3: memref<5120x256xbf16, #tpu.memory_space<vmem>>, %arg4: memref<1x256xf32, #tpu.memory_space<vmem>>, %arg5: memref<2x256xbf16, #tpu.memory_space<vmem>>) attributes {dimension_semantics = [#tpu.dimension_semantics<parallel>, #tpu.dimension_semantics<parallel>], iteration_bounds = array<i64: 1, 4>, scalar_prefetch = 0 : i64, scratch_operands = 0 : i64, tpu.core_type = #tpu.core_type<tc>, window_params = [{transform_indices = @transform_0, window_bounds = array<i64: 2, 5120>}, {transform_indices = @transform_1, window_bounds = array<i64: 5120, 256>}, {transform_indices = @transform_2, window_bounds = array<i64: 1, 256>}, {transform_indices = @transform_3, window_bounds = array<i64: 2, 256>}]} {
    %c0 = arith.constant 0 : index
    %c0_0 = arith.constant 0 : index
    %0 = vector.load %arg2[%c0, %c0_0] : memref<2x5120xbf16, #tpu.memory_space<vmem>>, vector<2x5120xbf16>
    %c0_1 = arith.constant 0 : index
    %c0_2 = arith.constant 0 : index
    %1 = vector.load %arg3[%c0_1, %c0_2] : memref<5120x256xbf16, #tpu.memory_space<vmem>>, vector<5120x256xbf16>
    %cst = arith.constant dense<0.000000e+00> : vector<2x256xf32>
    %2 = tpu.matmul %0, %1, %cst {dimension_numbers = #tpu.dot_dimension_numbers<[1], [0], [0], [1], [0, 0, 1, 1], [], []>} : vector<2x5120xbf16>, vector<5120x256xbf16>, vector<2x256xf32> -> vector<2x256xf32>
    %c0_3 = arith.constant 0 : index
    %c0_4 = arith.constant 0 : index
    %3 = vector.load %arg4[%c0_3, %c0_4] : memref<1x256xf32, #tpu.memory_space<vmem>>, vector<1x256xf32>
    %4 = vector.broadcast %3 : vector<1x256xf32> to vector<2x256xf32>
    %5 = arith.addf %2, %4 : vector<2x256xf32>
    %cst_5 = arith.constant 0.000000e+00 : f32
    %6 = vector.broadcast %cst_5 : f32 to vector<2x256xf32>
    %7 = arith.maximumf %5, %6 : vector<2x256xf32>
    %8 = arith.truncf %7 : vector<2x256xf32> to vector<2x256xbf16>
    %c0_6 = arith.constant 0 : index
    %c0_7 = arith.constant 0 : index
    %9 = vector.load %arg5[%c0_6, %c0_7] : memref<2x256xbf16, #tpu.memory_space<vmem>>, vector<2x256xbf16>
    tpu.vector_store %arg5[%c0_6, %c0_7], %8 {strides = array<i32>} : memref<2x256xbf16, #tpu.memory_space<vmem>>, vector<2x256xbf16>,
    return
  }
  func.func @transform_0(%arg0: i32, %arg1: i32) -> (i32, i32) {
    %c0_i32 = arith.constant 0 : i32
    %c0_i32_0 = arith.constant 0 : i32
    return %arg0, %c0_i32 : i32, i32
  }
  func.func @transform_1(%arg0: i32, %arg1: i32) -> (i32, i32) {
    %c0_i32 = arith.constant 0 : i32
    %c0_i32_0 = arith.constant 0 : i32
    return %c0_i32, %arg1 : i32, i32
  }
  func.func @transform_2(%arg0: i32, %arg1: i32) -> (i32, i32) {
    %c0_i32 = arith.constant 0 : i32
    %c0_i32_0 = arith.constant 0 : i32
    return %c0_i32, %arg1 : i32, i32
  }
  func.func @transform_3(%arg0: i32, %arg1: i32) -> (i32, i32) {
    %c0_i32 = arith.constant 0 : i32
    return %arg0, %arg1 : i32, i32
  }
}

module attributes {stable_mosaic.version = 11 : i64} {
  func.func @_matmul_bias_act_kernel(%arg0: i32, %arg1: i32, %arg2: memref<2x1024xbf16, #tpu.memory_space<vmem>>, %arg3: memref<1024x256xbf16, #tpu.memory_space<vmem>>, %arg4: memref<1x256xf32, #tpu.memory_space<vmem>>, %arg5: memref<2x256xbf16, #tpu.memory_space<vmem>>) attributes {dimension_semantics = [#tpu.dimension_semantics<parallel>, #tpu.dimension_semantics<parallel>], iteration_bounds = array<i64: 1, 2>, scalar_prefetch = 0 : i64, scratch_operands = 0 : i64, tpu.core_type = #tpu.core_type<tc>, window_params = [{transform_indices = @transform_0, window_bounds = array<i64: 2, 1024>}, {transform_indices = @transform_1, window_bounds = array<i64: 1024, 256>}, {transform_indices = @transform_2, window_bounds = array<i64: 1, 256>}, {transform_indices = @transform_3, window_bounds = array<i64: 2, 256>}]} {
    %c0 = arith.constant 0 : index
    %c0_0 = arith.constant 0 : index
    %0 = vector.load %arg2[%c0, %c0_0] : memref<2x1024xbf16, #tpu.memory_space<vmem>>, vector<2x1024xbf16>
    %c0_1 = arith.constant 0 : index
    %c0_2 = arith.constant 0 : index
    %1 = vector.load %arg3[%c0_1, %c0_2] : memref<1024x256xbf16, #tpu.memory_space<vmem>>, vector<1024x256xbf16>
    %cst = arith.constant dense<0.000000e+00> : vector<2x256xf32>
    %2 = tpu.matmul %0, %1, %cst {dimension_numbers = #tpu.dot_dimension_numbers<[1], [0], [0], [1], [0, 0, 1, 1], [], []>} : vector<2x1024xbf16>, vector<1024x256xbf16>, vector<2x256xf32> -> vector<2x256xf32>
    %c0_3 = arith.constant 0 : index
    %c0_4 = arith.constant 0 : index
    %3 = vector.load %arg4[%c0_3, %c0_4] : memref<1x256xf32, #tpu.memory_space<vmem>>, vector<1x256xf32>
    %4 = vector.broadcast %3 : vector<1x256xf32> to vector<2x256xf32>
    %5 = arith.addf %2, %4 : vector<2x256xf32>
    %cst_5 = arith.constant 0.000000e+00 : f32
    %6 = vector.broadcast %cst_5 : f32 to vector<2x256xf32>
    %7 = arith.maximumf %5, %6 : vector<2x256xf32>
    %8 = arith.truncf %7 : vector<2x256xf32> to vector<2x256xbf16>
    %c0_6 = arith.constant 0 : index
    %c0_7 = arith.constant 0 : index
    %9 = vector.load %arg5[%c0_6, %c0_7] : memref<2x256xbf16, #tpu.memory_space<vmem>>, vector<2x256xbf16>
    tpu.vector_store %arg5[%c0_6, %c0_7], %8 {strides = array<i32>} : memref<2x256xbf16, #tpu.memory_space<vmem>>, vector<2x256xbf16>,
    return
  }
  func.func @transform_0(%arg0: i32, %arg1: i32) -> (i32, i32) {
    %c0_i32 = arith.constant 0 : i32
    %c0_i32_0 = arith.constant 0 : i32
    return %arg0, %c0_i32 : i32, i32
  }
  func.func @transform_1(%arg0: i32, %arg1: i32) -> (i32, i32) {
    %c0_i32 = arith.constant 0 : i32
    %c0_i32_0 = arith.constant 0 : i32
    return %c0_i32, %arg1 : i32, i32
  }
  func.func @transform_2(%arg0: i32, %arg1: i32) -> (i32, i32) {
    %c0_i32 = arith.constant 0 : i32
    %c0_i32_0 = arith.constant 0 : i32
    return %c0_i32, %arg1 : i32, i32
  }
  func.func @transform_3(%arg0: i32, %arg1: i32) -> (i32, i32) {
    %c0_i32 = arith.constant 0 : i32
    return %arg0, %arg1 : i32, i32
  }
}

module attributes {stable_mosaic.version = 11 : i64} {
  func.func @_matmul_bias_act_kernel(%arg0: i32, %arg1: i32, %arg2: memref<2x512xbf16, #tpu.memory_space<vmem>>, %arg3: memref<512x128xbf16, #tpu.memory_space<vmem>>, %arg4: memref<1x128xf32, #tpu.memory_space<vmem>>, %arg5: memref<2x128xf32, #tpu.memory_space<vmem>>) attributes {dimension_semantics = [#tpu.dimension_semantics<parallel>, #tpu.dimension_semantics<parallel>], iteration_bounds = array<i64: 1, 1>, scalar_prefetch = 0 : i64, scratch_operands = 0 : i64, tpu.core_type = #tpu.core_type<tc>, window_params = [{transform_indices = @transform_0, window_bounds = array<i64: 2, 512>}, {transform_indices = @transform_1, window_bounds = array<i64: 512, 128>}, {transform_indices = @transform_2, window_bounds = array<i64: 1, 128>}, {transform_indices = @transform_3, window_bounds = array<i64: 2, 128>}]} {
    %c0 = arith.constant 0 : index
    %c0_0 = arith.constant 0 : index
    %0 = vector.load %arg2[%c0, %c0_0] : memref<2x512xbf16, #tpu.memory_space<vmem>>, vector<2x512xbf16>
    %c0_1 = arith.constant 0 : index
    %c0_2 = arith.constant 0 : index
    %1 = vector.load %arg3[%c0_1, %c0_2] : memref<512x128xbf16, #tpu.memory_space<vmem>>, vector<512x128xbf16>
    %cst = arith.constant dense<0.000000e+00> : vector<2x128xf32>
    %2 = tpu.matmul %0, %1, %cst {dimension_numbers = #tpu.dot_dimension_numbers<[1], [0], [0], [1], [0, 0, 1, 1], [], []>} : vector<2x512xbf16>, vector<512x128xbf16>, vector<2x128xf32> -> vector<2x128xf32>
    %c0_3 = arith.constant 0 : index
    %c0_4 = arith.constant 0 : index
    %3 = vector.load %arg4[%c0_3, %c0_4] : memref<1x128xf32, #tpu.memory_space<vmem>>, vector<1x128xf32>
    %4 = vector.broadcast %3 : vector<1x128xf32> to vector<2x128xf32>
    %5 = arith.addf %2, %4 : vector<2x128xf32>
    %6 = arith.negf %5 : vector<2x128xf32>
    %7 = math.exp %6 : vector<2x128xf32>
    %cst_5 = arith.constant 1.000000e+00 : f32
    %8 = vector.broadcast %cst_5 : f32 to vector<2x128xf32>
    %9 = arith.addf %8, %7 : vector<2x128xf32>
    %10 = arith.divf %8, %9 : vector<2x128xf32>
    %c0_6 = arith.constant 0 : index
    %c0_7 = arith.constant 0 : index
    %11 = vector.load %arg5[%c0_6, %c0_7] : memref<2x128xf32, #tpu.memory_space<vmem>>, vector<2x128xf32>
    tpu.vector_store %arg5[%c0_6, %c0_7], %10 {strides = array<i32>} : memref<2x128xf32, #tpu.memory_space<vmem>>, vector<2x128xf32>,
    return
  }
  func.func @transform_0(%arg0: i32, %arg1: i32) -> (i32, i32) {
    %c0_i32 = arith.constant 0 : i32
    %c0_i32_0 = arith.constant 0 : i32
    return %arg0, %c0_i32 : i32, i32
  }
  func.func @transform_1(%arg0: i32, %arg1: i32) -> (i32, i32) {
    %c0_i32 = arith.constant 0 : i32
    %c0_i32_0 = arith.constant 0 : i32
    return %c0_i32, %arg1 : i32, i32
  }
  func.func @transform_2(%arg0: i32, %arg1: i32) -> (i32, i32) {
    %c0_i32 = arith.constant 0 : i32
    %c0_i32_0 = arith.constant 0 : i32
    return %c0_i32, %arg1 : i32, i32
  }
  func.func @transform_3(%arg0: i32, %arg1: i32) -> (i32, i32) {
    %c0_i32 = arith.constant 0 : i32
    return %arg0, %arg1 : i32, i32
  }
}

</mosaic_0001>

<bundles_post_ra>
// kernel: capsule_net_forward.6
= control target key start
LH: loop header
LB: loop body
LE: loop exit
PB: predicated region body
PF: predicated region fallthrough
CT: control target
= control target key end

     0   :  { %s4887_s12 = smov 0   ;;  %s4889_s13 = smov 0   ;;  %s5473_s0 = inlined_call_operand.vmem [shape: bf16[1664,450], index: 0, kind: input, shape index: {}]   ;;  %s5474_s1 = inlined_call_operand.vmem [shape: bf16[450,128], index: 1, kind: input, shape index: {}]   ;;  %s5475_s2 = inlined_call_operand.vmem [shape: f32[1,128], index: 2, kind: input, shape index: {}]   ;;  %s5476_s3 = inlined_call_operand.vmem [shape: bf16[1664,128], index: 3, kind: output, shape index: {}]  }
   0x1   :  { %s4891_s14 = smov 0  }
   0x2 LB: > { %s25_s15 = sadd.s32 1, %s4860_s13  ;;  %p3451_p0 = scmp.ge.s32.totalorder %s4864_s14, 1  ;;  %s4864_s14 = sphi %s4891_s14, %s13_s14   ;;  %s4860_s13 = sphi %s4889_s13, %s5478_s13   ;;  %s4856_s12 = sphi %s4887_s12, %s5477_s12  }
   0x3   : > { %p27_p1 = scmp.ge.s32.totalorder %s25_s15, 2  ;;  %p170_p2 = scmp.lt.s32.totalorder %s4864_s14, 3 }
   0x5   : > { %s5480_s15 = smov (%p27_p1, %s25_s15), 0  ;;  %p171_p3 = pnand %p3451_p0, %p170_p2 }
   0x6   : > { %v4500_v0 = vld [vmem:[%s5474_s1] sm:$0xff] (!%p171_p3)   ;;  %v4866_v1 = vmov (!%p171_p3), 0   ;;  %v4501_v2 = vld [vmem:[%s5474_s1 + $0x8] sm:$0xff] (!%p171_p3)   ;;  %v4502_v5 = vld [vmem:[%s5474_s1 + $0x10] sm:$0xff] (!%p171_p3)   ;;  %s205_s30 = smul.u32 (!%p171_p3), 104, %s4856_s12  ;;  %vm1660_vm0 = vcmask (!%p171_p3), 539648  }
   0x7   : > { %174 = sbr.rel (%p171_p3) target bundleno = 702 (0x2be), region = 32  ;;  %1821 = vmatprep.subr.bf16.mxu1 (!%p171_p3), %v4866_v1  ;;  %2270 = vmatprep.subr.bf16.mxu0 (!%p171_p3), %v4866_v1  ;;  %v4503_v3 = vld [vmem:[%s5474_s1 + $0x80] sm:$0xff] (!%p171_p3)   ;;  %v4505_v4 = vld [vmem:[%s5474_s1 + $0x88] sm:$0xff] (!%p171_p3)   ;;  %v4507_v6 = vld [vmem:[%s5474_s1 + $0x90] sm:$0xff] (!%p171_p3)   ;;  %vm1817_vm1 = vcmask (!%p171_p3), 1040384  }
   0x8   : > { %1822 = vmatpush1.bf16.msra.mxu1 (!%p171_p3), %v4500_v0  ;;  %2271 = vmatpush1.bf16.msra.mxu0 (!%p171_p3), %v4503_v3  ;;  %v4504_v7 = vld [vmem:[%s5474_s1 + $0x18] sm:$0xff] (!%p171_p3)   ;;  %v4506_v9 = vld [vmem:[%s5474_s1 + $0x20] sm:$0xff] (!%p171_p3)   ;;  %p206_p4 = scmp.lt.s32.totalorder (!%p171_p3), %s205_s30, 207  ;;  %v4508_v11 = vld [vmem:[%s5474_s1 + $0x28] sm:$0xff] (!%p171_p3)  }
   0x9   : > { %1823 = vmatprep.subr.bf16.mxu1 (!%p171_p3), %v4866_v1  ;;  %2272 = vmatprep.subr.bf16.mxu0 (!%p171_p3), %v4866_v1  ;;  %v4509_v8 = vld [vmem:[%s5474_s1 + $0x98] sm:$0xff] (!%p171_p3)   ;;  %v4511_v10 = vld [vmem:[%s5474_s1 + $0xa0] sm:$0xff] (!%p171_p3)   ;;  %v4513_v12 = vld [vmem:[%s5474_s1 + $0xa8] sm:$0xff] (!%p171_p3)  }
   0xa   : > { %v4510_v13 = vld [vmem:[%s5474_s1 + $0x30] sm:$0xff] (!%p171_p3)   ;;  %v4512_v15 = vld [vmem:[%s5474_s1 + $0x38] sm:$0xff] (!%p171_p3)   ;;  %v4514_v18 = vld [vmem:[%s5474_s1 + $0x40] sm:$0xff] (!%p171_p3)  }
   0xb   : > { %v4515_v14 = vld [vmem:[%s5474_s1 + $0xb0] sm:$0xff] (!%p171_p3)   ;;  %v4517_v16 = vld [vmem:[%s5474_s1 + $0xb8] sm:$0xff] (!%p171_p3)   ;;  %v4519_v20 = vld [vmem:[%s5474_s1 + $0xc0] sm:$0xff] (!%p171_p3)  }
   0xc   : > { %1824 = vmatpush1.bf16.msra.mxu1 (!%p171_p3), %v4501_v2  ;;  %2273 = vmatpush1.bf16.msra.mxu0 (!%p171_p3), %v4505_v4  ;;  %v4516_v21 = vld [vmem:[%s5474_s1 + $0x48] sm:$0xff] (!%p171_p3)   ;;  %v4518_v23 = vld [vmem:[%s5474_s1 + $0x50] sm:$0xff] (!%p171_p3)   ;;  %v4520_v25 = vld [vmem:[%s5474_s1 + $0x58] sm:$0xff] (!%p171_p3)  }
   0xd   : > { %1825 = vmatprep.subr.bf16.mxu1 (!%p171_p3), %v4866_v1  ;;  %2274 = vmatprep.subr.bf16.mxu0 (!%p171_p3), %v4866_v1  ;;  %v4521_v22 = vld [vmem:[%s5474_s1 + $0xc8] sm:$0xff] (!%p171_p3)   ;;  %v4523_v24 = vld [vmem:[%s5474_s1 + $0xd0] sm:$0xff] (!%p171_p3)   ;;  %v4525_v26 = vld [vmem:[%s5474_s1 + $0xd8] sm:$0xff] (!%p171_p3)  }
   0xe   : > { %s5482_s30 = smov (!%p206_p4, %s205_s30), 207  ;;  %v4522_v27 = vld [vmem:[%s5474_s1 + $0x60] sm:$0xff]   ;;  %v4524_v29 = vld [vmem:[%s5474_s1 + $0x68] sm:$0xff]   ;;  %v4526_v33 = vld [vmem:[%s5474_s1 + $0x70] sm:$0xff]  }
   0xf   : > { %s3851_s19 = sshll.u32 %s5482_s30, 4  ;;  %v4527_v28 = vld [vmem:[%s5474_s1 + $0xe0] ss:$0 sps:$4 sm:$0x11]   ;;  %v4528_v34 = vld [vmem:[%s5474_s1 + $0x78] sm:$0xff]   ;;  %s3454_s9 = sshll.u32 %s5482_s30, 2 }
  0x10   : > { %1826 = vmatpush1.bf16.msra.mxu1 %v4502_v5  ;;  %2275 = vmatpush1.bf16.msra.mxu0 %v4507_v6  ;;  %s4973_s26 = scalar_lea.vmem %s5473_s0, %s3851_s19  ;;  %v1819_v30 = vsel %vm1817_vm1, %v4527_v28, 0  ;;  %s5189_s12 = scalar_lea.vmem %s5476_s3, %s3454_s9 }
  0x11   : > { %1827 = vmatprep.subr.bf16.mxu1 %v4866_v1  ;;  %2276 = vmatprep.subr.bf16.mxu0 %v4866_v1  ;;  %v4531_v17 = vld [vmem:[%s4973_s26 + $0xc] ss:$16 sps:$4 sm:$0xff]   ;;  %v4534_v19 = vld [vmem:[%s4973_s26 + $0x4] ss:$16 sps:$4 sm:$0xff]   ;;  %v4529_v31 = vld [vmem:[%s4973_s26 + $0x8] ss:$16 sps:$4 sm:$0xff]  }
  0x12   : > { %3693 = vmatprep.mubr.msk.bf16.mxu0 %vm1660_vm0, %v4531_v17  ;;  %1853 = vmatprep.mubr.bf16.mxu1 %v4534_v19  ;;  %v4535_v32 = vld [vmem:[%s4973_s26 + $0x2c] ss:$16 sps:$4 sm:$0xff]   ;;  %v4532_v35 = vld [vmem:[%s4973_s26] ss:$16 sps:$4 sm:$0xff]   ;;  %v4539_v36 = vld [vmem:[%s4973_s26 + $0x28] ss:$16 sps:$4 sm:$0xff]  }
  0x13   : > { %v4541_v37 = vld [vmem:[%s4973_s26 + $0x4c] ss:$16 sps:$4 sm:$0xff]   ;;  %v4537_v38 = vld [vmem:[%s4973_s26 + $0x24] ss:$16 sps:$4 sm:$0xff]   ;;  %v4540_v39 = vld [vmem:[%s4973_s26 + $0x20] ss:$16 sps:$4 sm:$0xff]  }
  0x14   : > { %1828 = vmatpush1.bf16.msra.mxu1 %v4504_v7  ;;  %2277 = vmatpush1.bf16.msra.mxu0 %v4509_v8  ;;  %v4545_v40 = vld [vmem:[%s4973_s26 + $0x48] ss:$16 sps:$4 sm:$0xff]   ;;  %v4547_v41 = vld [vmem:[%s4973_s26 + $0x6c] ss:$16 sps:$4 sm:$0xff]   ;;  %v4543_v42 = vld [vmem:[%s4973_s26 + $0x44] ss:$16 sps:$4 sm:$0xff]  }
  0x15   : > { %1829 = vmatprep.subr.bf16.mxu1 %v4866_v1  ;;  %2278 = vmatprep.subr.bf16.mxu0 %v4866_v1  ;;  %v4546_v43 = vld [vmem:[%s4973_s26 + $0x40] ss:$16 sps:$4 sm:$0xff]   ;;  %v4551_v44 = vld [vmem:[%s4973_s26 + $0x68] ss:$16 sps:$4 sm:$0xff]   ;;  %v4553_v45 = vld [vmem:[%s4973_s26 + $0x8c] ss:$16 sps:$4 sm:$0xff]  }
  0x16   : > { %v4549_v46 = vld [vmem:[%s4973_s26 + $0x64] ss:$16 sps:$4 sm:$0xff]   ;;  %v4557_v47 = vld [vmem:[%s4973_s26 + $0x88] ss:$16 sps:$4 sm:$0xff]   ;;  %v4552_v48 = vld [vmem:[%s4973_s26 + $0x60] ss:$16 sps:$4 sm:$0xff]  }
  0x17   : > { %v4559_v49 = vld [vmem:[%s4973_s26 + $0xac] ss:$16 sps:$4 sm:$0xff]   ;;  %v4555_v50 = vld [vmem:[%s4973_s26 + $0x84] ss:$16 sps:$4 sm:$0xff]   ;;  %v4563_v51 = vld [vmem:[%s4973_s26 + $0xa8] ss:$16 sps:$4 sm:$0xff]  }
  0x18   : > { %1830 = vmatpush1.bf16.msra.mxu1 %v4506_v9  ;;  %2279 = vmatpush1.bf16.msra.mxu0 %v4511_v10  ;;  %v4558_v52 = vld [vmem:[%s4973_s26 + $0x80] ss:$16 sps:$4 sm:$0xff]   ;;  %v4565_v53 = vld [vmem:[%s4973_s26 + $0xcc] ss:$16 sps:$4 sm:$0xff]   ;;  %v4561_v54 = vld [vmem:[%s4973_s26 + $0xa4] ss:$16 sps:$4 sm:$0xff]  }
  0x19   : > { %1831 = vmatprep.subr.bf16.mxu1 %v4866_v1  ;;  %2280 = vmatprep.subr.bf16.mxu0 %v4866_v1  ;;  %v4569_v55 = vld [vmem:[%s4973_s26 + $0xc8] ss:$16 sps:$4 sm:$0xff]   ;;  %v4564_v56 = vld [vmem:[%s4973_s26 + $0xa0] ss:$16 sps:$4 sm:$0xff]   ;;  %v4571_v57 = vld [vmem:[%s4973_s26 + $0xec] ss:$16 sps:$4 sm:$0xff]  }
  0x1a   : > { %v4567_v58 = vld [vmem:[%s4973_s26 + $0xc4] ss:$16 sps:$4 sm:$0xff]   ;;  %v4575_v59 = vld [vmem:[%s4973_s26 + $0xe8] ss:$16 sps:$4 sm:$0xff]   ;;  %v4570_v60 = vld [vmem:[%s4973_s26 + $0xc0] ss:$16 sps:$4 sm:$0xff]  }
  0x1b   : > { %v4577_v61 = vld [vmem:[%s4973_s26 + $0x10c] ss:$16 sps:$4 sm:$0xff]   ;;  %v4573_v62 = vld [vmem:[%s4973_s26 + $0xe4] ss:$16 sps:$4 sm:$0xff]   ;;  %v4581_v63 = vld [vmem:[%s4973_s26 + $0x108] ss:$16 sps:$4 sm:$0xff]  }
  0x1c   : > { %1832 = vmatpush1.bf16.msra.mxu1 %v4508_v11  ;;  %2281 = vmatpush1.bf16.msra.mxu0 %v4513_v12  ;;  %v4576_v0 = vld [vmem:[%s4973_s26 + $0xe0] ss:$16 sps:$4 sm:$0xff]   ;;  %v4579_v2 = vld [vmem:[%s4973_s26 + $0x104] ss:$16 sps:$4 sm:$0xff]   ;;  %v4587_v3 = vld [vmem:[%s4973_s26 + $0x128] ss:$16 sps:$4 sm:$0xff]  }
  0x1d   : > { %1833 = vmatprep.subr.bf16.mxu1 %v4866_v1  ;;  %2282 = vmatprep.subr.bf16.mxu0 %v4866_v1  ;;  %v4582_v4 = vld [vmem:[%s4973_s26 + $0x100] ss:$16 sps:$4 sm:$0xff]   ;;  %v4589_v5 = vld [vmem:[%s4973_s26 + $0x14c] ss:$16 sps:$4 sm:$0xff]   ;;  %v4585_v6 = vld [vmem:[%s4973_s26 + $0x124] ss:$16 sps:$4 sm:$0xff]  }
  0x1e   : > { %v4593_v7 = vld [vmem:[%s4973_s26 + $0x148] ss:$16 sps:$4 sm:$0xff]   ;;  %v4588_v8 = vld [vmem:[%s4973_s26 + $0x120] ss:$16 sps:$4 sm:$0xff]   ;;  %v4595_v9 = vld [vmem:[%s4973_s26 + $0x16c] ss:$16 sps:$4 sm:$0xff]  }
  0x1f   : > { %v4591_v10 = vld [vmem:[%s4973_s26 + $0x144] ss:$16 sps:$4 sm:$0xff]   ;;  %v4599_v11 = vld [vmem:[%s4973_s26 + $0x168] ss:$16 sps:$4 sm:$0xff]   ;;  %v4594_v12 = vld [vmem:[%s4973_s26 + $0x140] ss:$16 sps:$4 sm:$0xff]  }
  0x20   : > { %1834 = vmatpush1.bf16.msra.mxu1 %v4510_v13  ;;  %2283 = vmatpush1.bf16.msra.mxu0 %v4515_v14  ;;  %v4601_v13 = vld [vmem:[%s4973_s26 + $0x18c] ss:$16 sps:$4 sm:$0xff]   ;;  %v4597_v14 = vld [vmem:[%s4973_s26 + $0x164] ss:$16 sps:$4 sm:$0xff]   ;;  %v4611_v19 = vld [vmem:[%s4973_s26 + $0x1a8] ss:$16 sps:$4 sm:$0xff]  }
  0x21   : > { %1835 = vmatprep.subr.bf16.mxu1 %v4866_v1  ;;  %2284 = vmatprep.subr.bf16.mxu0 %v4866_v1  ;;  %v4607_v17 = vld [vmem:[%s4973_s26 + $0x1ac] ss:$16 sps:$4 sm:$0xff]   ;;  %v4618_v28 = vld [vmem:[%s4973_s26 + $0x1c0] ss:$16 sps:$4 sm:$0xff]  }
  0x24   : > { %1836 = vmatpush1.bf16.msra.mxu1 %v4512_v15  ;;  %2285 = vmatpush1.bf16.msra.mxu0 %v4517_v16  ;;  %v4605_v15 = vld [vmem:[%s4973_s26 + $0x188] ss:$16 sps:$4 sm:$0xff]   ;;  %v4600_v16 = vld [vmem:[%s4973_s26 + $0x160] ss:$16 sps:$4 sm:$0xff]  }
  0x25   : > { %1837 = vmatprep.subr.bf16.mxu1 %v4866_v1  ;;  %2286 = vmatprep.subr.bf16.mxu0 %v4866_v1 }
  0x28   : > { %1838 = vmatpush1.bf16.msra.mxu1 %v4514_v18  ;;  %2287 = vmatpush1.bf16.msra.mxu0 %v4519_v20  ;;  %v4603_v18 = vld [vmem:[%s4973_s26 + $0x184] ss:$16 sps:$4 sm:$0xff]   ;;  %v4606_v20 = vld [vmem:[%s4973_s26 + $0x180] ss:$16 sps:$4 sm:$0xff]  }
  0x29   : > { %1839 = vmatprep.subr.bf16.mxu1 %v4866_v1  ;;  %2288 = vmatprep.subr.bf16.mxu0 %v4866_v1 }
  0x2c   : > { %1840 = vmatpush1.bf16.msra.mxu1 %v4516_v21  ;;  %2289 = vmatpush1.bf16.msra.mxu0 %v4521_v22  ;;  %v4613_v21 = vld [vmem:[%s4973_s26 + $0x1cc] ss:$16 sps:$4 sm:$0xff]   ;;  %v4609_v22 = vld [vmem:[%s4973_s26 + $0x1a4] ss:$16 sps:$4 sm:$0xff]  }
  0x2d   : > { %1841 = vmatprep.subr.bf16.mxu1 %v4866_v1  ;;  %2290 = vmatprep.subr.bf16.mxu0 %v4866_v1 }
  0x30   : > { %1842 = vmatpush1.bf16.msra.mxu1 %v4518_v23  ;;  %2291 = vmatpush1.bf16.msra.mxu0 %v4523_v24  ;;  %v4617_v23 = vld [vmem:[%s4973_s26 + $0x1c8] ss:$16 sps:$4 sm:$0xff]   ;;  %v4612_v24 = vld [vmem:[%s4973_s26 + $0x1a0] ss:$16 sps:$4 sm:$0xff]  }
  0x31   : > { %1843 = vmatprep.subr.bf16.mxu1 %v4866_v1  ;;  %2292 = vmatprep.subr.bf16.mxu0 %v4866_v1 }
  0x34   : > { %1844 = vmatpush1.bf16.msra.mxu1 %v4520_v25  ;;  %2293 = vmatpush1.bf16.msra.mxu0 %v4525_v26  ;;  %v4619_v25 = vld [vmem:[%s4973_s26 + $0x1ec] ss:$16 sps:$4 sm:$0xff]   ;;  %v4615_v26 = vld [vmem:[%s4973_s26 + $0x1c4] ss:$16 sps:$4 sm:$0xff]  }
  0x35   : > { %1845 = vmatprep.subr.bf16.mxu1 %v4866_v1  ;;  %2294 = vmatprep.subr.bf16.mxu0 %v4866_v1 }
  0x38   : > { %1846 = vmatpush1.bf16.msra.mxu1 %v4522_v27  ;;  %2295 = vmatpush1.bf16.msra.mxu0 %v1819_v30  ;;  %v4623_v27 = vld [vmem:[%s4973_s26 + $0x1e8] ss:$16 sps:$4 sm:$0xff]   ;;  %v4621_v30 = vld [vmem:[%s4973_s26 + $0x1e4] ss:$16 sps:$4 sm:$0xff]  }
  0x39   : > { %1847 = vmatprep.subr.bf16.mxu1 %v4866_v1 }
  0x3b   : > { %2303 = vmatmul.mubr.bf16.vlgmr.msra.gmra.mrb[0].mxu0 %v4529_v31  ;;  %v4629_v31 = vld [vmem:[%s4973_s26 + $0x208] ss:$16 sps:$4 sm:$0xff]  }
  0x3c   : > { %1848 = vmatpush1.bf16.msra.mxu1 %v4524_v29  ;;  %3694 = vmatprep.mubr.msk.bf16.mxu0 %vm1660_vm0, %v4535_v32  ;;  %v4625_v29 = vld [vmem:[%s4973_s26 + $0x20c] ss:$16 sps:$4 sm:$0xff]   ;;  %v4624_v32 = vld [vmem:[%s4973_s26 + $0x1e0] ss:$16 sps:$4 sm:$0xff]  }
  0x3d   : > { %1849 = vmatprep.subr.bf16.mxu1 %v4866_v1 }
  0x40   : > { %1850 = vmatpush1.bf16.msra.mxu1 %v4526_v33  ;;  %v4631_v33 = vld [vmem:[%s4973_s26 + $0x22c] ss:$16 sps:$4 sm:$0xff]  }
  0x41   : > { %1851 = vmatprep.subr.bf16.mxu1 %v4866_v1  ;;  %v4583_v1 = vld [vmem:[%s4973_s26 + $0x12c] ss:$16 sps:$4 sm:$0xff]  }
  0x43   : > { %2311 = vmatmul.mubr.bf16.gmra.mrb[4].mxu0 %v4539_v36  ;;  %v4630_v36 = vld [vmem:[%s4973_s26 + $0x200] ss:$16 sps:$4 sm:$0xff]  }
  0x44   : > { %1852 = vmatpush1.bf16.msra.mxu1 %v4528_v34  ;;  %3695 = vmatprep.mubr.msk.bf16.mxu0 %vm1660_vm0, %v4541_v37  ;;  %v4627_v34 = vld [vmem:[%s4973_s26 + $0x204] ss:$16 sps:$4 sm:$0xff]   ;;  %v4637_v37 = vld [vmem:[%s4973_s26 + $0x24c] ss:$16 sps:$4 sm:$0xff]  }
  0x47   : > { %1854 = vmatmul.mubr.bf16.vlgmr.msra.gmra.mrb[0].mxu1 %v4532_v35  ;;  %v4635_v35 = vld [vmem:[%s4973_s26 + $0x228] ss:$16 sps:$4 sm:$0xff]  }
  0x48   : > { %1861 = vmatprep.mubr.bf16.mxu1 %v4537_v38  ;;  %v4633_v38 = vld [vmem:[%s4973_s26 + $0x224] ss:$16 sps:$4 sm:$0xff]  }
  0x4b   : > { %2319 = vmatmul.mubr.bf16.gmra.mrb[8].mxu0 %v4545_v40  ;;  %v4636_v40 = vld [vmem:[%s4973_s26 + $0x220] ss:$16 sps:$4 sm:$0xff]  }
  0x4c   : > { %3696 = vmatprep.mubr.msk.bf16.mxu0 %vm1660_vm0, %v4547_v41  ;;  %v4643_v41 = vld [vmem:[%s4973_s26 + $0x26c] ss:$16 sps:$4 sm:$0xff]  }
  0x4f   : > { %1862 = vmatmul.mubr.bf16.gmra.mrb[4].mxu1 %v4540_v39  ;;  %v4641_v39 = vld [vmem:[%s4973_s26 + $0x248] ss:$16 sps:$4 sm:$0xff]  }
  0x50   : > { %1869 = vmatprep.mubr.bf16.mxu1 %v4543_v42  ;;  %v4639_v42 = vld [vmem:[%s4973_s26 + $0x244] ss:$16 sps:$4 sm:$0xff]  }
  0x53   : > { %2327 = vmatmul.mubr.bf16.gmra.mrb[12].mxu0 %v4551_v44  ;;  %v4642_v44 = vld [vmem:[%s4973_s26 + $0x240] ss:$16 sps:$4 sm:$0xff]  }
  0x54   : > { %3697 = vmatprep.mubr.msk.bf16.mxu0 %vm1660_vm0, %v4553_v45  ;;  %v4649_v45 = vld [vmem:[%s4973_s26 + $0x28c] ss:$16 sps:$4 sm:$0xff]  }
  0x57   : > { %1870 = vmatmul.mubr.bf16.gmra.mrb[8].mxu1 %v4546_v43  ;;  %v4647_v43 = vld [vmem:[%s4973_s26 + $0x268] ss:$16 sps:$4 sm:$0xff]  }
  0x58   : > { %1877 = vmatprep.mubr.bf16.mxu1 %v4549_v46  ;;  %v4645_v46 = vld [vmem:[%s4973_s26 + $0x264] ss:$16 sps:$4 sm:$0xff]  }
  0x5b   : > { %2335 = vmatmul.mubr.bf16.gmra.mrb[16].mxu0 %v4557_v47  ;;  %v4653_v47 = vld [vmem:[%s4973_s26 + $0x288] ss:$16 sps:$4 sm:$0xff]  }
  0x5c   : > { %3698 = vmatprep.mubr.msk.bf16.mxu0 %vm1660_vm0, %v4559_v49  ;;  %v4655_v49 = vld [vmem:[%s4973_s26 + $0x2ac] ss:$16 sps:$4 sm:$0xff]  }
  0x5f   : > { %1878 = vmatmul.mubr.bf16.gmra.mrb[12].mxu1 %v4552_v48  ;;  %v4648_v48 = vld [vmem:[%s4973_s26 + $0x260] ss:$16 sps:$4 sm:$0xff]  }
  0x60   : > { %1885 = vmatprep.mubr.bf16.mxu1 %v4555_v50  ;;  %v4651_v50 = vld [vmem:[%s4973_s26 + $0x284] ss:$16 sps:$4 sm:$0xff]  }
  0x63   : > { %2343 = vmatmul.mubr.bf16.gmra.mrb[20].mxu0 %v4563_v51  ;;  %v4659_v51 = vld [vmem:[%s4973_s26 + $0x2a8] ss:$16 sps:$4 sm:$0xff]  }
  0x64   : > { %3699 = vmatprep.mubr.msk.bf16.mxu0 %vm1660_vm0, %v4565_v53  ;;  %v4661_v53 = vld [vmem:[%s4973_s26 + $0x2cc] ss:$16 sps:$4 sm:$0xff]  }
  0x67   : > { %1886 = vmatmul.mubr.bf16.gmra.mrb[16].mxu1 %v4558_v52  ;;  %v4654_v52 = vld [vmem:[%s4973_s26 + $0x280] ss:$16 sps:$4 sm:$0xff]  }
  0x68   : > { %1893 = vmatprep.mubr.bf16.mxu1 %v4561_v54  ;;  %v4657_v54 = vld [vmem:[%s4973_s26 + $0x2a4] ss:$16 sps:$4 sm:$0xff]  }
  0x6b   : > { %2351 = vmatmul.mubr.bf16.gmra.mrb[24].mxu0 %v4569_v55  ;;  %v4665_v55 = vld [vmem:[%s4973_s26 + $0x2c8] ss:$16 sps:$4 sm:$0xff]  }
  0x6c   : > { %3700 = vmatprep.mubr.msk.bf16.mxu0 %vm1660_vm0, %v4571_v57  ;;  %v4667_v57 = vld [vmem:[%s4973_s26 + $0x2ec] ss:$16 sps:$4 sm:$0xff]  }
  0x6f   : > { %1894 = vmatmul.mubr.bf16.gmra.mrb[20].mxu1 %v4564_v56  ;;  %v4660_v56 = vld [vmem:[%s4973_s26 + $0x2a0] ss:$16 sps:$4 sm:$0xff]  }
  0x70   : > { %1901 = vmatprep.mubr.bf16.mxu1 %v4567_v58  ;;  %v4663_v58 = vld [vmem:[%s4973_s26 + $0x2c4] ss:$16 sps:$4 sm:$0xff]  }
  0x73   : > { %2359 = vmatmul.mubr.bf16.gmra.mrb[28].mxu0 %v4575_v59  ;;  %v4671_v59 = vld [vmem:[%s4973_s26 + $0x2e8] ss:$16 sps:$4 sm:$0xff]  }
  0x74   : > { %3701 = vmatprep.mubr.msk.bf16.mxu0 %vm1660_vm0, %v4577_v61  ;;  %v4673_v61 = vld [vmem:[%s4973_s26 + $0x30c] ss:$16 sps:$4 sm:$0xff]  }
  0x77   : > { %1902 = vmatmul.mubr.bf16.gmra.mrb[24].mxu1 %v4570_v60  ;;  %v4666_v60 = vld [vmem:[%s4973_s26 + $0x2c0] ss:$16 sps:$4 sm:$0xff]  }
  0x78   : > { %1909 = vmatprep.mubr.bf16.mxu1 %v4573_v62  ;;  %v4669_v62 = vld [vmem:[%s4973_s26 + $0x2e4] ss:$16 sps:$4 sm:$0xff]  }
  0x7b   : > { %2367 = vmatmul.mubr.bf16.gmra.mrb[32].mxu0 %v4581_v63  ;;  %v4677_v63 = vld [vmem:[%s4973_s26 + $0x308] ss:$16 sps:$4 sm:$0xff]  }
  0x7c   : > { %3702 = vmatprep.mubr.msk.bf16.mxu0 %vm1660_vm0, %v4583_v1  ;;  %v4679_v1 = vld [vmem:[%s4973_s26 + $0x32c] ss:$16 sps:$4 sm:$0xff]  }
  0x7f   : > { %1910 = vmatmul.mubr.bf16.gmra.mrb[28].mxu1 %v4576_v0  ;;  %v4672_v0 = vld [vmem:[%s4973_s26 + $0x2e0] ss:$16 sps:$4 sm:$0xff]  }
  0x80   : > { %1917 = vmatprep.mubr.bf16.mxu1 %v4579_v2  ;;  %v4675_v2 = vld [vmem:[%s4973_s26 + $0x304] ss:$16 sps:$4 sm:$0xff]  }
  0x83   : > { %2375 = vmatmul.mubr.bf16.gmra.mrb[36].mxu0 %v4587_v3  ;;  %v4683_v3 = vld [vmem:[%s4973_s26 + $0x328] ss:$16 sps:$4 sm:$0xff]  }
  0x84   : > { %3703 = vmatprep.mubr.msk.bf16.mxu0 %vm1660_vm0, %v4589_v5  ;;  %v4685_v5 = vld [vmem:[%s4973_s26 + $0x34c] ss:$16 sps:$4 sm:$0xff]  }
  0x87   : > { %1918 = vmatmul.mubr.bf16.gmra.mrb[32].mxu1 %v4582_v4  ;;  %v4678_v4 = vld [vmem:[%s4973_s26 + $0x300] ss:$16 sps:$4 sm:$0xff]  }
  0x88   : > { %1925 = vmatprep.mubr.bf16.mxu1 %v4585_v6  ;;  %v4681_v6 = vld [vmem:[%s4973_s26 + $0x324] ss:$16 sps:$4 sm:$0xff]  }
  0x8b   : > { %2383 = vmatmul.mubr.bf16.gmra.mrb[40].mxu0 %v4593_v7  ;;  %v4689_v7 = vld [vmem:[%s4973_s26 + $0x348] ss:$16 sps:$4 sm:$0xff]  }
  0x8c   : > { %3704 = vmatprep.mubr.msk.bf16.mxu0 %vm1660_vm0, %v4595_v9  ;;  %v4691_v9 = vld [vmem:[%s4973_s26 + $0x36c] ss:$16 sps:$4 sm:$0xff]  }
  0x8f   : > { %1926 = vmatmul.mubr.bf16.gmra.mrb[36].mxu1 %v4588_v8  ;;  %v4684_v8 = vld [vmem:[%s4973_s26 + $0x320] ss:$16 sps:$4 sm:$0xff]  }
  0x90   : > { %1933 = vmatprep.mubr.bf16.mxu1 %v4591_v10  ;;  %v4687_v10 = vld [vmem:[%s4973_s26 + $0x344] ss:$16 sps:$4 sm:$0xff]  }
  0x93   : > { %2391 = vmatmul.mubr.bf16.gmra.mrb[44].mxu0 %v4599_v11 }
  0x94   : > { %3705 = vmatprep.mubr.msk.bf16.mxu0 %vm1660_vm0, %v4601_v13  ;;  %v4695_v13 = vld [vmem:[%s4973_s26 + $0x368] ss:$16 sps:$4 sm:$0xff]  }
  0x97   : > { %1934 = vmatmul.mubr.bf16.gmra.mrb[40].mxu1 %v4594_v12 }
  0x98   : > { %1941 = vmatprep.mubr.bf16.mxu1 %v4597_v14  ;;  %v4690_v14 = vld [vmem:[%s4973_s26 + $0x340] ss:$16 sps:$4 sm:$0xff]  }
  0x9b   : > { %2399 = vmatmul.mubr.bf16.gmra.mrb[48].mxu0 %v4605_v15 }
  0x9c   : > { %3706 = vmatprep.mubr.msk.bf16.mxu0 %vm1660_vm0, %v4607_v17 }
  0x9f   : > { %1942 = vmatmul.mubr.bf16.gmra.mrb[44].mxu1 %v4600_v16  ;;  %v4697_v16 = vld [vmem:[%s4973_s26 + $0x38c] ss:$16 sps:$4 sm:$0xff]  }
  0xa0   : > { %1949 = vmatprep.mubr.bf16.mxu1 %v4603_v18  ;;  %v4693_v18 = vld [vmem:[%s4973_s26 + $0x364] ss:$16 sps:$4 sm:$0xff]  }
  0xa3   : > { %2407 = vmatmul.mubr.bf16.gmra.mrb[52].mxu0 %v4611_v19  ;;  %v5176_v19 = vld [vmem:[%s5475_s2] ss:$0 sm:$0xff] }
  0xa4   : > { %3707 = vmatprep.mubr.msk.bf16.mxu0 %vm1660_vm0, %v4613_v21 }
  0xa7   : > { %1950 = vmatmul.mubr.bf16.gmra.mrb[48].mxu1 %v4606_v20 }
  0xa8   : > { %1957 = vmatprep.mubr.bf16.mxu1 %v4609_v22 }
  0xab   : > { %2415 = vmatmul.mubr.bf16.gmra.mrb[56].mxu0 %v4617_v23  ;;  %v4701_v23 = vld [vmem:[%s4973_s26 + $0x388] ss:$16 sps:$4 sm:$0xff]  }
  0xac   : > { %3708 = vmatprep.mubr.msk.bf16.mxu0 %vm1660_vm0, %v4619_v25 }
  0xaf   : > { %1958 = vmatmul.mubr.bf16.gmra.mrb[52].mxu1 %v4612_v24 }
  0xb0   : > { %1965 = vmatprep.mubr.bf16.mxu1 %v4615_v26  ;;  %v4696_v26 = vld [vmem:[%s4973_s26 + $0x360] ss:$16 sps:$4 sm:$0xff]  }
  0xb3   : > { %2423 = vmatmul.mubr.bf16.gmra.mrb[60].mxu0 %v4623_v27 }
  0xb4   : > { %3709 = vmatprep.mubr.msk.bf16.mxu0 %vm1660_vm0, %v4625_v29 }
  0xb7   : > { %1966 = vmatmul.mubr.bf16.gmra.mrb[56].mxu1 %v4618_v28  ;;  %v4703_v28 = vld [vmem:[%s4973_s26 + $0x3ac] ss:$16 sps:$4 sm:$0xff]  }
  0xb8   : > { %1973 = vmatprep.mubr.bf16.mxu1 %v4621_v30 }
  0xbb   : > { %2431 = vmatmul.mubr.bf16.gmra.mrb[64].mxu0 %v4629_v31  ;;  %v4699_v31 = vld [vmem:[%s4973_s26 + $0x384] ss:$16 sps:$4 sm:$0xff]  }
  0xbc   : > { %3710 = vmatprep.mubr.msk.bf16.mxu0 %vm1660_vm0, %v4631_v33 }
  0xbf   : > { %1974 = vmatmul.mubr.bf16.gmra.mrb[60].mxu1 %v4624_v32 }
  0xc0   : > { %1981 = vmatprep.mubr.bf16.mxu1 %v4627_v34 }
  0xc3   : > { %2439 = vmatmul.mubr.bf16.gmra.mrb[68].mxu0 %v4635_v35 }
  0xc4   : > { %3711 = vmatprep.mubr.msk.bf16.mxu0 %vm1660_vm0, %v4637_v37 }
  0xc7   : > { %1982 = vmatmul.mubr.bf16.gmra.mrb[64].mxu1 %v4630_v36 }
  0xc8   : > { %1989 = vmatprep.mubr.bf16.mxu1 %v4633_v38 }
  0xcb   : > { %2447 = vmatmul.mubr.bf16.gmra.mrb[72].mxu0 %v4641_v39 }
  0xcc   : > { %3712 = vmatprep.mubr.msk.bf16.mxu0 %vm1660_vm0, %v4643_v41  ;;  %v4707_v41 = vld [vmem:[%s4973_s26 + $0x3a8] ss:$16 sps:$4 sm:$0xff]  }
  0xcf   : > { %1990 = vmatmul.mubr.bf16.gmra.mrb[68].mxu1 %v4636_v40 }
  0xd0   : > { %1997 = vmatprep.mubr.bf16.mxu1 %v4639_v42 }
  0xd3   : > { %2455 = vmatmul.mubr.bf16.gmra.mrb[76].mxu0 %v4647_v43 }
  0xd4   : > { %3713 = vmatprep.mubr.msk.bf16.mxu0 %vm1660_vm0, %v4649_v45  ;;  %v4702_v45 = vld [vmem:[%s4973_s26 + $0x380] ss:$16 sps:$4 sm:$0xff]  }
  0xd7   : > { %1998 = vmatmul.mubr.bf16.gmra.mrb[72].mxu1 %v4642_v44 }
  0xd8   : > { %2005 = vmatprep.mubr.bf16.mxu1 %v4645_v46 }
  0xdb   : > { %2463 = vmatmul.mubr.bf16.gmra.mrb[80].mxu0 %v4653_v47  ;;  %v4709_v47 = vld [vmem:[%s4973_s26 + $0x3cc] ss:$16 sps:$4 sm:$0xff]  }
  0xdc   : > { %3714 = vmatprep.mubr.msk.bf16.mxu0 %vm1660_vm0, %v4655_v49 }
  0xdf   : > { %2006 = vmatmul.mubr.bf16.gmra.mrb[76].mxu1 %v4648_v48 }
  0xe0   : > { %2013 = vmatprep.mubr.bf16.mxu1 %v4651_v50  ;;  %v4705_v50 = vld [vmem:[%s4973_s26 + $0x3a4] ss:$16 sps:$4 sm:$0xff]  }
  0xe3   : > { %2471 = vmatmul.mubr.bf16.gmra.mrb[84].mxu0 %v4659_v51 }
  0xe4   : > { %3715 = vmatprep.mubr.msk.bf16.mxu0 %vm1660_vm0, %v4661_v53 }
  0xe7   : > { %2014 = vmatmul.mubr.bf16.gmra.mrb[80].mxu1 %v4654_v52 }
  0xe8   : > { %2021 = vmatprep.mubr.bf16.mxu1 %v4657_v54 }
  0xeb   : > { %2479 = vmatmul.mubr.bf16.gmra.mrb[88].mxu0 %v4665_v55 }
  0xec   : > { %3716 = vmatprep.mubr.msk.bf16.mxu0 %vm1660_vm0, %v4667_v57 }
  0xef   : > { %2022 = vmatmul.mubr.bf16.gmra.mrb[84].mxu1 %v4660_v56 }
  0xf0   : > { %2029 = vmatprep.mubr.bf16.mxu1 %v4663_v58 }
  0xf3   : > { %2487 = vmatmul.mubr.bf16.gmra.mrb[92].mxu0 %v4671_v59 }
  0xf4   : > { %3717 = vmatprep.mubr.msk.bf16.mxu0 %vm1660_vm0, %v4673_v61 }
  0xf7   : > { %2030 = vmatmul.mubr.bf16.gmra.mrb[88].mxu1 %v4666_v60  ;;  %v4713_v60 = vld [vmem:[%s4973_s26 + $0x3c8] ss:$16 sps:$4 sm:$0xff]  }
  0xf8   : > { %2037 = vmatprep.mubr.bf16.mxu1 %v4669_v62 }
  0xfb   : > { %2495 = vmatmul.mubr.bf16.gmra.mrb[96].mxu0 %v4677_v63 }
  0xfc   : > { %3718 = vmatprep.mubr.msk.bf16.mxu0 %vm1660_vm0, %v4679_v1 }
  0xff   : > { %2038 = vmatmul.mubr.bf16.gmra.mrb[92].mxu1 %v4672_v0  ;;  %v4708_v0 = vld [vmem:[%s4973_s26 + $0x3a0] ss:$16 sps:$4 sm:$0xff]  }
 0x100   : > { %2045 = vmatprep.mubr.bf16.mxu1 %v4675_v2  ;;  %v4715_v2 = vld [vmem:[%s4973_s26 + $0x3ec] ss:$16 sps:$4 sm:$0xff]  }
 0x103   : > { %2503 = vmatmul.mubr.bf16.gmra.mrb[100].mxu0 %v4683_v3 }
 0x104   : > { %3719 = vmatprep.mubr.msk.bf16.mxu0 %vm1660_vm0, %v4685_v5  ;;  %v4711_v5 = vld [vmem:[%s4973_s26 + $0x3c4] ss:$16 sps:$4 sm:$0xff]  }
 0x107   : > { %2046 = vmatmul.mubr.bf16.gmra.mrb[96].mxu1 %v4678_v4 }
 0x108   : > { %2053 = vmatprep.mubr.bf16.mxu1 %v4681_v6 }
 0x10b   : > { %2511 = vmatmul.mubr.bf16.gmra.mrb[104].mxu0 %v4689_v7 }
 0x10c   : > { %3720 = vmatprep.mubr.msk.bf16.mxu0 %vm1660_vm0, %v4691_v9 }
 0x10e   : > { %v2304_v11 = vpop.f32.mrb[0].mxu0 }
 0x10f   : > { %2054 = vmatmul.mubr.bf16.gmra.mrb[100].mxu1 %v4684_v8  ;;  %v2306_v12 = vpop.f32.mrb[1].mxu0 }
 0x110   : > { %2061 = vmatprep.mubr.bf16.mxu1 %v4687_v10  ;;  %v2307_v15 = vpop.f32.mrb[2].mxu0 }
 0x111   : > { %v2309_v17 = vpop.f32.mrb[3].mxu0 }
 0x113   : > { %2519 = vmatmul.mubr.bf16.gmra.mrb[108].mxu0 %v4695_v13 }
 0x114   : > { %3721 = vmatprep.mubr.msk.bf16.mxu0 %vm1660_vm0, %v4697_v16 }
 0x116   : > { %v2312_v20 = vpop.f32.mrb[4].mxu0 }
 0x117   : > { %2062 = vmatmul.mubr.bf16.gmra.mrb[104].mxu1 %v4690_v14  ;;  %v2314_v22 = vpop.f32.mrb[5].mxu0 }
 0x118   : > { %2069 = vmatprep.mubr.bf16.mxu1 %v4693_v18  ;;  %v2315_v27 = vpop.f32.mrb[6].mxu0  ;;  %v4721_v22 = vld [vmem:[%s4973_s26 + $0x40c] ss:$16 sps:$4 sm:$0xff]  }
 0x119   : > { %v2317_v30 = vpop.f32.mrb[7].mxu0 }
 0x11a   : > { %v1855_v21 = vpop.f32.mrb[0].mxu1 }
 0x11b   : > { %v1856_v24 = vadd.f32 %v5176_v19, %v1855_v21  ;;  %v1857_v25 = vpop.f32.mrb[1].mxu1  ;;  %2527 = vmatmul.mubr.bf16.gmra.mrb[112].mxu0 %v4701_v23 }
 0x11c   : > { %v1858_v29 = vpop.f32.mrb[2].mxu1  ;;  %3722 = vmatprep.mubr.msk.bf16.mxu0 %vm1660_vm0, %v4703_v28  ;;  %v4717_v25 = vld [vmem:[%s4973_s26 + $0x3e4] ss:$16 sps:$4 sm:$0xff]  }
 0x11d   : > { %v2305_v32 = vadd.f32 %v2304_v11, %v1856_v24  ;;  %v1859_v33 = vadd.f32 %v5176_v19, %v1858_v29  ;;  %v1860_v34 = vpop.f32.mrb[3].mxu1 }
 0x11e   : > { %v2320_v38 = vpop.f32.mrb[8].mxu0 }
 0x11f   : > { %v2308_v35 = vadd.f32 %v2307_v15, %v1859_v33  ;;  %2070 = vmatmul.mubr.bf16.gmra.mrb[108].mxu1 %v4696_v26  ;;  %v2719_v36 = vmax.f32 %v2305_v32, 0.0  ;;  %v2322_v40 = vpop.f32.mrb[9].mxu0  ;;  %v4719_v15 = vld [vmem:[%s4973_s26 + $0x3e8] ss:$16 sps:$4 sm:$0xff]  }
 0x120   : > { %2077 = vmatprep.mubr.bf16.mxu1 %v4699_v31  ;;  %v2323_v46 = vpop.f32.mrb[10].mxu0 }
 0x121   : > { %v2720_v37 = vmax.f32 %v2308_v35, 0.0  ;;  %v2325_v49 = vpop.f32.mrb[11].mxu0  ;;  %v4725_v35 = vld [vmem:[%s4973_s26 + $0x408] ss:$16 sps:$4 sm:$0xff]  }
 0x122   : > { %v1863_v39 = vpop.f32.mrb[4].mxu1 }
 0x123   : > { %v3959_v42 = vpack.c.bf16 %v2720_v37, %v2719_v36  ;;  %v1864_v43 = vadd.f32 %v5176_v19, %v1863_v39  ;;  %v1865_v44 = vpop.f32.mrb[5].mxu1  ;;  %2535 = vmatmul.mubr.bf16.gmra.mrb[116].mxu0 %v4707_v41  ;;  %v4720_v39 = vld [vmem:[%s4973_s26 + $0x3e0] ss:$16 sps:$4 sm:$0xff]   ;;  %v4727_v41 = vld [vmem:[%s4973_s26 + $0x42c] ss:$16 sps:$4 sm:$0xff]  }
 0x124   : > { %v1866_v48 = vpop.f32.mrb[6].mxu1  ;;  %3723 = vmatprep.mubr.msk.bf16.mxu0 %vm1660_vm0, %v4709_v47  ;;  %v4723_v44 = vld [vmem:[%s4973_s26 + $0x404] ss:$16 sps:$4 sm:$0xff]  }
 0x125   : > { %3960 = vst [vmem:[%s5189_s12] sm:$0xff] %v3959_v42   ;;  %v2313_v51 = vadd.f32 %v2312_v20, %v1864_v43  ;;  %v1867_v52 = vadd.f32 %v5176_v19, %v1866_v48  ;;  %v1868_v53 = vpop.f32.mrb[7].mxu1  ;;  %v4714_v20 = vld [vmem:[%s4973_s26 + $0x3c0] ss:$16 sps:$4 sm:$0xff]  }
 0x126   : > { %v2328_v57 = vpop.f32.mrb[12].mxu0 }
 0x127   : > { %v2316_v54 = vadd.f32 %v2315_v27, %v1867_v52  ;;  %2078 = vmatmul.mubr.bf16.gmra.mrb[112].mxu1 %v4702_v45  ;;  %v2721_v55 = vmax.f32 %v2313_v51, 0.0  ;;  %v2330_v59 = vpop.f32.mrb[13].mxu0 }
 0x128   : > { %2085 = vmatprep.mubr.bf16.mxu1 %v4705_v50  ;;  %v2331_v1 = vpop.f32.mrb[14].mxu0 }
 0x129   : > { %v2722_v56 = vmax.f32 %v2316_v54, 0.0  ;;  %v2333_v4 = vpop.f32.mrb[15].mxu0  ;;  %v4731_v54 = vld [vmem:[%s4973_s26 + $0x428] ss:$16 sps:$4 sm:$0xff]  }
 0x12a   : > { %v1871_v58 = vpop.f32.mrb[8].mxu1 }
 0x12b   : > { %v3964_v61 = vpack.c.bf16 %v2722_v56, %v2721_v55  ;;  %v1872_v62 = vadd.f32 %v5176_v19, %v1871_v58  ;;  %v1873_v63 = vpop.f32.mrb[9].mxu1  ;;  %2543 = vmatmul.mubr.bf16.gmra.mrb[120].mxu0 %v4713_v60  ;;  %v4726_v58 = vld [vmem:[%s4973_s26 + $0x400] ss:$16 sps:$4 sm:$0xff]   ;;  %v4733_v60 = vld [vmem:[%s4973_s26 + $0x44c] ss:$16 sps:$4 sm:$0xff]  }
 0x12c   : > { %v1874_v3 = vpop.f32.mrb[10].mxu1  ;;  %3724 = vmatprep.mubr.msk.bf16.mxu0 %vm1660_vm0, %v4715_v2  ;;  %v4729_v63 = vld [vmem:[%s4973_s26 + $0x424] ss:$16 sps:$4 sm:$0xff]  }
 0x12d   : > { %4216 = vst [vmem:[%s5189_s12 + $0x8] sm:$0xff] %v3964_v61   ;;  %v2321_v6 = vadd.f32 %v2320_v38, %v1872_v62  ;;  %v1875_v7 = vadd.f32 %v5176_v19, %v1874_v3  ;;  %v1876_v8 = vpop.f32.mrb[11].mxu1 }
 0x12e   : > { %v2336_v12 = vpop.f32.mrb[16].mxu0 }
 0x12f   : > { %v2324_v9 = vadd.f32 %v2323_v46, %v1875_v7  ;;  %2086 = vmatmul.mubr.bf16.gmra.mrb[116].mxu1 %v4708_v0  ;;  %v2723_v10 = vmax.f32 %v2321_v6, 0.0  ;;  %v2338_v14 = vpop.f32.mrb[17].mxu0 }
 0x130   : > { %2093 = vmatprep.mubr.bf16.mxu1 %v4711_v5  ;;  %v2339_v21 = vpop.f32.mrb[18].mxu0 }
 0x131   : > { %v2724_v11 = vmax.f32 %v2324_v9, 0.0  ;;  %v2341_v24 = vpop.f32.mrb[19].mxu0  ;;  %v4737_v9 = vld [vmem:[%s4973_s26 + $0x448] ss:$16 sps:$4 sm:$0xff]  }
 0x132   : > { %v1879_v13 = vpop.f32.mrb[12].mxu1 }
 0x133   : > { %v3969_v16 = vpack.c.bf16 %v2724_v11, %v2723_v10  ;;  %v1880_v17 = vadd.f32 %v5176_v19, %v1879_v13  ;;  %v1881_v18 = vpop.f32.mrb[13].mxu1  ;;  %2551 = vmatmul.mubr.bf16.gmra.mrb[124].mxu0 %v4719_v15  ;;  %v4732_v13 = vld [vmem:[%s4973_s26 + $0x420] ss:$16 sps:$4 sm:$0xff]   ;;  %v4739_v15 = vld [vmem:[%s4973_s26 + $0x46c] ss:$16 sps:$4 sm:$0xff]  }
 0x134   : > { %v1882_v23 = vpop.f32.mrb[14].mxu1  ;;  %3725 = vmatprep.mubr.msk.bf16.mxu0 %vm1660_vm0, %v4721_v22  ;;  %v4735_v18 = vld [vmem:[%s4973_s26 + $0x444] ss:$16 sps:$4 sm:$0xff]  }
 0x135   : > { %4217 = vst [vmem:[%s5189_s12 + $0x10] sm:$0xff] %v3969_v16   ;;  %v2329_v26 = vadd.f32 %v2328_v57, %v1880_v17  ;;  %v1883_v27 = vadd.f32 %v5176_v19, %v1882_v23  ;;  %v1884_v28 = vpop.f32.mrb[15].mxu1 }
 0x136   : > { %v2344_v32 = vpop.f32.mrb[20].mxu0 }
 0x137   : > { %v2332_v29 = vadd.f32 %v2331_v1, %v1883_v27  ;;  %2094 = vmatmul.mubr.bf16.gmra.mrb[120].mxu1 %v4714_v20  ;;  %v2725_v30 = vmax.f32 %v2329_v26, 0.0  ;;  %v2346_v34 = vpop.f32.mrb[21].mxu0 }
 0x138   : > { %2101 = vmatprep.mubr.bf16.mxu1 %v4717_v25  ;;  %v2347_v40 = vpop.f32.mrb[22].mxu0 }
 0x139   : > { %v2726_v31 = vmax.f32 %v2332_v29, 0.0  ;;  %v2349_v43 = vpop.f32.mrb[23].mxu0  ;;  %v4743_v29 = vld [vmem:[%s4973_s26 + $0x468] ss:$16 sps:$4 sm:$0xff]  }
 0x13a   : > { %v1887_v33 = vpop.f32.mrb[16].mxu1 }
 0x13b   : > { %v3974_v36 = vpack.c.bf16 %v2726_v31, %v2725_v30  ;;  %v1888_v37 = vadd.f32 %v5176_v19, %v1887_v33  ;;  %v1889_v38 = vpop.f32.mrb[17].mxu1  ;;  %2559 = vmatmul.mubr.bf16.gmra.mrb[128].mxu0 %v4725_v35  ;;  %v4738_v33 = vld [vmem:[%s4973_s26 + $0x440] ss:$16 sps:$4 sm:$0xff]   ;;  %v4745_v35 = vld [vmem:[%s4973_s26 + $0x48c] ss:$16 sps:$4 sm:$0xff]  }
 0x13c   : > { %v1890_v42 = vpop.f32.mrb[18].mxu1  ;;  %3726 = vmatprep.mubr.msk.bf16.mxu0 %vm1660_vm0, %v4727_v41  ;;  %v4741_v38 = vld [vmem:[%s4973_s26 + $0x464] ss:$16 sps:$4 sm:$0xff]  }
 0x13d   : > { %4218 = vst [vmem:[%s5189_s12 + $0x18] sm:$0xff] %v3974_v36   ;;  %v2337_v45 = vadd.f32 %v2336_v12, %v1888_v37  ;;  %v1891_v46 = vadd.f32 %v5176_v19, %v1890_v42  ;;  %v1892_v47 = vpop.f32.mrb[19].mxu1 }
 0x13e   : > { %v2352_v51 = vpop.f32.mrb[24].mxu0 }
 0x13f   : > { %v2340_v48 = vadd.f32 %v2339_v21, %v1891_v46  ;;  %2102 = vmatmul.mubr.bf16.gmra.mrb[124].mxu1 %v4720_v39  ;;  %v2727_v49 = vmax.f32 %v2337_v45, 0.0  ;;  %v2354_v53 = vpop.f32.mrb[25].mxu0 }
 0x140   : > { %2109 = vmatprep.mubr.bf16.mxu1 %v4723_v44  ;;  %v2355_v59 = vpop.f32.mrb[26].mxu0 }
 0x141   : > { %v2728_v50 = vmax.f32 %v2340_v48, 0.0  ;;  %v2357_v62 = vpop.f32.mrb[27].mxu0  ;;  %v4749_v48 = vld [vmem:[%s4973_s26 + $0x488] ss:$16 sps:$4 sm:$0xff]  }
 0x142   : > { %v1895_v52 = vpop.f32.mrb[20].mxu1 }
 0x143   : > { %v3979_v55 = vpack.c.bf16 %v2728_v50, %v2727_v49  ;;  %v1896_v56 = vadd.f32 %v5176_v19, %v1895_v52  ;;  %v1897_v57 = vpop.f32.mrb[21].mxu1  ;;  %2567 = vmatmul.mubr.bf16.gmra.mrb[132].mxu0 %v4731_v54  ;;  %v4744_v52 = vld [vmem:[%s4973_s26 + $0x460] ss:$16 sps:$4 sm:$0xff]   ;;  %v4751_v54 = vld [vmem:[%s4973_s26 + $0x4ac] ss:$16 sps:$4 sm:$0xff]  }
 0x144   : > { %v1898_v61 = vpop.f32.mrb[22].mxu1  ;;  %3727 = vmatprep.mubr.msk.bf16.mxu0 %vm1660_vm0, %v4733_v60  ;;  %v4747_v57 = vld [vmem:[%s4973_s26 + $0x484] ss:$16 sps:$4 sm:$0xff]  }
 0x145   : > { %4219 = vst [vmem:[%s5189_s12 + $0x20] sm:$0xff] %v3979_v55   ;;  %v2345_v0 = vadd.f32 %v2344_v32, %v1896_v56  ;;  %v1899_v1 = vadd.f32 %v5176_v19, %v1898_v61  ;;  %v1900_v2 = vpop.f32.mrb[23].mxu1 }
 0x146   : > { %v2360_v6 = vpop.f32.mrb[28].mxu0 }
 0x147   : > { %v2348_v3 = vadd.f32 %v2347_v40, %v1899_v1  ;;  %2110 = vmatmul.mubr.bf16.gmra.mrb[128].mxu1 %v4726_v58  ;;  %v2729_v4 = vmax.f32 %v2345_v0, 0.0  ;;  %v2362_v8 = vpop.f32.mrb[29].mxu0 }
 0x148   : > { %2117 = vmatprep.mubr.bf16.mxu1 %v4729_v63  ;;  %v2363_v14 = vpop.f32.mrb[30].mxu0 }
 0x149   : > { %v2730_v5 = vmax.f32 %v2348_v3, 0.0  ;;  %v2365_v17 = vpop.f32.mrb[31].mxu0  ;;  %v4755_v3 = vld [vmem:[%s4973_s26 + $0x4a8] ss:$16 sps:$4 sm:$0xff]  }
 0x14a   : > { %v1903_v7 = vpop.f32.mrb[24].mxu1 }
 0x14b   : > { %v3984_v10 = vpack.c.bf16 %v2730_v5, %v2729_v4  ;;  %v1904_v11 = vadd.f32 %v5176_v19, %v1903_v7  ;;  %v1905_v12 = vpop.f32.mrb[25].mxu1  ;;  %2575 = vmatmul.mubr.bf16.gmra.mrb[136].mxu0 %v4737_v9  ;;  %v4750_v7 = vld [vmem:[%s4973_s26 + $0x480] ss:$16 sps:$4 sm:$0xff]   ;;  %v4757_v9 = vld [vmem:[%s4973_s26 + $0x4cc] ss:$16 sps:$4 sm:$0xff]  }
 0x14c   : > { %v1906_v16 = vpop.f32.mrb[26].mxu1  ;;  %3728 = vmatprep.mubr.msk.bf16.mxu0 %vm1660_vm0, %v4739_v15  ;;  %v4753_v12 = vld [vmem:[%s4973_s26 + $0x4a4] ss:$16 sps:$4 sm:$0xff]  }
 0x14d   : > { %4220 = vst [vmem:[%s5189_s12 + $0x28] sm:$0xff] %v3984_v10   ;;  %v2353_v20 = vadd.f32 %v2352_v51, %v1904_v11  ;;  %v1907_v21 = vadd.f32 %v5176_v19, %v1906_v16  ;;  %v1908_v22 = vpop.f32.mrb[27].mxu1 }
 0x14e   : > { %v2368_v26 = vpop.f32.mrb[32].mxu0 }
 0x14f   : > { %v2356_v23 = vadd.f32 %v2355_v59, %v1907_v21  ;;  %2118 = vmatmul.mubr.bf16.gmra.mrb[132].mxu1 %v4732_v13  ;;  %v2731_v24 = vmax.f32 %v2353_v20, 0.0  ;;  %v2370_v28 = vpop.f32.mrb[33].mxu0 }
 0x150   : > { %2125 = vmatprep.mubr.bf16.mxu1 %v4735_v18  ;;  %v2371_v34 = vpop.f32.mrb[34].mxu0 }
 0x151   : > { %v2732_v25 = vmax.f32 %v2356_v23, 0.0  ;;  %v2373_v37 = vpop.f32.mrb[35].mxu0  ;;  %v4761_v23 = vld [vmem:[%s4973_s26 + $0x4c8] ss:$16 sps:$4 sm:$0xff]  }
 0x152   : > { %v1911_v27 = vpop.f32.mrb[28].mxu1 }
 0x153   : > { %v3989_v30 = vpack.c.bf16 %v2732_v25, %v2731_v24  ;;  %v1912_v31 = vadd.f32 %v5176_v19, %v1911_v27  ;;  %v1913_v32 = vpop.f32.mrb[29].mxu1  ;;  %2583 = vmatmul.mubr.bf16.gmra.mrb[140].mxu0 %v4743_v29  ;;  %v4756_v27 = vld [vmem:[%s4973_s26 + $0x4a0] ss:$16 sps:$4 sm:$0xff]   ;;  %v4763_v29 = vld [vmem:[%s4973_s26 + $0x4ec] ss:$16 sps:$4 sm:$0xff]  }
 0x154   : > { %v1914_v36 = vpop.f32.mrb[30].mxu1  ;;  %3729 = vmatprep.mubr.msk.bf16.mxu0 %vm1660_vm0, %v4745_v35  ;;  %v4759_v32 = vld [vmem:[%s4973_s26 + $0x4c4] ss:$16 sps:$4 sm:$0xff]  }
 0x155   : > { %4221 = vst [vmem:[%s5189_s12 + $0x30] sm:$0xff] %v3989_v30   ;;  %v2361_v39 = vadd.f32 %v2360_v6, %v1912_v31  ;;  %v1915_v40 = vadd.f32 %v5176_v19, %v1914_v36  ;;  %v1916_v41 = vpop.f32.mrb[31].mxu1 }
 0x156   : > { %v2376_v45 = vpop.f32.mrb[36].mxu0 }
 0x157   : > { %v2364_v42 = vadd.f32 %v2363_v14, %v1915_v40  ;;  %2126 = vmatmul.mubr.bf16.gmra.mrb[136].mxu1 %v4738_v33  ;;  %v2733_v43 = vmax.f32 %v2361_v39, 0.0  ;;  %v2378_v47 = vpop.f32.mrb[37].mxu0 }
 0x158   : > { %2133 = vmatprep.mubr.bf16.mxu1 %v4741_v38  ;;  %v2379_v53 = vpop.f32.mrb[38].mxu0 }
 0x159   : > { %v2734_v44 = vmax.f32 %v2364_v42, 0.0  ;;  %v2381_v56 = vpop.f32.mrb[39].mxu0  ;;  %v4767_v42 = vld [vmem:[%s4973_s26 + $0x4e8] ss:$16 sps:$4 sm:$0xff]  }
 0x15a   : > { %v1919_v46 = vpop.f32.mrb[32].mxu1 }
 0x15b   : > { %v3994_v49 = vpack.c.bf16 %v2734_v44, %v2733_v43  ;;  %v1920_v50 = vadd.f32 %v5176_v19, %v1919_v46  ;;  %v1921_v51 = vpop.f32.mrb[33].mxu1  ;;  %2591 = vmatmul.mubr.bf16.gmra.mrb[144].mxu0 %v4749_v48  ;;  %v4762_v46 = vld [vmem:[%s4973_s26 + $0x4c0] ss:$16 sps:$4 sm:$0xff]   ;;  %v4769_v48 = vld [vmem:[%s4973_s26 + $0x50c] ss:$16 sps:$4 sm:$0xff]  }
 0x15c   : > { %v1922_v55 = vpop.f32.mrb[34].mxu1  ;;  %3730 = vmatprep.mubr.msk.bf16.mxu0 %vm1660_vm0, %v4751_v54  ;;  %v4765_v51 = vld [vmem:[%s4973_s26 + $0x4e4] ss:$16 sps:$4 sm:$0xff]  }
 0x15d   : > { %4222 = vst [vmem:[%s5189_s12 + $0x38] sm:$0xff] %v3994_v49   ;;  %v2369_v58 = vadd.f32 %v2368_v26, %v1920_v50  ;;  %v1923_v59 = vadd.f32 %v5176_v19, %v1922_v55  ;;  %v1924_v60 = vpop.f32.mrb[35].mxu1 }
 0x15e   : > { %v2384_v0 = vpop.f32.mrb[40].mxu0 }
 0x15f   : > { %v2372_v61 = vadd.f32 %v2371_v34, %v1923_v59  ;;  %2134 = vmatmul.mubr.bf16.gmra.mrb[140].mxu1 %v4744_v52  ;;  %v2735_v62 = vmax.f32 %v2369_v58, 0.0  ;;  %v2386_v2 = vpop.f32.mrb[41].mxu0 }
 0x160   : > { %2141 = vmatprep.mubr.bf16.mxu1 %v4747_v57  ;;  %v2387_v8 = vpop.f32.mrb[42].mxu0 }
 0x161   : > { %v2736_v63 = vmax.f32 %v2372_v61, 0.0  ;;  %v2389_v11 = vpop.f32.mrb[43].mxu0  ;;  %v4773_v61 = vld [vmem:[%s4973_s26 + $0x508] ss:$16 sps:$4 sm:$0xff]  }
 0x162   : > { %v1927_v1 = vpop.f32.mrb[36].mxu1 }
 0x163   : > { %v3999_v4 = vpack.c.bf16 %v2736_v63, %v2735_v62  ;;  %v1928_v5 = vadd.f32 %v5176_v19, %v1927_v1  ;;  %v1929_v6 = vpop.f32.mrb[37].mxu1  ;;  %2599 = vmatmul.mubr.bf16.gmra.mrb[148].mxu0 %v4755_v3  ;;  %v4768_v1 = vld [vmem:[%s4973_s26 + $0x4e0] ss:$16 sps:$4 sm:$0xff]   ;;  %v4775_v3 = vld [vmem:[%s4973_s26 + $0x52c] ss:$16 sps:$4 sm:$0xff]  }
 0x164   : > { %v1930_v10 = vpop.f32.mrb[38].mxu1  ;;  %3731 = vmatprep.mubr.msk.bf16.mxu0 %vm1660_vm0, %v4757_v9  ;;  %v4771_v6 = vld [vmem:[%s4973_s26 + $0x504] ss:$16 sps:$4 sm:$0xff]  }
 0x165   : > { %4223 = vst [vmem:[%s5189_s12 + $0x40] sm:$0xff] %v3999_v4   ;;  %v2377_v13 = vadd.f32 %v2376_v45, %v1928_v5  ;;  %v1931_v14 = vadd.f32 %v5176_v19, %v1930_v10  ;;  %v1932_v15 = vpop.f32.mrb[39].mxu1 }
 0x166   : > { %v2392_v20 = vpop.f32.mrb[44].mxu0 }
 0x167   : > { %v2380_v16 = vadd.f32 %v2379_v53, %v1931_v14  ;;  %2142 = vmatmul.mubr.bf16.gmra.mrb[144].mxu1 %v4750_v7  ;;  %v2737_v17 = vmax.f32 %v2377_v13, 0.0  ;;  %v2394_v22 = vpop.f32.mrb[45].mxu0 }
 0x168   : > { %2149 = vmatprep.mubr.bf16.mxu1 %v4753_v12  ;;  %v2395_v28 = vpop.f32.mrb[46].mxu0 }
 0x169   : > { %v2738_v18 = vmax.f32 %v2380_v16, 0.0  ;;  %v2397_v31 = vpop.f32.mrb[47].mxu0  ;;  %v4779_v16 = vld [vmem:[%s4973_s26 + $0x528] ss:$16 sps:$4 sm:$0xff]  }
 0x16a   : > { %v1935_v21 = vpop.f32.mrb[40].mxu1 }
 0x16b   : > { %v4004_v24 = vpack.c.bf16 %v2738_v18, %v2737_v17  ;;  %v1936_v25 = vadd.f32 %v5176_v19, %v1935_v21  ;;  %v1937_v26 = vpop.f32.mrb[41].mxu1  ;;  %2607 = vmatmul.mubr.bf16.gmra.mrb[152].mxu0 %v4761_v23  ;;  %v4774_v21 = vld [vmem:[%s4973_s26 + $0x500] ss:$16 sps:$4 sm:$0xff]   ;;  %v4781_v23 = vld [vmem:[%s4973_s26 + $0x54c] ss:$16 sps:$4 sm:$0xff]  }
 0x16c   : > { %v1938_v30 = vpop.f32.mrb[42].mxu1  ;;  %3732 = vmatprep.mubr.msk.bf16.mxu0 %vm1660_vm0, %v4763_v29  ;;  %v4777_v26 = vld [vmem:[%s4973_s26 + $0x524] ss:$16 sps:$4 sm:$0xff]  }
 0x16d   : > { %4224 = vst [vmem:[%s5189_s12 + $0x48] sm:$0xff] %v4004_v24   ;;  %v2385_v33 = vadd.f32 %v2384_v0, %v1936_v25  ;;  %v1939_v34 = vadd.f32 %v5176_v19, %v1938_v30  ;;  %v1940_v35 = vpop.f32.mrb[43].mxu1 }
 0x16e   : > { %v2400_v39 = vpop.f32.mrb[48].mxu0 }
 0x16f   : > { %v2388_v36 = vadd.f32 %v2387_v8, %v1939_v34  ;;  %2150 = vmatmul.mubr.bf16.gmra.mrb[148].mxu1 %v4756_v27  ;;  %v2739_v37 = vmax.f32 %v2385_v33, 0.0  ;;  %v2402_v41 = vpop.f32.mrb[49].mxu0 }
 0x170   : > { %2157 = vmatprep.mubr.bf16.mxu1 %v4759_v32  ;;  %v2403_v47 = vpop.f32.mrb[50].mxu0 }
 0x171   : > { %v2740_v38 = vmax.f32 %v2388_v36, 0.0  ;;  %v2405_v50 = vpop.f32.mrb[51].mxu0  ;;  %v4785_v36 = vld [vmem:[%s4973_s26 + $0x548] ss:$16 sps:$4 sm:$0xff]  }
 0x172   : > { %v1943_v40 = vpop.f32.mrb[44].mxu1 }
 0x173   : > { %v4009_v43 = vpack.c.bf16 %v2740_v38, %v2739_v37  ;;  %v1944_v44 = vadd.f32 %v5176_v19, %v1943_v40  ;;  %v1945_v45 = vpop.f32.mrb[45].mxu1  ;;  %2615 = vmatmul.mubr.bf16.gmra.mrb[156].mxu0 %v4767_v42  ;;  %v4780_v40 = vld [vmem:[%s4973_s26 + $0x520] ss:$16 sps:$4 sm:$0xff]   ;;  %v4787_v42 = vld [vmem:[%s4973_s26 + $0x56c] ss:$16 sps:$4 sm:$0xff]  }
 0x174   : > { %v1946_v49 = vpop.f32.mrb[46].mxu1  ;;  %3733 = vmatprep.mubr.msk.bf16.mxu0 %vm1660_vm0, %v4769_v48  ;;  %v4783_v45 = vld [vmem:[%s4973_s26 + $0x544] ss:$16 sps:$4 sm:$0xff]  }
 0x175   : > { %4225 = vst [vmem:[%s5189_s12 + $0x50] sm:$0xff] %v4009_v43   ;;  %v2393_v52 = vadd.f32 %v2392_v20, %v1944_v44  ;;  %v1947_v53 = vadd.f32 %v5176_v19, %v1946_v49  ;;  %v1948_v54 = vpop.f32.mrb[47].mxu1 }
 0x176   : > { %v2408_v58 = vpop.f32.mrb[52].mxu0 }
 0x177   : > { %v2396_v55 = vadd.f32 %v2395_v28, %v1947_v53  ;;  %2158 = vmatmul.mubr.bf16.gmra.mrb[152].mxu1 %v4762_v46  ;;  %v2741_v56 = vmax.f32 %v2393_v52, 0.0  ;;  %v2410_v60 = vpop.f32.mrb[53].mxu0 }
 0x178   : > { %2165 = vmatprep.mubr.bf16.mxu1 %v4765_v51  ;;  %v2411_v2 = vpop.f32.mrb[54].mxu0 }
 0x179   : > { %v2742_v57 = vmax.f32 %v2396_v55, 0.0  ;;  %v2413_v5 = vpop.f32.mrb[55].mxu0  ;;  %v4791_v55 = vld [vmem:[%s4973_s26 + $0x568] ss:$16 sps:$4 sm:$0xff]  }
 0x17a   : > { %v1951_v59 = vpop.f32.mrb[48].mxu1 }
 0x17b   : > { %v4014_v62 = vpack.c.bf16 %v2742_v57, %v2741_v56  ;;  %v1952_v63 = vadd.f32 %v5176_v19, %v1951_v59  ;;  %v1953_v0 = vpop.f32.mrb[49].mxu1  ;;  %2623 = vmatmul.mubr.bf16.gmra.mrb[160].mxu0 %v4773_v61  ;;  %v4786_v59 = vld [vmem:[%s4973_s26 + $0x540] ss:$16 sps:$4 sm:$0xff]   ;;  %v4793_v61 = vld [vmem:[%s4973_s26 + $0x58c] ss:$16 sps:$4 sm:$0xff]  }
 0x17c   : > { %v1954_v4 = vpop.f32.mrb[50].mxu1  ;;  %3734 = vmatprep.mubr.msk.bf16.mxu0 %vm1660_vm0, %v4775_v3  ;;  %v4789_v0 = vld [vmem:[%s4973_s26 + $0x564] ss:$16 sps:$4 sm:$0xff]  }
 0x17d   : > { %4226 = vst [vmem:[%s5189_s12 + $0x58] sm:$0xff] %v4014_v62   ;;  %v2401_v7 = vadd.f32 %v2400_v39, %v1952_v63  ;;  %v1955_v8 = vadd.f32 %v5176_v19, %v1954_v4  ;;  %v1956_v9 = vpop.f32.mrb[51].mxu1 }
 0x17e   : > { %v2416_v13 = vpop.f32.mrb[56].mxu0 }
 0x17f   : > { %v2404_v10 = vadd.f32 %v2403_v47, %v1955_v8  ;;  %2166 = vmatmul.mubr.bf16.gmra.mrb[156].mxu1 %v4768_v1  ;;  %v2743_v11 = vmax.f32 %v2401_v7, 0.0  ;;  %v2418_v15 = vpop.f32.mrb[57].mxu0 }
 0x180   : > { %2173 = vmatprep.mubr.bf16.mxu1 %v4771_v6  ;;  %v2419_v22 = vpop.f32.mrb[58].mxu0 }
 0x181   : > { %v2744_v12 = vmax.f32 %v2404_v10, 0.0  ;;  %v2421_v25 = vpop.f32.mrb[59].mxu0  ;;  %v4797_v10 = vld [vmem:[%s4973_s26 + $0x588] ss:$16 sps:$4 sm:$0xff]  }
 0x182   : > { %v1959_v14 = vpop.f32.mrb[52].mxu1 }
 0x183   : > { %v4019_v17 = vpack.c.bf16 %v2744_v12, %v2743_v11  ;;  %v1960_v18 = vadd.f32 %v5176_v19, %v1959_v14  ;;  %v1961_v20 = vpop.f32.mrb[53].mxu1  ;;  %2631 = vmatmul.mubr.bf16.gmra.mrb[164].mxu0 %v4779_v16  ;;  %v4792_v14 = vld [vmem:[%s4973_s26 + $0x560] ss:$16 sps:$4 sm:$0xff]   ;;  %v4799_v16 = vld [vmem:[%s4973_s26 + $0x5ac] ss:$16 sps:$4 sm:$0xff]  }
 0x184   : > { %v1962_v24 = vpop.f32.mrb[54].mxu1  ;;  %3735 = vmatprep.mubr.msk.bf16.mxu0 %vm1660_vm0, %v4781_v23  ;;  %v4795_v20 = vld [vmem:[%s4973_s26 + $0x584] ss:$16 sps:$4 sm:$0xff]  }
 0x185   : > { %4227 = vst [vmem:[%s5189_s12 + $0x60] sm:$0xff] %v4019_v17   ;;  %v2409_v27 = vadd.f32 %v2408_v58, %v1960_v18  ;;  %v1963_v28 = vadd.f32 %v5176_v19, %v1962_v24  ;;  %v1964_v29 = vpop.f32.mrb[55].mxu1 }
 0x186   : > { %v2424_v33 = vpop.f32.mrb[60].mxu0 }
 0x187   : > { %v2412_v30 = vadd.f32 %v2411_v2, %v1963_v28  ;;  %2174 = vmatmul.mubr.bf16.gmra.mrb[160].mxu1 %v4774_v21  ;;  %v2745_v31 = vmax.f32 %v2409_v27, 0.0  ;;  %v2426_v35 = vpop.f32.mrb[61].mxu0 }
 0x188   : > { %2181 = vmatprep.mubr.bf16.mxu1 %v4777_v26  ;;  %v2427_v41 = vpop.f32.mrb[62].mxu0 }
 0x189   : > { %v2746_v32 = vmax.f32 %v2412_v30, 0.0  ;;  %v2429_v44 = vpop.f32.mrb[63].mxu0  ;;  %v4803_v30 = vld [vmem:[%s4973_s26 + $0x5a8] ss:$16 sps:$4 sm:$0xff]  }
 0x18a   : > { %v1967_v34 = vpop.f32.mrb[56].mxu1 }
 0x18b   : > { %v4024_v37 = vpack.c.bf16 %v2746_v32, %v2745_v31  ;;  %v1968_v38 = vadd.f32 %v5176_v19, %v1967_v34  ;;  %v1969_v39 = vpop.f32.mrb[57].mxu1  ;;  %2639 = vmatmul.mubr.bf16.gmra.mrb[168].mxu0 %v4785_v36  ;;  %v4798_v34 = vld [vmem:[%s4973_s26 + $0x580] ss:$16 sps:$4 sm:$0xff]   ;;  %v4805_v36 = vld [vmem:[%s4973_s26 + $0x5cc] ss:$16 sps:$4 sm:$0xff]  }
 0x18c   : > { %v1970_v43 = vpop.f32.mrb[58].mxu1  ;;  %3736 = vmatprep.mubr.msk.bf16.mxu0 %vm1660_vm0, %v4787_v42  ;;  %v4801_v39 = vld [vmem:[%s4973_s26 + $0x5a4] ss:$16 sps:$4 sm:$0xff]  }
 0x18d   : > { %4228 = vst [vmem:[%s5189_s12 + $0x68] sm:$0xff] %v4024_v37   ;;  %v2417_v46 = vadd.f32 %v2416_v13, %v1968_v38  ;;  %v1971_v47 = vadd.f32 %v5176_v19, %v1970_v43  ;;  %v1972_v48 = vpop.f32.mrb[59].mxu1 }
 0x18e   : > { %v2432_v52 = vpop.f32.mrb[64].mxu0 }
 0x18f   : > { %v2420_v49 = vadd.f32 %v2419_v22, %v1971_v47  ;;  %2182 = vmatmul.mubr.bf16.gmra.mrb[164].mxu1 %v4780_v40  ;;  %v2747_v50 = vmax.f32 %v2417_v46, 0.0  ;;  %v2434_v54 = vpop.f32.mrb[65].mxu0 }
 0x190   : > { %2189 = vmatprep.mubr.bf16.mxu1 %v4783_v45  ;;  %v2435_v60 = vpop.f32.mrb[66].mxu0 }
 0x191   : > { %v2748_v51 = vmax.f32 %v2420_v49, 0.0  ;;  %v2437_v63 = vpop.f32.mrb[67].mxu0  ;;  %v4809_v49 = vld [vmem:[%s4973_s26 + $0x5c8] ss:$16 sps:$4 sm:$0xff]  }
 0x192   : > { %v1975_v53 = vpop.f32.mrb[60].mxu1 }
 0x193   : > { %v4029_v56 = vpack.c.bf16 %v2748_v51, %v2747_v50  ;;  %v1976_v57 = vadd.f32 %v5176_v19, %v1975_v53  ;;  %v1977_v58 = vpop.f32.mrb[61].mxu1  ;;  %2647 = vmatmul.mubr.bf16.gmra.mrb[172].mxu0 %v4791_v55  ;;  %v4804_v53 = vld [vmem:[%s4973_s26 + $0x5a0] ss:$16 sps:$4 sm:$0xff]   ;;  %v4811_v55 = vld [vmem:[%s4973_s26 + $0x5ec] ss:$16 sps:$4 sm:$0xff]  }
 0x194   : > { %v1978_v62 = vpop.f32.mrb[62].mxu1  ;;  %3737 = vmatprep.mubr.msk.bf16.mxu0 %vm1660_vm0, %v4793_v61  ;;  %v4807_v58 = vld [vmem:[%s4973_s26 + $0x5c4] ss:$16 sps:$4 sm:$0xff]  }
 0x195   : > { %4229 = vst [vmem:[%s5189_s12 + $0x70] sm:$0xff] %v4029_v56   ;;  %v2425_v1 = vadd.f32 %v2424_v33, %v1976_v57  ;;  %v1979_v2 = vadd.f32 %v5176_v19, %v1978_v62  ;;  %v1980_v3 = vpop.f32.mrb[63].mxu1 }
 0x196   : > { %v2440_v7 = vpop.f32.mrb[68].mxu0 }
 0x197   : > { %v2428_v4 = vadd.f32 %v2427_v41, %v1979_v2  ;;  %2190 = vmatmul.mubr.bf16.gmra.mrb[168].mxu1 %v4786_v59  ;;  %v2749_v5 = vmax.f32 %v2425_v1, 0.0  ;;  %v2442_v9 = vpop.f32.mrb[69].mxu0 }
 0x198   : > { %2197 = vmatprep.mubr.bf16.mxu1 %v4789_v0  ;;  %v2443_v15 = vpop.f32.mrb[70].mxu0 }
 0x199   : > { %v2750_v6 = vmax.f32 %v2428_v4, 0.0  ;;  %v2445_v18 = vpop.f32.mrb[71].mxu0  ;;  %v4815_v4 = vld [vmem:[%s4973_s26 + $0x5e8] ss:$16 sps:$4 sm:$0xff]  }
 0x19a   : > { %v1983_v8 = vpop.f32.mrb[64].mxu1 }
 0x19b   : > { %v4034_v11 = vpack.c.bf16 %v2750_v6, %v2749_v5  ;;  %v1984_v12 = vadd.f32 %v5176_v19, %v1983_v8  ;;  %v1985_v13 = vpop.f32.mrb[65].mxu1  ;;  %2655 = vmatmul.mubr.bf16.gmra.mrb[176].mxu0 %v4797_v10  ;;  %v4810_v8 = vld [vmem:[%s4973_s26 + $0x5c0] ss:$16 sps:$4 sm:$0xff]   ;;  %v4817_v10 = vld [vmem:[%s4973_s26 + $0x60c] ss:$16 sps:$4 sm:$0xff]  }
 0x19c   : > { %v1986_v17 = vpop.f32.mrb[66].mxu1  ;;  %3738 = vmatprep.mubr.msk.bf16.mxu0 %vm1660_vm0, %v4799_v16  ;;  %v4813_v13 = vld [vmem:[%s4973_s26 + $0x5e4] ss:$16 sps:$4 sm:$0xff]  }
 0x19d   : > { %4230 = vst [vmem:[%s5189_s12 + $0x78] sm:$0xff] %v4034_v11   ;;  %v2433_v21 = vadd.f32 %v2432_v52, %v1984_v12  ;;  %v1987_v22 = vadd.f32 %v5176_v19, %v1986_v17  ;;  %v1988_v23 = vpop.f32.mrb[67].mxu1 }
 0x19e   : > { %v2448_v27 = vpop.f32.mrb[72].mxu0 }
 0x19f   : > { %v2436_v24 = vadd.f32 %v2435_v60, %v1987_v22  ;;  %2198 = vmatmul.mubr.bf16.gmra.mrb[172].mxu1 %v4792_v14  ;;  %v2751_v25 = vmax.f32 %v2433_v21, 0.0  ;;  %v2450_v29 = vpop.f32.mrb[73].mxu0 }
 0x1a0   : > { %2205 = vmatprep.mubr.bf16.mxu1 %v4795_v20  ;;  %v2451_v35 = vpop.f32.mrb[74].mxu0 }
 0x1a1   : > { %v2752_v26 = vmax.f32 %v2436_v24, 0.0  ;;  %v2453_v38 = vpop.f32.mrb[75].mxu0  ;;  %v4821_v24 = vld [vmem:[%s4973_s26 + $0x608] ss:$16 sps:$4 sm:$0xff]  }
 0x1a2   : > { %v1991_v28 = vpop.f32.mrb[68].mxu1 }
 0x1a3   : > { %v4039_v31 = vpack.c.bf16 %v2752_v26, %v2751_v25  ;;  %v1992_v32 = vadd.f32 %v5176_v19, %v1991_v28  ;;  %v1993_v33 = vpop.f32.mrb[69].mxu1  ;;  %2663 = vmatmul.mubr.bf16.gmra.mrb[180].mxu0 %v4803_v30  ;;  %v4816_v28 = vld [vmem:[%s4973_s26 + $0x5e0] ss:$16 sps:$4 sm:$0xff]   ;;  %v4823_v30 = vld [vmem:[%s4973_s26 + $0x62c] ss:$16 sps:$4 sm:$0xff]  }
 0x1a4   : > { %v1994_v37 = vpop.f32.mrb[70].mxu1  ;;  %3739 = vmatprep.mubr.msk.bf16.mxu0 %vm1660_vm0, %v4805_v36  ;;  %v4819_v33 = vld [vmem:[%s4973_s26 + $0x604] ss:$16 sps:$4 sm:$0xff]  }
 0x1a5   : > { %4231 = vst [vmem:[%s5189_s12 + $0x80] sm:$0xff] %v4039_v31   ;;  %v2441_v40 = vadd.f32 %v2440_v7, %v1992_v32  ;;  %v1995_v41 = vadd.f32 %v5176_v19, %v1994_v37  ;;  %v1996_v42 = vpop.f32.mrb[71].mxu1 }
 0x1a6   : > { %v2456_v46 = vpop.f32.mrb[76].mxu0 }
 0x1a7   : > { %v2444_v43 = vadd.f32 %v2443_v15, %v1995_v41  ;;  %2206 = vmatmul.mubr.bf16.gmra.mrb[176].mxu1 %v4798_v34  ;;  %v2753_v44 = vmax.f32 %v2441_v40, 0.0  ;;  %v2458_v48 = vpop.f32.mrb[77].mxu0 }
 0x1a8   : > { %2213 = vmatprep.mubr.bf16.mxu1 %v4801_v39  ;;  %v2459_v54 = vpop.f32.mrb[78].mxu0 }
 0x1a9   : > { %v2754_v45 = vmax.f32 %v2444_v43, 0.0  ;;  %v2461_v57 = vpop.f32.mrb[79].mxu0  ;;  %v4827_v43 = vld [vmem:[%s4973_s26 + $0x628] ss:$16 sps:$4 sm:$0xff]  }
 0x1aa   : > { %v1999_v47 = vpop.f32.mrb[72].mxu1 }
 0x1ab   : > { %v4044_v50 = vpack.c.bf16 %v2754_v45, %v2753_v44  ;;  %v2000_v51 = vadd.f32 %v5176_v19, %v1999_v47  ;;  %v2001_v52 = vpop.f32.mrb[73].mxu1  ;;  %2671 = vmatmul.mubr.bf16.gmra.mrb[184].mxu0 %v4809_v49  ;;  %v4822_v47 = vld [vmem:[%s4973_s26 + $0x600] ss:$16 sps:$4 sm:$0xff]   ;;  %v4829_v49 = vld [vmem:[%s4973_s26 + $0x64c] ss:$16 sps:$4 sm:$0xff]  }
 0x1ac   : > { %v2002_v56 = vpop.f32.mrb[74].mxu1  ;;  %3740 = vmatprep.mubr.msk.bf16.mxu0 %vm1660_vm0, %v4811_v55  ;;  %v4825_v52 = vld [vmem:[%s4973_s26 + $0x624] ss:$16 sps:$4 sm:$0xff]  }
 0x1ad   : > { %4232 = vst [vmem:[%s5189_s12 + $0x88] sm:$0xff] %v4044_v50   ;;  %v2449_v59 = vadd.f32 %v2448_v27, %v2000_v51  ;;  %v2003_v60 = vadd.f32 %v5176_v19, %v2002_v56  ;;  %v2004_v61 = vpop.f32.mrb[75].mxu1 }
 0x1ae   : > { %v2464_v1 = vpop.f32.mrb[80].mxu0 }
 0x1af   : > { %v2452_v62 = vadd.f32 %v2451_v35, %v2003_v60  ;;  %2214 = vmatmul.mubr.bf16.gmra.mrb[180].mxu1 %v4804_v53  ;;  %v2755_v63 = vmax.f32 %v2449_v59, 0.0  ;;  %v2466_v3 = vpop.f32.mrb[81].mxu0 }
 0x1b0   : > { %2221 = vmatprep.mubr.bf16.mxu1 %v4807_v58  ;;  %v2467_v9 = vpop.f32.mrb[82].mxu0 }
 0x1b1   : > { %v2756_v0 = vmax.f32 %v2452_v62, 0.0  ;;  %v2469_v12 = vpop.f32.mrb[83].mxu0  ;;  %v4833_v62 = vld [vmem:[%s4973_s26 + $0x648] ss:$16 sps:$4 sm:$0xff]  }
 0x1b2   : > { %v2007_v2 = vpop.f32.mrb[76].mxu1 }
 0x1b3   : > { %v4049_v5 = vpack.c.bf16 %v2756_v0, %v2755_v63  ;;  %v2008_v6 = vadd.f32 %v5176_v19, %v2007_v2  ;;  %v2009_v7 = vpop.f32.mrb[77].mxu1  ;;  %2679 = vmatmul.mubr.bf16.gmra.mrb[188].mxu0 %v4815_v4  ;;  %v4828_v2 = vld [vmem:[%s4973_s26 + $0x620] ss:$16 sps:$4 sm:$0xff]   ;;  %v4835_v4 = vld [vmem:[%s4973_s26 + $0x66c] ss:$16 sps:$4 sm:$0xff]  }
 0x1b4   : > { %v2010_v11 = vpop.f32.mrb[78].mxu1  ;;  %3741 = vmatprep.mubr.msk.bf16.mxu0 %vm1660_vm0, %v4817_v10  ;;  %v4831_v7 = vld [vmem:[%s4973_s26 + $0x644] ss:$16 sps:$4 sm:$0xff]  }
 0x1b5   : > { %4233 = vst [vmem:[%s5189_s12 + $0x90] sm:$0xff] %v4049_v5   ;;  %v2457_v14 = vadd.f32 %v2456_v46, %v2008_v6  ;;  %v2011_v15 = vadd.f32 %v5176_v19, %v2010_v11  ;;  %v2012_v16 = vpop.f32.mrb[79].mxu1 }
 0x1b6   : > { %v2472_v21 = vpop.f32.mrb[84].mxu0 }
 0x1b7   : > { %v2460_v17 = vadd.f32 %v2459_v54, %v2011_v15  ;;  %2222 = vmatmul.mubr.bf16.gmra.mrb[184].mxu1 %v4810_v8  ;;  %v2757_v18 = vmax.f32 %v2457_v14, 0.0  ;;  %v2474_v23 = vpop.f32.mrb[85].mxu0  ;;  %v5360_v54 = vld [vmem:[%s5475_s2] ss:$0 sm:$0xff] }
 0x1b8   : > { %2229 = vmatprep.mubr.bf16.mxu1 %v4813_v13  ;;  %v2475_v29 = vpop.f32.mrb[86].mxu0 }
 0x1b9   : > { %v2758_v20 = vmax.f32 %v2460_v17, 0.0  ;;  %v2477_v32 = vpop.f32.mrb[87].mxu0  ;;  %v4839_v17 = vld [vmem:[%s4973_s26 + $0x668] ss:$16 sps:$4 sm:$0xff]  }
 0x1ba   : > { %v2015_v22 = vpop.f32.mrb[80].mxu1 }
 0x1bb   : > { %v4054_v25 = vpack.c.bf16 %v2758_v20, %v2757_v18  ;;  %v2016_v26 = vadd.f32 %v5176_v19, %v2015_v22  ;;  %v2017_v27 = vpop.f32.mrb[81].mxu1  ;;  %2687 = vmatmul.mubr.bf16.gmra.mrb[192].mxu0 %v4821_v24  ;;  %v4834_v22 = vld [vmem:[%s4973_s26 + $0x640] ss:$16 sps:$4 sm:$0xff]  }
 0x1bc   : > { %v2018_v31 = vpop.f32.mrb[82].mxu1  ;;  %3742 = vmatprep.mubr.msk.bf16.mxu0 %vm1660_vm0, %v4823_v30 }
 0x1bd   : > { %4234 = vst [vmem:[%s5189_s12 + $0x98] sm:$0xff] %v4054_v25   ;;  %v2465_v34 = vadd.f32 %v2464_v1, %v2016_v26  ;;  %v2019_v35 = vadd.f32 %v5176_v19, %v2018_v31  ;;  %v2020_v36 = vpop.f32.mrb[83].mxu1  ;;  %v4837_v26 = vld [vmem:[%s4973_s26 + $0x664] ss:$16 sps:$4 sm:$0xff]  }
 0x1be   : > { %v2480_v40 = vpop.f32.mrb[88].mxu0 }
 0x1bf   : > { %v2468_v37 = vadd.f32 %v2467_v9, %v2019_v35  ;;  %2230 = vmatmul.mubr.bf16.gmra.mrb[188].mxu1 %v4816_v28  ;;  %v2759_v38 = vmax.f32 %v2465_v34, 0.0  ;;  %v2482_v42 = vpop.f32.mrb[89].mxu0 }
 0x1c0   : > { %2237 = vmatprep.mubr.bf16.mxu1 %v4819_v33  ;;  %v2483_v48 = vpop.f32.mrb[90].mxu0 }
 0x1c1   : > { %v2760_v39 = vmax.f32 %v2468_v37, 0.0  ;;  %v2485_v51 = vpop.f32.mrb[91].mxu0 }
 0x1c2   : > { %v2023_v41 = vpop.f32.mrb[84].mxu1 }
 0x1c3   : > { %v4059_v44 = vpack.c.bf16 %v2760_v39, %v2759_v38  ;;  %v2024_v45 = vadd.f32 %v5176_v19, %v2023_v41  ;;  %v2025_v46 = vpop.f32.mrb[85].mxu1  ;;  %2695 = vmatmul.mubr.bf16.gmra.mrb[196].mxu0 %v4827_v43  ;;  %v4840_v39 = vld [vmem:[%s4973_s26 + $0x660] ss:$16 sps:$4 sm:$0xff]  }
 0x1c4   : > { %v2026_v50 = vpop.f32.mrb[86].mxu1  ;;  %3743 = vmatprep.mubr.msk.bf16.mxu0 %vm1660_vm0, %v4829_v49 }
 0x1c5   : > { %4235 = vst [vmem:[%s5189_s12 + $0xa0] sm:$0xff] %v4059_v44   ;;  %v2473_v53 = vadd.f32 %v2472_v21, %v2024_v45  ;;  %v2027_v55 = vadd.f32 %v5360_v54, %v2026_v50  ;;  %v2028_v56 = vpop.f32.mrb[87].mxu1 }
 0x1c6   : > { %v2488_v59 = vpop.f32.mrb[92].mxu0 }
 0x1c7   : > { %v2476_v19 = vadd.f32 %v2475_v29, %v2027_v55  ;;  %2238 = vmatmul.mubr.bf16.gmra.mrb[192].mxu1 %v4822_v47  ;;  %v2761_v57 = vmax.f32 %v2473_v53, 0.0  ;;  %v2490_v61 = vpop.f32.mrb[93].mxu0 }
 0x1c8   : > { %2245 = vmatprep.mubr.bf16.mxu1 %v4825_v52  ;;  %v2491_v3 = vpop.f32.mrb[94].mxu0 }
 0x1c9   : > { %v2762_v58 = vmax.f32 %v2476_v19, 0.0  ;;  %v2493_v6 = vpop.f32.mrb[95].mxu0 }
 0x1ca   : > { %v2031_v60 = vpop.f32.mrb[88].mxu1 }
 0x1cb   : > { %v4064_v63 = vpack.c.bf16 %v2762_v58, %v2761_v57  ;;  %v2032_v0 = vadd.f32 %v5360_v54, %v2031_v60  ;;  %v2033_v1 = vpop.f32.mrb[89].mxu1  ;;  %2703 = vmatmul.mubr.bf16.gmra.mrb[200].mxu0 %v4833_v62 }
 0x1cc   : > { %v2034_v5 = vpop.f32.mrb[90].mxu1  ;;  %3744 = vmatprep.mubr.msk.bf16.mxu0 %vm1660_vm0, %v4835_v4 }
 0x1cd   : > { %4236 = vst [vmem:[%s5189_s12 + $0xa8] sm:$0xff] %v4064_v63   ;;  %v2481_v8 = vadd.f32 %v2480_v40, %v2032_v0  ;;  %v2035_v9 = vadd.f32 %v5360_v54, %v2034_v5  ;;  %v2036_v10 = vpop.f32.mrb[91].mxu1 }
 0x1ce   : > { %v2496_v14 = vpop.f32.mrb[96].mxu0 }
 0x1cf   : > { %v2484_v11 = vadd.f32 %v2483_v48, %v2035_v9  ;;  %2246 = vmatmul.mubr.bf16.gmra.mrb[196].mxu1 %v4828_v2  ;;  %v2763_v12 = vmax.f32 %v2481_v8, 0.0  ;;  %v2498_v16 = vpop.f32.mrb[97].mxu0 }
 0x1d0   : > { %2253 = vmatprep.mubr.bf16.mxu1 %v4831_v7  ;;  %v2499_v23 = vpop.f32.mrb[98].mxu0 }
 0x1d1   : > { %v2764_v13 = vmax.f32 %v2484_v11, 0.0  ;;  %v2501_v25 = vpop.f32.mrb[99].mxu0 }
 0x1d2   : > { %v2039_v15 = vpop.f32.mrb[92].mxu1 }
 0x1d3   : > { %v4069_v18 = vpack.c.bf16 %v2764_v13, %v2763_v12  ;;  %v2040_v20 = vadd.f32 %v5360_v54, %v2039_v15  ;;  %v2041_v21 = vpop.f32.mrb[93].mxu1  ;;  %2711 = vmatmul.mubr.bf16.gmra.mrb[204].mxu0 %v4839_v17 }
 0x1d4   : > { %v2042_v24 = vpop.f32.mrb[94].mxu1 }
 0x1d5   : > { %4237 = vst [vmem:[%s5189_s12 + $0xb0] sm:$0xff] %v4069_v18   ;;  %v2489_v27 = vadd.f32 %v2488_v59, %v2040_v20  ;;  %v2043_v28 = vadd.f32 %v5360_v54, %v2042_v24  ;;  %v2044_v29 = vpop.f32.mrb[95].mxu1 }
 0x1d6   : > { %v2504_v33 = vpop.f32.mrb[100].mxu0 }
 0x1d7   : > { %v2492_v30 = vadd.f32 %v2491_v3, %v2043_v28  ;;  %2254 = vmatmul.mubr.bf16.gmra.mrb[200].mxu1 %v4834_v22  ;;  %v2765_v31 = vmax.f32 %v2489_v27, 0.0  ;;  %v2506_v35 = vpop.f32.mrb[101].mxu0 }
 0x1d8   : > { %2261 = vmatprep.mubr.bf16.mxu1 %v4837_v26  ;;  %v2507_v40 = vpop.f32.mrb[102].mxu0 }
 0x1d9   : > { %v2766_v32 = vmax.f32 %v2492_v30, 0.0  ;;  %v2509_v42 = vpop.f32.mrb[103].mxu0 }
 0x1da   : > { %v2047_v34 = vpop.f32.mrb[96].mxu1 }
 0x1db   : > { %v4074_v36 = vpack.c.bf16 %v2766_v32, %v2765_v31  ;;  %v2048_v37 = vadd.f32 %v5360_v54, %v2047_v34  ;;  %v2049_v38 = vpop.f32.mrb[97].mxu1 }
 0x1dc   : > { %v2050_v41 = vpop.f32.mrb[98].mxu1 }
 0x1dd   : > { %4238 = vst [vmem:[%s5189_s12 + $0xb8] sm:$0xff] %v4074_v36   ;;  %v2497_v43 = vadd.f32 %v2496_v14, %v2048_v37  ;;  %v2051_v44 = vadd.f32 %v5360_v54, %v2050_v41  ;;  %v2052_v45 = vpop.f32.mrb[99].mxu1 }
 0x1de   : > { %v2512_v49 = vpop.f32.mrb[104].mxu0 }
 0x1df   : > { %v2500_v46 = vadd.f32 %v2499_v23, %v2051_v44  ;;  %2262 = vmatmul.mubr.bf16.gmra.mrb[204].mxu1 %v4840_v39  ;;  %v2767_v47 = vmax.f32 %v2497_v43, 0.0  ;;  %v2514_v51 = vpop.f32.mrb[105].mxu0 }
 0x1e0   : > { %v2515_v56 = vpop.f32.mrb[106].mxu0 }
 0x1e1   : > { %v2768_v48 = vmax.f32 %v2500_v46, 0.0  ;;  %v2517_v57 = vpop.f32.mrb[107].mxu0 }
 0x1e2   : > { %v2055_v50 = vpop.f32.mrb[100].mxu1 }
 0x1e3   : > { %v4079_v52 = vpack.c.bf16 %v2768_v48, %v2767_v47  ;;  %v2056_v53 = vadd.f32 %v5360_v54, %v2055_v50  ;;  %v2057_v55 = vpop.f32.mrb[101].mxu1 }
 0x1e4   : > { %v2058_v19 = vpop.f32.mrb[102].mxu1 }
 0x1e5   : > { %4239 = vst [vmem:[%s5189_s12 + $0xc0] sm:$0xff] %v4079_v52   ;;  %v2505_v58 = vadd.f32 %v2504_v33, %v2056_v53  ;;  %v2059_v59 = vadd.f32 %v5360_v54, %v2058_v19  ;;  %v2060_v60 = vpop.f32.mrb[103].mxu1 }
 0x1e6   : > { %v2520_v0 = vpop.f32.mrb[108].mxu0 }
 0x1e7   : > { %v2508_v61 = vadd.f32 %v2507_v40, %v2059_v59  ;;  %v2769_v62 = vmax.f32 %v2505_v58, 0.0  ;;  %v2522_v2 = vpop.f32.mrb[109].mxu0 }
 0x1e8   : > { %v2523_v6 = vpop.f32.mrb[110].mxu0 }
 0x1e9   : > { %v2770_v63 = vmax.f32 %v2508_v61, 0.0  ;;  %v2525_v8 = vpop.f32.mrb[111].mxu0 }
 0x1ea   : > { %v2063_v1 = vpop.f32.mrb[104].mxu1 }
 0x1eb   : > { %v4084_v3 = vpack.c.bf16 %v2770_v63, %v2769_v62  ;;  %v2064_v4 = vadd.f32 %v5360_v54, %v2063_v1  ;;  %v2065_v5 = vpop.f32.mrb[105].mxu1 }
 0x1ec   : > { %v2066_v7 = vpop.f32.mrb[106].mxu1 }
 0x1ed   : > { %4240 = vst [vmem:[%s5189_s12 + $0xc8] sm:$0xff] %v4084_v3   ;;  %v2513_v9 = vadd.f32 %v2512_v49, %v2064_v4  ;;  %v2067_v10 = vadd.f32 %v5360_v54, %v2066_v7  ;;  %v2068_v11 = vpop.f32.mrb[107].mxu1 }
 0x1ee   : > { %v2528_v15 = vpop.f32.mrb[112].mxu0 }
 0x1ef   : > { %v2516_v12 = vadd.f32 %v2515_v56, %v2067_v10  ;;  %v2771_v13 = vmax.f32 %v2513_v9, 0.0  ;;  %v2530_v17 = vpop.f32.mrb[113].mxu0 }
 0x1f0   : > { %v2531_v22 = vpop.f32.mrb[114].mxu0 }
 0x1f1   : > { %v2772_v14 = vmax.f32 %v2516_v12, 0.0  ;;  %v2533_v24 = vpop.f32.mrb[115].mxu0 }
 0x1f2   : > { %v2071_v16 = vpop.f32.mrb[108].mxu1 }
 0x1f3   : > { %v4089_v18 = vpack.c.bf16 %v2772_v14, %v2771_v13  ;;  %v2072_v20 = vadd.f32 %v5360_v54, %v2071_v16  ;;  %v2073_v21 = vpop.f32.mrb[109].mxu1 }
 0x1f4   : > { %v2074_v23 = vpop.f32.mrb[110].mxu1 }
 0x1f5   : > { %4241 = vst [vmem:[%s5189_s12 + $0xd0] sm:$0xff] %v4089_v18   ;;  %v2521_v25 = vadd.f32 %v2520_v0, %v2072_v20  ;;  %v2075_v26 = vadd.f32 %v5360_v54, %v2074_v23  ;;  %v2076_v27 = vpop.f32.mrb[111].mxu1 }
 0x1f6   : > { %v2536_v31 = vpop.f32.mrb[116].mxu0 }
 0x1f7   : > { %v2524_v28 = vadd.f32 %v2523_v6, %v2075_v26  ;;  %v2773_v29 = vmax.f32 %v2521_v25, 0.0  ;;  %v2538_v33 = vpop.f32.mrb[117].mxu0 }
 0x1f8   : > { %v2539_v37 = vpop.f32.mrb[118].mxu0 }
 0x1f9   : > { %v2774_v30 = vmax.f32 %v2524_v28, 0.0  ;;  %v2541_v39 = vpop.f32.mrb[119].mxu0 }
 0x1fa   : > { %v2079_v32 = vpop.f32.mrb[112].mxu1 }
 0x1fb   : > { %v4094_v34 = vpack.c.bf16 %v2774_v30, %v2773_v29  ;;  %v2080_v35 = vadd.f32 %v5360_v54, %v2079_v32  ;;  %v2081_v36 = vpop.f32.mrb[113].mxu1 }
 0x1fc   : > { %v2082_v38 = vpop.f32.mrb[114].mxu1 }
 0x1fd   : > { %4242 = vst [vmem:[%s5189_s12 + $0xd8] sm:$0xff] %v4094_v34   ;;  %v2529_v40 = vadd.f32 %v2528_v15, %v2080_v35  ;;  %v2083_v41 = vadd.f32 %v5360_v54, %v2082_v38  ;;  %v2084_v42 = vpop.f32.mrb[115].mxu1 }
 0x1fe   : > { %v2544_v46 = vpop.f32.mrb[120].mxu0 }
 0x1ff   : > { %v2532_v43 = vadd.f32 %v2531_v22, %v2083_v41  ;;  %v2775_v44 = vmax.f32 %v2529_v40, 0.0  ;;  %v2546_v48 = vpop.f32.mrb[121].mxu0 }
 0x200   : > { %v2547_v52 = vpop.f32.mrb[122].mxu0 }
 0x201   : > { %v2776_v45 = vmax.f32 %v2532_v43, 0.0  ;;  %v2549_v55 = vpop.f32.mrb[123].mxu0 }
 0x202   : > { %v2087_v47 = vpop.f32.mrb[116].mxu1 }
 0x203   : > { %v4099_v49 = vpack.c.bf16 %v2776_v45, %v2775_v44  ;;  %v2088_v50 = vadd.f32 %v5360_v54, %v2087_v47  ;;  %v2089_v51 = vpop.f32.mrb[117].mxu1 }
 0x204   : > { %v2090_v53 = vpop.f32.mrb[118].mxu1 }
 0x205   : > { %4243 = vst [vmem:[%s5189_s12 + $0xe0] sm:$0xff] %v4099_v49   ;;  %v2537_v56 = vadd.f32 %v2536_v31, %v2088_v50  ;;  %v2091_v19 = vadd.f32 %v5360_v54, %v2090_v53  ;;  %v2092_v57 = vpop.f32.mrb[119].mxu1 }
 0x206   : > { %v2552_v61 = vpop.f32.mrb[124].mxu0 }
 0x207   : > { %v2540_v58 = vadd.f32 %v2539_v37, %v2091_v19  ;;  %v2777_v59 = vmax.f32 %v2537_v56, 0.0  ;;  %v2554_v63 = vpop.f32.mrb[125].mxu0 }
 0x208   : > { %v2555_v3 = vpop.f32.mrb[126].mxu0 }
 0x209   : > { %v2778_v60 = vmax.f32 %v2540_v58, 0.0  ;;  %v2557_v5 = vpop.f32.mrb[127].mxu0 }
 0x20a   : > { %v2095_v62 = vpop.f32.mrb[120].mxu1 }
 0x20b   : > { %v4104_v0 = vpack.c.bf16 %v2778_v60, %v2777_v59  ;;  %v2096_v1 = vadd.f32 %v5360_v54, %v2095_v62  ;;  %v2097_v2 = vpop.f32.mrb[121].mxu1 }
 0x20c   : > { %v2098_v4 = vpop.f32.mrb[122].mxu1 }
 0x20d   : > { %4244 = vst [vmem:[%s5189_s12 + $0xe8] sm:$0xff] %v4104_v0   ;;  %v2545_v6 = vadd.f32 %v2544_v46, %v2096_v1  ;;  %v2099_v7 = vadd.f32 %v5360_v54, %v2098_v4  ;;  %v2100_v8 = vpop.f32.mrb[123].mxu1 }
 0x20e   : > { %v2560_v12 = vpop.f32.mrb[128].mxu0 }
 0x20f   : > { %v2548_v9 = vadd.f32 %v2547_v52, %v2099_v7  ;;  %v2779_v10 = vmax.f32 %v2545_v6, 0.0  ;;  %v2562_v14 = vpop.f32.mrb[129].mxu0 }
 0x210   : > { %v2563_v18 = vpop.f32.mrb[130].mxu0 }
 0x211   : > { %v2780_v11 = vmax.f32 %v2548_v9, 0.0  ;;  %v2565_v21 = vpop.f32.mrb[131].mxu0 }
 0x212   : > { %v2103_v13 = vpop.f32.mrb[124].mxu1 }
 0x213   : > { %v4109_v15 = vpack.c.bf16 %v2780_v11, %v2779_v10  ;;  %v2104_v16 = vadd.f32 %v5360_v54, %v2103_v13  ;;  %v2105_v17 = vpop.f32.mrb[125].mxu1 }
 0x214   : > { %v2106_v20 = vpop.f32.mrb[126].mxu1 }
 0x215   : > { %4245 = vst [vmem:[%s5189_s12 + $0xf0] sm:$0xff] %v4109_v15   ;;  %v2553_v22 = vadd.f32 %v2552_v61, %v2104_v16  ;;  %v2107_v23 = vadd.f32 %v5360_v54, %v2106_v20  ;;  %v2108_v24 = vpop.f32.mrb[127].mxu1 }
 0x216   : > { %v2568_v28 = vpop.f32.mrb[132].mxu0 }
 0x217   : > { %v2556_v25 = vadd.f32 %v2555_v3, %v2107_v23  ;;  %v2781_v26 = vmax.f32 %v2553_v22, 0.0  ;;  %v2570_v30 = vpop.f32.mrb[133].mxu0 }
 0x218   : > { %v2571_v34 = vpop.f32.mrb[134].mxu0 }
 0x219   : > { %v2782_v27 = vmax.f32 %v2556_v25, 0.0  ;;  %v2573_v36 = vpop.f32.mrb[135].mxu0 }
 0x21a   : > { %v2111_v29 = vpop.f32.mrb[128].mxu1 }
 0x21b   : > { %v4114_v31 = vpack.c.bf16 %v2782_v27, %v2781_v26  ;;  %v2112_v32 = vadd.f32 %v5360_v54, %v2111_v29  ;;  %v2113_v33 = vpop.f32.mrb[129].mxu1 }
 0x21c   : > { %v2114_v35 = vpop.f32.mrb[130].mxu1 }
 0x21d   : > { %4246 = vst [vmem:[%s5189_s12 + $0xf8] sm:$0xff] %v4114_v31   ;;  %v2561_v37 = vadd.f32 %v2560_v12, %v2112_v32  ;;  %v2115_v38 = vadd.f32 %v5360_v54, %v2114_v35  ;;  %v2116_v39 = vpop.f32.mrb[131].mxu1 }
 0x21e   : > { %v2576_v43 = vpop.f32.mrb[136].mxu0 }
 0x21f   : > { %v2564_v40 = vadd.f32 %v2563_v18, %v2115_v38  ;;  %v2783_v41 = vmax.f32 %v2561_v37, 0.0  ;;  %v2578_v45 = vpop.f32.mrb[137].mxu0 }
 0x220   : > { %v2579_v49 = vpop.f32.mrb[138].mxu0 }
 0x221   : > { %v2784_v42 = vmax.f32 %v2564_v40, 0.0  ;;  %v2581_v51 = vpop.f32.mrb[139].mxu0 }
 0x222   : > { %v2119_v44 = vpop.f32.mrb[132].mxu1 }
 0x223   : > { %v4119_v46 = vpack.c.bf16 %v2784_v42, %v2783_v41  ;;  %v2120_v47 = vadd.f32 %v5360_v54, %v2119_v44  ;;  %v2121_v48 = vpop.f32.mrb[133].mxu1 }
 0x224   : > { %v2122_v50 = vpop.f32.mrb[134].mxu1 }
 0x225   : > { %4247 = vst [vmem:[%s5189_s12 + $0x100] sm:$0xff] %v4119_v46   ;;  %v2569_v52 = vadd.f32 %v2568_v28, %v2120_v47  ;;  %v2123_v53 = vadd.f32 %v5360_v54, %v2122_v50  ;;  %v2124_v55 = vpop.f32.mrb[135].mxu1 }
 0x226   : > { %v2584_v58 = vpop.f32.mrb[140].mxu0 }
 0x227   : > { %v2572_v56 = vadd.f32 %v2571_v34, %v2123_v53  ;;  %v2785_v19 = vmax.f32 %v2569_v52, 0.0  ;;  %v2586_v60 = vpop.f32.mrb[141].mxu0 }
 0x228   : > { %v2587_v0 = vpop.f32.mrb[142].mxu0 }
 0x229   : > { %v2786_v57 = vmax.f32 %v2572_v56, 0.0  ;;  %v2589_v2 = vpop.f32.mrb[143].mxu0 }
 0x22a   : > { %v2127_v59 = vpop.f32.mrb[136].mxu1 }
 0x22b   : > { %v4124_v61 = vpack.c.bf16 %v2786_v57, %v2785_v19  ;;  %v2128_v62 = vadd.f32 %v5360_v54, %v2127_v59  ;;  %v2129_v63 = vpop.f32.mrb[137].mxu1 }
 0x22c   : > { %v2130_v1 = vpop.f32.mrb[138].mxu1 }
 0x22d   : > { %4248 = vst [vmem:[%s5189_s12 + $0x108] sm:$0xff] %v4124_v61   ;;  %v2577_v3 = vadd.f32 %v2576_v43, %v2128_v62  ;;  %v2131_v4 = vadd.f32 %v5360_v54, %v2130_v1  ;;  %v2132_v5 = vpop.f32.mrb[139].mxu1 }
 0x22e   : > { %v2592_v9 = vpop.f32.mrb[144].mxu0 }
 0x22f   : > { %v2580_v6 = vadd.f32 %v2579_v49, %v2131_v4  ;;  %v2787_v7 = vmax.f32 %v2577_v3, 0.0  ;;  %v2594_v11 = vpop.f32.mrb[145].mxu0 }
 0x230   : > { %v2595_v15 = vpop.f32.mrb[146].mxu0 }
 0x231   : > { %v2788_v8 = vmax.f32 %v2580_v6, 0.0  ;;  %v2597_v17 = vpop.f32.mrb[147].mxu0 }
 0x232   : > { %v2135_v10 = vpop.f32.mrb[140].mxu1 }
 0x233   : > { %v4129_v12 = vpack.c.bf16 %v2788_v8, %v2787_v7  ;;  %v2136_v13 = vadd.f32 %v5360_v54, %v2135_v10  ;;  %v2137_v14 = vpop.f32.mrb[141].mxu1 }
 0x234   : > { %v2138_v16 = vpop.f32.mrb[142].mxu1 }
 0x235   : > { %4249 = vst [vmem:[%s5189_s12 + $0x110] sm:$0xff] %v4129_v12   ;;  %v2585_v18 = vadd.f32 %v2584_v58, %v2136_v13  ;;  %v2139_v20 = vadd.f32 %v5360_v54, %v2138_v16  ;;  %v2140_v21 = vpop.f32.mrb[143].mxu1 }
 0x236   : > { %v2600_v25 = vpop.f32.mrb[148].mxu0 }
 0x237   : > { %v2588_v22 = vadd.f32 %v2587_v0, %v2139_v20  ;;  %v2789_v23 = vmax.f32 %v2585_v18, 0.0  ;;  %v2602_v27 = vpop.f32.mrb[149].mxu0 }
 0x238   : > { %v2603_v31 = vpop.f32.mrb[150].mxu0 }
 0x239   : > { %v2790_v24 = vmax.f32 %v2588_v22, 0.0  ;;  %v2605_v33 = vpop.f32.mrb[151].mxu0 }
 0x23a   : > { %v2143_v26 = vpop.f32.mrb[144].mxu1 }
 0x23b   : > { %v4134_v28 = vpack.c.bf16 %v2790_v24, %v2789_v23  ;;  %v2144_v29 = vadd.f32 %v5360_v54, %v2143_v26  ;;  %v2145_v30 = vpop.f32.mrb[145].mxu1 }
 0x23c   : > { %v2146_v32 = vpop.f32.mrb[146].mxu1 }
 0x23d   : > { %4250 = vst [vmem:[%s5189_s12 + $0x118] sm:$0xff] %v4134_v28   ;;  %v2593_v34 = vadd.f32 %v2592_v9, %v2144_v29  ;;  %v2147_v35 = vadd.f32 %v5360_v54, %v2146_v32  ;;  %v2148_v36 = vpop.f32.mrb[147].mxu1 }
 0x23e   : > { %v2608_v40 = vpop.f32.mrb[152].mxu0 }
 0x23f   : > { %v2596_v37 = vadd.f32 %v2595_v15, %v2147_v35  ;;  %v2791_v38 = vmax.f32 %v2593_v34, 0.0  ;;  %v2610_v42 = vpop.f32.mrb[153].mxu0 }
 0x240   : > { %v2611_v46 = vpop.f32.mrb[154].mxu0 }
 0x241   : > { %v2792_v39 = vmax.f32 %v2596_v37, 0.0  ;;  %v2613_v48 = vpop.f32.mrb[155].mxu0 }
 0x242   : > { %v2151_v41 = vpop.f32.mrb[148].mxu1 }
 0x243   : > { %v4139_v43 = vpack.c.bf16 %v2792_v39, %v2791_v38  ;;  %v2152_v44 = vadd.f32 %v5360_v54, %v2151_v41  ;;  %v2153_v45 = vpop.f32.mrb[149].mxu1 }
 0x244   : > { %v2154_v47 = vpop.f32.mrb[150].mxu1 }
 0x245   : > { %4251 = vst [vmem:[%s5189_s12 + $0x120] sm:$0xff] %v4139_v43   ;;  %v2601_v49 = vadd.f32 %v2600_v25, %v2152_v44  ;;  %v2155_v50 = vadd.f32 %v5360_v54, %v2154_v47  ;;  %v2156_v51 = vpop.f32.mrb[151].mxu1 }
 0x246   : > { %v2616_v56 = vpop.f32.mrb[156].mxu0 }
 0x247   : > { %v2604_v52 = vadd.f32 %v2603_v31, %v2155_v50  ;;  %v2793_v53 = vmax.f32 %v2601_v49, 0.0  ;;  %v2618_v57 = vpop.f32.mrb[157].mxu0 }
 0x248   : > { %v2619_v61 = vpop.f32.mrb[158].mxu0 }
 0x249   : > { %v2794_v55 = vmax.f32 %v2604_v52, 0.0  ;;  %v2621_v63 = vpop.f32.mrb[159].mxu0 }
 0x24a   : > { %v2159_v19 = vpop.f32.mrb[152].mxu1 }
 0x24b   : > { %v4144_v58 = vpack.c.bf16 %v2794_v55, %v2793_v53  ;;  %v2160_v59 = vadd.f32 %v5360_v54, %v2159_v19  ;;  %v2161_v60 = vpop.f32.mrb[153].mxu1 }
 0x24c   : > { %v2162_v62 = vpop.f32.mrb[154].mxu1 }
 0x24d   : > { %4252 = vst [vmem:[%s5189_s12 + $0x128] sm:$0xff] %v4144_v58   ;;  %v2609_v0 = vadd.f32 %v2608_v40, %v2160_v59  ;;  %v2163_v1 = vadd.f32 %v5360_v54, %v2162_v62  ;;  %v2164_v2 = vpop.f32.mrb[155].mxu1 }
 0x24e   : > { %v2624_v6 = vpop.f32.mrb[160].mxu0 }
 0x24f   : > { %v2612_v3 = vadd.f32 %v2611_v46, %v2163_v1  ;;  %v2795_v4 = vmax.f32 %v2609_v0, 0.0  ;;  %v2626_v8 = vpop.f32.mrb[161].mxu0 }
 0x250   : > { %v2627_v12 = vpop.f32.mrb[162].mxu0 }
 0x251   : > { %v2796_v5 = vmax.f32 %v2612_v3, 0.0  ;;  %v2629_v14 = vpop.f32.mrb[163].mxu0 }
 0x252   : > { %v2167_v7 = vpop.f32.mrb[156].mxu1 }
 0x253   : > { %v4149_v9 = vpack.c.bf16 %v2796_v5, %v2795_v4  ;;  %v2168_v10 = vadd.f32 %v5360_v54, %v2167_v7  ;;  %v2169_v11 = vpop.f32.mrb[157].mxu1 }
 0x254   : > { %v2170_v13 = vpop.f32.mrb[158].mxu1 }
 0x255   : > { %4253 = vst [vmem:[%s5189_s12 + $0x130] sm:$0xff] %v4149_v9   ;;  %v2617_v15 = vadd.f32 %v2616_v56, %v2168_v10  ;;  %v2171_v16 = vadd.f32 %v5360_v54, %v2170_v13  ;;  %v2172_v17 = vpop.f32.mrb[159].mxu1 }
 0x256   : > { %v2632_v22 = vpop.f32.mrb[164].mxu0 }
 0x257   : > { %v2620_v18 = vadd.f32 %v2619_v61, %v2171_v16  ;;  %v2797_v20 = vmax.f32 %v2617_v15, 0.0  ;;  %v2634_v24 = vpop.f32.mrb[165].mxu0 }
 0x258   : > { %v2635_v28 = vpop.f32.mrb[166].mxu0 }
 0x259   : > { %v2798_v21 = vmax.f32 %v2620_v18, 0.0  ;;  %v2637_v30 = vpop.f32.mrb[167].mxu0 }
 0x25a   : > { %v2175_v23 = vpop.f32.mrb[160].mxu1 }
 0x25b   : > { %v4154_v25 = vpack.c.bf16 %v2798_v21, %v2797_v20  ;;  %v2176_v26 = vadd.f32 %v5360_v54, %v2175_v23  ;;  %v2177_v27 = vpop.f32.mrb[161].mxu1 }
 0x25c   : > { %v2178_v29 = vpop.f32.mrb[162].mxu1 }
 0x25d   : > { %4254 = vst [vmem:[%s5189_s12 + $0x138] sm:$0xff] %v4154_v25   ;;  %v2625_v31 = vadd.f32 %v2624_v6, %v2176_v26  ;;  %v2179_v32 = vadd.f32 %v5360_v54, %v2178_v29  ;;  %v2180_v33 = vpop.f32.mrb[163].mxu1 }
 0x25e   : > { %v2640_v37 = vpop.f32.mrb[168].mxu0 }
 0x25f   : > { %v2628_v34 = vadd.f32 %v2627_v12, %v2179_v32  ;;  %v2799_v35 = vmax.f32 %v2625_v31, 0.0  ;;  %v2642_v39 = vpop.f32.mrb[169].mxu0 }
 0x260   : > { %v2643_v43 = vpop.f32.mrb[170].mxu0 }
 0x261   : > { %v2800_v36 = vmax.f32 %v2628_v34, 0.0  ;;  %v2645_v45 = vpop.f32.mrb[171].mxu0 }
 0x262   : > { %v2183_v38 = vpop.f32.mrb[164].mxu1 }
 0x263   : > { %v4159_v40 = vpack.c.bf16 %v2800_v36, %v2799_v35  ;;  %v2184_v41 = vadd.f32 %v5360_v54, %v2183_v38  ;;  %v2185_v42 = vpop.f32.mrb[165].mxu1 }
 0x264   : > { %v2186_v44 = vpop.f32.mrb[166].mxu1 }
 0x265   : > { %4255 = vst [vmem:[%s5189_s12 + $0x140] sm:$0xff] %v4159_v40   ;;  %v2633_v46 = vadd.f32 %v2632_v22, %v2184_v41  ;;  %v2187_v47 = vadd.f32 %v5360_v54, %v2186_v44  ;;  %v2188_v48 = vpop.f32.mrb[167].mxu1 }
 0x266   : > { %v2648_v52 = vpop.f32.mrb[172].mxu0 }
 0x267   : > { %v2636_v49 = vadd.f32 %v2635_v28, %v2187_v47  ;;  %v2801_v50 = vmax.f32 %v2633_v46, 0.0  ;;  %v2650_v55 = vpop.f32.mrb[173].mxu0 }
 0x268   : > { %v2651_v58 = vpop.f32.mrb[174].mxu0 }
 0x269   : > { %v2802_v51 = vmax.f32 %v2636_v49, 0.0  ;;  %v2653_v60 = vpop.f32.mrb[175].mxu0 }
 0x26a   : > { %v2191_v53 = vpop.f32.mrb[168].mxu1 }
 0x26b   : > { %v4164_v56 = vpack.c.bf16 %v2802_v51, %v2801_v50  ;;  %v2192_v19 = vadd.f32 %v5360_v54, %v2191_v53  ;;  %v2193_v57 = vpop.f32.mrb[169].mxu1 }
 0x26c   : > { %v2194_v59 = vpop.f32.mrb[170].mxu1 }
 0x26d   : > { %4256 = vst [vmem:[%s5189_s12 + $0x148] sm:$0xff] %v4164_v56   ;;  %v2641_v61 = vadd.f32 %v2640_v37, %v2192_v19  ;;  %v2195_v62 = vadd.f32 %v5360_v54, %v2194_v59  ;;  %v2196_v63 = vpop.f32.mrb[171].mxu1 }
 0x26e   : > { %v2656_v3 = vpop.f32.mrb[176].mxu0 }
 0x26f   : > { %v2644_v0 = vadd.f32 %v2643_v43, %v2195_v62  ;;  %v2803_v1 = vmax.f32 %v2641_v61, 0.0  ;;  %v2658_v5 = vpop.f32.mrb[177].mxu0 }
 0x270   : > { %v2659_v9 = vpop.f32.mrb[178].mxu0 }
 0x271   : > { %v2804_v2 = vmax.f32 %v2644_v0, 0.0  ;;  %v2661_v11 = vpop.f32.mrb[179].mxu0 }
 0x272   : > { %v2199_v4 = vpop.f32.mrb[172].mxu1 }
 0x273   : > { %v4169_v6 = vpack.c.bf16 %v2804_v2, %v2803_v1  ;;  %v2200_v7 = vadd.f32 %v5360_v54, %v2199_v4  ;;  %v2201_v8 = vpop.f32.mrb[173].mxu1 }
 0x274   : > { %v2202_v10 = vpop.f32.mrb[174].mxu1 }
 0x275   : > { %4257 = vst [vmem:[%s5189_s12 + $0x150] sm:$0xff] %v4169_v6   ;;  %v2649_v12 = vadd.f32 %v2648_v52, %v2200_v7  ;;  %v2203_v13 = vadd.f32 %v5360_v54, %v2202_v10  ;;  %v2204_v14 = vpop.f32.mrb[175].mxu1 }
 0x276   : > { %v2664_v18 = vpop.f32.mrb[180].mxu0 }
 0x277   : > { %v2652_v15 = vadd.f32 %v2651_v58, %v2203_v13  ;;  %v2805_v16 = vmax.f32 %v2649_v12, 0.0  ;;  %v2666_v21 = vpop.f32.mrb[181].mxu0 }
 0x278   : > { %v2667_v25 = vpop.f32.mrb[182].mxu0 }
 0x279   : > { %v2806_v17 = vmax.f32 %v2652_v15, 0.0  ;;  %v2669_v27 = vpop.f32.mrb[183].mxu0 }
 0x27a   : > { %v2207_v20 = vpop.f32.mrb[176].mxu1 }
 0x27b   : > { %v4174_v22 = vpack.c.bf16 %v2806_v17, %v2805_v16  ;;  %v2208_v23 = vadd.f32 %v5360_v54, %v2207_v20  ;;  %v2209_v24 = vpop.f32.mrb[177].mxu1 }
 0x27c   : > { %v2210_v26 = vpop.f32.mrb[178].mxu1 }
 0x27d   : > { %4258 = vst [vmem:[%s5189_s12 + $0x158] sm:$0xff] %v4174_v22   ;;  %v2657_v28 = vadd.f32 %v2656_v3, %v2208_v23  ;;  %v2211_v29 = vadd.f32 %v5360_v54, %v2210_v26  ;;  %v2212_v30 = vpop.f32.mrb[179].mxu1 }
 0x27e   : > { %v2672_v34 = vpop.f32.mrb[184].mxu0 }
 0x27f   : > { %v2660_v31 = vadd.f32 %v2659_v9, %v2211_v29  ;;  %v2807_v32 = vmax.f32 %v2657_v28, 0.0  ;;  %v2674_v36 = vpop.f32.mrb[185].mxu0 }
 0x280   : > { %v2675_v40 = vpop.f32.mrb[186].mxu0 }
 0x281   : > { %v2808_v33 = vmax.f32 %v2660_v31, 0.0  ;;  %v2677_v42 = vpop.f32.mrb[187].mxu0 }
 0x282   : > { %v2215_v35 = vpop.f32.mrb[180].mxu1 }
 0x283   : > { %v4179_v37 = vpack.c.bf16 %v2808_v33, %v2807_v32  ;;  %v2216_v38 = vadd.f32 %v5360_v54, %v2215_v35  ;;  %v2217_v39 = vpop.f32.mrb[181].mxu1 }
 0x284   : > { %v2218_v41 = vpop.f32.mrb[182].mxu1 }
 0x285   : > { %4259 = vst [vmem:[%s5189_s12 + $0x160] sm:$0xff] %v4179_v37   ;;  %v2665_v43 = vadd.f32 %v2664_v18, %v2216_v38  ;;  %v2219_v44 = vadd.f32 %v5360_v54, %v2218_v41  ;;  %v2220_v45 = vpop.f32.mrb[183].mxu1 }
 0x286   : > { %v2680_v49 = vpop.f32.mrb[188].mxu0 }
 0x287   : > { %v2668_v46 = vadd.f32 %v2667_v25, %v2219_v44  ;;  %v2809_v47 = vmax.f32 %v2665_v43, 0.0  ;;  %v2682_v51 = vpop.f32.mrb[189].mxu0 }
 0x288   : > { %v2683_v56 = vpop.f32.mrb[190].mxu0 }
 0x289   : > { %v2810_v48 = vmax.f32 %v2668_v46, 0.0  ;;  %v2685_v57 = vpop.f32.mrb[191].mxu0 }
 0x28a   : > { %v2223_v50 = vpop.f32.mrb[184].mxu1 }
 0x28b   : > { %v4184_v52 = vpack.c.bf16 %v2810_v48, %v2809_v47  ;;  %v2224_v53 = vadd.f32 %v5360_v54, %v2223_v50  ;;  %v2225_v55 = vpop.f32.mrb[185].mxu1 }
 0x28c   : > { %v2226_v19 = vpop.f32.mrb[186].mxu1 }
 0x28d   : > { %4260 = vst [vmem:[%s5189_s12 + $0x168] sm:$0xff] %v4184_v52   ;;  %v2673_v58 = vadd.f32 %v2672_v34, %v2224_v53  ;;  %v2227_v59 = vadd.f32 %v5360_v54, %v2226_v19  ;;  %v2228_v60 = vpop.f32.mrb[187].mxu1 }
 0x28e   : > { %v2688_v0 = vpop.f32.mrb[192].mxu0 }
 0x28f   : > { %v2676_v61 = vadd.f32 %v2675_v40, %v2227_v59  ;;  %v2811_v62 = vmax.f32 %v2673_v58, 0.0  ;;  %v2690_v2 = vpop.f32.mrb[193].mxu0 }
 0x290   : > { %v2691_v6 = vpop.f32.mrb[194].mxu0 }
 0x291   : > { %v2812_v63 = vmax.f32 %v2676_v61, 0.0  ;;  %v2693_v8 = vpop.f32.mrb[195].mxu0 }
 0x292   : > { %v2231_v1 = vpop.f32.mrb[188].mxu1 }
 0x293   : > { %v4189_v3 = vpack.c.bf16 %v2812_v63, %v2811_v62  ;;  %v2232_v4 = vadd.f32 %v5360_v54, %v2231_v1  ;;  %v2233_v5 = vpop.f32.mrb[189].mxu1 }
 0x294   : > { %v2234_v7 = vpop.f32.mrb[190].mxu1 }
 0x295   : > { %4261 = vst [vmem:[%s5189_s12 + $0x170] sm:$0xff] %v4189_v3   ;;  %v2681_v9 = vadd.f32 %v2680_v49, %v2232_v4  ;;  %v2235_v10 = vadd.f32 %v5360_v54, %v2234_v7  ;;  %v2236_v11 = vpop.f32.mrb[191].mxu1 }
 0x296   : > { %v2696_v15 = vpop.f32.mrb[196].mxu0 }
 0x297   : > { %v2684_v12 = vadd.f32 %v2683_v56, %v2235_v10  ;;  %v2813_v13 = vmax.f32 %v2681_v9, 0.0  ;;  %v2698_v17 = vpop.f32.mrb[197].mxu0 }
 0x298   : > { %v2699_v22 = vpop.f32.mrb[198].mxu0 }
 0x299   : > { %v2814_v14 = vmax.f32 %v2684_v12, 0.0  ;;  %v2701_v24 = vpop.f32.mrb[199].mxu0 }
 0x29a   : > { %v2239_v16 = vpop.f32.mrb[192].mxu1 }
 0x29b   : > { %v4194_v18 = vpack.c.bf16 %v2814_v14, %v2813_v13  ;;  %v2240_v20 = vadd.f32 %v5360_v54, %v2239_v16  ;;  %v2241_v21 = vpop.f32.mrb[193].mxu1 }
 0x29c   : > { %v2242_v23 = vpop.f32.mrb[194].mxu1 }
 0x29d   : > { %4262 = vst [vmem:[%s5189_s12 + $0x178] sm:$0xff] %v4194_v18   ;;  %v2689_v25 = vadd.f32 %v2688_v0, %v2240_v20  ;;  %v2243_v26 = vadd.f32 %v5360_v54, %v2242_v23  ;;  %v2244_v27 = vpop.f32.mrb[195].mxu1 }
 0x29e   : > { %v2704_v31 = vpop.f32.mrb[200].mxu0 }
 0x29f   : > { %v2692_v28 = vadd.f32 %v2691_v6, %v2243_v26  ;;  %v2815_v29 = vmax.f32 %v2689_v25, 0.0  ;;  %v2706_v33 = vpop.f32.mrb[201].mxu0 }
 0x2a0   : > { %v2707_v37 = vpop.f32.mrb[202].mxu0 }
 0x2a1   : > { %v2816_v30 = vmax.f32 %v2692_v28, 0.0  ;;  %v2709_v39 = vpop.f32.mrb[203].mxu0 }
 0x2a2   : > { %v2247_v32 = vpop.f32.mrb[196].mxu1 }
 0x2a3   : > { %v4199_v34 = vpack.c.bf16 %v2816_v30, %v2815_v29  ;;  %v2248_v35 = vadd.f32 %v5360_v54, %v2247_v32  ;;  %v2249_v36 = vpop.f32.mrb[197].mxu1 }
 0x2a4   : > { %v2250_v38 = vpop.f32.mrb[198].mxu1 }
 0x2a5   : > { %4263 = vst [vmem:[%s5189_s12 + $0x180] sm:$0xff] %v4199_v34   ;;  %v2697_v40 = vadd.f32 %v2696_v15, %v2248_v35  ;;  %v2251_v41 = vadd.f32 %v5360_v54, %v2250_v38  ;;  %v2252_v42 = vpop.f32.mrb[199].mxu1 }
 0x2a6   : > { %v2712_v46 = vpop.f32.mrb[204].mxu0 }
 0x2a7   : > { %v2700_v43 = vadd.f32 %v2699_v22, %v2251_v41  ;;  %v2817_v44 = vmax.f32 %v2697_v40, 0.0  ;;  %v2714_v48 = vpop.f32.mrb[205].mxu0 }
 0x2a8   : > { %v2715_v52 = vpop.f32.mrb[206].mxu0 }
 0x2a9   : > { %v2818_v45 = vmax.f32 %v2700_v43, 0.0  ;;  %v2717_v55 = vpop.f32.mrb[207].mxu0 }
 0x2aa   : > { %v2255_v47 = vpop.f32.mrb[200].mxu1 }
 0x2ab   : > { %v4204_v49 = vpack.c.bf16 %v2818_v45, %v2817_v44  ;;  %v2256_v50 = vadd.f32 %v5360_v54, %v2255_v47  ;;  %v2257_v51 = vpop.f32.mrb[201].mxu1 }
 0x2ac   : > { %v2258_v53 = vpop.f32.mrb[202].mxu1 }
 0x2ad   : > { %4264 = vst [vmem:[%s5189_s12 + $0x188] sm:$0xff] %v4204_v49   ;;  %v2705_v56 = vadd.f32 %v2704_v31, %v2256_v50  ;;  %v2259_v19 = vadd.f32 %v5360_v54, %v2258_v53  ;;  %v2260_v57 = vpop.f32.mrb[203].mxu1 }
 0x2af   : > { %v2708_v58 = vadd.f32 %v2707_v37, %v2259_v19  ;;  %v2819_v59 = vmax.f32 %v2705_v56, 0.0 }
 0x2b1   : > { %v2820_v60 = vmax.f32 %v2708_v58, 0.0 }
 0x2b2   : > { %v2263_v61 = vpop.f32.mrb[204].mxu1 }
 0x2b3   : > { %v4209_v62 = vpack.c.bf16 %v2820_v60, %v2819_v59  ;;  %v2264_v63 = vadd.f32 %v5360_v54, %v2263_v61  ;;  %v2265_v0 = vpop.f32.mrb[205].mxu1 }
 0x2b4   : > { %v2266_v1 = vpop.f32.mrb[206].mxu1 }
 0x2b5   : > { %4265 = vst [vmem:[%s5189_s12 + $0x190] sm:$0xff] %v4209_v62   ;;  %v2713_v2 = vadd.f32 %v2712_v46, %v2264_v63  ;;  %v2267_v3 = vadd.f32 %v5360_v54, %v2266_v1  ;;  %v2268_v4 = vpop.f32.mrb[207].mxu1 }
 0x2b7   : > { %v2716_v5 = vadd.f32 %v2715_v52, %v2267_v3  ;;  %v2821_v6 = vmax.f32 %v2713_v2, 0.0 }
 0x2b9   : > { %v2822_v7 = vmax.f32 %v2716_v5, 0.0 }
 0x2bb   : > { %v4214_v8 = vpack.c.bf16 %v2822_v7, %v2821_v6 }
 0x2bd   : > { %4266 = vst [vmem:[%s5189_s12 + $0x198] sm:$0xff] %v4214_v8  }
 0x2be PF: > { %s13_s14 = sadd.s32 1, %s4864_s14   ;;  %s5477_s12 = smov %s4860_s13 }
 0x2bf   : > { %p10_p5 = scmp.ge.s32.totalorder %s13_s14, 4   ;;  %s5478_s13 = smov %s5480_s15 }
 0x2c1   :  { %12 = sbr.rel (!%p10_p5) target bundleno = 2 (0x2), region = 68 }

// kernel: capsule_net_forward.7
= control target key start
LH: loop header
LB: loop body
LE: loop exit
PB: predicated region body
PF: predicated region fallthrough
CT: control target
= control target key end

     0   :  { %s2414_s12 = smov 0   ;;  %s2416_s13 = smov 0   ;;  %s2762_s0 = inlined_call_operand.vmem [shape: bf16[768,384], index: 0, kind: input, shape index: {}]   ;;  %s2763_s1 = inlined_call_operand.vmem [shape: bf16[384,128], index: 1, kind: input, shape index: {}]   ;;  %s2764_s2 = inlined_call_operand.vmem [shape: f32[1,128], index: 2, kind: input, shape index: {}]   ;;  %s2765_s3 = inlined_call_operand.vmem [shape: bf16[768,128], index: 3, kind: output, shape index: {}]  }
   0x1   :  { %s2418_s14 = smov 0  }
   0x2 LB: > { %s25_s15 = sadd.s32 1, %s2387_s13  ;;  %p1754_p0 = scmp.ge.s32.totalorder %s2391_s14, 1  ;;  %s2391_s14 = sphi %s2418_s14, %s13_s14   ;;  %s2387_s13 = sphi %s2416_s13, %s2767_s13   ;;  %s2383_s12 = sphi %s2414_s12, %s2766_s12  }
   0x3   : > { %p27_p1 = scmp.ge.s32.totalorder %s25_s15, 2  ;;  %p170_p2 = scmp.lt.s32.totalorder %s2391_s14, 3 }
   0x5   : > { %s2769_s15 = smov (%p27_p1, %s25_s15), 0  ;;  %p171_p3 = pnand %p1754_p0, %p170_p2 }
   0x6   : > { %v2249_v0 = vld [vmem:[%s2763_s1] sm:$0xff] (!%p171_p3)   ;;  %v2393_v1 = vmov (!%p171_p3), 0   ;;  %s205_s18 = smul.u32 (!%p171_p3), 48, %s2383_s12  ;;  %v2250_v2 = vld [vmem:[%s2763_s1 + $0x8] sm:$0xff] (!%p171_p3)   ;;  %v2251_v3 = vld [vmem:[%s2763_s1 + $0x10] sm:$0xff] (!%p171_p3)  }
   0x7   : > { %174 = sbr.rel (%p171_p3) target bundleno = 430 (0x1ae), region = 32  ;;  %908 = vmatprep.subr.bf16.mxu0 (!%p171_p3), %v2393_v1  ;;  %2191 = vmatprep.subr.bf16.mxu1 (!%p171_p3), %v2393_v1  ;;  %v2252_v4 = vld [vmem:[%s2763_s1 + $0x18] sm:$0xff] (!%p171_p3)   ;;  %v2253_v5 = vld [vmem:[%s2763_s1 + $0x20] sm:$0xff] (!%p171_p3)   ;;  %v2254_v7 = vld [vmem:[%s2763_s1 + $0x28] sm:$0xff] (!%p171_p3)  }
   0x8   : > { %909 = vmatpush1.bf16.msra.mxu0 (!%p171_p3), %v2249_v0  ;;  %2207 = vmatpush1.bf16.msra.mxu1 (!%p171_p3), %v2249_v0  ;;  %p206_p4 = scmp.lt.s32.totalorder (!%p171_p3), %s205_s18, 95  ;;  %v2255_v9 = vld [vmem:[%s2763_s1 + $0x30] sm:$0xff] (!%p171_p3)   ;;  %v2256_v10 = vld [vmem:[%s2763_s1 + $0x38] sm:$0xff] (!%p171_p3)   ;;  %v2257_v11 = vld [vmem:[%s2763_s1 + $0x40] sm:$0xff] (!%p171_p3)  }
   0x9   : > { %910 = vmatprep.subr.bf16.mxu0 (!%p171_p3), %v2393_v1  ;;  %2192 = vmatprep.subr.bf16.mxu1 (!%p171_p3), %v2393_v1  ;;  %v2258_v12 = vld [vmem:[%s2763_s1 + $0x48] sm:$0xff] (!%p171_p3)   ;;  %v2259_v13 = vld [vmem:[%s2763_s1 + $0x50] sm:$0xff] (!%p171_p3)   ;;  %v2260_v14 = vld [vmem:[%s2763_s1 + $0x58] sm:$0xff] (!%p171_p3)  }
   0xa   : > { %v2261_v15 = vld [vmem:[%s2763_s1 + $0x60] sm:$0xff] (!%p171_p3)   ;;  %v2262_v16 = vld [vmem:[%s2763_s1 + $0x68] sm:$0xff] (!%p171_p3)   ;;  %v2263_v17 = vld [vmem:[%s2763_s1 + $0x70] sm:$0xff] (!%p171_p3)  }
   0xb   : > { %v2264_v18 = vld [vmem:[%s2763_s1 + $0x78] sm:$0xff] (!%p171_p3)   ;;  %v2271_v20 = vld [vmem:[%s2763_s1 + $0x80] sm:$0xff] (!%p171_p3)   ;;  %v2272_v22 = vld [vmem:[%s2763_s1 + $0x88] sm:$0xff] (!%p171_p3)  }
   0xc   : > { %911 = vmatpush1.bf16.msra.mxu0 (!%p171_p3), %v2250_v2  ;;  %2208 = vmatpush1.bf16.msra.mxu1 (!%p171_p3), %v2250_v2  ;;  %v2279_v25 = vld [vmem:[%s2763_s1 + $0x90] sm:$0xff] (!%p171_p3)   ;;  %v2286_v30 = vld [vmem:[%s2763_s1 + $0x98] sm:$0xff] (!%p171_p3)   ;;  %v2293_v31 = vld [vmem:[%s2763_s1 + $0xa0] sm:$0xff] (!%p171_p3)  }
   0xd   : > { %912 = vmatprep.subr.bf16.mxu0 (!%p171_p3), %v2393_v1  ;;  %2193 = vmatprep.subr.bf16.mxu1 (!%p171_p3), %v2393_v1  ;;  %v2294_v36 = vld [vmem:[%s2763_s1 + $0xa8] sm:$0xff] (!%p171_p3)   ;;  %v2301_v37 = vld [vmem:[%s2763_s1 + $0xb0] sm:$0xff] (!%p171_p3)   ;;  %v2308_v42 = vld [vmem:[%s2763_s1 + $0xb8] sm:$0xff] (!%p171_p3)  }
   0xe   : > { %s2771_s18 = smov (!%p206_p4, %s205_s18), 95 }
   0xf   : > { %s2223_s25 = smul.u32 12, %s2771_s18 }
  0x10   : > { %913 = vmatpush1.bf16.msra.mxu0 %v2251_v3  ;;  %2209 = vmatpush1.bf16.msra.mxu1 %v2251_v3 }
  0x11   : > { %914 = vmatprep.subr.bf16.mxu0 %v2393_v1  ;;  %2194 = vmatprep.subr.bf16.mxu1 %v2393_v1  ;;  %s2461_s30 = scalar_lea.vmem %s2762_s0, %s2223_s25  ;;  %s1756_s25 = sshll.u32 %s2771_s18, 2 }
  0x12   : > { %v2267_v6 = vld [vmem:[%s2461_s30 + $0x4] ss:$12 sps:$4 sm:$0xff]   ;;  %v2270_v8 = vld [vmem:[%s2461_s30 + $0x1b4] ss:$12 sps:$4 sm:$0xff]   ;;  %v2273_v23 = vld [vmem:[%s2461_s30 + $0x1c] ss:$12 sps:$4 sm:$0xff]   ;;  %s2661_s28 = scalar_lea.vmem %s2765_s3, %s1756_s25 }
  0x13   : > { %940 = vmatprep.mubr.bf16.mxu0 %v2267_v6  ;;  %1084 = vmatprep.mubr.bf16.mxu1 %v2270_v8  ;;  %v2265_v19 = vld [vmem:[%s2461_s30] ss:$12 sps:$4 sm:$0xff]   ;;  %v2268_v21 = vld [vmem:[%s2461_s30 + $0x1b0] ss:$12 sps:$4 sm:$0xff]   ;;  %v2277_v26 = vld [vmem:[%s2461_s30 + $0x18] ss:$12 sps:$4 sm:$0xff]  }
  0x14   : > { %915 = vmatpush1.bf16.msra.mxu0 %v2252_v4  ;;  %2210 = vmatpush1.bf16.msra.mxu1 %v2252_v4  ;;  %v2275_v24 = vld [vmem:[%s2461_s30 + $0x1cc] ss:$12 sps:$4 sm:$0xff]   ;;  %v2278_v27 = vld [vmem:[%s2461_s30 + $0x1c8] ss:$12 sps:$4 sm:$0xff]   ;;  %v2282_v29 = vld [vmem:[%s2461_s30 + $0x1e4] ss:$12 sps:$4 sm:$0xff]  }
  0x15   : > { %916 = vmatprep.subr.bf16.mxu0 %v2393_v1  ;;  %2195 = vmatprep.subr.bf16.mxu1 %v2393_v1  ;;  %v2280_v28 = vld [vmem:[%s2461_s30 + $0x34] ss:$12 sps:$4 sm:$0xff]   ;;  %v2284_v32 = vld [vmem:[%s2461_s30 + $0x30] ss:$12 sps:$4 sm:$0xff]   ;;  %v2287_v34 = vld [vmem:[%s2461_s30 + $0x4c] ss:$12 sps:$4 sm:$0xff]  }
  0x16   : > { %v2285_v33 = vld [vmem:[%s2461_s30 + $0x1e0] ss:$12 sps:$4 sm:$0xff]   ;;  %v2289_v35 = vld [vmem:[%s2461_s30 + $0x1fc] ss:$12 sps:$4 sm:$0xff]   ;;  %v2292_v39 = vld [vmem:[%s2461_s30 + $0x1f8] ss:$12 sps:$4 sm:$0xff]  }
  0x17   : > { %v2291_v38 = vld [vmem:[%s2461_s30 + $0x48] ss:$12 sps:$4 sm:$0xff]   ;;  %v2295_v40 = vld [vmem:[%s2461_s30 + $0x64] ss:$12 sps:$4 sm:$0xff]   ;;  %v2299_v43 = vld [vmem:[%s2461_s30 + $0x60] ss:$12 sps:$4 sm:$0xff]  }
  0x18   : > { %917 = vmatpush1.bf16.msra.mxu0 %v2253_v5  ;;  %2211 = vmatpush1.bf16.msra.mxu1 %v2253_v5  ;;  %v2297_v41 = vld [vmem:[%s2461_s30 + $0x214] ss:$12 sps:$4 sm:$0xff]   ;;  %v2300_v44 = vld [vmem:[%s2461_s30 + $0x210] ss:$12 sps:$4 sm:$0xff]   ;;  %v2304_v46 = vld [vmem:[%s2461_s30 + $0x22c] ss:$12 sps:$4 sm:$0xff]  }
  0x19   : > { %918 = vmatprep.subr.bf16.mxu0 %v2393_v1  ;;  %2196 = vmatprep.subr.bf16.mxu1 %v2393_v1  ;;  %v2302_v45 = vld [vmem:[%s2461_s30 + $0x7c] ss:$12 sps:$4 sm:$0xff]   ;;  %v2306_v47 = vld [vmem:[%s2461_s30 + $0x78] ss:$12 sps:$4 sm:$0xff]   ;;  %v2309_v49 = vld [vmem:[%s2461_s30 + $0x94] ss:$12 sps:$4 sm:$0xff]  }
  0x1a   : > { %v2307_v48 = vld [vmem:[%s2461_s30 + $0x228] ss:$12 sps:$4 sm:$0xff]   ;;  %v2312_v51 = vld [vmem:[%s2461_s30 + $0x90] ss:$12 sps:$4 sm:$0xff]   ;;  %v2313_v52 = vld [vmem:[%s2461_s30 + $0x20] ss:$12 sps:$4 sm:$0xff]  }
  0x1b   : > { %v2311_v50 = vld [vmem:[%s2461_s30 + $0x8] ss:$12 sps:$4 sm:$0xff]   ;;  %v2314_v53 = vld [vmem:[%s2461_s30 + $0xac] ss:$12 sps:$4 sm:$0xff]   ;;  %v2318_v56 = vld [vmem:[%s2461_s30 + $0x50] ss:$12 sps:$4 sm:$0xff]  }
  0x1c   : > { %919 = vmatpush1.bf16.msra.mxu0 %v2254_v7  ;;  %2212 = vmatpush1.bf16.msra.mxu1 %v2254_v7  ;;  %v2316_v54 = vld [vmem:[%s2461_s30 + $0x38] ss:$12 sps:$4 sm:$0xff]   ;;  %v2317_v55 = vld [vmem:[%s2461_s30 + $0xa8] ss:$12 sps:$4 sm:$0xff]   ;;  %v2322_v59 = vld [vmem:[%s2461_s30 + $0xc0] ss:$12 sps:$4 sm:$0xff]  }
  0x1d   : > { %920 = vmatprep.subr.bf16.mxu0 %v2393_v1  ;;  %2197 = vmatprep.subr.bf16.mxu1 %v2393_v1  ;;  %v2319_v57 = vld [vmem:[%s2461_s30 + $0xc4] ss:$12 sps:$4 sm:$0xff]   ;;  %v2321_v58 = vld [vmem:[%s2461_s30 + $0x68] ss:$12 sps:$4 sm:$0xff]   ;;  %v2323_v60 = vld [vmem:[%s2461_s30 + $0x80] ss:$12 sps:$4 sm:$0xff]  }
  0x1e   : > { %v2324_v61 = vld [vmem:[%s2461_s30 + $0xdc] ss:$12 sps:$4 sm:$0xff]   ;;  %v2326_v62 = vld [vmem:[%s2461_s30 + $0x98] ss:$12 sps:$4 sm:$0xff]   ;;  %v2333_v4 = vld [vmem:[%s2461_s30 + $0xe0] ss:$12 sps:$4 sm:$0xff]  }
  0x1f   : > { %v2327_v63 = vld [vmem:[%s2461_s30 + $0xd8] ss:$12 sps:$4 sm:$0xff]   ;;  %v2328_v0 = vld [vmem:[%s2461_s30 + $0xb0] ss:$12 sps:$4 sm:$0xff]   ;;  %v2331_v2 = vld [vmem:[%s2461_s30 + $0xc8] ss:$12 sps:$4 sm:$0xff]  }
  0x20   : > { %921 = vmatpush1.bf16.msra.mxu0 %v2255_v9  ;;  %2213 = vmatpush1.bf16.msra.mxu1 %v2255_v9  ;;  %v2332_v3 = vld [vmem:[%s2461_s30 + $0xf0] ss:$12 sps:$4 sm:$0xff]   ;;  %v2334_v5 = vld [vmem:[%s2461_s30 + $0x10c] ss:$12 sps:$4 sm:$0xff]   ;;  %v2337_v7 = vld [vmem:[%s2461_s30 + $0x108] ss:$12 sps:$4 sm:$0xff]  }
  0x21   : > { %922 = vmatprep.subr.bf16.mxu0 %v2393_v1  ;;  %2198 = vmatprep.subr.bf16.mxu1 %v2393_v1  ;;  %v2336_v6 = vld [vmem:[%s2461_s30 + $0xf8] ss:$12 sps:$4 sm:$0xff]   ;;  %v2338_v8 = vld [vmem:[%s2461_s30 + $0x110] ss:$12 sps:$4 sm:$0xff]  }
  0x22   : > { %v2339_v9 = vld [vmem:[%s2461_s30 + $0x124] ss:$12 sps:$4 sm:$0xff]  }
  0x24   : > { %923 = vmatpush1.bf16.msra.mxu0 %v2256_v10  ;;  %2214 = vmatpush1.bf16.msra.mxu1 %v2256_v10  ;;  %v2341_v10 = vld [vmem:[%s2461_s30 + $0x128] ss:$12 sps:$4 sm:$0xff]  }
  0x25   : > { %924 = vmatprep.subr.bf16.mxu0 %v2393_v1  ;;  %2199 = vmatprep.subr.bf16.mxu1 %v2393_v1 }
  0x28   : > { %925 = vmatpush1.bf16.msra.mxu0 %v2257_v11  ;;  %2215 = vmatpush1.bf16.msra.mxu1 %v2257_v11  ;;  %v2342_v11 = vld [vmem:[%s2461_s30 + $0x120] ss:$12 sps:$4 sm:$0xff]  }
  0x29   : > { %926 = vmatprep.subr.bf16.mxu0 %v2393_v1  ;;  %2200 = vmatprep.subr.bf16.mxu1 %v2393_v1 }
  0x2c   : > { %927 = vmatpush1.bf16.msra.mxu0 %v2258_v12  ;;  %2216 = vmatpush1.bf16.msra.mxu1 %v2258_v12  ;;  %v2343_v12 = vld [vmem:[%s2461_s30 + $0x140] ss:$12 sps:$4 sm:$0xff]  }
  0x2d   : > { %928 = vmatprep.subr.bf16.mxu0 %v2393_v1  ;;  %2201 = vmatprep.subr.bf16.mxu1 %v2393_v1 }
  0x30   : > { %929 = vmatpush1.bf16.msra.mxu0 %v2259_v13  ;;  %2217 = vmatpush1.bf16.msra.mxu1 %v2259_v13  ;;  %v2344_v13 = vld [vmem:[%s2461_s30 + $0x13c] ss:$12 sps:$4 sm:$0xff]  }
  0x31   : > { %930 = vmatprep.subr.bf16.mxu0 %v2393_v1  ;;  %2202 = vmatprep.subr.bf16.mxu1 %v2393_v1 }
  0x34   : > { %931 = vmatpush1.bf16.msra.mxu0 %v2260_v14  ;;  %2218 = vmatpush1.bf16.msra.mxu1 %v2260_v14  ;;  %v2346_v14 = vld [vmem:[%s2461_s30 + $0x158] ss:$12 sps:$4 sm:$0xff]  }
  0x35   : > { %932 = vmatprep.subr.bf16.mxu0 %v2393_v1  ;;  %2203 = vmatprep.subr.bf16.mxu1 %v2393_v1 }
  0x38   : > { %933 = vmatpush1.bf16.msra.mxu0 %v2261_v15  ;;  %2219 = vmatpush1.bf16.msra.mxu1 %v2261_v15  ;;  %v2347_v15 = vld [vmem:[%s2461_s30 + $0x138] ss:$12 sps:$4 sm:$0xff]  }
  0x39   : > { %934 = vmatprep.subr.bf16.mxu0 %v2393_v1  ;;  %2204 = vmatprep.subr.bf16.mxu1 %v2393_v1 }
  0x3c   : > { %935 = vmatpush1.bf16.msra.mxu0 %v2262_v16  ;;  %2220 = vmatpush1.bf16.msra.mxu1 %v2262_v16  ;;  %v2348_v16 = vld [vmem:[%s2461_s30 + $0x170] ss:$12 sps:$4 sm:$0xff]  }
  0x3d   : > { %936 = vmatprep.subr.bf16.mxu0 %v2393_v1  ;;  %2205 = vmatprep.subr.bf16.mxu1 %v2393_v1 }
  0x40   : > { %937 = vmatpush1.bf16.msra.mxu0 %v2263_v17  ;;  %2221 = vmatpush1.bf16.msra.mxu1 %v2263_v17  ;;  %v2349_v17 = vld [vmem:[%s2461_s30 + $0x154] ss:$12 sps:$4 sm:$0xff]  }
  0x41   : > { %938 = vmatprep.subr.bf16.mxu0 %v2393_v1  ;;  %2206 = vmatprep.subr.bf16.mxu1 %v2393_v1  ;;  %v2329_v1 = vld [vmem:[%s2461_s30 + $0xf4] ss:$12 sps:$4 sm:$0xff]  }
  0x44   : > { %939 = vmatpush1.bf16.msra.mxu0 %v2264_v18  ;;  %2222 = vmatpush1.bf16.msra.mxu1 %v2264_v18  ;;  %v2351_v18 = vld [vmem:[%s2461_s30 + $0x188] ss:$12 sps:$4 sm:$0xff]  }
  0x45   : > { %2127 = vmatprep.subr.bf16.mxu1 %v2271_v20 }
  0x47   : > { %941 = vmatmul.mubr.bf16.vlgmr.msra.gmra.mrb[0].mxu0 %v2265_v19  ;;  %1085 = vmatmul.mubr.bf16.vlgmr.msra.gmra.mrb[0].mxu1 %v2268_v21  ;;  %v2352_v19 = vld [vmem:[%s2461_s30 + $0x150] ss:$12 sps:$4 sm:$0xff]   ;;  %v2354_v21 = vld [vmem:[%s2461_s30 + $0x16c] ss:$12 sps:$4 sm:$0xff]  }
  0x48   : > { %2128 = vmatpush3.bf16.msra.mxu1 %v2271_v20  ;;  %948 = vmatprep.mubr.bf16.mxu0 %v2273_v23  ;;  %v2353_v20 = vld [vmem:[%s2461_s30 + $0x1a0] ss:$12 sps:$4 sm:$0xff]   ;;  %v2357_v23 = vld [vmem:[%s2461_s30 + $0x168] ss:$12 sps:$4 sm:$0xff]  }
  0x49   : > { %2129 = vmatprep.subr.bf16.mxu1 %v2272_v22  ;;  %1092 = vmatprep.mubr.bf16.mxu1 %v2275_v24  ;;  %v2358_v24 = vld [vmem:[%s2461_s30 + $0x1d0] ss:$12 sps:$4 sm:$0xff]  }
  0x4c   : > { %2130 = vmatpush3.bf16.msra.mxu1 %v2272_v22  ;;  %v2356_v22 = vld [vmem:[%s2461_s30 + $0x1b8] ss:$12 sps:$4 sm:$0xff]  }
  0x4d   : > { %2131 = vmatprep.subr.bf16.mxu1 %v2279_v25 }
  0x4f   : > { %949 = vmatmul.mubr.bf16.gmra.mrb[4].mxu0 %v2277_v26  ;;  %1093 = vmatmul.mubr.bf16.gmra.mrb[4].mxu1 %v2278_v27  ;;  %v2361_v26 = vld [vmem:[%s2461_s30 + $0x1e8] ss:$12 sps:$4 sm:$0xff]   ;;  %v2362_v27 = vld [vmem:[%s2461_s30 + $0x180] ss:$12 sps:$4 sm:$0xff]  }
  0x50   : > { %2132 = vmatpush3.bf16.msra.mxu1 %v2279_v25  ;;  %956 = vmatprep.mubr.bf16.mxu0 %v2280_v28  ;;  %v2359_v25 = vld [vmem:[%s2461_s30 + $0x184] ss:$12 sps:$4 sm:$0xff]   ;;  %v2363_v28 = vld [vmem:[%s2461_s30 + $0x200] ss:$12 sps:$4 sm:$0xff]  }
  0x51   : > { %1100 = vmatprep.mubr.bf16.mxu1 %v2282_v29  ;;  %2133 = vmatprep.subr.bf16.mxu1 %v2286_v30  ;;  %v2364_v29 = vld [vmem:[%s2461_s30 + $0x19c] ss:$12 sps:$4 sm:$0xff]  }
  0x54   : > { %2134 = vmatpush3.bf16.msra.mxu1 %v2286_v30  ;;  %v2366_v30 = vld [vmem:[%s2461_s30 + $0x218] ss:$12 sps:$4 sm:$0xff]  }
  0x55   : > { %2135 = vmatprep.subr.bf16.mxu1 %v2293_v31 }
  0x57   : > { %957 = vmatmul.mubr.bf16.gmra.mrb[8].mxu0 %v2284_v32  ;;  %1101 = vmatmul.mubr.bf16.gmra.mrb[8].mxu1 %v2285_v33  ;;  %v2368_v32 = vld [vmem:[%s2461_s30 + $0x230] ss:$12 sps:$4 sm:$0xff]  }
  0x58   : > { %964 = vmatprep.mubr.bf16.mxu0 %v2287_v34  ;;  %1108 = vmatprep.mubr.bf16.mxu1 %v2289_v35 }
  0x59   : > { %2136 = vmatpush3.bf16.msra.mxu1 %v2293_v31  ;;  %v2367_v31 = vld [vmem:[%s2461_s30 + $0x198] ss:$12 sps:$4 sm:$0xff]  }
  0x5a   : > { %2137 = vmatprep.subr.bf16.mxu1 %v2294_v36 }
  0x5d   : > { %2138 = vmatpush3.bf16.msra.mxu1 %v2294_v36 }
  0x5e   : > { %2139 = vmatprep.subr.bf16.mxu1 %v2301_v37 }
  0x5f   : > { %965 = vmatmul.mubr.bf16.gmra.mrb[12].mxu0 %v2291_v38  ;;  %1109 = vmatmul.mubr.bf16.gmra.mrb[12].mxu1 %v2292_v39 }
  0x60   : > { %972 = vmatprep.mubr.bf16.mxu0 %v2295_v40  ;;  %1116 = vmatprep.mubr.bf16.mxu1 %v2297_v41 }
  0x61   : > { %2140 = vmatpush3.bf16.msra.mxu1 %v2301_v37 }
  0x62   : > { %2141 = vmatprep.subr.bf16.mxu1 %v2308_v42 }
  0x65   : > { %2142 = vmatpush3.bf16.msra.mxu1 %v2308_v42 }
  0x67   : > { %973 = vmatmul.mubr.bf16.gmra.mrb[16].mxu0 %v2299_v43  ;;  %1117 = vmatmul.mubr.bf16.gmra.mrb[16].mxu1 %v2300_v44 }
  0x68   : > { %980 = vmatprep.mubr.bf16.mxu0 %v2302_v45  ;;  %1124 = vmatprep.mubr.bf16.mxu1 %v2304_v46 }
  0x6f   : > { %981 = vmatmul.mubr.bf16.gmra.mrb[20].mxu0 %v2306_v47  ;;  %1125 = vmatmul.mubr.bf16.gmra.mrb[20].mxu1 %v2307_v48 }
  0x70   : > { %988 = vmatprep.mubr.bf16.mxu0 %v2309_v49  ;;  %2143 = vmatprep.mubr.bf16.mxu1 %v2311_v50 }
  0x77   : > { %989 = vmatmul.mubr.bf16.gmra.mrb[24].mxu0 %v2312_v51  ;;  %2144 = vmatmul.mubr.bf16.vlgmr.msra.gmra.mrb[24].mxu1 %v2313_v52 }
  0x78   : > { %996 = vmatprep.mubr.bf16.mxu0 %v2314_v53  ;;  %2147 = vmatprep.mubr.bf16.mxu1 %v2316_v54 }
  0x7f   : > { %997 = vmatmul.mubr.bf16.gmra.mrb[28].mxu0 %v2317_v55  ;;  %2148 = vmatmul.mubr.bf16.gmra.mrb[28].mxu1 %v2318_v56 }
  0x80   : > { %1004 = vmatprep.mubr.bf16.mxu0 %v2319_v57  ;;  %2151 = vmatprep.mubr.bf16.mxu1 %v2321_v58 }
  0x87   : > { %1005 = vmatmul.mubr.bf16.gmra.mrb[32].mxu0 %v2322_v59  ;;  %2152 = vmatmul.mubr.bf16.gmra.mrb[32].mxu1 %v2323_v60 }
  0x88   : > { %1012 = vmatprep.mubr.bf16.mxu0 %v2324_v61  ;;  %2155 = vmatprep.mubr.bf16.mxu1 %v2326_v62 }
  0x8f   : > { %1013 = vmatmul.mubr.bf16.gmra.mrb[36].mxu0 %v2327_v63  ;;  %2156 = vmatmul.mubr.bf16.gmra.mrb[36].mxu1 %v2328_v0 }
  0x90   : > { %1020 = vmatprep.mubr.bf16.mxu0 %v2329_v1  ;;  %2159 = vmatprep.mubr.bf16.mxu1 %v2331_v2 }
  0x97   : > { %1021 = vmatmul.mubr.bf16.gmra.mrb[40].mxu0 %v2332_v3  ;;  %2160 = vmatmul.mubr.bf16.gmra.mrb[40].mxu1 %v2333_v4 }
  0x98   : > { %1028 = vmatprep.mubr.bf16.mxu0 %v2334_v5  ;;  %2163 = vmatprep.mubr.bf16.mxu1 %v2336_v6 }
  0x9f   : > { %1029 = vmatmul.mubr.bf16.gmra.mrb[44].mxu0 %v2337_v7  ;;  %2164 = vmatmul.mubr.bf16.gmra.mrb[44].mxu1 %v2338_v8 }
  0xa0   : > { %1036 = vmatprep.mubr.bf16.mxu0 %v2339_v9  ;;  %2167 = vmatprep.mubr.bf16.mxu1 %v2341_v10 }
  0xa7   : > { %1037 = vmatmul.mubr.bf16.gmra.mrb[48].mxu0 %v2342_v11  ;;  %2168 = vmatmul.mubr.bf16.gmra.mrb[48].mxu1 %v2343_v12 }
  0xa8   : > { %1044 = vmatprep.mubr.bf16.mxu0 %v2344_v13  ;;  %2171 = vmatprep.mubr.bf16.mxu1 %v2346_v14 }
  0xaf   : > { %1045 = vmatmul.mubr.bf16.gmra.mrb[52].mxu0 %v2347_v15  ;;  %2172 = vmatmul.mubr.bf16.gmra.mrb[52].mxu1 %v2348_v16 }
  0xb0   : > { %1052 = vmatprep.mubr.bf16.mxu0 %v2349_v17  ;;  %2175 = vmatprep.mubr.bf16.mxu1 %v2351_v18  ;;  %v2647_v17 = vld [vmem:[%s2764_s2] ss:$0 sm:$0xff] }
  0xb7   : > { %1053 = vmatmul.mubr.bf16.gmra.mrb[56].mxu0 %v2352_v19  ;;  %2176 = vmatmul.mubr.bf16.gmra.mrb[56].mxu1 %v2353_v20 }
  0xb8   : > { %1060 = vmatprep.mubr.bf16.mxu0 %v2354_v21  ;;  %2179 = vmatprep.mubr.bf16.mxu1 %v2356_v22 }
  0xbf   : > { %1061 = vmatmul.mubr.bf16.gmra.mrb[60].mxu0 %v2357_v23  ;;  %2180 = vmatmul.mubr.bf16.gmra.mrb[60].mxu1 %v2358_v24 }
  0xc0   : > { %1068 = vmatprep.mubr.bf16.mxu0 %v2359_v25  ;;  %2183 = vmatprep.mubr.bf16.mxu1 %v2361_v26 }
  0xc7   : > { %1069 = vmatmul.mubr.bf16.gmra.mrb[64].mxu0 %v2362_v27  ;;  %2184 = vmatmul.mubr.bf16.gmra.mrb[64].mxu1 %v2363_v28 }
  0xc8   : > { %1076 = vmatprep.mubr.bf16.mxu0 %v2364_v29  ;;  %2187 = vmatprep.mubr.bf16.mxu1 %v2366_v30 }
  0xcf   : > { %1077 = vmatmul.mubr.bf16.gmra.mrb[68].mxu0 %v2367_v31  ;;  %2188 = vmatmul.mubr.bf16.gmra.mrb[68].mxu1 %v2368_v32 }
 0x11a   : > { %v942_v33 = vpop.f32.mrb[0].mxu0  ;;  %v2616_v34 = vpop.f32.mrb[0].mxu1 }
 0x11b   : > { %v944_v35 = vpop.f32.mrb[1].mxu0  ;;  %v1088_v36 = vpop.f32.mrb[1].mxu1  ;;  %v943_v19 = vadd.f32 %v2647_v17, %v942_v33 }
 0x11c   : > { %v945_v37 = vpop.f32.mrb[2].mxu0  ;;  %v2618_v38 = vpop.f32.mrb[2].mxu1 }
 0x11d   : > { %v947_v39 = vpop.f32.mrb[3].mxu0  ;;  %v1091_v40 = vpop.f32.mrb[3].mxu1  ;;  %v946_v26 = vadd.f32 %v2647_v17, %v945_v37 }
 0x122   : > { %v950_v41 = vpop.f32.mrb[4].mxu0  ;;  %v2620_v42 = vpop.f32.mrb[4].mxu1 }
 0x123   : > { %v952_v43 = vpop.f32.mrb[5].mxu0  ;;  %v1096_v44 = vpop.f32.mrb[5].mxu1  ;;  %v951_v18 = vadd.f32 %v2647_v17, %v950_v41 }
 0x124   : > { %v953_v45 = vpop.f32.mrb[6].mxu0  ;;  %v2622_v46 = vpop.f32.mrb[6].mxu1 }
 0x125   : > { %v955_v47 = vpop.f32.mrb[7].mxu0  ;;  %v1099_v48 = vpop.f32.mrb[7].mxu1  ;;  %v954_v22 = vadd.f32 %v2647_v17, %v953_v45 }
 0x12a   : > { %v958_v49 = vpop.f32.mrb[8].mxu0  ;;  %v2624_v50 = vpop.f32.mrb[8].mxu1 }
 0x12b   : > { %v960_v51 = vpop.f32.mrb[9].mxu0  ;;  %v1104_v52 = vpop.f32.mrb[9].mxu1  ;;  %v959_v43 = vadd.f32 %v2647_v17, %v958_v49 }
 0x12c   : > { %v961_v53 = vpop.f32.mrb[10].mxu0  ;;  %v2626_v54 = vpop.f32.mrb[10].mxu1 }
 0x12d   : > { %v963_v55 = vpop.f32.mrb[11].mxu0  ;;  %v1107_v56 = vpop.f32.mrb[11].mxu1 }
 0x12e   : > { %v962_v56 = vadd.f32 %v2647_v17, %v961_v53 }
 0x132   : > { %v966_v57 = vpop.f32.mrb[12].mxu0  ;;  %v2628_v58 = vpop.f32.mrb[12].mxu1 }
 0x133   : > { %v968_v59 = vpop.f32.mrb[13].mxu0  ;;  %v1112_v60 = vpop.f32.mrb[13].mxu1  ;;  %v967_v40 = vadd.f32 %v2647_v17, %v966_v57 }
 0x134   : > { %v969_v61 = vpop.f32.mrb[14].mxu0  ;;  %v2630_v62 = vpop.f32.mrb[14].mxu1 }
 0x135   : > { %v971_v63 = vpop.f32.mrb[15].mxu0  ;;  %v1115_v0 = vpop.f32.mrb[15].mxu1  ;;  %v970_v48 = vadd.f32 %v2647_v17, %v969_v61 }
 0x13a   : > { %v2632_v1 = vpop.f32.mrb[16].mxu0  ;;  %v2634_v2 = vpop.f32.mrb[16].mxu1 }
 0x13b   : > { %v976_v3 = vpop.f32.mrb[17].mxu0  ;;  %v1120_v4 = vpop.f32.mrb[17].mxu1  ;;  %v975_v53 = vadd.f32 %v2647_v17, %v2632_v1 }
 0x13c   : > { %v2636_v5 = vpop.f32.mrb[18].mxu0  ;;  %v2638_v6 = vpop.f32.mrb[18].mxu1 }
 0x13d   : > { %v979_v7 = vpop.f32.mrb[19].mxu0  ;;  %v1123_v8 = vpop.f32.mrb[19].mxu1 }
 0x142   : > { %v982_v9 = vpop.f32.mrb[20].mxu0  ;;  %v2640_v10 = vpop.f32.mrb[20].mxu1 }
 0x143   : > { %v984_v11 = vpop.f32.mrb[21].mxu0  ;;  %v1128_v12 = vpop.f32.mrb[21].mxu1 }
 0x144   : > { %v985_v13 = vpop.f32.mrb[22].mxu0  ;;  %v2642_v14 = vpop.f32.mrb[22].mxu1  ;;  %v983_v11 = vadd.f32 %v2647_v17, %v982_v9 }
 0x145   : > { %v987_v15 = vpop.f32.mrb[23].mxu0  ;;  %v1131_v16 = vpop.f32.mrb[23].mxu1 }
 0x14a   : > { %v2651_v20 = vpop.f32.mrb[24].mxu0  ;;  %v2145_v21 = vpop.f32.mrb[24].mxu1 }
 0x14b   : > { %v1176_v23 = vadd.f32 %v2145_v21, %v951_v18  ;;  %v992_v24 = vpop.f32.mrb[25].mxu0  ;;  %v1167_v25 = vpop.f32.mrb[25].mxu1 }
 0x14c   : > { %v1168_v27 = vadd.f32 %v1167_v25, %v943_v19  ;;  %v2655_v28 = vpop.f32.mrb[26].mxu0  ;;  %v2146_v29 = vpop.f32.mrb[26].mxu1  ;;  %v986_v19 = vadd.f32 %v2647_v17, %v985_v13  ;;  %v978_v24 = vadd.f32 %v2647_v17, %v2636_v5  ;;  %v991_v5 = vadd.f32 %v2647_v17, %v2651_v20 }
 0x14d   : > { %v1179_v30 = vadd.f32 %v2146_v29, %v954_v22  ;;  %v995_v31 = vpop.f32.mrb[27].mxu0  ;;  %v1170_v32 = vpop.f32.mrb[27].mxu1  ;;  %v1360_v33 = vmax.f32 %v1176_v23, 0.0 }
 0x14e   : > { %v1171_v35 = vadd.f32 %v1170_v32, %v946_v26  ;;  %v1358_v39 = vmax.f32 %v1168_v27, 0.0 }
 0x14f   : > { %v1361_v36 = vmax.f32 %v1179_v30, 0.0 }
 0x150   : > { %v1359_v37 = vmax.f32 %v1171_v35, 0.0 }
 0x151   : > { %v1960_v41 = vpack.c.bf16 %v1361_v36, %v1360_v33 }
 0x152   : > { %v1955_v44 = vpack.c.bf16 %v1359_v37, %v1358_v39  ;;  %v998_v45 = vpop.f32.mrb[28].mxu0  ;;  %v2149_v47 = vpop.f32.mrb[28].mxu1 }
 0x153   : > { %2072 = vst [vmem:[%s2661_s28 + $0x8] sm:$0xff] %v1960_v41   ;;  %v1192_v51 = vadd.f32 %v2149_v47, %v967_v40  ;;  %v1000_v52 = vpop.f32.mrb[29].mxu0  ;;  %v1183_v55 = vpop.f32.mrb[29].mxu1  ;;  %v999_v33 = vadd.f32 %v2647_v17, %v998_v45 }
 0x154   : > { %1956 = vst [vmem:[%s2661_s28] sm:$0xff] %v1955_v44   ;;  %v1184_v59 = vadd.f32 %v1183_v55, %v959_v43  ;;  %v1001_v60 = vpop.f32.mrb[30].mxu0  ;;  %v2150_v63 = vpop.f32.mrb[30].mxu1 }
 0x155   : > { %v1195_v57 = vadd.f32 %v2150_v63, %v970_v48  ;;  %v1003_v0 = vpop.f32.mrb[31].mxu0  ;;  %v1186_v3 = vpop.f32.mrb[31].mxu1  ;;  %v1364_v4 = vmax.f32 %v1192_v51, 0.0  ;;  %v1002_v41 = vadd.f32 %v2647_v17, %v1001_v60  ;;  %v994_v48 = vadd.f32 %v2647_v17, %v2655_v28 }
 0x156   : > { %v1187_v49 = vadd.f32 %v1186_v3, %v962_v56  ;;  %v1362_v8 = vmax.f32 %v1184_v59, 0.0 }
 0x157   : > { %v1365_v7 = vmax.f32 %v1195_v57, 0.0 }
 0x158   : > { %v1363_v61 = vmax.f32 %v1187_v49, 0.0 }
 0x159   : > { %v1970_v12 = vpack.c.bf16 %v1365_v7, %v1364_v4 }
 0x15a   : > { %v1965_v15 = vpack.c.bf16 %v1363_v61, %v1362_v8  ;;  %v1006_v16 = vpop.f32.mrb[32].mxu0  ;;  %v2153_v18 = vpop.f32.mrb[32].mxu1 }
 0x15b   : > { %2074 = vst [vmem:[%s2661_s28 + $0x18] sm:$0xff] %v1970_v12   ;;  %v1208_v21 = vadd.f32 %v2153_v18, %v983_v11  ;;  %v1008_v22 = vpop.f32.mrb[33].mxu0  ;;  %v1199_v23 = vpop.f32.mrb[33].mxu1  ;;  %v1007_v4 = vadd.f32 %v2647_v17, %v1006_v16 }
 0x15c   : > { %2073 = vst [vmem:[%s2661_s28 + $0x10] sm:$0xff] %v1965_v15   ;;  %v1200_v25 = vadd.f32 %v1199_v23, %v975_v53  ;;  %v1009_v26 = vpop.f32.mrb[34].mxu0  ;;  %v2154_v9 = vpop.f32.mrb[34].mxu1 }
 0x15d   : > { %v1211_v27 = vadd.f32 %v2154_v9, %v986_v19  ;;  %v1011_v29 = vpop.f32.mrb[35].mxu0  ;;  %v1202_v1 = vpop.f32.mrb[35].mxu1  ;;  %v1368_v31 = vmax.f32 %v1208_v21, 0.0  ;;  %v1010_v15 = vadd.f32 %v2647_v17, %v1009_v26 }
 0x15e   : > { %v1203_v30 = vadd.f32 %v1202_v1, %v978_v24  ;;  %v1366_v13 = vmax.f32 %v1200_v25, 0.0 }
 0x15f   : > { %v1369_v32 = vmax.f32 %v1211_v27, 0.0 }
 0x160   : > { %v1367_v35 = vmax.f32 %v1203_v30, 0.0 }
 0x161   : > { %v1980_v36 = vpack.c.bf16 %v1369_v32, %v1368_v31 }
 0x162   : > { %v1975_v39 = vpack.c.bf16 %v1367_v35, %v1366_v13  ;;  %v1014_v37 = vpop.f32.mrb[36].mxu0  ;;  %v2157_v40 = vpop.f32.mrb[36].mxu1 }
 0x163   : > { %2076 = vst [vmem:[%s2661_s28 + $0x28] sm:$0xff] %v1980_v36   ;;  %v1224_v43 = vadd.f32 %v2157_v40, %v999_v33  ;;  %v1016_v44 = vpop.f32.mrb[37].mxu0  ;;  %v1215_v47 = vpop.f32.mrb[37].mxu1  ;;  %v1015_v3 = vadd.f32 %v2647_v17, %v1014_v37 }
 0x164   : > { %2075 = vst [vmem:[%s2661_s28 + $0x20] sm:$0xff] %v1975_v39   ;;  %v1216_v51 = vadd.f32 %v1215_v47, %v991_v5  ;;  %v1017_v52 = vpop.f32.mrb[38].mxu0  ;;  %v2158_v45 = vpop.f32.mrb[38].mxu1 }
 0x165   : > { %v1227_v55 = vadd.f32 %v2158_v45, %v1002_v41  ;;  %v1019_v56 = vpop.f32.mrb[39].mxu0  ;;  %v1218_v20 = vpop.f32.mrb[39].mxu1  ;;  %v1372_v63 = vmax.f32 %v1224_v43, 0.0  ;;  %v1018_v61 = vadd.f32 %v2647_v17, %v1017_v52 }
 0x166   : > { %v1219_v59 = vadd.f32 %v1218_v20, %v994_v48  ;;  %v1370_v60 = vmax.f32 %v1216_v51, 0.0 }
 0x167   : > { %v1373_v57 = vmax.f32 %v1227_v55, 0.0 }
 0x168   : > { %v1371_v0 = vmax.f32 %v1219_v59, 0.0 }
 0x169   : > { %v1990_v49 = vpack.c.bf16 %v1373_v57, %v1372_v63 }
 0x16a   : > { %v1985_v28 = vpack.c.bf16 %v1371_v0, %v1370_v60  ;;  %v1022_v7 = vpop.f32.mrb[40].mxu0  ;;  %v2161_v8 = vpop.f32.mrb[40].mxu1 }
 0x16b   : > { %2078 = vst [vmem:[%s2661_s28 + $0x38] sm:$0xff] %v1990_v49   ;;  %v1240_v11 = vadd.f32 %v2161_v8, %v1015_v3  ;;  %v1024_v12 = vpop.f32.mrb[41].mxu0  ;;  %v1231_v53 = vpop.f32.mrb[41].mxu1  ;;  %v1023_v30 = vadd.f32 %v2647_v17, %v1022_v7 }
 0x16c   : > { %2077 = vst [vmem:[%s2661_s28 + $0x30] sm:$0xff] %v1985_v28   ;;  %v1232_v18 = vadd.f32 %v1231_v53, %v1007_v4  ;;  %v1025_v19 = vpop.f32.mrb[42].mxu0  ;;  %v2162_v21 = vpop.f32.mrb[42].mxu1 }
 0x16d   : > { %v1243_v22 = vadd.f32 %v2162_v21, %v1018_v61  ;;  %v1027_v23 = vpop.f32.mrb[43].mxu0  ;;  %v1234_v24 = vpop.f32.mrb[43].mxu1  ;;  %v1376_v25 = vmax.f32 %v1240_v11, 0.0  ;;  %v1026_v36 = vadd.f32 %v2647_v17, %v1025_v19 }
 0x16e   : > { %v1235_v16 = vadd.f32 %v1234_v24, %v1010_v15  ;;  %v1374_v27 = vmax.f32 %v1232_v18, 0.0 }
 0x16f   : > { %v1377_v9 = vmax.f32 %v1243_v22, 0.0 }
 0x170   : > { %v1375_v29 = vmax.f32 %v1235_v16, 0.0 }
 0x171   : > { %v2000_v1 = vpack.c.bf16 %v1377_v9, %v1376_v25 }
 0x172   : > { %v1995_v31 = vpack.c.bf16 %v1375_v29, %v1374_v27  ;;  %v1030_v32 = vpop.f32.mrb[44].mxu0  ;;  %v2165_v26 = vpop.f32.mrb[44].mxu1 }
 0x173   : > { %2080 = vst [vmem:[%s2661_s28 + $0x48] sm:$0xff] %v2000_v1   ;;  %v1031_v13 = vadd.f32 %v2647_v17, %v1030_v32  ;;  %v1032_v35 = vpop.f32.mrb[45].mxu0  ;;  %v1247_v33 = vpop.f32.mrb[45].mxu1 }
 0x174   : > { %2079 = vst [vmem:[%s2661_s28 + $0x40] sm:$0xff] %v1995_v31   ;;  %v1248_v5 = vadd.f32 %v1247_v33, %v1023_v30  ;;  %v1033_v39 = vpop.f32.mrb[46].mxu0  ;;  %v2166_v37 = vpop.f32.mrb[46].mxu1 }
 0x175   : > { %v1256_v40 = vadd.f32 %v2165_v26, %v1031_v13  ;;  %v1034_v41 = vadd.f32 %v2647_v17, %v1033_v39  ;;  %v1035_v43 = vpop.f32.mrb[47].mxu0  ;;  %v1250_v44 = vpop.f32.mrb[47].mxu1 }
 0x176   : > { %v1251_v47 = vadd.f32 %v1250_v44, %v1026_v36  ;;  %v1378_v51 = vmax.f32 %v1248_v5, 0.0  ;;  %v1095_v44 = vadd.f32 %v2647_v17, %v2620_v42  ;;  %v1090_v42 = vadd.f32 %v2647_v17, %v2618_v38 }
 0x177   : > { %v1259_v48 = vadd.f32 %v2166_v37, %v1034_v41  ;;  %v1380_v45 = vmax.f32 %v1256_v40, 0.0  ;;  %v1111_v38 = vadd.f32 %v2647_v17, %v2628_v58 }
 0x178   : > { %v1379_v52 = vmax.f32 %v1251_v47, 0.0 }
 0x179   : > { %v1381_v55 = vmax.f32 %v1259_v48, 0.0 }
 0x17a   : > { %v2005_v56 = vpack.c.bf16 %v1379_v52, %v1378_v51  ;;  %v1038_v20 = vpop.f32.mrb[48].mxu0  ;;  %v2169_v59 = vpop.f32.mrb[48].mxu1  ;;  %v1087_v51 = vadd.f32 %v2647_v17, %v2616_v34 }
 0x17b   : > { %v2010_v63 = vpack.c.bf16 %v1381_v55, %v1380_v45  ;;  %v1039_v57 = vadd.f32 %v2647_v17, %v1038_v20  ;;  %v1040_v60 = vpop.f32.mrb[49].mxu0  ;;  %v1263_v0 = vpop.f32.mrb[49].mxu1  ;;  %v1098_v55 = vadd.f32 %v2647_v17, %v2622_v46 }
 0x17c   : > { %2081 = vst [vmem:[%s2661_s28 + $0x50] sm:$0xff] %v2005_v56   ;;  %v1041_v3 = vpop.f32.mrb[50].mxu0  ;;  %v2170_v49 = vpop.f32.mrb[50].mxu1 }
 0x17d   : > { %2082 = vst [vmem:[%s2661_s28 + $0x58] sm:$0xff] %v2010_v63   ;;  %v1264_v4 = vadd.f32 %v1263_v0, %v1039_v57  ;;  %v1042_v28 = vadd.f32 %v2647_v17, %v1041_v3  ;;  %v1043_v7 = vpop.f32.mrb[51].mxu0  ;;  %v1266_v8 = vpop.f32.mrb[51].mxu1 }
 0x17f   : > { %v1267_v61 = vadd.f32 %v1266_v8, %v1042_v28  ;;  %v1382_v11 = vmax.f32 %v1264_v4, 0.0 }
 0x181   : > { %v1383_v12 = vmax.f32 %v1267_v61, 0.0 }
 0x182   : > { %v1046_v53 = vpop.f32.mrb[52].mxu0  ;;  %v2173_v15 = vpop.f32.mrb[52].mxu1 }
 0x183   : > { %v2015_v18 = vpack.c.bf16 %v1383_v12, %v1382_v11  ;;  %v1047_v19 = vadd.f32 %v2647_v17, %v1046_v53  ;;  %v1048_v21 = vpop.f32.mrb[53].mxu0  ;;  %v1279_v22 = vpop.f32.mrb[53].mxu1 }
 0x184   : > { %v1049_v23 = vpop.f32.mrb[54].mxu0  ;;  %v2174_v24 = vpop.f32.mrb[54].mxu1 }
 0x185   : > { %2083 = vst [vmem:[%s2661_s28 + $0x60] sm:$0xff] %v2015_v18   ;;  %v1272_v16 = vadd.f32 %v2169_v59, %v1047_v19  ;;  %v1050_v25 = vadd.f32 %v2647_v17, %v1049_v23  ;;  %v1051_v9 = vpop.f32.mrb[55].mxu0  ;;  %v1282_v27 = vpop.f32.mrb[55].mxu1 }
 0x187   : > { %v1275_v29 = vadd.f32 %v2170_v49, %v1050_v25  ;;  %v1384_v1 = vmax.f32 %v1272_v16, 0.0 }
 0x189   : > { %v1385_v30 = vmax.f32 %v1275_v29, 0.0 }
 0x18a   : > { %v1054_v31 = vpop.f32.mrb[56].mxu0  ;;  %v2704_v32 = vpop.f32.mrb[56].mxu1 }
 0x18b   : > { %v2020_v26 = vpack.c.bf16 %v1385_v30, %v1384_v1  ;;  %v1055_v13 = vadd.f32 %v2647_v17, %v1054_v31  ;;  %v1056_v35 = vpop.f32.mrb[57].mxu0  ;;  %v1295_v33 = vpop.f32.mrb[57].mxu1  ;;  %v1106_v1 = vadd.f32 %v2647_v17, %v2626_v54  ;;  %v1127_v54 = vadd.f32 %v2647_v17, %v2640_v10 }
 0x18c   : > { %v1057_v36 = vpop.f32.mrb[58].mxu0  ;;  %v2707_v5 = vpop.f32.mrb[58].mxu1 }
 0x18d   : > { %2084 = vst [vmem:[%s2661_s28 + $0x68] sm:$0xff] %v2020_v26   ;;  %v1280_v39 = vadd.f32 %v1279_v22, %v1055_v13  ;;  %v1058_v37 = vadd.f32 %v2647_v17, %v1057_v36  ;;  %v1059_v40 = vpop.f32.mrb[59].mxu0  ;;  %v1298_v41 = vpop.f32.mrb[59].mxu1 }
 0x18f   : > { %v1283_v43 = vadd.f32 %v1282_v27, %v1058_v37  ;;  %v1386_v47 = vmax.f32 %v1280_v39, 0.0 }
 0x191   : > { %v1387_v48 = vmax.f32 %v1283_v43, 0.0 }
 0x192   : > { %v1062_v52 = vpop.f32.mrb[60].mxu0  ;;  %v2181_v45 = vpop.f32.mrb[60].mxu1 }
 0x193   : > { %v2025_v56 = vpack.c.bf16 %v1387_v48, %v1386_v47  ;;  %v1063_v20 = vadd.f32 %v2647_v17, %v1062_v52  ;;  %v1320_v59 = vadd.f32 %v2181_v45, %v1095_v44  ;;  %v1064_v63 = vpop.f32.mrb[61].mxu0  ;;  %v1311_v57 = vpop.f32.mrb[61].mxu1 }
 0x194   : > { %v1312_v60 = vadd.f32 %v1311_v57, %v1087_v51  ;;  %v1065_v0 = vpop.f32.mrb[62].mxu0  ;;  %v2182_v3 = vpop.f32.mrb[62].mxu1 }
 0x195   : > { %2085 = vst [vmem:[%s2661_s28 + $0x70] sm:$0xff] %v2025_v56   ;;  %v1288_v49 = vadd.f32 %v2173_v15, %v1063_v20  ;;  %v1066_v34 = vadd.f32 %v2647_v17, %v1065_v0  ;;  %v1323_v4 = vadd.f32 %v2182_v3, %v1098_v55  ;;  %v1067_v28 = vpop.f32.mrb[63].mxu0  ;;  %v1314_v7 = vpop.f32.mrb[63].mxu1  ;;  %v1396_v8 = vmax.f32 %v1320_v59, 0.0 }
 0x196   : > { %v1315_v46 = vadd.f32 %v1314_v7, %v1090_v42  ;;  %v1394_v12 = vmax.f32 %v1312_v60, 0.0  ;;  %v1103_v15 = vadd.f32 %v2647_v17, %v2624_v50  ;;  %v1122_v42 = vadd.f32 %v2647_v17, %v2638_v6 }
 0x197   : > { %v1291_v61 = vadd.f32 %v2174_v24, %v1066_v34  ;;  %v1397_v11 = vmax.f32 %v1323_v4, 0.0  ;;  %v1388_v18 = vmax.f32 %v1288_v49, 0.0  ;;  %v1114_v24 = vadd.f32 %v2647_v17, %v2630_v62 }
 0x198   : > { %v1395_v53 = vmax.f32 %v1315_v46, 0.0 }
 0x199   : > { %v1389_v19 = vmax.f32 %v1291_v61, 0.0  ;;  %v2050_v21 = vpack.c.bf16 %v1397_v11, %v1396_v8 }
 0x19a   : > { %v2045_v22 = vpack.c.bf16 %v1395_v53, %v1394_v12  ;;  %v1070_v23 = vpop.f32.mrb[64].mxu0  ;;  %v2185_v16 = vpop.f32.mrb[64].mxu1 }
 0x19b   : > { %v2030_v25 = vpack.c.bf16 %v1389_v19, %v1388_v18  ;;  %2090 = vst [vmem:[%s2661_s28 + $0x98] sm:$0xff] %v2050_v21   ;;  %v1071_v9 = vadd.f32 %v2647_v17, %v1070_v23  ;;  %v1336_v27 = vadd.f32 %v2185_v16, %v1111_v38  ;;  %v1072_v58 = vpop.f32.mrb[65].mxu0  ;;  %v1327_v29 = vpop.f32.mrb[65].mxu1 }
 0x19c   : > { %2089 = vst [vmem:[%s2661_s28 + $0x90] sm:$0xff] %v2045_v22   ;;  %v1328_v30 = vadd.f32 %v1327_v29, %v1103_v15  ;;  %v1073_v50 = vpop.f32.mrb[66].mxu0  ;;  %v2186_v31 = vpop.f32.mrb[66].mxu1 }
 0x19d   : > { %2086 = vst [vmem:[%s2661_s28 + $0x78] sm:$0xff] %v2030_v25   ;;  %v1296_v26 = vadd.f32 %v1295_v33, %v1071_v9  ;;  %v1074_v13 = vadd.f32 %v2647_v17, %v1073_v50  ;;  %v1339_v35 = vadd.f32 %v2186_v31, %v1114_v24  ;;  %v1075_v62 = vpop.f32.mrb[67].mxu0  ;;  %v1330_v36 = vpop.f32.mrb[67].mxu1  ;;  %v1400_v37 = vmax.f32 %v1336_v27, 0.0 }
 0x19e   : > { %v1331_v39 = vadd.f32 %v1330_v36, %v1106_v1  ;;  %v1398_v44 = vmax.f32 %v1328_v30, 0.0  ;;  %v1119_v33 = vadd.f32 %v2647_v17, %v2634_v2 }
 0x19f   : > { %v1299_v40 = vadd.f32 %v1298_v41, %v1074_v13  ;;  %v1401_v43 = vmax.f32 %v1339_v35, 0.0  ;;  %v1390_v48 = vmax.f32 %v1296_v26, 0.0  ;;  %v1130_v41 = vadd.f32 %v2647_v17, %v2642_v14 }
 0x1a0   : > { %v1399_v47 = vmax.f32 %v1331_v39, 0.0 }
 0x1a1   : > { %v1391_v51 = vmax.f32 %v1299_v40, 0.0  ;;  %v2060_v52 = vpack.c.bf16 %v1401_v43, %v1400_v37 }
 0x1a2   : > { %v2055_v45 = vpack.c.bf16 %v1399_v47, %v1398_v44  ;;  %v1078_v55 = vpop.f32.mrb[68].mxu0  ;;  %v2189_v56 = vpop.f32.mrb[68].mxu1 }
 0x1a3   : > { %v2035_v20 = vpack.c.bf16 %v1391_v51, %v1390_v48  ;;  %2092 = vst [vmem:[%s2661_s28 + $0xa8] sm:$0xff] %v2060_v52   ;;  %v1079_v59 = vadd.f32 %v2647_v17, %v1078_v55  ;;  %v1352_v63 = vadd.f32 %v2189_v56, %v1127_v54  ;;  %v1080_v10 = vpop.f32.mrb[69].mxu0  ;;  %v1343_v57 = vpop.f32.mrb[69].mxu1 }
 0x1a4   : > { %2091 = vst [vmem:[%s2661_s28 + $0xa0] sm:$0xff] %v2055_v45   ;;  %v1344_v60 = vadd.f32 %v1343_v57, %v1119_v33  ;;  %v1081_v2 = vpop.f32.mrb[70].mxu0  ;;  %v2190_v0 = vpop.f32.mrb[70].mxu1 }
 0x1a5   : > { %2087 = vst [vmem:[%s2661_s28 + $0x80] sm:$0xff] %v2035_v20   ;;  %v1304_v3 = vadd.f32 %v2704_v32, %v1079_v59  ;;  %v1082_v14 = vadd.f32 %v2647_v17, %v1081_v2  ;;  %v1355_v49 = vadd.f32 %v2190_v0, %v1130_v41  ;;  %v1083_v34 = vpop.f32.mrb[71].mxu0  ;;  %v1346_v4 = vpop.f32.mrb[71].mxu1  ;;  %v1404_v7 = vmax.f32 %v1352_v63, 0.0 }
 0x1a6   : > { %v1347_v28 = vadd.f32 %v1346_v4, %v1122_v42  ;;  %v1402_v8 = vmax.f32 %v1344_v60, 0.0 }
 0x1a7   : > { %v1307_v46 = vadd.f32 %v2707_v5, %v1082_v14  ;;  %v1405_v6 = vmax.f32 %v1355_v49, 0.0  ;;  %v1392_v11 = vmax.f32 %v1304_v3, 0.0 }
 0x1a8   : > { %v1403_v61 = vmax.f32 %v1347_v28, 0.0 }
 0x1a9   : > { %v1393_v12 = vmax.f32 %v1307_v46, 0.0  ;;  %v2070_v53 = vpack.c.bf16 %v1405_v6, %v1404_v7 }
 0x1aa   : > { %v2065_v38 = vpack.c.bf16 %v1403_v61, %v1402_v8 }
 0x1ab   : > { %v2040_v32 = vpack.c.bf16 %v1393_v12, %v1392_v11  ;;  %2094 = vst [vmem:[%s2661_s28 + $0xb8] sm:$0xff] %v2070_v53  }
 0x1ac   : > { %2093 = vst [vmem:[%s2661_s28 + $0xb0] sm:$0xff] %v2065_v38  }
 0x1ad   : > { %2088 = vst [vmem:[%s2661_s28 + $0x88] sm:$0xff] %v2040_v32  }
 0x1ae PF: > { %s13_s14 = sadd.s32 1, %s2391_s14   ;;  %s2766_s12 = smov %s2387_s13 }
 0x1af   : > { %p10_p5 = scmp.ge.s32.totalorder %s13_s14, 4   ;;  %s2767_s13 = smov %s2769_s15 }
 0x1b1   :  { %12 = sbr.rel (!%p10_p5) target bundleno = 2 (0x2), region = 68 }

// kernel: capsule_net_forward.8
= control target key start
LH: loop header
LB: loop body
LE: loop exit
PB: predicated region body
PF: predicated region fallthrough
CT: control target
= control target key end

     0   :  { %v1276_v1 = vmov 0   ;;  %s1729_s1 = inlined_call_operand.vmem [shape: bf16[384,256], index: 1, kind: input, shape index: {}]   ;;  %s1730_s0 = inlined_call_operand.vmem [shape: bf16[160,384], index: 0, kind: input, shape index: {}]   ;;  %s1731_s2 = inlined_call_operand.vmem [shape: f32[1,256], index: 2, kind: input, shape index: {}]   ;;  %s1732_s3 = inlined_call_operand.vmem [shape: bf16[160,256], index: 3, kind: output, shape index: {}]  }
   0x1   :  { %v1164_v0 = vld [vmem:[%s1729_s1 + $0x4] ss:$8 sps:$4 sm:$0xff]   ;;  %680 = vmatprep.mubr.bf16.mxu0 %v1276_v1  ;;  %v1166_v2 = vld [vmem:[%s1729_s1] ss:$8 sps:$4 sm:$0xff]   ;;  %v1167_v3 = vld [vmem:[%s1729_s1 + $0x14] ss:$8 sps:$4 sm:$0xff]  }
   0x2   :  { %515 = vmatprep.subr.bf16.mxu1 %v1164_v0  ;;  %v1169_v4 = vld [vmem:[%s1729_s1 + $0x10] ss:$8 sps:$4 sm:$0xff]   ;;  %v1170_v5 = vld [vmem:[%s1729_s1 + $0x24] ss:$8 sps:$4 sm:$0xff]   ;;  %v1172_v6 = vld [vmem:[%s1729_s1 + $0x20] ss:$8 sps:$4 sm:$0xff]  }
   0x3   :  { %516 = vmatpush1.bf16.msra.mxu1 %v1166_v2  ;;  %v1173_v7 = vld [vmem:[%s1729_s1 + $0x34] ss:$8 sps:$4 sm:$0xff]   ;;  %v1175_v8 = vld [vmem:[%s1729_s1 + $0x30] ss:$8 sps:$4 sm:$0xff]   ;;  %v1188_v9 = vld [vmem:[%s1729_s1 + $0x104] ss:$8 sps:$4 sm:$0xff]  }
   0x4   :  { %517 = vmatprep.subr.bf16.mxu1 %v1167_v3  ;;  %v1176_v10 = vld [vmem:[%s1729_s1 + $0x44] ss:$8 sps:$4 sm:$0xff]   ;;  %v1192_v11 = vld [vmem:[%s1729_s1 + $0x100] ss:$8 sps:$4 sm:$0xff]   ;;  %648 = vmatprep.subr.bf16.mxu0 %v1188_v9  ;;  %v1194_v12 = vld [vmem:[%s1729_s1 + $0x114] ss:$8 sps:$4 sm:$0xff]  }
   0x5   :  { %649 = vmatpush1.bf16.msra.mxu0 %v1192_v11  ;;  %v1178_v13 = vld [vmem:[%s1729_s1 + $0x40] ss:$8 sps:$4 sm:$0xff]   ;;  %v1179_v14 = vld [vmem:[%s1729_s1 + $0x54] ss:$8 sps:$4 sm:$0xff]   ;;  %v1198_v15 = vld [vmem:[%s1729_s1 + $0x110] ss:$8 sps:$4 sm:$0xff]  }
   0x6   :  { %650 = vmatprep.subr.bf16.mxu0 %v1194_v12  ;;  %v1200_v16 = vld [vmem:[%s1729_s1 + $0x124] ss:$8 sps:$4 sm:$0xff]   ;;  %v1181_v17 = vld [vmem:[%s1729_s1 + $0x50] ss:$8 sps:$4 sm:$0xff]   ;;  %v1204_v18 = vld [vmem:[%s1729_s1 + $0x120] ss:$8 sps:$4 sm:$0xff]  }
   0x7   :  { %518 = vmatpush1.bf16.msra.mxu1 %v1169_v4  ;;  %v1206_v19 = vld [vmem:[%s1729_s1 + $0x134] ss:$8 sps:$4 sm:$0xff]   ;;  %v1182_v20 = vld [vmem:[%s1729_s1 + $0x64] ss:$8 sps:$4 sm:$0xff]   ;;  %v1210_v21 = vld [vmem:[%s1729_s1 + $0x130] ss:$8 sps:$4 sm:$0xff]  }
   0x8   :  { %519 = vmatprep.subr.bf16.mxu1 %v1170_v5  ;;  %v1184_v22 = vld [vmem:[%s1729_s1 + $0x60] ss:$8 sps:$4 sm:$0xff]   ;;  %v1212_v23 = vld [vmem:[%s1729_s1 + $0x144] ss:$8 sps:$4 sm:$0xff]   ;;  %v1185_v24 = vld [vmem:[%s1729_s1 + $0x74] ss:$8 sps:$4 sm:$0xff]  }
   0x9   :  { %651 = vmatpush1.bf16.msra.mxu0 %v1198_v15  ;;  %v1187_v25 = vld [vmem:[%s1729_s1 + $0x70] ss:$8 sps:$4 sm:$0xff]   ;;  %v1216_v26 = vld [vmem:[%s1729_s1 + $0x140] ss:$8 sps:$4 sm:$0xff]   ;;  %v1218_v27 = vld [vmem:[%s1729_s1 + $0x154] ss:$8 sps:$4 sm:$0xff]  }
   0xa   :  { %652 = vmatprep.subr.bf16.mxu0 %v1200_v16  ;;  %v1190_v28 = vld [vmem:[%s1729_s1 + $0x84] ss:$8 sps:$4 sm:$0xff]   ;;  %v1222_v29 = vld [vmem:[%s1729_s1 + $0x150] ss:$8 sps:$4 sm:$0xff]   ;;  %v1193_v30 = vld [vmem:[%s1729_s1 + $0x80] ss:$8 sps:$4 sm:$0xff]  }
   0xb   :  { %520 = vmatpush1.bf16.msra.mxu1 %v1172_v6  ;;  %v1224_v31 = vld [vmem:[%s1729_s1 + $0x164] ss:$8 sps:$4 sm:$0xff]   ;;  %v1196_v32 = vld [vmem:[%s1729_s1 + $0x94] ss:$8 sps:$4 sm:$0xff]   ;;  %v1199_v33 = vld [vmem:[%s1729_s1 + $0x90] ss:$8 sps:$4 sm:$0xff]  }
   0xc   :  { %521 = vmatprep.subr.bf16.mxu1 %v1173_v7  ;;  %v1238_v34 = vld [vmem:[%s1730_s0 + $0x4] ss:$12 sps:$4 sm:$0xff]   ;;  %v1228_v35 = vld [vmem:[%s1729_s1 + $0x160] ss:$8 sps:$4 sm:$0xff]   ;;  %v1230_v36 = vld [vmem:[%s1729_s1 + $0x174] ss:$8 sps:$4 sm:$0xff]  }
   0xd   :  { %653 = vmatpush1.bf16.msra.mxu0 %v1204_v18  ;;  %v1202_v37 = vld [vmem:[%s1729_s1 + $0xa4] ss:$8 sps:$4 sm:$0xff]   ;;  %547 = vmatprep.mubr.bf16.mxu1 %v1238_v34  ;;  %v1234_v38 = vld [vmem:[%s1729_s1 + $0x170] ss:$8 sps:$4 sm:$0xff]   ;;  %v1205_v39 = vld [vmem:[%s1729_s1 + $0xa0] ss:$8 sps:$4 sm:$0xff]  }
   0xe   :  { %654 = vmatprep.subr.bf16.mxu0 %v1206_v19  ;;  %v1208_v40 = vld [vmem:[%s1729_s1 + $0xb4] ss:$8 sps:$4 sm:$0xff]   ;;  %v1211_v42 = vld [vmem:[%s1729_s1 + $0xb0] ss:$8 sps:$4 sm:$0xff]   ;;  %v1214_v43 = vld [vmem:[%s1729_s1 + $0xc4] ss:$8 sps:$4 sm:$0xff]   ;;  %v105_v19 = vlaneseq }
   0xf   :  { %522 = vmatpush1.bf16.msra.mxu1 %v1175_v8  ;;  %v1239_v41 = vld [vmem:[%s1730_s0 + $0x8] ss:$12 sps:$4 sm:$0xff]   ;;  %v1242_v46 = vld [vmem:[%s1730_s0 + $0x20] ss:$12 sps:$4 sm:$0xff]   ;;  %v1223_v47 = vld [vmem:[%s1729_s1 + $0xd0] ss:$8 sps:$4 sm:$0xff]  }
  0x10   :  { %523 = vmatprep.subr.bf16.mxu1 %v1176_v10  ;;  %v1217_v44 = vld [vmem:[%s1729_s1 + $0xc0] ss:$8 sps:$4 sm:$0xff]   ;;  %v1220_v45 = vld [vmem:[%s1729_s1 + $0xd4] ss:$8 sps:$4 sm:$0xff]   ;;  %v1226_v48 = vld [vmem:[%s1729_s1 + $0xe4] ss:$8 sps:$4 sm:$0xff]  }
  0x11   :  { %655 = vmatpush1.bf16.msra.mxu0 %v1210_v21  ;;  %v1229_v49 = vld [vmem:[%s1729_s1 + $0xe0] ss:$8 sps:$4 sm:$0xff]   ;;  %v1232_v50 = vld [vmem:[%s1729_s1 + $0xf4] ss:$8 sps:$4 sm:$0xff]   ;;  %v1246_v51 = vld [vmem:[%s1730_s0 + $0x38] ss:$12 sps:$4 sm:$0xff]  }
  0x12   :  { %656 = vmatprep.subr.bf16.mxu0 %v1212_v23  ;;  %v1235_v52 = vld [vmem:[%s1729_s1 + $0xf0] ss:$8 sps:$4 sm:$0xff]   ;;  %v1236_v53 = vld [vmem:[%s1730_s0] ss:$12 sps:$4 sm:$0xff]   ;;  %v1240_v54 = vld [vmem:[%s1730_s0 + $0x1c] ss:$12 sps:$4 sm:$0xff]  }
  0x13   :  { %524 = vmatpush1.bf16.msra.mxu1 %v1178_v13  ;;  %v1250_v55 = vld [vmem:[%s1730_s0 + $0x50] ss:$12 sps:$4 sm:$0xff]   ;;  %v1243_v56 = vld [vmem:[%s1730_s0 + $0x18] ss:$12 sps:$4 sm:$0xff]   ;;  %v1244_v57 = vld [vmem:[%s1730_s0 + $0x34] ss:$12 sps:$4 sm:$0xff]  }
  0x14   :  { %525 = vmatprep.subr.bf16.mxu1 %v1179_v14  ;;  %v1254_v58 = vld [vmem:[%s1730_s0 + $0x68] ss:$12 sps:$4 sm:$0xff]   ;;  %v1247_v59 = vld [vmem:[%s1730_s0 + $0x30] ss:$12 sps:$4 sm:$0xff]   ;;  %v1248_v60 = vld [vmem:[%s1730_s0 + $0x4c] ss:$12 sps:$4 sm:$0xff]  }
  0x15   :  { %657 = vmatpush1.bf16.msra.mxu0 %v1216_v26  ;;  %v1258_v61 = vld [vmem:[%s1730_s0 + $0x80] ss:$12 sps:$4 sm:$0xff]   ;;  %v1251_v62 = vld [vmem:[%s1730_s0 + $0x48] ss:$12 sps:$4 sm:$0xff]   ;;  %v1252_v63 = vld [vmem:[%s1730_s0 + $0x64] ss:$12 sps:$4 sm:$0xff]  }
  0x16   :  { %658 = vmatprep.subr.bf16.mxu0 %v1218_v27  ;;  %v1262_v0 = vld [vmem:[%s1730_s0 + $0x98] ss:$12 sps:$4 sm:$0xff]   ;;  %v1255_v2 = vld [vmem:[%s1730_s0 + $0x60] ss:$12 sps:$4 sm:$0xff]   ;;  %v1256_v3 = vld [vmem:[%s1730_s0 + $0x7c] ss:$12 sps:$4 sm:$0xff]  }
  0x17   :  { %526 = vmatpush1.bf16.msra.mxu1 %v1181_v17  ;;  %v1266_v4 = vld [vmem:[%s1730_s0 + $0xb0] ss:$12 sps:$4 sm:$0xff]   ;;  %v1259_v5 = vld [vmem:[%s1730_s0 + $0x78] ss:$12 sps:$4 sm:$0xff]   ;;  %v1260_v6 = vld [vmem:[%s1730_s0 + $0x94] ss:$12 sps:$4 sm:$0xff]  }
  0x18   :  { %527 = vmatprep.subr.bf16.mxu1 %v1182_v20  ;;  %v1270_v7 = vld [vmem:[%s1730_s0 + $0xc8] ss:$12 sps:$4 sm:$0xff]   ;;  %v1263_v8 = vld [vmem:[%s1730_s0 + $0x90] ss:$12 sps:$4 sm:$0xff]   ;;  %v1264_v9 = vld [vmem:[%s1730_s0 + $0xac] ss:$12 sps:$4 sm:$0xff]  }
  0x19   :  { %659 = vmatpush1.bf16.msra.mxu0 %v1222_v29  ;;  %v1274_v10 = vld [vmem:[%s1730_s0 + $0xe0] ss:$12 sps:$4 sm:$0xff]   ;;  %v1267_v11 = vld [vmem:[%s1730_s0 + $0xa8] ss:$12 sps:$4 sm:$0xff]   ;;  %v1268_v12 = vld [vmem:[%s1730_s0 + $0xc4] ss:$12 sps:$4 sm:$0xff]  }
  0x1a   :  { %660 = vmatprep.subr.bf16.mxu0 %v1224_v31  ;;  %v1272_v13 = vld [vmem:[%s1730_s0 + $0xdc] ss:$12 sps:$4 sm:$0xff]   ;;  %v1275_v14 = vld [vmem:[%s1730_s0 + $0xd8] ss:$12 sps:$4 sm:$0xff]   ;;  %v103_v26 = vld [vmem:[%s1731_s2] sm:$0x3] }
  0x1b   :  { %528 = vmatpush1.bf16.msra.mxu1 %v1184_v22  ;;  %v106_v22 = vshrl.u32 %v105_v19, 7 }
  0x1c   :  { %529 = vmatprep.subr.bf16.mxu1 %v1185_v24 }
  0x1d   :  { %661 = vmatpush1.bf16.msra.mxu0 %v1228_v35  ;;  %v111_v27 = vsub.s32 1, %v106_v22 }
  0x1e   :  { %662 = vmatprep.subr.bf16.mxu0 %v1230_v36 }
  0x1f   :  { %530 = vmatpush1.bf16.msra.mxu1 %v1187_v25  ;;  %v107_v25 = vsub.s32 0, %v106_v22 }
  0x20   :  { %531 = vmatprep.subr.bf16.mxu1 %v1190_v28 }
  0x21   :  { %663 = vmatpush1.bf16.msra.mxu0 %v1234_v38 }
  0x23   :  { %532 = vmatpush1.bf16.msra.mxu1 %v1193_v30  ;;  %v1546_v30 = vrot.slane %v103_v26, %v107_v25 }
  0x24   :  { %533 = vmatprep.subr.bf16.mxu1 %v1196_v32  ;;  %681 = vmatmul.mubr.bf16.vlgmr.msra.gmra.mrb[0].mxu0 %v1239_v41  ;;  %v1550_v32 = vrot.slane %v103_v26, %v111_v27 }
  0x25   :  { %690 = vmatprep.mubr.bf16.mxu0 %v1276_v1 }
  0x27   :  { %534 = vmatpush1.bf16.msra.mxu1 %v1199_v33 }
  0x28   :  { %535 = vmatprep.subr.bf16.mxu1 %v1202_v37 }
  0x2b   :  { %536 = vmatpush1.bf16.msra.mxu1 %v1205_v39 }
  0x2c   :  { %537 = vmatprep.subr.bf16.mxu1 %v1208_v40  ;;  %691 = vmatmul.mubr.bf16.gmra.mrb[4].mxu0 %v1242_v46 }
  0x2d   :  { %700 = vmatprep.mubr.bf16.mxu0 %v1276_v1 }
  0x2f   :  { %538 = vmatpush1.bf16.msra.mxu1 %v1211_v42 }
  0x30   :  { %539 = vmatprep.subr.bf16.mxu1 %v1214_v43 }
  0x33   :  { %540 = vmatpush1.bf16.msra.mxu1 %v1217_v44 }
  0x34   :  { %541 = vmatprep.subr.bf16.mxu1 %v1220_v45  ;;  %701 = vmatmul.mubr.bf16.gmra.mrb[8].mxu0 %v1246_v51 }
  0x35   :  { %710 = vmatprep.mubr.bf16.mxu0 %v1276_v1 }
  0x37   :  { %542 = vmatpush1.bf16.msra.mxu1 %v1223_v47 }
  0x38   :  { %543 = vmatprep.subr.bf16.mxu1 %v1226_v48 }
  0x3b   :  { %544 = vmatpush1.bf16.msra.mxu1 %v1229_v49 }
  0x3c   :  { %545 = vmatprep.subr.bf16.mxu1 %v1232_v50  ;;  %711 = vmatmul.mubr.bf16.gmra.mrb[12].mxu0 %v1250_v55 }
  0x3d   :  { %720 = vmatprep.mubr.bf16.mxu0 %v1276_v1 }
  0x3f   :  { %546 = vmatpush1.bf16.msra.mxu1 %v1235_v52 }
  0x42   :  { %548 = vmatmul.mubr.bf16.vlgmr.msra.gmra.mrb[0].mxu1 %v1236_v53 }
  0x43   :  { %557 = vmatprep.mubr.bf16.mxu1 %v1240_v54 }
  0x44   :  { %721 = vmatmul.mubr.bf16.gmra.mrb[16].mxu0 %v1254_v58 }
  0x45   :  { %730 = vmatprep.mubr.bf16.mxu0 %v1276_v1 }
  0x4a   :  { %558 = vmatmul.mubr.bf16.gmra.mrb[4].mxu1 %v1243_v56 }
  0x4b   :  { %567 = vmatprep.mubr.bf16.mxu1 %v1244_v57 }
  0x4c   :  { %731 = vmatmul.mubr.bf16.gmra.mrb[20].mxu0 %v1258_v61 }
  0x4d   :  { %740 = vmatprep.mubr.bf16.mxu0 %v1276_v1 }
  0x52   :  { %568 = vmatmul.mubr.bf16.gmra.mrb[8].mxu1 %v1247_v59 }
  0x53   :  { %577 = vmatprep.mubr.bf16.mxu1 %v1248_v60 }
  0x54   :  { %741 = vmatmul.mubr.bf16.gmra.mrb[24].mxu0 %v1262_v0 }
  0x55   :  { %750 = vmatprep.mubr.bf16.mxu0 %v1276_v1 }
  0x5a   :  { %578 = vmatmul.mubr.bf16.gmra.mrb[12].mxu1 %v1251_v62 }
  0x5b   :  { %587 = vmatprep.mubr.bf16.mxu1 %v1252_v63 }
  0x5c   :  { %751 = vmatmul.mubr.bf16.gmra.mrb[28].mxu0 %v1266_v4 }
  0x5d   :  { %760 = vmatprep.mubr.bf16.mxu0 %v1276_v1 }
  0x62   :  { %588 = vmatmul.mubr.bf16.gmra.mrb[16].mxu1 %v1255_v2 }
  0x63   :  { %597 = vmatprep.mubr.bf16.mxu1 %v1256_v3 }
  0x64   :  { %761 = vmatmul.mubr.bf16.gmra.mrb[32].mxu0 %v1270_v7 }
  0x65   :  { %770 = vmatprep.mubr.bf16.mxu0 %v1276_v1  ;;  %v1271_v1 = vld [vmem:[%s1730_s0 + $0xc0] ss:$12 sps:$4 sm:$0xff]  }
  0x6a   :  { %598 = vmatmul.mubr.bf16.gmra.mrb[20].mxu1 %v1259_v5 }
  0x6b   :  { %607 = vmatprep.mubr.bf16.mxu1 %v1260_v6 }
  0x6c   :  { %771 = vmatmul.mubr.bf16.gmra.mrb[36].mxu0 %v1274_v10 }
  0x72   :  { %608 = vmatmul.mubr.bf16.gmra.mrb[24].mxu1 %v1263_v8 }
  0x73   :  { %617 = vmatprep.mubr.bf16.mxu1 %v1264_v9 }
  0x7a   :  { %618 = vmatmul.mubr.bf16.gmra.mrb[28].mxu1 %v1267_v11 }
  0x7b   :  { %627 = vmatprep.mubr.bf16.mxu1 %v1268_v12 }
  0x82   :  { %628 = vmatmul.mubr.bf16.gmra.mrb[32].mxu1 %v1271_v1 }
  0x83   :  { %637 = vmatprep.mubr.bf16.mxu1 %v1272_v13 }
  0x8a   :  { %638 = vmatmul.mubr.bf16.gmra.mrb[36].mxu1 %v1275_v14 }
  0xf7   :  { %v682_v15 = vpop.f32.mrb[0].mxu0 }
  0xf8   :  { %v684_v16 = vpop.f32.mrb[1].mxu0 }
  0xf9   :  { %v686_v17 = vpop.f32.mrb[2].mxu0 }
  0xfa   :  { %v688_v18 = vpop.f32.mrb[3].mxu0 }
  0xff   :  { %v692_v20 = vpop.f32.mrb[4].mxu0 }
 0x100   :  { %v694_v21 = vpop.f32.mrb[5].mxu0 }
 0x101   :  { %v696_v23 = vpop.f32.mrb[6].mxu0 }
 0x102   :  { %v698_v24 = vpop.f32.mrb[7].mxu0 }
 0x107   :  { %v702_v28 = vpop.f32.mrb[8].mxu0 }
 0x108   :  { %v1544_v29 = vpop.f32.mrb[9].mxu0 }
 0x109   :  { %v1548_v31 = vpop.f32.mrb[10].mxu0 }
 0x10a   :  { %v1552_v33 = vpop.f32.mrb[11].mxu0 }
 0x10f   :  { %v1557_v42 = vpop.f32.mrb[12].mxu0 }
 0x110   :  { %v1560_v45 = vpop.f32.mrb[13].mxu0 }
 0x111   :  { %v1562_v48 = vpop.f32.mrb[14].mxu0 }
 0x112   :  { %v1564_v51 = vpop.f32.mrb[15].mxu0 }
 0x115   :  { %v549_v34 = vpop.f32.mrb[0].mxu1 }
 0x116   :  { %v550_v35 = vadd.f32 %v549_v34, %v1546_v30  ;;  %v551_v36 = vpop.f32.mrb[1].mxu1 }
 0x117   :  { %v552_v37 = vadd.f32 %v551_v36, %v1550_v32  ;;  %v553_v38 = vpop.f32.mrb[2].mxu1  ;;  %v1572_v0 = vpop.f32.mrb[16].mxu0 }
 0x118   :  { %v683_v39 = vadd.f32 %v682_v15, %v550_v35  ;;  %v554_v40 = vadd.f32 %v553_v38, %v1546_v30  ;;  %v555_v41 = vpop.f32.mrb[3].mxu1  ;;  %v1578_v4 = vpop.f32.mrb[17].mxu0 }
 0x119   :  { %v685_v43 = vadd.f32 %v684_v16, %v552_v37  ;;  %v556_v44 = vadd.f32 %v555_v41, %v1550_v32  ;;  %v1580_v7 = vpop.f32.mrb[18].mxu0 }
 0x11a   :  { %v781_v46 = vmax.f32 %v683_v39, 0.0  ;;  %v687_v47 = vadd.f32 %v686_v17, %v554_v40  ;;  %v1582_v10 = vpop.f32.mrb[19].mxu0 }
 0x11b   :  { %v782_v49 = vmax.f32 %v685_v43, 0.0  ;;  %v689_v50 = vadd.f32 %v688_v18, %v556_v44 }
 0x11c   :  { %v783_v52 = vmax.f32 %v687_v47, 0.0 }
 0x11d   :  { %v1063_v53 = vpack.c.bf16 %v782_v49, %v781_v46  ;;  %v784_v54 = vmax.f32 %v689_v50, 0.0  ;;  %v559_v55 = vpop.f32.mrb[4].mxu1 }
 0x11e   :  { %v560_v56 = vadd.f32 %v559_v55, %v1546_v30  ;;  %v561_v57 = vpop.f32.mrb[5].mxu1 }
 0x11f   :  { %941 = vst [vmem:[%s1732_s3] sm:$0xff] %v1063_v53  ;;  %v1064_v58 = vpack.c.bf16 %v784_v54, %v783_v52  ;;  %v562_v59 = vadd.f32 %v561_v57, %v1550_v32  ;;  %v563_v60 = vpop.f32.mrb[6].mxu1  ;;  %v1590_v22 = vpop.f32.mrb[20].mxu0 }
 0x120   :  { %v693_v61 = vadd.f32 %v692_v20, %v560_v56  ;;  %v564_v62 = vadd.f32 %v563_v60, %v1546_v30  ;;  %v565_v63 = vpop.f32.mrb[7].mxu1  ;;  %v1597_v25 = vpop.f32.mrb[21].mxu0 }
 0x121   :  { %942 = vst [vmem:[%s1732_s3 + $0x8] sm:$0xff] %v1064_v58  ;;  %v695_v2 = vadd.f32 %v694_v21, %v562_v59  ;;  %v566_v3 = vadd.f32 %v565_v63, %v1550_v32  ;;  %v1600_v34 = vpop.f32.mrb[22].mxu0 }
 0x122   :  { %v785_v5 = vmax.f32 %v693_v61, 0.0  ;;  %v697_v6 = vadd.f32 %v696_v23, %v564_v62  ;;  %v1603_v36 = vpop.f32.mrb[23].mxu0 }
 0x123   :  { %v786_v8 = vmax.f32 %v695_v2, 0.0  ;;  %v699_v9 = vadd.f32 %v698_v24, %v566_v3 }
 0x124   :  { %v787_v11 = vmax.f32 %v697_v6, 0.0 }
 0x125   :  { %v1065_v12 = vpack.c.bf16 %v786_v8, %v785_v5  ;;  %v788_v1 = vmax.f32 %v699_v9, 0.0  ;;  %v569_v13 = vpop.f32.mrb[8].mxu1 }
 0x126   :  { %v570_v14 = vadd.f32 %v569_v13, %v1546_v30  ;;  %v571_v15 = vpop.f32.mrb[9].mxu1 }
 0x127   :  { %943 = vst [vmem:[%s1732_s3 + $0x10] sm:$0xff] %v1065_v12  ;;  %v1066_v16 = vpack.c.bf16 %v788_v1, %v787_v11  ;;  %v572_v17 = vadd.f32 %v571_v15, %v1550_v32  ;;  %v573_v18 = vpop.f32.mrb[10].mxu1  ;;  %v1612_v49 = vpop.f32.mrb[24].mxu0 }
 0x128   :  { %v703_v19 = vadd.f32 %v702_v28, %v570_v14  ;;  %v574_v20 = vadd.f32 %v573_v18, %v1546_v30  ;;  %v575_v21 = vpop.f32.mrb[11].mxu1  ;;  %v1619_v53 = vpop.f32.mrb[25].mxu0 }
 0x129   :  { %944 = vst [vmem:[%s1732_s3 + $0x18] sm:$0xff] %v1066_v16  ;;  %v705_v23 = vadd.f32 %v1544_v29, %v572_v17  ;;  %v576_v24 = vadd.f32 %v575_v21, %v1550_v32  ;;  %v1622_v56 = vpop.f32.mrb[26].mxu0 }
 0x12a   :  { %v789_v26 = vmax.f32 %v703_v19, 0.0  ;;  %v707_v27 = vadd.f32 %v1548_v31, %v574_v20  ;;  %v1625_v58 = vpop.f32.mrb[27].mxu0 }
 0x12b   :  { %v790_v28 = vmax.f32 %v705_v23, 0.0  ;;  %v709_v35 = vadd.f32 %v1552_v33, %v576_v24 }
 0x12c   :  { %v791_v37 = vmax.f32 %v707_v27, 0.0 }
 0x12d   :  { %v1067_v38 = vpack.c.bf16 %v790_v28, %v789_v26  ;;  %v792_v39 = vmax.f32 %v709_v35, 0.0  ;;  %v579_v40 = vpop.f32.mrb[12].mxu1 }
 0x12e   :  { %v580_v29 = vadd.f32 %v579_v40, %v1546_v30  ;;  %v581_v41 = vpop.f32.mrb[13].mxu1 }
 0x12f   :  { %945 = vst [vmem:[%s1732_s3 + $0x20] sm:$0xff] %v1067_v38  ;;  %v1068_v43 = vpack.c.bf16 %v792_v39, %v791_v37  ;;  %v582_v31 = vadd.f32 %v581_v41, %v1550_v32  ;;  %v583_v44 = vpop.f32.mrb[14].mxu1  ;;  %v1634_v8 = vpop.f32.mrb[28].mxu0 }
 0x130   :  { %v713_v46 = vadd.f32 %v1557_v42, %v580_v29  ;;  %v584_v33 = vadd.f32 %v583_v44, %v1546_v30  ;;  %v585_v47 = vpop.f32.mrb[15].mxu1  ;;  %v1641_v12 = vpop.f32.mrb[29].mxu0 }
 0x131   :  { %946 = vst [vmem:[%s1732_s3 + $0x28] sm:$0xff] %v1068_v43  ;;  %v715_v50 = vadd.f32 %v1560_v45, %v582_v31  ;;  %v586_v52 = vadd.f32 %v585_v47, %v1550_v32  ;;  %v1644_v14 = vpop.f32.mrb[30].mxu0 }
 0x132   :  { %v793_v54 = vmax.f32 %v713_v46, 0.0  ;;  %v717_v55 = vadd.f32 %v1562_v48, %v584_v33  ;;  %v1647_v16 = vpop.f32.mrb[31].mxu0 }
 0x133   :  { %v794_v42 = vmax.f32 %v715_v50, 0.0  ;;  %v719_v57 = vadd.f32 %v1564_v51, %v586_v52 }
 0x134   :  { %v795_v59 = vmax.f32 %v717_v55, 0.0 }
 0x135   :  { %v1069_v60 = vpack.c.bf16 %v794_v42, %v793_v54  ;;  %v796_v61 = vmax.f32 %v719_v57, 0.0  ;;  %v589_v62 = vpop.f32.mrb[16].mxu1 }
 0x136   :  { %v590_v45 = vadd.f32 %v589_v62, %v1546_v30  ;;  %v591_v63 = vpop.f32.mrb[17].mxu1 }
 0x137   :  { %947 = vst [vmem:[%s1732_s3 + $0x30] sm:$0xff] %v1069_v60  ;;  %v1070_v2 = vpack.c.bf16 %v796_v61, %v795_v59  ;;  %v592_v48 = vadd.f32 %v591_v63, %v1550_v32  ;;  %v593_v3 = vpop.f32.mrb[18].mxu1  ;;  %v1656_v28 = vpop.f32.mrb[32].mxu0 }
 0x138   :  { %v723_v5 = vadd.f32 %v1572_v0, %v590_v45  ;;  %v594_v51 = vadd.f32 %v593_v3, %v1546_v30  ;;  %v595_v6 = vpop.f32.mrb[19].mxu1  ;;  %v1663_v38 = vpop.f32.mrb[33].mxu0 }
 0x139   :  { %948 = vst [vmem:[%s1732_s3 + $0x38] sm:$0xff] %v1070_v2  ;;  %v725_v9 = vadd.f32 %v1578_v4, %v592_v48  ;;  %v596_v11 = vadd.f32 %v595_v6, %v1550_v32  ;;  %v1666_v29 = vpop.f32.mrb[34].mxu0 }
 0x13a   :  { %v797_v1 = vmax.f32 %v723_v5, 0.0  ;;  %v727_v13 = vadd.f32 %v1580_v7, %v594_v51  ;;  %v1669_v43 = vpop.f32.mrb[35].mxu0 }
 0x13b   :  { %v798_v0 = vmax.f32 %v725_v9, 0.0  ;;  %v729_v15 = vadd.f32 %v1582_v10, %v596_v11 }
 0x13c   :  { %v799_v17 = vmax.f32 %v727_v13, 0.0 }
 0x13d   :  { %v1071_v18 = vpack.c.bf16 %v798_v0, %v797_v1  ;;  %v800_v19 = vmax.f32 %v729_v15, 0.0  ;;  %v599_v20 = vpop.f32.mrb[20].mxu1 }
 0x13e   :  { %v600_v4 = vadd.f32 %v599_v20, %v1546_v30  ;;  %v601_v21 = vpop.f32.mrb[21].mxu1 }
 0x13f   :  { %949 = vst [vmem:[%s1732_s3 + $0x40] sm:$0xff] %v1071_v18  ;;  %v1072_v23 = vpack.c.bf16 %v800_v19, %v799_v17  ;;  %v602_v7 = vadd.f32 %v601_v21, %v1550_v32  ;;  %v603_v24 = vpop.f32.mrb[22].mxu1  ;;  %v772_v42 = vpop.f32.mrb[36].mxu0 }
 0x140   :  { %v733_v26 = vadd.f32 %v1590_v22, %v600_v4  ;;  %v604_v10 = vadd.f32 %v603_v24, %v1546_v30  ;;  %v605_v27 = vpop.f32.mrb[23].mxu1  ;;  %v774_v60 = vpop.f32.mrb[37].mxu0 }
 0x141   :  { %950 = vst [vmem:[%s1732_s3 + $0x48] sm:$0xff] %v1072_v23  ;;  %v735_v35 = vadd.f32 %v1597_v25, %v602_v7  ;;  %v606_v37 = vadd.f32 %v605_v27, %v1550_v32  ;;  %v776_v45 = vpop.f32.mrb[38].mxu0 }
 0x142   :  { %v801_v39 = vmax.f32 %v733_v26, 0.0  ;;  %v737_v40 = vadd.f32 %v1600_v34, %v604_v10  ;;  %v778_v2 = vpop.f32.mrb[39].mxu0 }
 0x143   :  { %v802_v22 = vmax.f32 %v735_v35, 0.0  ;;  %v739_v41 = vadd.f32 %v1603_v36, %v606_v37 }
 0x144   :  { %v803_v31 = vmax.f32 %v737_v40, 0.0 }
 0x145   :  { %v1073_v44 = vpack.c.bf16 %v802_v22, %v801_v39  ;;  %v804_v46 = vmax.f32 %v739_v41, 0.0  ;;  %v609_v33 = vpop.f32.mrb[24].mxu1 }
 0x146   :  { %v610_v25 = vadd.f32 %v609_v33, %v1546_v30  ;;  %v611_v47 = vpop.f32.mrb[25].mxu1 }
 0x147   :  { %951 = vst [vmem:[%s1732_s3 + $0x50] sm:$0xff] %v1073_v44  ;;  %v1074_v50 = vpack.c.bf16 %v804_v46, %v803_v31  ;;  %v612_v34 = vadd.f32 %v611_v47, %v1550_v32  ;;  %v613_v52 = vpop.f32.mrb[26].mxu1 }
 0x148   :  { %v743_v54 = vadd.f32 %v1612_v49, %v610_v25  ;;  %v614_v36 = vadd.f32 %v613_v52, %v1546_v30  ;;  %v615_v55 = vpop.f32.mrb[27].mxu1 }
 0x149   :  { %952 = vst [vmem:[%s1732_s3 + $0x58] sm:$0xff] %v1074_v50  ;;  %v745_v57 = vadd.f32 %v1619_v53, %v612_v34  ;;  %v616_v59 = vadd.f32 %v615_v55, %v1550_v32 }
 0x14a   :  { %v805_v61 = vmax.f32 %v743_v54, 0.0  ;;  %v747_v62 = vadd.f32 %v1622_v56, %v614_v36 }
 0x14b   :  { %v806_v63 = vmax.f32 %v745_v57, 0.0  ;;  %v749_v49 = vadd.f32 %v1625_v58, %v616_v59 }
 0x14c   :  { %v807_v48 = vmax.f32 %v747_v62, 0.0 }
 0x14d   :  { %v1075_v3 = vpack.c.bf16 %v806_v63, %v805_v61  ;;  %v808_v5 = vmax.f32 %v749_v49, 0.0  ;;  %v619_v51 = vpop.f32.mrb[28].mxu1 }
 0x14e   :  { %v620_v6 = vadd.f32 %v619_v51, %v1546_v30  ;;  %v621_v9 = vpop.f32.mrb[29].mxu1 }
 0x14f   :  { %953 = vst [vmem:[%s1732_s3 + $0x60] sm:$0xff] %v1075_v3  ;;  %v1076_v53 = vpack.c.bf16 %v808_v5, %v807_v48  ;;  %v622_v11 = vadd.f32 %v621_v9, %v1550_v32  ;;  %v623_v56 = vpop.f32.mrb[30].mxu1 }
 0x150   :  { %v753_v1 = vadd.f32 %v1634_v8, %v620_v6  ;;  %v624_v58 = vadd.f32 %v623_v56, %v1546_v30  ;;  %v625_v13 = vpop.f32.mrb[31].mxu1 }
 0x151   :  { %954 = vst [vmem:[%s1732_s3 + $0x68] sm:$0xff] %v1076_v53  ;;  %v755_v0 = vadd.f32 %v1641_v12, %v622_v11  ;;  %v626_v15 = vadd.f32 %v625_v13, %v1550_v32 }
 0x152   :  { %v809_v17 = vmax.f32 %v753_v1, 0.0  ;;  %v757_v18 = vadd.f32 %v1644_v14, %v624_v58 }
 0x153   :  { %v810_v19 = vmax.f32 %v755_v0, 0.0  ;;  %v759_v20 = vadd.f32 %v1647_v16, %v626_v15 }
 0x154   :  { %v811_v4 = vmax.f32 %v757_v18, 0.0 }
 0x155   :  { %v1077_v21 = vpack.c.bf16 %v810_v19, %v809_v17  ;;  %v812_v8 = vmax.f32 %v759_v20, 0.0  ;;  %v629_v23 = vpop.f32.mrb[32].mxu1 }
 0x156   :  { %v630_v7 = vadd.f32 %v629_v23, %v1546_v30  ;;  %v631_v24 = vpop.f32.mrb[33].mxu1 }
 0x157   :  { %955 = vst [vmem:[%s1732_s3 + $0x70] sm:$0xff] %v1077_v21  ;;  %v1078_v12 = vpack.c.bf16 %v812_v8, %v811_v4  ;;  %v632_v26 = vadd.f32 %v631_v24, %v1550_v32  ;;  %v633_v10 = vpop.f32.mrb[34].mxu1 }
 0x158   :  { %v763_v14 = vadd.f32 %v1656_v28, %v630_v7  ;;  %v634_v27 = vadd.f32 %v633_v10, %v1546_v30  ;;  %v635_v16 = vpop.f32.mrb[35].mxu1 }
 0x159   :  { %956 = vst [vmem:[%s1732_s3 + $0x78] sm:$0xff] %v1078_v12  ;;  %v765_v35 = vadd.f32 %v1663_v38, %v632_v26  ;;  %v636_v37 = vadd.f32 %v635_v16, %v1550_v32 }
 0x15a   :  { %v813_v39 = vmax.f32 %v763_v14, 0.0  ;;  %v767_v40 = vadd.f32 %v1666_v29, %v634_v27 }
 0x15b   :  { %v814_v22 = vmax.f32 %v765_v35, 0.0  ;;  %v769_v41 = vadd.f32 %v1669_v43, %v636_v37 }
 0x15c   :  { %v815_v31 = vmax.f32 %v767_v40, 0.0 }
 0x15d   :  { %v1079_v44 = vpack.c.bf16 %v814_v22, %v813_v39  ;;  %v816_v28 = vmax.f32 %v769_v41, 0.0  ;;  %v639_v46 = vpop.f32.mrb[36].mxu1 }
 0x15e   :  { %v640_v33 = vadd.f32 %v639_v46, %v1546_v30  ;;  %v641_v25 = vpop.f32.mrb[37].mxu1 }
 0x15f   :  { %957 = vst [vmem:[%s1732_s3 + $0x80] sm:$0xff] %v1079_v44  ;;  %v1080_v38 = vpack.c.bf16 %v816_v28, %v815_v31  ;;  %v642_v47 = vadd.f32 %v641_v25, %v1550_v32  ;;  %v643_v50 = vpop.f32.mrb[38].mxu1 }
 0x160   :  { %v773_v34 = vadd.f32 %v772_v42, %v640_v33  ;;  %v644_v29 = vadd.f32 %v643_v50, %v1546_v30  ;;  %v645_v52 = vpop.f32.mrb[39].mxu1 }
 0x161   :  { %958 = vst [vmem:[%s1732_s3 + $0x88] sm:$0xff] %v1080_v38  ;;  %v775_v43 = vadd.f32 %v774_v60, %v642_v47  ;;  %v646_v54 = vadd.f32 %v645_v52, %v1550_v32 }
 0x162   :  { %v817_v36 = vmax.f32 %v773_v34, 0.0  ;;  %v777_v55 = vadd.f32 %v776_v45, %v644_v29 }
 0x163   :  { %v818_v57 = vmax.f32 %v775_v43, 0.0  ;;  %v779_v59 = vadd.f32 %v778_v2, %v646_v54 }
 0x164   :  { %v819_v61 = vmax.f32 %v777_v55, 0.0 }
 0x165   :  { %v1081_v62 = vpack.c.bf16 %v818_v57, %v817_v36  ;;  %v820_v63 = vmax.f32 %v779_v59, 0.0 }
 0x167   :  { %959 = vst [vmem:[%s1732_s3 + $0x90] sm:$0xff] %v1081_v62  ;;  %v1082_v30 = vpack.c.bf16 %v820_v63, %v819_v61 }
 0x169   :  { %960 = vst [vmem:[%s1732_s3 + $0x98] sm:$0xff] %v1082_v30 }

// kernel: capsule_net_forward.9
= control target key start
LH: loop header
LB: loop body
LE: loop exit
PB: predicated region body
PF: predicated region fallthrough
CT: control target
= control target key end

     0   :  { %s12327_s12 = smov 0   ;;  %s12329_s13 = smov 0   ;;  %s14543_s0 = inlined_call_operand.vmem [shape: bf16[2,5120], index: 0, kind: input, shape index: {}]   ;;  %s14544_s1 = inlined_call_operand.vmem [shape: bf16[5120,1024], index: 1, kind: input, shape index: {}]   ;;  %s14545_s2 = inlined_call_operand.vmem [shape: f32[1,1024], index: 2, kind: input, shape index: {}]   ;;  %s14546_s3 = inlined_call_operand.vmem [shape: bf16[2,1024], index: 3, kind: output, shape index: {}]  }
   0x1   :  { %s12331_s14 = smov 0   ;;  %s12333_s15 = smov 0  }
   0x2   :  { %s12335_s16 = smov 0  }
   0x3 LB: > { %s22_s17 = sadd.s32 1, %s12300_s15  ;;  %p65_p1 = scmp.ne.s32.totalorder %s12292_s13, %s12288_s12  ;;  %s12304_s16 = sphi %s12335_s16, %s13_s16   ;;  %s12300_s15 = sphi %s12333_s15, %s14550_s15   ;;  %s12296_s14 = sphi %s12331_s14, %s14549_s14   ;;  %s12292_s13 = sphi %s12329_s13, %s14548_s13   ;;  %s12288_s12 = sphi %s12327_s12, %s14547_s12  }
   0x4   : > { %p23_p0 = scmp.ge.s32.totalorder %s22_s17, 4  ;;  %p66_p2 = scmp.eq.s32.totalorder %s12304_s16, 0 }
   0x5   : > { %s58_s19 = sadd.s32 1, %s12292_s13  ;;  %p10527_p5 = scmp.ge.s32.totalorder %s12304_s16, 4 }
   0x6   : > { %s14552_s17 = smov (%p23_p0, %s22_s17), 0  ;;  %p67_p3 = por %p66_p2, %p65_p1 }
   0x7   : > { %s55_s18 = ssub.s32 %s12300_s15, %s14552_s17  ;;  %152 = sbr.rel (%p10527_p5) target bundleno = 658 (0x292), region = 20 }
   0x8   : > { %p56_p4 = scmp.eq.s32.totalorder %s55_s18, 0 }
   0xa   : > { %s12362_s20 = scalar_select %p56_p4, %s12292_s13, %s58_s19  }
   0xe   : > { %155 = sbr.rel (!%p67_p3) target bundleno = 658 (0x292), region = 24  ;;  %s157_s21 = sand.u32 (%p67_p3), 1, %s12292_s13  }
   0xf   : > { %s11177_s22 = sshll.u32 (%p67_p3), %s12300_s15, 3  ;;  %s11254_s23 = smul.u32 (%p67_p3), 5120, %s157_s21 }
  0x10   : > { %s12370_s26 = scalar_lea.vmem (%p67_p3), %s14544_s1, %s11177_s22 }
  0x11   : > { %v1471_v0 = vld [vmem:[%s12370_s26] sm:$0xff] (%p67_p3)  ;;  %s12378_s27 = scalar_lea.vmem (%p67_p3), [#allocation2], %s11254_s23 }
  0x12   : > { %v1473_v1 = vld [vmem:[%s12370_s26 + $0x20] sm:$0xff] (%p67_p3)  ;;  %1472 = vst [vmem:[%s12378_s27] sm:$0xff] (%p67_p3), %v1471_v0 }
  0x13   : > { %v1475_v2 = vld [vmem:[%s12370_s26 + $0x40] sm:$0xff] (%p67_p3)  ;;  %1474 = vst [vmem:[%s12378_s27 + $0x8] sm:$0xff] (%p67_p3), %v1473_v1 }
  0x14   : > { %v1477_v3 = vld [vmem:[%s12370_s26 + $0x60] sm:$0xff] (%p67_p3)  ;;  %1476 = vst [vmem:[%s12378_s27 + $0x10] sm:$0xff] (%p67_p3), %v1475_v2 }
  0x15   : > { %v1479_v4 = vld [vmem:[%s12370_s26 + $0x80] sm:$0xff]  ;;  %1478 = vst [vmem:[%s12378_s27 + $0x18] sm:$0xff] %v1477_v3 }
  0x16   : > { %v1481_v5 = vld [vmem:[%s12370_s26 + $0xa0] sm:$0xff]  ;;  %1480 = vst [vmem:[%s12378_s27 + $0x20] sm:$0xff] %v1479_v4 }
  0x17   : > { %1482 = vst [vmem:[%s12378_s27 + $0x28] sm:$0xff] %v1481_v5  ;;  %v1483_v6 = vld [vmem:[%s12370_s26 + $0xc0] sm:$0xff] }
  0x18   : > { %v1485_v7 = vld [vmem:[%s12370_s26 + $0xe0] sm:$0xff]  ;;  %1484 = vst [vmem:[%s12378_s27 + $0x30] sm:$0xff] %v1483_v6 }
  0x19   : > { %v1487_v8 = vld [vmem:[%s12370_s26 + $0x100] sm:$0xff]  ;;  %1486 = vst [vmem:[%s12378_s27 + $0x38] sm:$0xff] %v1485_v7 }
  0x1a   : > { %1488 = vst [vmem:[%s12378_s27 + $0x40] sm:$0xff] %v1487_v8  ;;  %v1489_v9 = vld [vmem:[%s12370_s26 + $0x120] sm:$0xff] }
  0x1b   : > { %v1491_v10 = vld [vmem:[%s12370_s26 + $0x140] sm:$0xff]  ;;  %1490 = vst [vmem:[%s12378_s27 + $0x48] sm:$0xff] %v1489_v9 }
  0x1c   : > { %v1493_v11 = vld [vmem:[%s12370_s26 + $0x160] sm:$0xff]  ;;  %1492 = vst [vmem:[%s12378_s27 + $0x50] sm:$0xff] %v1491_v10 }
  0x1d   : > { %1494 = vst [vmem:[%s12378_s27 + $0x58] sm:$0xff] %v1493_v11  ;;  %v1495_v12 = vld [vmem:[%s12370_s26 + $0x180] sm:$0xff] }
  0x1e   : > { %v1497_v13 = vld [vmem:[%s12370_s26 + $0x1a0] sm:$0xff]  ;;  %1496 = vst [vmem:[%s12378_s27 + $0x60] sm:$0xff] %v1495_v12 }
  0x1f   : > { %v1499_v14 = vld [vmem:[%s12370_s26 + $0x1c0] sm:$0xff]  ;;  %1498 = vst [vmem:[%s12378_s27 + $0x68] sm:$0xff] %v1497_v13 }
  0x20   : > { %1500 = vst [vmem:[%s12378_s27 + $0x70] sm:$0xff] %v1499_v14  ;;  %v1501_v15 = vld [vmem:[%s12370_s26 + $0x1e0] sm:$0xff] }
  0x21   : > { %v1503_v16 = vld [vmem:[%s12370_s26 + $0x200] sm:$0xff]  ;;  %1502 = vst [vmem:[%s12378_s27 + $0x78] sm:$0xff] %v1501_v15 }
  0x22   : > { %v1505_v17 = vld [vmem:[%s12370_s26 + $0x220] sm:$0xff]  ;;  %1504 = vst [vmem:[%s12378_s27 + $0x80] sm:$0xff] %v1503_v16 }
  0x23   : > { %1506 = vst [vmem:[%s12378_s27 + $0x88] sm:$0xff] %v1505_v17  ;;  %v1507_v18 = vld [vmem:[%s12370_s26 + $0x240] sm:$0xff] }
  0x24   : > { %v1509_v19 = vld [vmem:[%s12370_s26 + $0x260] sm:$0xff]  ;;  %1508 = vst [vmem:[%s12378_s27 + $0x90] sm:$0xff] %v1507_v18 }
  0x25   : > { %v1511_v20 = vld [vmem:[%s12370_s26 + $0x280] sm:$0xff]  ;;  %1510 = vst [vmem:[%s12378_s27 + $0x98] sm:$0xff] %v1509_v19 }
  0x26   : > { %1512 = vst [vmem:[%s12378_s27 + $0xa0] sm:$0xff] %v1511_v20  ;;  %v1513_v21 = vld [vmem:[%s12370_s26 + $0x2a0] sm:$0xff] }
  0x27   : > { %v1515_v22 = vld [vmem:[%s12370_s26 + $0x2c0] sm:$0xff]  ;;  %1514 = vst [vmem:[%s12378_s27 + $0xa8] sm:$0xff] %v1513_v21 }
  0x28   : > { %v1517_v23 = vld [vmem:[%s12370_s26 + $0x2e0] sm:$0xff]  ;;  %1516 = vst [vmem:[%s12378_s27 + $0xb0] sm:$0xff] %v1515_v22 }
  0x29   : > { %1518 = vst [vmem:[%s12378_s27 + $0xb8] sm:$0xff] %v1517_v23  ;;  %v1519_v24 = vld [vmem:[%s12370_s26 + $0x300] sm:$0xff] }
  0x2a   : > { %v1521_v25 = vld [vmem:[%s12370_s26 + $0x320] sm:$0xff]  ;;  %1520 = vst [vmem:[%s12378_s27 + $0xc0] sm:$0xff] %v1519_v24 }
  0x2b   : > { %v1523_v26 = vld [vmem:[%s12370_s26 + $0x340] sm:$0xff]  ;;  %1522 = vst [vmem:[%s12378_s27 + $0xc8] sm:$0xff] %v1521_v25 }
  0x2c   : > { %1524 = vst [vmem:[%s12378_s27 + $0xd0] sm:$0xff] %v1523_v26  ;;  %v1525_v27 = vld [vmem:[%s12370_s26 + $0x360] sm:$0xff] }
  0x2d   : > { %v1527_v28 = vld [vmem:[%s12370_s26 + $0x380] sm:$0xff]  ;;  %1526 = vst [vmem:[%s12378_s27 + $0xd8] sm:$0xff] %v1525_v27 }
  0x2e   : > { %v1529_v29 = vld [vmem:[%s12370_s26 + $0x3a0] sm:$0xff]  ;;  %1528 = vst [vmem:[%s12378_s27 + $0xe0] sm:$0xff] %v1527_v28 }
  0x2f   : > { %1530 = vst [vmem:[%s12378_s27 + $0xe8] sm:$0xff] %v1529_v29  ;;  %v1531_v30 = vld [vmem:[%s12370_s26 + $0x3c0] sm:$0xff] }
  0x30   : > { %v1533_v31 = vld [vmem:[%s12370_s26 + $0x3e0] sm:$0xff]  ;;  %1532 = vst [vmem:[%s12378_s27 + $0xf0] sm:$0xff] %v1531_v30 }
  0x31   : > { %v1535_v32 = vld [vmem:[%s12370_s26 + $0x400] sm:$0xff]  ;;  %1534 = vst [vmem:[%s12378_s27 + $0xf8] sm:$0xff] %v1533_v31 }
  0x32   : > { %1536 = vst [vmem:[%s12378_s27 + $0x100] sm:$0xff] %v1535_v32  ;;  %v1537_v33 = vld [vmem:[%s12370_s26 + $0x420] sm:$0xff] }
  0x33   : > { %v1539_v34 = vld [vmem:[%s12370_s26 + $0x440] sm:$0xff]  ;;  %1538 = vst [vmem:[%s12378_s27 + $0x108] sm:$0xff] %v1537_v33 }
  0x34   : > { %v1541_v35 = vld [vmem:[%s12370_s26 + $0x460] sm:$0xff]  ;;  %1540 = vst [vmem:[%s12378_s27 + $0x110] sm:$0xff] %v1539_v34 }
  0x35   : > { %1542 = vst [vmem:[%s12378_s27 + $0x118] sm:$0xff] %v1541_v35  ;;  %v1543_v36 = vld [vmem:[%s12370_s26 + $0x480] sm:$0xff] }
  0x36   : > { %v1545_v37 = vld [vmem:[%s12370_s26 + $0x4a0] sm:$0xff]  ;;  %1544 = vst [vmem:[%s12378_s27 + $0x120] sm:$0xff] %v1543_v36 }
  0x37   : > { %v1547_v38 = vld [vmem:[%s12370_s26 + $0x4c0] sm:$0xff]  ;;  %1546 = vst [vmem:[%s12378_s27 + $0x128] sm:$0xff] %v1545_v37 }
  0x38   : > { %1548 = vst [vmem:[%s12378_s27 + $0x130] sm:$0xff] %v1547_v38  ;;  %v1549_v39 = vld [vmem:[%s12370_s26 + $0x4e0] sm:$0xff] }
  0x39   : > { %v1551_v40 = vld [vmem:[%s12370_s26 + $0x500] sm:$0xff]  ;;  %1550 = vst [vmem:[%s12378_s27 + $0x138] sm:$0xff] %v1549_v39 }
  0x3a   : > { %v1553_v41 = vld [vmem:[%s12370_s26 + $0x520] sm:$0xff]  ;;  %1552 = vst [vmem:[%s12378_s27 + $0x140] sm:$0xff] %v1551_v40 }
  0x3b   : > { %1554 = vst [vmem:[%s12378_s27 + $0x148] sm:$0xff] %v1553_v41  ;;  %v1555_v42 = vld [vmem:[%s12370_s26 + $0x540] sm:$0xff] }
  0x3c   : > { %v1557_v43 = vld [vmem:[%s12370_s26 + $0x560] sm:$0xff]  ;;  %1556 = vst [vmem:[%s12378_s27 + $0x150] sm:$0xff] %v1555_v42 }
  0x3d   : > { %v1559_v44 = vld [vmem:[%s12370_s26 + $0x580] sm:$0xff]  ;;  %1558 = vst [vmem:[%s12378_s27 + $0x158] sm:$0xff] %v1557_v43 }
  0x3e   : > { %1560 = vst [vmem:[%s12378_s27 + $0x160] sm:$0xff] %v1559_v44  ;;  %v1561_v45 = vld [vmem:[%s12370_s26 + $0x5a0] sm:$0xff] }
  0x3f   : > { %v1563_v46 = vld [vmem:[%s12370_s26 + $0x5c0] sm:$0xff]  ;;  %1562 = vst [vmem:[%s12378_s27 + $0x168] sm:$0xff] %v1561_v45 }
  0x40   : > { %v1565_v47 = vld [vmem:[%s12370_s26 + $0x5e0] sm:$0xff]  ;;  %1564 = vst [vmem:[%s12378_s27 + $0x170] sm:$0xff] %v1563_v46 }
  0x41   : > { %1566 = vst [vmem:[%s12378_s27 + $0x178] sm:$0xff] %v1565_v47  ;;  %v1567_v48 = vld [vmem:[%s12370_s26 + $0x600] sm:$0xff] }
  0x42   : > { %v1569_v49 = vld [vmem:[%s12370_s26 + $0x620] sm:$0xff]  ;;  %1568 = vst [vmem:[%s12378_s27 + $0x180] sm:$0xff] %v1567_v48 }
  0x43   : > { %v1571_v50 = vld [vmem:[%s12370_s26 + $0x640] sm:$0xff]  ;;  %1570 = vst [vmem:[%s12378_s27 + $0x188] sm:$0xff] %v1569_v49 }
  0x44   : > { %1572 = vst [vmem:[%s12378_s27 + $0x190] sm:$0xff] %v1571_v50  ;;  %v1573_v51 = vld [vmem:[%s12370_s26 + $0x660] sm:$0xff] }
  0x45   : > { %v1575_v52 = vld [vmem:[%s12370_s26 + $0x680] sm:$0xff]  ;;  %1574 = vst [vmem:[%s12378_s27 + $0x198] sm:$0xff] %v1573_v51 }
  0x46   : > { %v1577_v53 = vld [vmem:[%s12370_s26 + $0x6a0] sm:$0xff]  ;;  %1576 = vst [vmem:[%s12378_s27 + $0x1a0] sm:$0xff] %v1575_v52 }
  0x47   : > { %1578 = vst [vmem:[%s12378_s27 + $0x1a8] sm:$0xff] %v1577_v53  ;;  %v1579_v54 = vld [vmem:[%s12370_s26 + $0x6c0] sm:$0xff] }
  0x48   : > { %v1581_v55 = vld [vmem:[%s12370_s26 + $0x6e0] sm:$0xff]  ;;  %1580 = vst [vmem:[%s12378_s27 + $0x1b0] sm:$0xff] %v1579_v54 }
  0x49   : > { %v1583_v56 = vld [vmem:[%s12370_s26 + $0x700] sm:$0xff]  ;;  %1582 = vst [vmem:[%s12378_s27 + $0x1b8] sm:$0xff] %v1581_v55 }
  0x4a   : > { %1584 = vst [vmem:[%s12378_s27 + $0x1c0] sm:$0xff] %v1583_v56  ;;  %v1585_v57 = vld [vmem:[%s12370_s26 + $0x720] sm:$0xff] }
  0x4b   : > { %v1587_v58 = vld [vmem:[%s12370_s26 + $0x740] sm:$0xff]  ;;  %1586 = vst [vmem:[%s12378_s27 + $0x1c8] sm:$0xff] %v1585_v57 }
  0x4c   : > { %v1589_v59 = vld [vmem:[%s12370_s26 + $0x760] sm:$0xff]  ;;  %1588 = vst [vmem:[%s12378_s27 + $0x1d0] sm:$0xff] %v1587_v58 }
  0x4d   : > { %1590 = vst [vmem:[%s12378_s27 + $0x1d8] sm:$0xff] %v1589_v59  ;;  %v1591_v60 = vld [vmem:[%s12370_s26 + $0x780] sm:$0xff] }
  0x4e   : > { %v1593_v61 = vld [vmem:[%s12370_s26 + $0x7a0] sm:$0xff]  ;;  %1592 = vst [vmem:[%s12378_s27 + $0x1e0] sm:$0xff] %v1591_v60 }
  0x4f   : > { %v1595_v62 = vld [vmem:[%s12370_s26 + $0x7c0] sm:$0xff]  ;;  %1594 = vst [vmem:[%s12378_s27 + $0x1e8] sm:$0xff] %v1593_v61 }
  0x50   : > { %1596 = vst [vmem:[%s12378_s27 + $0x1f0] sm:$0xff] %v1595_v62  ;;  %v1597_v63 = vld [vmem:[%s12370_s26 + $0x7e0] sm:$0xff] }
  0x51   : > { %v1599_v0 = vld [vmem:[%s12370_s26 + $0x800] sm:$0xff]  ;;  %1598 = vst [vmem:[%s12378_s27 + $0x1f8] sm:$0xff] %v1597_v63 }
  0x52   : > { %v1601_v1 = vld [vmem:[%s12370_s26 + $0x820] sm:$0xff]  ;;  %1600 = vst [vmem:[%s12378_s27 + $0x200] sm:$0xff] %v1599_v0 }
  0x53   : > { %1602 = vst [vmem:[%s12378_s27 + $0x208] sm:$0xff] %v1601_v1  ;;  %v1603_v2 = vld [vmem:[%s12370_s26 + $0x840] sm:$0xff] }
  0x54   : > { %v1605_v3 = vld [vmem:[%s12370_s26 + $0x860] sm:$0xff]  ;;  %1604 = vst [vmem:[%s12378_s27 + $0x210] sm:$0xff] %v1603_v2 }
  0x55   : > { %v1607_v4 = vld [vmem:[%s12370_s26 + $0x880] sm:$0xff]  ;;  %1606 = vst [vmem:[%s12378_s27 + $0x218] sm:$0xff] %v1605_v3 }
  0x56   : > { %1608 = vst [vmem:[%s12378_s27 + $0x220] sm:$0xff] %v1607_v4  ;;  %v1609_v5 = vld [vmem:[%s12370_s26 + $0x8a0] sm:$0xff] }
  0x57   : > { %v1611_v6 = vld [vmem:[%s12370_s26 + $0x8c0] sm:$0xff]  ;;  %1610 = vst [vmem:[%s12378_s27 + $0x228] sm:$0xff] %v1609_v5 }
  0x58   : > { %v1613_v7 = vld [vmem:[%s12370_s26 + $0x8e0] sm:$0xff]  ;;  %1612 = vst [vmem:[%s12378_s27 + $0x230] sm:$0xff] %v1611_v6 }
  0x59   : > { %1614 = vst [vmem:[%s12378_s27 + $0x238] sm:$0xff] %v1613_v7  ;;  %v1615_v8 = vld [vmem:[%s12370_s26 + $0x900] sm:$0xff] }
  0x5a   : > { %v1617_v9 = vld [vmem:[%s12370_s26 + $0x920] sm:$0xff]  ;;  %1616 = vst [vmem:[%s12378_s27 + $0x240] sm:$0xff] %v1615_v8 }
  0x5b   : > { %v1619_v10 = vld [vmem:[%s12370_s26 + $0x940] sm:$0xff]  ;;  %1618 = vst [vmem:[%s12378_s27 + $0x248] sm:$0xff] %v1617_v9 }
  0x5c   : > { %1620 = vst [vmem:[%s12378_s27 + $0x250] sm:$0xff] %v1619_v10  ;;  %v1621_v11 = vld [vmem:[%s12370_s26 + $0x960] sm:$0xff] }
  0x5d   : > { %v1623_v12 = vld [vmem:[%s12370_s26 + $0x980] sm:$0xff]  ;;  %1622 = vst [vmem:[%s12378_s27 + $0x258] sm:$0xff] %v1621_v11 }
  0x5e   : > { %v1625_v13 = vld [vmem:[%s12370_s26 + $0x9a0] sm:$0xff]  ;;  %1624 = vst [vmem:[%s12378_s27 + $0x260] sm:$0xff] %v1623_v12 }
  0x5f   : > { %1626 = vst [vmem:[%s12378_s27 + $0x268] sm:$0xff] %v1625_v13  ;;  %v1627_v14 = vld [vmem:[%s12370_s26 + $0x9c0] sm:$0xff] }
  0x60   : > { %v1629_v15 = vld [vmem:[%s12370_s26 + $0x9e0] sm:$0xff]  ;;  %1628 = vst [vmem:[%s12378_s27 + $0x270] sm:$0xff] %v1627_v14 }
  0x61   : > { %v1631_v16 = vld [vmem:[%s12370_s26 + $0xa00] sm:$0xff]  ;;  %1630 = vst [vmem:[%s12378_s27 + $0x278] sm:$0xff] %v1629_v15 }
  0x62   : > { %1632 = vst [vmem:[%s12378_s27 + $0x280] sm:$0xff] %v1631_v16  ;;  %v1633_v17 = vld [vmem:[%s12370_s26 + $0xa20] sm:$0xff] }
  0x63   : > { %v1635_v18 = vld [vmem:[%s12370_s26 + $0xa40] sm:$0xff]  ;;  %1634 = vst [vmem:[%s12378_s27 + $0x288] sm:$0xff] %v1633_v17 }
  0x64   : > { %v1637_v19 = vld [vmem:[%s12370_s26 + $0xa60] sm:$0xff]  ;;  %1636 = vst [vmem:[%s12378_s27 + $0x290] sm:$0xff] %v1635_v18 }
  0x65   : > { %1638 = vst [vmem:[%s12378_s27 + $0x298] sm:$0xff] %v1637_v19  ;;  %v1639_v20 = vld [vmem:[%s12370_s26 + $0xa80] sm:$0xff] }
  0x66   : > { %v1641_v21 = vld [vmem:[%s12370_s26 + $0xaa0] sm:$0xff]  ;;  %1640 = vst [vmem:[%s12378_s27 + $0x2a0] sm:$0xff] %v1639_v20 }
  0x67   : > { %v1643_v22 = vld [vmem:[%s12370_s26 + $0xac0] sm:$0xff]  ;;  %1642 = vst [vmem:[%s12378_s27 + $0x2a8] sm:$0xff] %v1641_v21 }
  0x68   : > { %1644 = vst [vmem:[%s12378_s27 + $0x2b0] sm:$0xff] %v1643_v22  ;;  %v1645_v23 = vld [vmem:[%s12370_s26 + $0xae0] sm:$0xff] }
  0x69   : > { %v1647_v24 = vld [vmem:[%s12370_s26 + $0xb00] sm:$0xff]  ;;  %1646 = vst [vmem:[%s12378_s27 + $0x2b8] sm:$0xff] %v1645_v23 }
  0x6a   : > { %v1649_v25 = vld [vmem:[%s12370_s26 + $0xb20] sm:$0xff]  ;;  %1648 = vst [vmem:[%s12378_s27 + $0x2c0] sm:$0xff] %v1647_v24 }
  0x6b   : > { %1650 = vst [vmem:[%s12378_s27 + $0x2c8] sm:$0xff] %v1649_v25  ;;  %v1651_v26 = vld [vmem:[%s12370_s26 + $0xb40] sm:$0xff] }
  0x6c   : > { %v1653_v27 = vld [vmem:[%s12370_s26 + $0xb60] sm:$0xff]  ;;  %1652 = vst [vmem:[%s12378_s27 + $0x2d0] sm:$0xff] %v1651_v26 }
  0x6d   : > { %v1655_v28 = vld [vmem:[%s12370_s26 + $0xb80] sm:$0xff]  ;;  %1654 = vst [vmem:[%s12378_s27 + $0x2d8] sm:$0xff] %v1653_v27 }
  0x6e   : > { %1656 = vst [vmem:[%s12378_s27 + $0x2e0] sm:$0xff] %v1655_v28  ;;  %v1657_v29 = vld [vmem:[%s12370_s26 + $0xba0] sm:$0xff] }
  0x6f   : > { %v1659_v30 = vld [vmem:[%s12370_s26 + $0xbc0] sm:$0xff]  ;;  %1658 = vst [vmem:[%s12378_s27 + $0x2e8] sm:$0xff] %v1657_v29 }
  0x70   : > { %v1661_v31 = vld [vmem:[%s12370_s26 + $0xbe0] sm:$0xff]  ;;  %1660 = vst [vmem:[%s12378_s27 + $0x2f0] sm:$0xff] %v1659_v30 }
  0x71   : > { %1662 = vst [vmem:[%s12378_s27 + $0x2f8] sm:$0xff] %v1661_v31  ;;  %v1663_v32 = vld [vmem:[%s12370_s26 + $0xc00] sm:$0xff] }
  0x72   : > { %v1665_v33 = vld [vmem:[%s12370_s26 + $0xc20] sm:$0xff]  ;;  %1664 = vst [vmem:[%s12378_s27 + $0x300] sm:$0xff] %v1663_v32 }
  0x73   : > { %v1667_v34 = vld [vmem:[%s12370_s26 + $0xc40] sm:$0xff]  ;;  %1666 = vst [vmem:[%s12378_s27 + $0x308] sm:$0xff] %v1665_v33 }
  0x74   : > { %1668 = vst [vmem:[%s12378_s27 + $0x310] sm:$0xff] %v1667_v34  ;;  %v1669_v35 = vld [vmem:[%s12370_s26 + $0xc60] sm:$0xff] }
  0x75   : > { %v1671_v36 = vld [vmem:[%s12370_s26 + $0xc80] sm:$0xff]  ;;  %1670 = vst [vmem:[%s12378_s27 + $0x318] sm:$0xff] %v1669_v35 }
  0x76   : > { %v1673_v37 = vld [vmem:[%s12370_s26 + $0xca0] sm:$0xff]  ;;  %1672 = vst [vmem:[%s12378_s27 + $0x320] sm:$0xff] %v1671_v36 }
  0x77   : > { %1674 = vst [vmem:[%s12378_s27 + $0x328] sm:$0xff] %v1673_v37  ;;  %v1675_v38 = vld [vmem:[%s12370_s26 + $0xcc0] sm:$0xff] }
  0x78   : > { %v1677_v39 = vld [vmem:[%s12370_s26 + $0xce0] sm:$0xff]  ;;  %1676 = vst [vmem:[%s12378_s27 + $0x330] sm:$0xff] %v1675_v38 }
  0x79   : > { %v1679_v40 = vld [vmem:[%s12370_s26 + $0xd00] sm:$0xff]  ;;  %1678 = vst [vmem:[%s12378_s27 + $0x338] sm:$0xff] %v1677_v39 }
  0x7a   : > { %1680 = vst [vmem:[%s12378_s27 + $0x340] sm:$0xff] %v1679_v40  ;;  %v1681_v41 = vld [vmem:[%s12370_s26 + $0xd20] sm:$0xff] }
  0x7b   : > { %v1683_v42 = vld [vmem:[%s12370_s26 + $0xd40] sm:$0xff]  ;;  %1682 = vst [vmem:[%s12378_s27 + $0x348] sm:$0xff] %v1681_v41 }
  0x7c   : > { %v1685_v43 = vld [vmem:[%s12370_s26 + $0xd60] sm:$0xff]  ;;  %1684 = vst [vmem:[%s12378_s27 + $0x350] sm:$0xff] %v1683_v42 }
  0x7d   : > { %1686 = vst [vmem:[%s12378_s27 + $0x358] sm:$0xff] %v1685_v43  ;;  %v1687_v44 = vld [vmem:[%s12370_s26 + $0xd80] sm:$0xff] }
  0x7e   : > { %v1689_v45 = vld [vmem:[%s12370_s26 + $0xda0] sm:$0xff]  ;;  %1688 = vst [vmem:[%s12378_s27 + $0x360] sm:$0xff] %v1687_v44 }
  0x7f   : > { %v1691_v46 = vld [vmem:[%s12370_s26 + $0xdc0] sm:$0xff]  ;;  %1690 = vst [vmem:[%s12378_s27 + $0x368] sm:$0xff] %v1689_v45 }
  0x80   : > { %1692 = vst [vmem:[%s12378_s27 + $0x370] sm:$0xff] %v1691_v46  ;;  %v1693_v47 = vld [vmem:[%s12370_s26 + $0xde0] sm:$0xff] }
  0x81   : > { %v1695_v48 = vld [vmem:[%s12370_s26 + $0xe00] sm:$0xff]  ;;  %1694 = vst [vmem:[%s12378_s27 + $0x378] sm:$0xff] %v1693_v47 }
  0x82   : > { %v1697_v49 = vld [vmem:[%s12370_s26 + $0xe20] sm:$0xff]  ;;  %1696 = vst [vmem:[%s12378_s27 + $0x380] sm:$0xff] %v1695_v48 }
  0x83   : > { %1698 = vst [vmem:[%s12378_s27 + $0x388] sm:$0xff] %v1697_v49  ;;  %v1699_v50 = vld [vmem:[%s12370_s26 + $0xe40] sm:$0xff] }
  0x84   : > { %v1701_v51 = vld [vmem:[%s12370_s26 + $0xe60] sm:$0xff]  ;;  %1700 = vst [vmem:[%s12378_s27 + $0x390] sm:$0xff] %v1699_v50 }
  0x85   : > { %v1703_v52 = vld [vmem:[%s12370_s26 + $0xe80] sm:$0xff]  ;;  %1702 = vst [vmem:[%s12378_s27 + $0x398] sm:$0xff] %v1701_v51 }
  0x86   : > { %1704 = vst [vmem:[%s12378_s27 + $0x3a0] sm:$0xff] %v1703_v52  ;;  %v1705_v53 = vld [vmem:[%s12370_s26 + $0xea0] sm:$0xff] }
  0x87   : > { %v1707_v54 = vld [vmem:[%s12370_s26 + $0xec0] sm:$0xff]  ;;  %1706 = vst [vmem:[%s12378_s27 + $0x3a8] sm:$0xff] %v1705_v53 }
  0x88   : > { %v1709_v55 = vld [vmem:[%s12370_s26 + $0xee0] sm:$0xff]  ;;  %1708 = vst [vmem:[%s12378_s27 + $0x3b0] sm:$0xff] %v1707_v54 }
  0x89   : > { %1710 = vst [vmem:[%s12378_s27 + $0x3b8] sm:$0xff] %v1709_v55  ;;  %v1711_v56 = vld [vmem:[%s12370_s26 + $0xf00] sm:$0xff] }
  0x8a   : > { %v1713_v57 = vld [vmem:[%s12370_s26 + $0xf20] sm:$0xff]  ;;  %1712 = vst [vmem:[%s12378_s27 + $0x3c0] sm:$0xff] %v1711_v56 }
  0x8b   : > { %v1715_v58 = vld [vmem:[%s12370_s26 + $0xf40] sm:$0xff]  ;;  %1714 = vst [vmem:[%s12378_s27 + $0x3c8] sm:$0xff] %v1713_v57 }
  0x8c   : > { %1716 = vst [vmem:[%s12378_s27 + $0x3d0] sm:$0xff] %v1715_v58  ;;  %v1717_v59 = vld [vmem:[%s12370_s26 + $0xf60] sm:$0xff] }
  0x8d   : > { %v1719_v60 = vld [vmem:[%s12370_s26 + $0xf80] sm:$0xff]  ;;  %1718 = vst [vmem:[%s12378_s27 + $0x3d8] sm:$0xff] %v1717_v59 }
  0x8e   : > { %v1721_v61 = vld [vmem:[%s12370_s26 + $0xfa0] sm:$0xff]  ;;  %1720 = vst [vmem:[%s12378_s27 + $0x3e0] sm:$0xff] %v1719_v60 }
  0x8f   : > { %1722 = vst [vmem:[%s12378_s27 + $0x3e8] sm:$0xff] %v1721_v61  ;;  %v1723_v62 = vld [vmem:[%s12370_s26 + $0xfc0] sm:$0xff] }
  0x90   : > { %v1725_v63 = vld [vmem:[%s12370_s26 + $0xfe0] sm:$0xff]  ;;  %1724 = vst [vmem:[%s12378_s27 + $0x3f0] sm:$0xff] %v1723_v62 }
  0x91   : > { %v1727_v0 = vld [vmem:[%s12370_s26 + $0x1000] sm:$0xff]  ;;  %1726 = vst [vmem:[%s12378_s27 + $0x3f8] sm:$0xff] %v1725_v63 }
  0x92   : > { %1728 = vst [vmem:[%s12378_s27 + $0x400] sm:$0xff] %v1727_v0  ;;  %v1729_v1 = vld [vmem:[%s12370_s26 + $0x1020] sm:$0xff] }
  0x93   : > { %v1731_v2 = vld [vmem:[%s12370_s26 + $0x1040] sm:$0xff]  ;;  %1730 = vst [vmem:[%s12378_s27 + $0x408] sm:$0xff] %v1729_v1 }
  0x94   : > { %v1733_v3 = vld [vmem:[%s12370_s26 + $0x1060] sm:$0xff]  ;;  %1732 = vst [vmem:[%s12378_s27 + $0x410] sm:$0xff] %v1731_v2 }
  0x95   : > { %1734 = vst [vmem:[%s12378_s27 + $0x418] sm:$0xff] %v1733_v3  ;;  %v1735_v4 = vld [vmem:[%s12370_s26 + $0x1080] sm:$0xff] }
  0x96   : > { %v1737_v5 = vld [vmem:[%s12370_s26 + $0x10a0] sm:$0xff]  ;;  %1736 = vst [vmem:[%s12378_s27 + $0x420] sm:$0xff] %v1735_v4 }
  0x97   : > { %v1739_v6 = vld [vmem:[%s12370_s26 + $0x10c0] sm:$0xff]  ;;  %1738 = vst [vmem:[%s12378_s27 + $0x428] sm:$0xff] %v1737_v5 }
  0x98   : > { %1740 = vst [vmem:[%s12378_s27 + $0x430] sm:$0xff] %v1739_v6  ;;  %v1741_v7 = vld [vmem:[%s12370_s26 + $0x10e0] sm:$0xff] }
  0x99   : > { %v1743_v8 = vld [vmem:[%s12370_s26 + $0x1100] sm:$0xff]  ;;  %1742 = vst [vmem:[%s12378_s27 + $0x438] sm:$0xff] %v1741_v7 }
  0x9a   : > { %v1745_v9 = vld [vmem:[%s12370_s26 + $0x1120] sm:$0xff]  ;;  %1744 = vst [vmem:[%s12378_s27 + $0x440] sm:$0xff] %v1743_v8 }
  0x9b   : > { %1746 = vst [vmem:[%s12378_s27 + $0x448] sm:$0xff] %v1745_v9  ;;  %v1747_v10 = vld [vmem:[%s12370_s26 + $0x1140] sm:$0xff] }
  0x9c   : > { %v1749_v11 = vld [vmem:[%s12370_s26 + $0x1160] sm:$0xff]  ;;  %1748 = vst [vmem:[%s12378_s27 + $0x450] sm:$0xff] %v1747_v10 }
  0x9d   : > { %v1751_v12 = vld [vmem:[%s12370_s26 + $0x1180] sm:$0xff]  ;;  %1750 = vst [vmem:[%s12378_s27 + $0x458] sm:$0xff] %v1749_v11 }
  0x9e   : > { %1752 = vst [vmem:[%s12378_s27 + $0x460] sm:$0xff] %v1751_v12  ;;  %v1753_v13 = vld [vmem:[%s12370_s26 + $0x11a0] sm:$0xff] }
  0x9f   : > { %v1755_v14 = vld [vmem:[%s12370_s26 + $0x11c0] sm:$0xff]  ;;  %1754 = vst [vmem:[%s12378_s27 + $0x468] sm:$0xff] %v1753_v13 }
  0xa0   : > { %v1757_v15 = vld [vmem:[%s12370_s26 + $0x11e0] sm:$0xff]  ;;  %1756 = vst [vmem:[%s12378_s27 + $0x470] sm:$0xff] %v1755_v14 }
  0xa1   : > { %1758 = vst [vmem:[%s12378_s27 + $0x478] sm:$0xff] %v1757_v15  ;;  %v1759_v16 = vld [vmem:[%s12370_s26 + $0x1200] sm:$0xff] }
  0xa2   : > { %v1761_v17 = vld [vmem:[%s12370_s26 + $0x1220] sm:$0xff]  ;;  %1760 = vst [vmem:[%s12378_s27 + $0x480] sm:$0xff] %v1759_v16 }
  0xa3   : > { %v1763_v18 = vld [vmem:[%s12370_s26 + $0x1240] sm:$0xff]  ;;  %1762 = vst [vmem:[%s12378_s27 + $0x488] sm:$0xff] %v1761_v17 }
  0xa4   : > { %1764 = vst [vmem:[%s12378_s27 + $0x490] sm:$0xff] %v1763_v18  ;;  %v1765_v19 = vld [vmem:[%s12370_s26 + $0x1260] sm:$0xff] }
  0xa5   : > { %v1767_v20 = vld [vmem:[%s12370_s26 + $0x1280] sm:$0xff]  ;;  %1766 = vst [vmem:[%s12378_s27 + $0x498] sm:$0xff] %v1765_v19 }
  0xa6   : > { %v1769_v21 = vld [vmem:[%s12370_s26 + $0x12a0] sm:$0xff]  ;;  %1768 = vst [vmem:[%s12378_s27 + $0x4a0] sm:$0xff] %v1767_v20 }
  0xa7   : > { %1770 = vst [vmem:[%s12378_s27 + $0x4a8] sm:$0xff] %v1769_v21  ;;  %v1771_v22 = vld [vmem:[%s12370_s26 + $0x12c0] sm:$0xff] }
  0xa8   : > { %v1773_v23 = vld [vmem:[%s12370_s26 + $0x12e0] sm:$0xff]  ;;  %1772 = vst [vmem:[%s12378_s27 + $0x4b0] sm:$0xff] %v1771_v22 }
  0xa9   : > { %v1775_v24 = vld [vmem:[%s12370_s26 + $0x1300] sm:$0xff]  ;;  %1774 = vst [vmem:[%s12378_s27 + $0x4b8] sm:$0xff] %v1773_v23 }
  0xaa   : > { %1776 = vst [vmem:[%s12378_s27 + $0x4c0] sm:$0xff] %v1775_v24  ;;  %v1777_v25 = vld [vmem:[%s12370_s26 + $0x1320] sm:$0xff] }
  0xab   : > { %v1779_v26 = vld [vmem:[%s12370_s26 + $0x1340] sm:$0xff]  ;;  %1778 = vst [vmem:[%s12378_s27 + $0x4c8] sm:$0xff] %v1777_v25 }
  0xac   : > { %v1781_v27 = vld [vmem:[%s12370_s26 + $0x1360] sm:$0xff]  ;;  %1780 = vst [vmem:[%s12378_s27 + $0x4d0] sm:$0xff] %v1779_v26 }
  0xad   : > { %1782 = vst [vmem:[%s12378_s27 + $0x4d8] sm:$0xff] %v1781_v27  ;;  %v1783_v28 = vld [vmem:[%s12370_s26 + $0x1380] sm:$0xff] }
  0xae   : > { %v1785_v29 = vld [vmem:[%s12370_s26 + $0x13a0] sm:$0xff]  ;;  %1784 = vst [vmem:[%s12378_s27 + $0x4e0] sm:$0xff] %v1783_v28 }
  0xaf   : > { %v1787_v30 = vld [vmem:[%s12370_s26 + $0x13c0] sm:$0xff]  ;;  %1786 = vst [vmem:[%s12378_s27 + $0x4e8] sm:$0xff] %v1785_v29 }
  0xb0   : > { %1788 = vst [vmem:[%s12378_s27 + $0x4f0] sm:$0xff] %v1787_v30  ;;  %v1789_v31 = vld [vmem:[%s12370_s26 + $0x13e0] sm:$0xff] }
  0xb1   : > { %v1791_v32 = vld [vmem:[%s12370_s26 + $0x1400] sm:$0xff]  ;;  %1790 = vst [vmem:[%s12378_s27 + $0x4f8] sm:$0xff] %v1789_v31 }
  0xb2   : > { %v1793_v33 = vld [vmem:[%s12370_s26 + $0x1420] sm:$0xff]  ;;  %1792 = vst [vmem:[%s12378_s27 + $0x500] sm:$0xff] %v1791_v32 }
  0xb3   : > { %1794 = vst [vmem:[%s12378_s27 + $0x508] sm:$0xff] %v1793_v33  ;;  %v1795_v34 = vld [vmem:[%s12370_s26 + $0x1440] sm:$0xff] }
  0xb4   : > { %v1797_v35 = vld [vmem:[%s12370_s26 + $0x1460] sm:$0xff]  ;;  %1796 = vst [vmem:[%s12378_s27 + $0x510] sm:$0xff] %v1795_v34 }
  0xb5   : > { %v1799_v36 = vld [vmem:[%s12370_s26 + $0x1480] sm:$0xff]  ;;  %1798 = vst [vmem:[%s12378_s27 + $0x518] sm:$0xff] %v1797_v35 }
  0xb6   : > { %1800 = vst [vmem:[%s12378_s27 + $0x520] sm:$0xff] %v1799_v36  ;;  %v1801_v37 = vld [vmem:[%s12370_s26 + $0x14a0] sm:$0xff] }
  0xb7   : > { %v1803_v38 = vld [vmem:[%s12370_s26 + $0x14c0] sm:$0xff]  ;;  %1802 = vst [vmem:[%s12378_s27 + $0x528] sm:$0xff] %v1801_v37 }
  0xb8   : > { %v1805_v39 = vld [vmem:[%s12370_s26 + $0x14e0] sm:$0xff]  ;;  %1804 = vst [vmem:[%s12378_s27 + $0x530] sm:$0xff] %v1803_v38 }
  0xb9   : > { %1806 = vst [vmem:[%s12378_s27 + $0x538] sm:$0xff] %v1805_v39  ;;  %v1807_v40 = vld [vmem:[%s12370_s26 + $0x1500] sm:$0xff] }
  0xba   : > { %v1809_v41 = vld [vmem:[%s12370_s26 + $0x1520] sm:$0xff]  ;;  %1808 = vst [vmem:[%s12378_s27 + $0x540] sm:$0xff] %v1807_v40 }
  0xbb   : > { %v1811_v42 = vld [vmem:[%s12370_s26 + $0x1540] sm:$0xff]  ;;  %1810 = vst [vmem:[%s12378_s27 + $0x548] sm:$0xff] %v1809_v41 }
  0xbc   : > { %1812 = vst [vmem:[%s12378_s27 + $0x550] sm:$0xff] %v1811_v42  ;;  %v1813_v43 = vld [vmem:[%s12370_s26 + $0x1560] sm:$0xff] }
  0xbd   : > { %v1815_v44 = vld [vmem:[%s12370_s26 + $0x1580] sm:$0xff]  ;;  %1814 = vst [vmem:[%s12378_s27 + $0x558] sm:$0xff] %v1813_v43 }
  0xbe   : > { %v1817_v45 = vld [vmem:[%s12370_s26 + $0x15a0] sm:$0xff]  ;;  %1816 = vst [vmem:[%s12378_s27 + $0x560] sm:$0xff] %v1815_v44 }
  0xbf   : > { %1818 = vst [vmem:[%s12378_s27 + $0x568] sm:$0xff] %v1817_v45  ;;  %v1819_v46 = vld [vmem:[%s12370_s26 + $0x15c0] sm:$0xff] }
  0xc0   : > { %v1821_v47 = vld [vmem:[%s12370_s26 + $0x15e0] sm:$0xff]  ;;  %1820 = vst [vmem:[%s12378_s27 + $0x570] sm:$0xff] %v1819_v46 }
  0xc1   : > { %v1823_v48 = vld [vmem:[%s12370_s26 + $0x1600] sm:$0xff]  ;;  %1822 = vst [vmem:[%s12378_s27 + $0x578] sm:$0xff] %v1821_v47 }
  0xc2   : > { %1824 = vst [vmem:[%s12378_s27 + $0x580] sm:$0xff] %v1823_v48  ;;  %v1825_v49 = vld [vmem:[%s12370_s26 + $0x1620] sm:$0xff] }
  0xc3   : > { %v1827_v50 = vld [vmem:[%s12370_s26 + $0x1640] sm:$0xff]  ;;  %1826 = vst [vmem:[%s12378_s27 + $0x588] sm:$0xff] %v1825_v49 }
  0xc4   : > { %v1829_v51 = vld [vmem:[%s12370_s26 + $0x1660] sm:$0xff]  ;;  %1828 = vst [vmem:[%s12378_s27 + $0x590] sm:$0xff] %v1827_v50 }
  0xc5   : > { %1830 = vst [vmem:[%s12378_s27 + $0x598] sm:$0xff] %v1829_v51  ;;  %v1831_v52 = vld [vmem:[%s12370_s26 + $0x1680] sm:$0xff] }
  0xc6   : > { %v1833_v53 = vld [vmem:[%s12370_s26 + $0x16a0] sm:$0xff]  ;;  %1832 = vst [vmem:[%s12378_s27 + $0x5a0] sm:$0xff] %v1831_v52 }
  0xc7   : > { %v1835_v54 = vld [vmem:[%s12370_s26 + $0x16c0] sm:$0xff]  ;;  %1834 = vst [vmem:[%s12378_s27 + $0x5a8] sm:$0xff] %v1833_v53 }
  0xc8   : > { %1836 = vst [vmem:[%s12378_s27 + $0x5b0] sm:$0xff] %v1835_v54  ;;  %v1837_v55 = vld [vmem:[%s12370_s26 + $0x16e0] sm:$0xff] }
  0xc9   : > { %v1839_v56 = vld [vmem:[%s12370_s26 + $0x1700] sm:$0xff]  ;;  %1838 = vst [vmem:[%s12378_s27 + $0x5b8] sm:$0xff] %v1837_v55 }
  0xca   : > { %v1841_v57 = vld [vmem:[%s12370_s26 + $0x1720] sm:$0xff]  ;;  %1840 = vst [vmem:[%s12378_s27 + $0x5c0] sm:$0xff] %v1839_v56 }
  0xcb   : > { %1842 = vst [vmem:[%s12378_s27 + $0x5c8] sm:$0xff] %v1841_v57  ;;  %v1843_v58 = vld [vmem:[%s12370_s26 + $0x1740] sm:$0xff] }
  0xcc   : > { %v1845_v59 = vld [vmem:[%s12370_s26 + $0x1760] sm:$0xff]  ;;  %1844 = vst [vmem:[%s12378_s27 + $0x5d0] sm:$0xff] %v1843_v58 }
  0xcd   : > { %v1847_v60 = vld [vmem:[%s12370_s26 + $0x1780] sm:$0xff]  ;;  %1846 = vst [vmem:[%s12378_s27 + $0x5d8] sm:$0xff] %v1845_v59 }
  0xce   : > { %1848 = vst [vmem:[%s12378_s27 + $0x5e0] sm:$0xff] %v1847_v60  ;;  %v1849_v61 = vld [vmem:[%s12370_s26 + $0x17a0] sm:$0xff] }
  0xcf   : > { %v1851_v62 = vld [vmem:[%s12370_s26 + $0x17c0] sm:$0xff]  ;;  %1850 = vst [vmem:[%s12378_s27 + $0x5e8] sm:$0xff] %v1849_v61 }
  0xd0   : > { %v1853_v63 = vld [vmem:[%s12370_s26 + $0x17e0] sm:$0xff]  ;;  %1852 = vst [vmem:[%s12378_s27 + $0x5f0] sm:$0xff] %v1851_v62 }
  0xd1   : > { %1854 = vst [vmem:[%s12378_s27 + $0x5f8] sm:$0xff] %v1853_v63  ;;  %v1855_v0 = vld [vmem:[%s12370_s26 + $0x1800] sm:$0xff] }
  0xd2   : > { %v1857_v1 = vld [vmem:[%s12370_s26 + $0x1820] sm:$0xff]  ;;  %1856 = vst [vmem:[%s12378_s27 + $0x600] sm:$0xff] %v1855_v0 }
  0xd3   : > { %v1859_v2 = vld [vmem:[%s12370_s26 + $0x1840] sm:$0xff]  ;;  %1858 = vst [vmem:[%s12378_s27 + $0x608] sm:$0xff] %v1857_v1 }
  0xd4   : > { %1860 = vst [vmem:[%s12378_s27 + $0x610] sm:$0xff] %v1859_v2  ;;  %v1861_v3 = vld [vmem:[%s12370_s26 + $0x1860] sm:$0xff] }
  0xd5   : > { %v1863_v4 = vld [vmem:[%s12370_s26 + $0x1880] sm:$0xff]  ;;  %1862 = vst [vmem:[%s12378_s27 + $0x618] sm:$0xff] %v1861_v3 }
  0xd6   : > { %v1865_v5 = vld [vmem:[%s12370_s26 + $0x18a0] sm:$0xff]  ;;  %1864 = vst [vmem:[%s12378_s27 + $0x620] sm:$0xff] %v1863_v4 }
  0xd7   : > { %1866 = vst [vmem:[%s12378_s27 + $0x628] sm:$0xff] %v1865_v5  ;;  %v1867_v6 = vld [vmem:[%s12370_s26 + $0x18c0] sm:$0xff] }
  0xd8   : > { %v1869_v7 = vld [vmem:[%s12370_s26 + $0x18e0] sm:$0xff]  ;;  %1868 = vst [vmem:[%s12378_s27 + $0x630] sm:$0xff] %v1867_v6 }
  0xd9   : > { %v1871_v8 = vld [vmem:[%s12370_s26 + $0x1900] sm:$0xff]  ;;  %1870 = vst [vmem:[%s12378_s27 + $0x638] sm:$0xff] %v1869_v7 }
  0xda   : > { %1872 = vst [vmem:[%s12378_s27 + $0x640] sm:$0xff] %v1871_v8  ;;  %v1873_v9 = vld [vmem:[%s12370_s26 + $0x1920] sm:$0xff] }
  0xdb   : > { %v1875_v10 = vld [vmem:[%s12370_s26 + $0x1940] sm:$0xff]  ;;  %1874 = vst [vmem:[%s12378_s27 + $0x648] sm:$0xff] %v1873_v9 }
  0xdc   : > { %v1877_v11 = vld [vmem:[%s12370_s26 + $0x1960] sm:$0xff]  ;;  %1876 = vst [vmem:[%s12378_s27 + $0x650] sm:$0xff] %v1875_v10 }
  0xdd   : > { %1878 = vst [vmem:[%s12378_s27 + $0x658] sm:$0xff] %v1877_v11  ;;  %v1879_v12 = vld [vmem:[%s12370_s26 + $0x1980] sm:$0xff] }
  0xde   : > { %v1881_v13 = vld [vmem:[%s12370_s26 + $0x19a0] sm:$0xff]  ;;  %1880 = vst [vmem:[%s12378_s27 + $0x660] sm:$0xff] %v1879_v12 }
  0xdf   : > { %v1883_v14 = vld [vmem:[%s12370_s26 + $0x19c0] sm:$0xff]  ;;  %1882 = vst [vmem:[%s12378_s27 + $0x668] sm:$0xff] %v1881_v13 }
  0xe0   : > { %1884 = vst [vmem:[%s12378_s27 + $0x670] sm:$0xff] %v1883_v14  ;;  %v1885_v15 = vld [vmem:[%s12370_s26 + $0x19e0] sm:$0xff] }
  0xe1   : > { %v1887_v16 = vld [vmem:[%s12370_s26 + $0x1a00] sm:$0xff]  ;;  %1886 = vst [vmem:[%s12378_s27 + $0x678] sm:$0xff] %v1885_v15 }
  0xe2   : > { %v1889_v17 = vld [vmem:[%s12370_s26 + $0x1a20] sm:$0xff]  ;;  %1888 = vst [vmem:[%s12378_s27 + $0x680] sm:$0xff] %v1887_v16 }
  0xe3   : > { %1890 = vst [vmem:[%s12378_s27 + $0x688] sm:$0xff] %v1889_v17  ;;  %v1891_v18 = vld [vmem:[%s12370_s26 + $0x1a40] sm:$0xff] }
  0xe4   : > { %v1893_v19 = vld [vmem:[%s12370_s26 + $0x1a60] sm:$0xff]  ;;  %1892 = vst [vmem:[%s12378_s27 + $0x690] sm:$0xff] %v1891_v18 }
  0xe5   : > { %v1895_v20 = vld [vmem:[%s12370_s26 + $0x1a80] sm:$0xff]  ;;  %1894 = vst [vmem:[%s12378_s27 + $0x698] sm:$0xff] %v1893_v19 }
  0xe6   : > { %1896 = vst [vmem:[%s12378_s27 + $0x6a0] sm:$0xff] %v1895_v20  ;;  %v1897_v21 = vld [vmem:[%s12370_s26 + $0x1aa0] sm:$0xff] }
  0xe7   : > { %v1899_v22 = vld [vmem:[%s12370_s26 + $0x1ac0] sm:$0xff]  ;;  %1898 = vst [vmem:[%s12378_s27 + $0x6a8] sm:$0xff] %v1897_v21 }
  0xe8   : > { %v1901_v23 = vld [vmem:[%s12370_s26 + $0x1ae0] sm:$0xff]  ;;  %1900 = vst [vmem:[%s12378_s27 + $0x6b0] sm:$0xff] %v1899_v22 }
  0xe9   : > { %1902 = vst [vmem:[%s12378_s27 + $0x6b8] sm:$0xff] %v1901_v23  ;;  %v1903_v24 = vld [vmem:[%s12370_s26 + $0x1b00] sm:$0xff] }
  0xea   : > { %v1905_v25 = vld [vmem:[%s12370_s26 + $0x1b20] sm:$0xff]  ;;  %1904 = vst [vmem:[%s12378_s27 + $0x6c0] sm:$0xff] %v1903_v24 }
  0xeb   : > { %v1907_v26 = vld [vmem:[%s12370_s26 + $0x1b40] sm:$0xff]  ;;  %1906 = vst [vmem:[%s12378_s27 + $0x6c8] sm:$0xff] %v1905_v25 }
  0xec   : > { %1908 = vst [vmem:[%s12378_s27 + $0x6d0] sm:$0xff] %v1907_v26  ;;  %v1909_v27 = vld [vmem:[%s12370_s26 + $0x1b60] sm:$0xff] }
  0xed   : > { %v1911_v28 = vld [vmem:[%s12370_s26 + $0x1b80] sm:$0xff]  ;;  %1910 = vst [vmem:[%s12378_s27 + $0x6d8] sm:$0xff] %v1909_v27 }
  0xee   : > { %v1913_v29 = vld [vmem:[%s12370_s26 + $0x1ba0] sm:$0xff]  ;;  %1912 = vst [vmem:[%s12378_s27 + $0x6e0] sm:$0xff] %v1911_v28 }
  0xef   : > { %1914 = vst [vmem:[%s12378_s27 + $0x6e8] sm:$0xff] %v1913_v29  ;;  %v1915_v30 = vld [vmem:[%s12370_s26 + $0x1bc0] sm:$0xff] }
  0xf0   : > { %v1917_v31 = vld [vmem:[%s12370_s26 + $0x1be0] sm:$0xff]  ;;  %1916 = vst [vmem:[%s12378_s27 + $0x6f0] sm:$0xff] %v1915_v30 }
  0xf1   : > { %v1919_v32 = vld [vmem:[%s12370_s26 + $0x1c00] sm:$0xff]  ;;  %1918 = vst [vmem:[%s12378_s27 + $0x6f8] sm:$0xff] %v1917_v31 }
  0xf2   : > { %1920 = vst [vmem:[%s12378_s27 + $0x700] sm:$0xff] %v1919_v32  ;;  %v1921_v33 = vld [vmem:[%s12370_s26 + $0x1c20] sm:$0xff] }
  0xf3   : > { %v1923_v34 = vld [vmem:[%s12370_s26 + $0x1c40] sm:$0xff]  ;;  %1922 = vst [vmem:[%s12378_s27 + $0x708] sm:$0xff] %v1921_v33 }
  0xf4   : > { %v1925_v35 = vld [vmem:[%s12370_s26 + $0x1c60] sm:$0xff]  ;;  %1924 = vst [vmem:[%s12378_s27 + $0x710] sm:$0xff] %v1923_v34 }
  0xf5   : > { %1926 = vst [vmem:[%s12378_s27 + $0x718] sm:$0xff] %v1925_v35  ;;  %v1927_v36 = vld [vmem:[%s12370_s26 + $0x1c80] sm:$0xff] }
  0xf6   : > { %v1929_v37 = vld [vmem:[%s12370_s26 + $0x1ca0] sm:$0xff]  ;;  %1928 = vst [vmem:[%s12378_s27 + $0x720] sm:$0xff] %v1927_v36 }
  0xf7   : > { %v1931_v38 = vld [vmem:[%s12370_s26 + $0x1cc0] sm:$0xff]  ;;  %1930 = vst [vmem:[%s12378_s27 + $0x728] sm:$0xff] %v1929_v37 }
  0xf8   : > { %1932 = vst [vmem:[%s12378_s27 + $0x730] sm:$0xff] %v1931_v38  ;;  %v1933_v39 = vld [vmem:[%s12370_s26 + $0x1ce0] sm:$0xff] }
  0xf9   : > { %v1935_v40 = vld [vmem:[%s12370_s26 + $0x1d00] sm:$0xff]  ;;  %1934 = vst [vmem:[%s12378_s27 + $0x738] sm:$0xff] %v1933_v39 }
  0xfa   : > { %v1937_v41 = vld [vmem:[%s12370_s26 + $0x1d20] sm:$0xff]  ;;  %1936 = vst [vmem:[%s12378_s27 + $0x740] sm:$0xff] %v1935_v40 }
  0xfb   : > { %1938 = vst [vmem:[%s12378_s27 + $0x748] sm:$0xff] %v1937_v41  ;;  %v1939_v42 = vld [vmem:[%s12370_s26 + $0x1d40] sm:$0xff] }
  0xfc   : > { %v1941_v43 = vld [vmem:[%s12370_s26 + $0x1d60] sm:$0xff]  ;;  %1940 = vst [vmem:[%s12378_s27 + $0x750] sm:$0xff] %v1939_v42 }
  0xfd   : > { %v1943_v44 = vld [vmem:[%s12370_s26 + $0x1d80] sm:$0xff]  ;;  %1942 = vst [vmem:[%s12378_s27 + $0x758] sm:$0xff] %v1941_v43 }
  0xfe   : > { %1944 = vst [vmem:[%s12378_s27 + $0x760] sm:$0xff] %v1943_v44  ;;  %v1945_v45 = vld [vmem:[%s12370_s26 + $0x1da0] sm:$0xff] }
  0xff   : > { %v1947_v46 = vld [vmem:[%s12370_s26 + $0x1dc0] sm:$0xff]  ;;  %1946 = vst [vmem:[%s12378_s27 + $0x768] sm:$0xff] %v1945_v45 }
 0x100   : > { %v1949_v47 = vld [vmem:[%s12370_s26 + $0x1de0] sm:$0xff]  ;;  %1948 = vst [vmem:[%s12378_s27 + $0x770] sm:$0xff] %v1947_v46 }
 0x101   : > { %1950 = vst [vmem:[%s12378_s27 + $0x778] sm:$0xff] %v1949_v47  ;;  %v1951_v48 = vld [vmem:[%s12370_s26 + $0x1e00] sm:$0xff] }
 0x102   : > { %v1953_v49 = vld [vmem:[%s12370_s26 + $0x1e20] sm:$0xff]  ;;  %1952 = vst [vmem:[%s12378_s27 + $0x780] sm:$0xff] %v1951_v48 }
 0x103   : > { %v1955_v50 = vld [vmem:[%s12370_s26 + $0x1e40] sm:$0xff]  ;;  %1954 = vst [vmem:[%s12378_s27 + $0x788] sm:$0xff] %v1953_v49 }
 0x104   : > { %1956 = vst [vmem:[%s12378_s27 + $0x790] sm:$0xff] %v1955_v50  ;;  %v1957_v51 = vld [vmem:[%s12370_s26 + $0x1e60] sm:$0xff] }
 0x105   : > { %v1959_v52 = vld [vmem:[%s12370_s26 + $0x1e80] sm:$0xff]  ;;  %1958 = vst [vmem:[%s12378_s27 + $0x798] sm:$0xff] %v1957_v51 }
 0x106   : > { %v1961_v53 = vld [vmem:[%s12370_s26 + $0x1ea0] sm:$0xff]  ;;  %1960 = vst [vmem:[%s12378_s27 + $0x7a0] sm:$0xff] %v1959_v52 }
 0x107   : > { %1962 = vst [vmem:[%s12378_s27 + $0x7a8] sm:$0xff] %v1961_v53  ;;  %v1963_v54 = vld [vmem:[%s12370_s26 + $0x1ec0] sm:$0xff] }
 0x108   : > { %v1965_v55 = vld [vmem:[%s12370_s26 + $0x1ee0] sm:$0xff]  ;;  %1964 = vst [vmem:[%s12378_s27 + $0x7b0] sm:$0xff] %v1963_v54 }
 0x109   : > { %v1967_v56 = vld [vmem:[%s12370_s26 + $0x1f00] sm:$0xff]  ;;  %1966 = vst [vmem:[%s12378_s27 + $0x7b8] sm:$0xff] %v1965_v55 }
 0x10a   : > { %1968 = vst [vmem:[%s12378_s27 + $0x7c0] sm:$0xff] %v1967_v56  ;;  %v1969_v57 = vld [vmem:[%s12370_s26 + $0x1f20] sm:$0xff] }
 0x10b   : > { %v1971_v58 = vld [vmem:[%s12370_s26 + $0x1f40] sm:$0xff]  ;;  %1970 = vst [vmem:[%s12378_s27 + $0x7c8] sm:$0xff] %v1969_v57 }
 0x10c   : > { %v1973_v59 = vld [vmem:[%s12370_s26 + $0x1f60] sm:$0xff]  ;;  %1972 = vst [vmem:[%s12378_s27 + $0x7d0] sm:$0xff] %v1971_v58 }
 0x10d   : > { %1974 = vst [vmem:[%s12378_s27 + $0x7d8] sm:$0xff] %v1973_v59  ;;  %v1975_v60 = vld [vmem:[%s12370_s26 + $0x1f80] sm:$0xff] }
 0x10e   : > { %v1977_v61 = vld [vmem:[%s12370_s26 + $0x1fa0] sm:$0xff]  ;;  %1976 = vst [vmem:[%s12378_s27 + $0x7e0] sm:$0xff] %v1975_v60 }
 0x10f   : > { %v1979_v62 = vld [vmem:[%s12370_s26 + $0x1fc0] sm:$0xff]  ;;  %1978 = vst [vmem:[%s12378_s27 + $0x7e8] sm:$0xff] %v1977_v61 }
 0x110   : > { %1980 = vst [vmem:[%s12378_s27 + $0x7f0] sm:$0xff] %v1979_v62  ;;  %v1981_v63 = vld [vmem:[%s12370_s26 + $0x1fe0] sm:$0xff] }
 0x111   : > { %v1983_v0 = vld [vmem:[%s12370_s26 + $0x2000] sm:$0xff]  ;;  %1982 = vst [vmem:[%s12378_s27 + $0x7f8] sm:$0xff] %v1981_v63 }
 0x112   : > { %v1985_v1 = vld [vmem:[%s12370_s26 + $0x2020] sm:$0xff]  ;;  %1984 = vst [vmem:[%s12378_s27 + $0x800] sm:$0xff] %v1983_v0 }
 0x113   : > { %1986 = vst [vmem:[%s12378_s27 + $0x808] sm:$0xff] %v1985_v1  ;;  %v1987_v2 = vld [vmem:[%s12370_s26 + $0x2040] sm:$0xff] }
 0x114   : > { %v1989_v3 = vld [vmem:[%s12370_s26 + $0x2060] sm:$0xff]  ;;  %1988 = vst [vmem:[%s12378_s27 + $0x810] sm:$0xff] %v1987_v2 }
 0x115   : > { %v1991_v4 = vld [vmem:[%s12370_s26 + $0x2080] sm:$0xff]  ;;  %1990 = vst [vmem:[%s12378_s27 + $0x818] sm:$0xff] %v1989_v3 }
 0x116   : > { %1992 = vst [vmem:[%s12378_s27 + $0x820] sm:$0xff] %v1991_v4  ;;  %v1993_v5 = vld [vmem:[%s12370_s26 + $0x20a0] sm:$0xff] }
 0x117   : > { %v1995_v6 = vld [vmem:[%s12370_s26 + $0x20c0] sm:$0xff]  ;;  %1994 = vst [vmem:[%s12378_s27 + $0x828] sm:$0xff] %v1993_v5 }
 0x118   : > { %v1997_v7 = vld [vmem:[%s12370_s26 + $0x20e0] sm:$0xff]  ;;  %1996 = vst [vmem:[%s12378_s27 + $0x830] sm:$0xff] %v1995_v6 }
 0x119   : > { %1998 = vst [vmem:[%s12378_s27 + $0x838] sm:$0xff] %v1997_v7  ;;  %v1999_v8 = vld [vmem:[%s12370_s26 + $0x2100] sm:$0xff] }
 0x11a   : > { %v2001_v9 = vld [vmem:[%s12370_s26 + $0x2120] sm:$0xff]  ;;  %2000 = vst [vmem:[%s12378_s27 + $0x840] sm:$0xff] %v1999_v8 }
 0x11b   : > { %v2003_v10 = vld [vmem:[%s12370_s26 + $0x2140] sm:$0xff]  ;;  %2002 = vst [vmem:[%s12378_s27 + $0x848] sm:$0xff] %v2001_v9 }
 0x11c   : > { %2004 = vst [vmem:[%s12378_s27 + $0x850] sm:$0xff] %v2003_v10  ;;  %v2005_v11 = vld [vmem:[%s12370_s26 + $0x2160] sm:$0xff] }
 0x11d   : > { %v2007_v12 = vld [vmem:[%s12370_s26 + $0x2180] sm:$0xff]  ;;  %2006 = vst [vmem:[%s12378_s27 + $0x858] sm:$0xff] %v2005_v11 }
 0x11e   : > { %v2009_v13 = vld [vmem:[%s12370_s26 + $0x21a0] sm:$0xff]  ;;  %2008 = vst [vmem:[%s12378_s27 + $0x860] sm:$0xff] %v2007_v12 }
 0x11f   : > { %2010 = vst [vmem:[%s12378_s27 + $0x868] sm:$0xff] %v2009_v13  ;;  %v2011_v14 = vld [vmem:[%s12370_s26 + $0x21c0] sm:$0xff] }
 0x120   : > { %v2013_v15 = vld [vmem:[%s12370_s26 + $0x21e0] sm:$0xff]  ;;  %2012 = vst [vmem:[%s12378_s27 + $0x870] sm:$0xff] %v2011_v14 }
 0x121   : > { %v2015_v16 = vld [vmem:[%s12370_s26 + $0x2200] sm:$0xff]  ;;  %2014 = vst [vmem:[%s12378_s27 + $0x878] sm:$0xff] %v2013_v15 }
 0x122   : > { %2016 = vst [vmem:[%s12378_s27 + $0x880] sm:$0xff] %v2015_v16  ;;  %v2017_v17 = vld [vmem:[%s12370_s26 + $0x2220] sm:$0xff] }
 0x123   : > { %v2019_v18 = vld [vmem:[%s12370_s26 + $0x2240] sm:$0xff]  ;;  %2018 = vst [vmem:[%s12378_s27 + $0x888] sm:$0xff] %v2017_v17 }
 0x124   : > { %v2021_v19 = vld [vmem:[%s12370_s26 + $0x2260] sm:$0xff]  ;;  %2020 = vst [vmem:[%s12378_s27 + $0x890] sm:$0xff] %v2019_v18 }
 0x125   : > { %2022 = vst [vmem:[%s12378_s27 + $0x898] sm:$0xff] %v2021_v19  ;;  %v2023_v20 = vld [vmem:[%s12370_s26 + $0x2280] sm:$0xff] }
 0x126   : > { %v2025_v21 = vld [vmem:[%s12370_s26 + $0x22a0] sm:$0xff]  ;;  %2024 = vst [vmem:[%s12378_s27 + $0x8a0] sm:$0xff] %v2023_v20 }
 0x127   : > { %v2027_v22 = vld [vmem:[%s12370_s26 + $0x22c0] sm:$0xff]  ;;  %2026 = vst [vmem:[%s12378_s27 + $0x8a8] sm:$0xff] %v2025_v21 }
 0x128   : > { %2028 = vst [vmem:[%s12378_s27 + $0x8b0] sm:$0xff] %v2027_v22  ;;  %v2029_v23 = vld [vmem:[%s12370_s26 + $0x22e0] sm:$0xff] }
 0x129   : > { %v2031_v24 = vld [vmem:[%s12370_s26 + $0x2300] sm:$0xff]  ;;  %2030 = vst [vmem:[%s12378_s27 + $0x8b8] sm:$0xff] %v2029_v23 }
 0x12a   : > { %v2033_v25 = vld [vmem:[%s12370_s26 + $0x2320] sm:$0xff]  ;;  %2032 = vst [vmem:[%s12378_s27 + $0x8c0] sm:$0xff] %v2031_v24 }
 0x12b   : > { %2034 = vst [vmem:[%s12378_s27 + $0x8c8] sm:$0xff] %v2033_v25  ;;  %v2035_v26 = vld [vmem:[%s12370_s26 + $0x2340] sm:$0xff] }
 0x12c   : > { %v2037_v27 = vld [vmem:[%s12370_s26 + $0x2360] sm:$0xff]  ;;  %2036 = vst [vmem:[%s12378_s27 + $0x8d0] sm:$0xff] %v2035_v26 }
 0x12d   : > { %v2039_v28 = vld [vmem:[%s12370_s26 + $0x2380] sm:$0xff]  ;;  %2038 = vst [vmem:[%s12378_s27 + $0x8d8] sm:$0xff] %v2037_v27 }
 0x12e   : > { %2040 = vst [vmem:[%s12378_s27 + $0x8e0] sm:$0xff] %v2039_v28  ;;  %v2041_v29 = vld [vmem:[%s12370_s26 + $0x23a0] sm:$0xff] }
 0x12f   : > { %v2043_v30 = vld [vmem:[%s12370_s26 + $0x23c0] sm:$0xff]  ;;  %2042 = vst [vmem:[%s12378_s27 + $0x8e8] sm:$0xff] %v2041_v29 }
 0x130   : > { %v2045_v31 = vld [vmem:[%s12370_s26 + $0x23e0] sm:$0xff]  ;;  %2044 = vst [vmem:[%s12378_s27 + $0x8f0] sm:$0xff] %v2043_v30 }
 0x131   : > { %2046 = vst [vmem:[%s12378_s27 + $0x8f8] sm:$0xff] %v2045_v31  ;;  %v2047_v32 = vld [vmem:[%s12370_s26 + $0x2400] sm:$0xff] }
 0x132   : > { %v2049_v33 = vld [vmem:[%s12370_s26 + $0x2420] sm:$0xff]  ;;  %2048 = vst [vmem:[%s12378_s27 + $0x900] sm:$0xff] %v2047_v32 }
 0x133   : > { %v2051_v34 = vld [vmem:[%s12370_s26 + $0x2440] sm:$0xff]  ;;  %2050 = vst [vmem:[%s12378_s27 + $0x908] sm:$0xff] %v2049_v33 }
 0x134   : > { %2052 = vst [vmem:[%s12378_s27 + $0x910] sm:$0xff] %v2051_v34  ;;  %v2053_v35 = vld [vmem:[%s12370_s26 + $0x2460] sm:$0xff] }
 0x135   : > { %v2055_v36 = vld [vmem:[%s12370_s26 + $0x2480] sm:$0xff]  ;;  %2054 = vst [vmem:[%s12378_s27 + $0x918] sm:$0xff] %v2053_v35 }
 0x136   : > { %v2057_v37 = vld [vmem:[%s12370_s26 + $0x24a0] sm:$0xff]  ;;  %2056 = vst [vmem:[%s12378_s27 + $0x920] sm:$0xff] %v2055_v36 }
 0x137   : > { %2058 = vst [vmem:[%s12378_s27 + $0x928] sm:$0xff] %v2057_v37  ;;  %v2059_v38 = vld [vmem:[%s12370_s26 + $0x24c0] sm:$0xff] }
 0x138   : > { %v2061_v39 = vld [vmem:[%s12370_s26 + $0x24e0] sm:$0xff]  ;;  %2060 = vst [vmem:[%s12378_s27 + $0x930] sm:$0xff] %v2059_v38 }
 0x139   : > { %v2063_v40 = vld [vmem:[%s12370_s26 + $0x2500] sm:$0xff]  ;;  %2062 = vst [vmem:[%s12378_s27 + $0x938] sm:$0xff] %v2061_v39 }
 0x13a   : > { %2064 = vst [vmem:[%s12378_s27 + $0x940] sm:$0xff] %v2063_v40  ;;  %v2065_v41 = vld [vmem:[%s12370_s26 + $0x2520] sm:$0xff] }
 0x13b   : > { %v2067_v42 = vld [vmem:[%s12370_s26 + $0x2540] sm:$0xff]  ;;  %2066 = vst [vmem:[%s12378_s27 + $0x948] sm:$0xff] %v2065_v41 }
 0x13c   : > { %v2069_v43 = vld [vmem:[%s12370_s26 + $0x2560] sm:$0xff]  ;;  %2068 = vst [vmem:[%s12378_s27 + $0x950] sm:$0xff] %v2067_v42 }
 0x13d   : > { %2070 = vst [vmem:[%s12378_s27 + $0x958] sm:$0xff] %v2069_v43  ;;  %v2071_v44 = vld [vmem:[%s12370_s26 + $0x2580] sm:$0xff] }
 0x13e   : > { %v2073_v45 = vld [vmem:[%s12370_s26 + $0x25a0] sm:$0xff]  ;;  %2072 = vst [vmem:[%s12378_s27 + $0x960] sm:$0xff] %v2071_v44 }
 0x13f   : > { %v2075_v46 = vld [vmem:[%s12370_s26 + $0x25c0] sm:$0xff]  ;;  %2074 = vst [vmem:[%s12378_s27 + $0x968] sm:$0xff] %v2073_v45 }
 0x140   : > { %2076 = vst [vmem:[%s12378_s27 + $0x970] sm:$0xff] %v2075_v46  ;;  %v2077_v47 = vld [vmem:[%s12370_s26 + $0x25e0] sm:$0xff] }
 0x141   : > { %v2079_v48 = vld [vmem:[%s12370_s26 + $0x2600] sm:$0xff]  ;;  %2078 = vst [vmem:[%s12378_s27 + $0x978] sm:$0xff] %v2077_v47 }
 0x142   : > { %v2081_v49 = vld [vmem:[%s12370_s26 + $0x2620] sm:$0xff]  ;;  %2080 = vst [vmem:[%s12378_s27 + $0x980] sm:$0xff] %v2079_v48 }
 0x143   : > { %2082 = vst [vmem:[%s12378_s27 + $0x988] sm:$0xff] %v2081_v49  ;;  %v2083_v50 = vld [vmem:[%s12370_s26 + $0x2640] sm:$0xff] }
 0x144   : > { %v2085_v51 = vld [vmem:[%s12370_s26 + $0x2660] sm:$0xff]  ;;  %2084 = vst [vmem:[%s12378_s27 + $0x990] sm:$0xff] %v2083_v50 }
 0x145   : > { %v2087_v52 = vld [vmem:[%s12370_s26 + $0x2680] sm:$0xff]  ;;  %2086 = vst [vmem:[%s12378_s27 + $0x998] sm:$0xff] %v2085_v51 }
 0x146   : > { %2088 = vst [vmem:[%s12378_s27 + $0x9a0] sm:$0xff] %v2087_v52  ;;  %v2089_v53 = vld [vmem:[%s12370_s26 + $0x26a0] sm:$0xff] }
 0x147   : > { %v2091_v54 = vld [vmem:[%s12370_s26 + $0x26c0] sm:$0xff]  ;;  %2090 = vst [vmem:[%s12378_s27 + $0x9a8] sm:$0xff] %v2089_v53 }
 0x148   : > { %v2093_v55 = vld [vmem:[%s12370_s26 + $0x26e0] sm:$0xff]  ;;  %2092 = vst [vmem:[%s12378_s27 + $0x9b0] sm:$0xff] %v2091_v54 }
 0x149   : > { %2094 = vst [vmem:[%s12378_s27 + $0x9b8] sm:$0xff] %v2093_v55  ;;  %v2095_v56 = vld [vmem:[%s12370_s26 + $0x2700] sm:$0xff] }
 0x14a   : > { %v2097_v57 = vld [vmem:[%s12370_s26 + $0x2720] sm:$0xff]  ;;  %2096 = vst [vmem:[%s12378_s27 + $0x9c0] sm:$0xff] %v2095_v56 }
 0x14b   : > { %v2099_v58 = vld [vmem:[%s12370_s26 + $0x2740] sm:$0xff]  ;;  %2098 = vst [vmem:[%s12378_s27 + $0x9c8] sm:$0xff] %v2097_v57 }
 0x14c   : > { %2100 = vst [vmem:[%s12378_s27 + $0x9d0] sm:$0xff] %v2099_v58  ;;  %v2101_v59 = vld [vmem:[%s12370_s26 + $0x2760] sm:$0xff] }
 0x14d   : > { %v2103_v60 = vld [vmem:[%s12370_s26 + $0x2780] sm:$0xff]  ;;  %2102 = vst [vmem:[%s12378_s27 + $0x9d8] sm:$0xff] %v2101_v59 }
 0x14e   : > { %v2105_v61 = vld [vmem:[%s12370_s26 + $0x27a0] sm:$0xff]  ;;  %2104 = vst [vmem:[%s12378_s27 + $0x9e0] sm:$0xff] %v2103_v60 }
 0x14f   : > { %2106 = vst [vmem:[%s12378_s27 + $0x9e8] sm:$0xff] %v2105_v61  ;;  %v2107_v62 = vld [vmem:[%s12370_s26 + $0x27c0] sm:$0xff] }
 0x150   : > { %v2109_v63 = vld [vmem:[%s12370_s26 + $0x27e0] sm:$0xff]  ;;  %2108 = vst [vmem:[%s12378_s27 + $0x9f0] sm:$0xff] %v2107_v62 }
 0x151   : > { %v2111_v0 = vld [vmem:[%s12370_s26 + $0x2800] sm:$0xff]  ;;  %2110 = vst [vmem:[%s12378_s27 + $0x9f8] sm:$0xff] %v2109_v63 }
 0x152   : > { %2112 = vst [vmem:[%s12378_s27 + $0xa00] sm:$0xff] %v2111_v0  ;;  %v2113_v1 = vld [vmem:[%s12370_s26 + $0x2820] sm:$0xff] }
 0x153   : > { %v2115_v2 = vld [vmem:[%s12370_s26 + $0x2840] sm:$0xff]  ;;  %2114 = vst [vmem:[%s12378_s27 + $0xa08] sm:$0xff] %v2113_v1 }
 0x154   : > { %v2117_v3 = vld [vmem:[%s12370_s26 + $0x2860] sm:$0xff]  ;;  %2116 = vst [vmem:[%s12378_s27 + $0xa10] sm:$0xff] %v2115_v2 }
 0x155   : > { %2118 = vst [vmem:[%s12378_s27 + $0xa18] sm:$0xff] %v2117_v3  ;;  %v2119_v4 = vld [vmem:[%s12370_s26 + $0x2880] sm:$0xff] }
 0x156   : > { %v2121_v5 = vld [vmem:[%s12370_s26 + $0x28a0] sm:$0xff]  ;;  %2120 = vst [vmem:[%s12378_s27 + $0xa20] sm:$0xff] %v2119_v4 }
 0x157   : > { %v2123_v6 = vld [vmem:[%s12370_s26 + $0x28c0] sm:$0xff]  ;;  %2122 = vst [vmem:[%s12378_s27 + $0xa28] sm:$0xff] %v2121_v5 }
 0x158   : > { %2124 = vst [vmem:[%s12378_s27 + $0xa30] sm:$0xff] %v2123_v6  ;;  %v2125_v7 = vld [vmem:[%s12370_s26 + $0x28e0] sm:$0xff] }
 0x159   : > { %v2127_v8 = vld [vmem:[%s12370_s26 + $0x2900] sm:$0xff]  ;;  %2126 = vst [vmem:[%s12378_s27 + $0xa38] sm:$0xff] %v2125_v7 }
 0x15a   : > { %v2129_v9 = vld [vmem:[%s12370_s26 + $0x2920] sm:$0xff]  ;;  %2128 = vst [vmem:[%s12378_s27 + $0xa40] sm:$0xff] %v2127_v8 }
 0x15b   : > { %2130 = vst [vmem:[%s12378_s27 + $0xa48] sm:$0xff] %v2129_v9  ;;  %v2131_v10 = vld [vmem:[%s12370_s26 + $0x2940] sm:$0xff] }
 0x15c   : > { %v2133_v11 = vld [vmem:[%s12370_s26 + $0x2960] sm:$0xff]  ;;  %2132 = vst [vmem:[%s12378_s27 + $0xa50] sm:$0xff] %v2131_v10 }
 0x15d   : > { %v2135_v12 = vld [vmem:[%s12370_s26 + $0x2980] sm:$0xff]  ;;  %2134 = vst [vmem:[%s12378_s27 + $0xa58] sm:$0xff] %v2133_v11 }
 0x15e   : > { %2136 = vst [vmem:[%s12378_s27 + $0xa60] sm:$0xff] %v2135_v12  ;;  %v2137_v13 = vld [vmem:[%s12370_s26 + $0x29a0] sm:$0xff] }
 0x15f   : > { %v2139_v14 = vld [vmem:[%s12370_s26 + $0x29c0] sm:$0xff]  ;;  %2138 = vst [vmem:[%s12378_s27 + $0xa68] sm:$0xff] %v2137_v13 }
 0x160   : > { %v2141_v15 = vld [vmem:[%s12370_s26 + $0x29e0] sm:$0xff]  ;;  %2140 = vst [vmem:[%s12378_s27 + $0xa70] sm:$0xff] %v2139_v14 }
 0x161   : > { %2142 = vst [vmem:[%s12378_s27 + $0xa78] sm:$0xff] %v2141_v15  ;;  %v2143_v16 = vld [vmem:[%s12370_s26 + $0x2a00] sm:$0xff] }
 0x162   : > { %v2145_v17 = vld [vmem:[%s12370_s26 + $0x2a20] sm:$0xff]  ;;  %2144 = vst [vmem:[%s12378_s27 + $0xa80] sm:$0xff] %v2143_v16 }
 0x163   : > { %v2147_v18 = vld [vmem:[%s12370_s26 + $0x2a40] sm:$0xff]  ;;  %2146 = vst [vmem:[%s12378_s27 + $0xa88] sm:$0xff] %v2145_v17 }
 0x164   : > { %2148 = vst [vmem:[%s12378_s27 + $0xa90] sm:$0xff] %v2147_v18  ;;  %v2149_v19 = vld [vmem:[%s12370_s26 + $0x2a60] sm:$0xff] }
 0x165   : > { %v2151_v20 = vld [vmem:[%s12370_s26 + $0x2a80] sm:$0xff]  ;;  %2150 = vst [vmem:[%s12378_s27 + $0xa98] sm:$0xff] %v2149_v19 }
 0x166   : > { %v2153_v21 = vld [vmem:[%s12370_s26 + $0x2aa0] sm:$0xff]  ;;  %2152 = vst [vmem:[%s12378_s27 + $0xaa0] sm:$0xff] %v2151_v20 }
 0x167   : > { %2154 = vst [vmem:[%s12378_s27 + $0xaa8] sm:$0xff] %v2153_v21  ;;  %v2155_v22 = vld [vmem:[%s12370_s26 + $0x2ac0] sm:$0xff] }
 0x168   : > { %v2157_v23 = vld [vmem:[%s12370_s26 + $0x2ae0] sm:$0xff]  ;;  %2156 = vst [vmem:[%s12378_s27 + $0xab0] sm:$0xff] %v2155_v22 }
 0x169   : > { %v2159_v24 = vld [vmem:[%s12370_s26 + $0x2b00] sm:$0xff]  ;;  %2158 = vst [vmem:[%s12378_s27 + $0xab8] sm:$0xff] %v2157_v23 }
 0x16a   : > { %2160 = vst [vmem:[%s12378_s27 + $0xac0] sm:$0xff] %v2159_v24  ;;  %v2161_v25 = vld [vmem:[%s12370_s26 + $0x2b20] sm:$0xff] }
 0x16b   : > { %v2163_v26 = vld [vmem:[%s12370_s26 + $0x2b40] sm:$0xff]  ;;  %2162 = vst [vmem:[%s12378_s27 + $0xac8] sm:$0xff] %v2161_v25 }
 0x16c   : > { %v2165_v27 = vld [vmem:[%s12370_s26 + $0x2b60] sm:$0xff]  ;;  %2164 = vst [vmem:[%s12378_s27 + $0xad0] sm:$0xff] %v2163_v26 }
 0x16d   : > { %2166 = vst [vmem:[%s12378_s27 + $0xad8] sm:$0xff] %v2165_v27  ;;  %v2167_v28 = vld [vmem:[%s12370_s26 + $0x2b80] sm:$0xff] }
 0x16e   : > { %v2169_v29 = vld [vmem:[%s12370_s26 + $0x2ba0] sm:$0xff]  ;;  %2168 = vst [vmem:[%s12378_s27 + $0xae0] sm:$0xff] %v2167_v28 }
 0x16f   : > { %v2171_v30 = vld [vmem:[%s12370_s26 + $0x2bc0] sm:$0xff]  ;;  %2170 = vst [vmem:[%s12378_s27 + $0xae8] sm:$0xff] %v2169_v29 }
 0x170   : > { %2172 = vst [vmem:[%s12378_s27 + $0xaf0] sm:$0xff] %v2171_v30  ;;  %v2173_v31 = vld [vmem:[%s12370_s26 + $0x2be0] sm:$0xff] }
 0x171   : > { %v2175_v32 = vld [vmem:[%s12370_s26 + $0x2c00] sm:$0xff]  ;;  %2174 = vst [vmem:[%s12378_s27 + $0xaf8] sm:$0xff] %v2173_v31 }
 0x172   : > { %v2177_v33 = vld [vmem:[%s12370_s26 + $0x2c20] sm:$0xff]  ;;  %2176 = vst [vmem:[%s12378_s27 + $0xb00] sm:$0xff] %v2175_v32 }
 0x173   : > { %2178 = vst [vmem:[%s12378_s27 + $0xb08] sm:$0xff] %v2177_v33  ;;  %v2179_v34 = vld [vmem:[%s12370_s26 + $0x2c40] sm:$0xff] }
 0x174   : > { %v2181_v35 = vld [vmem:[%s12370_s26 + $0x2c60] sm:$0xff]  ;;  %2180 = vst [vmem:[%s12378_s27 + $0xb10] sm:$0xff] %v2179_v34 }
 0x175   : > { %v2183_v36 = vld [vmem:[%s12370_s26 + $0x2c80] sm:$0xff]  ;;  %2182 = vst [vmem:[%s12378_s27 + $0xb18] sm:$0xff] %v2181_v35 }
 0x176   : > { %2184 = vst [vmem:[%s12378_s27 + $0xb20] sm:$0xff] %v2183_v36  ;;  %v2185_v37 = vld [vmem:[%s12370_s26 + $0x2ca0] sm:$0xff] }
 0x177   : > { %v2187_v38 = vld [vmem:[%s12370_s26 + $0x2cc0] sm:$0xff]  ;;  %2186 = vst [vmem:[%s12378_s27 + $0xb28] sm:$0xff] %v2185_v37 }
 0x178   : > { %v2189_v39 = vld [vmem:[%s12370_s26 + $0x2ce0] sm:$0xff]  ;;  %2188 = vst [vmem:[%s12378_s27 + $0xb30] sm:$0xff] %v2187_v38 }
 0x179   : > { %2190 = vst [vmem:[%s12378_s27 + $0xb38] sm:$0xff] %v2189_v39  ;;  %v2191_v40 = vld [vmem:[%s12370_s26 + $0x2d00] sm:$0xff] }
 0x17a   : > { %v2193_v41 = vld [vmem:[%s12370_s26 + $0x2d20] sm:$0xff]  ;;  %2192 = vst [vmem:[%s12378_s27 + $0xb40] sm:$0xff] %v2191_v40 }
 0x17b   : > { %v2195_v42 = vld [vmem:[%s12370_s26 + $0x2d40] sm:$0xff]  ;;  %2194 = vst [vmem:[%s12378_s27 + $0xb48] sm:$0xff] %v2193_v41 }
 0x17c   : > { %2196 = vst [vmem:[%s12378_s27 + $0xb50] sm:$0xff] %v2195_v42  ;;  %v2197_v43 = vld [vmem:[%s12370_s26 + $0x2d60] sm:$0xff] }
 0x17d   : > { %v2199_v44 = vld [vmem:[%s12370_s26 + $0x2d80] sm:$0xff]  ;;  %2198 = vst [vmem:[%s12378_s27 + $0xb58] sm:$0xff] %v2197_v43 }
 0x17e   : > { %v2201_v45 = vld [vmem:[%s12370_s26 + $0x2da0] sm:$0xff]  ;;  %2200 = vst [vmem:[%s12378_s27 + $0xb60] sm:$0xff] %v2199_v44 }
 0x17f   : > { %2202 = vst [vmem:[%s12378_s27 + $0xb68] sm:$0xff] %v2201_v45  ;;  %v2203_v46 = vld [vmem:[%s12370_s26 + $0x2dc0] sm:$0xff] }
 0x180   : > { %v2205_v47 = vld [vmem:[%s12370_s26 + $0x2de0] sm:$0xff]  ;;  %2204 = vst [vmem:[%s12378_s27 + $0xb70] sm:$0xff] %v2203_v46 }
 0x181   : > { %v2207_v48 = vld [vmem:[%s12370_s26 + $0x2e00] sm:$0xff]  ;;  %2206 = vst [vmem:[%s12378_s27 + $0xb78] sm:$0xff] %v2205_v47 }
 0x182   : > { %2208 = vst [vmem:[%s12378_s27 + $0xb80] sm:$0xff] %v2207_v48  ;;  %v2209_v49 = vld [vmem:[%s12370_s26 + $0x2e20] sm:$0xff] }
 0x183   : > { %v2211_v50 = vld [vmem:[%s12370_s26 + $0x2e40] sm:$0xff]  ;;  %2210 = vst [vmem:[%s12378_s27 + $0xb88] sm:$0xff] %v2209_v49 }
 0x184   : > { %v2213_v51 = vld [vmem:[%s12370_s26 + $0x2e60] sm:$0xff]  ;;  %2212 = vst [vmem:[%s12378_s27 + $0xb90] sm:$0xff] %v2211_v50 }
 0x185   : > { %2214 = vst [vmem:[%s12378_s27 + $0xb98] sm:$0xff] %v2213_v51  ;;  %v2215_v52 = vld [vmem:[%s12370_s26 + $0x2e80] sm:$0xff] }
 0x186   : > { %v2217_v53 = vld [vmem:[%s12370_s26 + $0x2ea0] sm:$0xff]  ;;  %2216 = vst [vmem:[%s12378_s27 + $0xba0] sm:$0xff] %v2215_v52 }
 0x187   : > { %v2219_v54 = vld [vmem:[%s12370_s26 + $0x2ec0] sm:$0xff]  ;;  %2218 = vst [vmem:[%s12378_s27 + $0xba8] sm:$0xff] %v2217_v53 }
 0x188   : > { %2220 = vst [vmem:[%s12378_s27 + $0xbb0] sm:$0xff] %v2219_v54  ;;  %v2221_v55 = vld [vmem:[%s12370_s26 + $0x2ee0] sm:$0xff] }
 0x189   : > { %v2223_v56 = vld [vmem:[%s12370_s26 + $0x2f00] sm:$0xff]  ;;  %2222 = vst [vmem:[%s12378_s27 + $0xbb8] sm:$0xff] %v2221_v55 }
 0x18a   : > { %v2225_v57 = vld [vmem:[%s12370_s26 + $0x2f20] sm:$0xff]  ;;  %2224 = vst [vmem:[%s12378_s27 + $0xbc0] sm:$0xff] %v2223_v56 }
 0x18b   : > { %2226 = vst [vmem:[%s12378_s27 + $0xbc8] sm:$0xff] %v2225_v57  ;;  %v2227_v58 = vld [vmem:[%s12370_s26 + $0x2f40] sm:$0xff] }
 0x18c   : > { %v2229_v59 = vld [vmem:[%s12370_s26 + $0x2f60] sm:$0xff]  ;;  %2228 = vst [vmem:[%s12378_s27 + $0xbd0] sm:$0xff] %v2227_v58 }
 0x18d   : > { %v2231_v60 = vld [vmem:[%s12370_s26 + $0x2f80] sm:$0xff]  ;;  %2230 = vst [vmem:[%s12378_s27 + $0xbd8] sm:$0xff] %v2229_v59 }
 0x18e   : > { %2232 = vst [vmem:[%s12378_s27 + $0xbe0] sm:$0xff] %v2231_v60  ;;  %v2233_v61 = vld [vmem:[%s12370_s26 + $0x2fa0] sm:$0xff] }
 0x18f   : > { %v2235_v62 = vld [vmem:[%s12370_s26 + $0x2fc0] sm:$0xff]  ;;  %2234 = vst [vmem:[%s12378_s27 + $0xbe8] sm:$0xff] %v2233_v61 }
 0x190   : > { %v2237_v63 = vld [vmem:[%s12370_s26 + $0x2fe0] sm:$0xff]  ;;  %2236 = vst [vmem:[%s12378_s27 + $0xbf0] sm:$0xff] %v2235_v62 }
 0x191   : > { %2238 = vst [vmem:[%s12378_s27 + $0xbf8] sm:$0xff] %v2237_v63  ;;  %v2239_v0 = vld [vmem:[%s12370_s26 + $0x3000] sm:$0xff] }
 0x192   : > { %v2241_v1 = vld [vmem:[%s12370_s26 + $0x3020] sm:$0xff]  ;;  %2240 = vst [vmem:[%s12378_s27 + $0xc00] sm:$0xff] %v2239_v0 }
 0x193   : > { %v2243_v2 = vld [vmem:[%s12370_s26 + $0x3040] sm:$0xff]  ;;  %2242 = vst [vmem:[%s12378_s27 + $0xc08] sm:$0xff] %v2241_v1 }
 0x194   : > { %2244 = vst [vmem:[%s12378_s27 + $0xc10] sm:$0xff] %v2243_v2  ;;  %v2245_v3 = vld [vmem:[%s12370_s26 + $0x3060] sm:$0xff] }
 0x195   : > { %v2247_v4 = vld [vmem:[%s12370_s26 + $0x3080] sm:$0xff]  ;;  %2246 = vst [vmem:[%s12378_s27 + $0xc18] sm:$0xff] %v2245_v3 }
 0x196   : > { %v2249_v5 = vld [vmem:[%s12370_s26 + $0x30a0] sm:$0xff]  ;;  %2248 = vst [vmem:[%s12378_s27 + $0xc20] sm:$0xff] %v2247_v4 }
 0x197   : > { %2250 = vst [vmem:[%s12378_s27 + $0xc28] sm:$0xff] %v2249_v5  ;;  %v2251_v6 = vld [vmem:[%s12370_s26 + $0x30c0] sm:$0xff] }
 0x198   : > { %v2253_v7 = vld [vmem:[%s12370_s26 + $0x30e0] sm:$0xff]  ;;  %2252 = vst [vmem:[%s12378_s27 + $0xc30] sm:$0xff] %v2251_v6 }
 0x199   : > { %v2255_v8 = vld [vmem:[%s12370_s26 + $0x3100] sm:$0xff]  ;;  %2254 = vst [vmem:[%s12378_s27 + $0xc38] sm:$0xff] %v2253_v7 }
 0x19a   : > { %2256 = vst [vmem:[%s12378_s27 + $0xc40] sm:$0xff] %v2255_v8  ;;  %v2257_v9 = vld [vmem:[%s12370_s26 + $0x3120] sm:$0xff] }
 0x19b   : > { %v2259_v10 = vld [vmem:[%s12370_s26 + $0x3140] sm:$0xff]  ;;  %2258 = vst [vmem:[%s12378_s27 + $0xc48] sm:$0xff] %v2257_v9 }
 0x19c   : > { %v2261_v11 = vld [vmem:[%s12370_s26 + $0x3160] sm:$0xff]  ;;  %2260 = vst [vmem:[%s12378_s27 + $0xc50] sm:$0xff] %v2259_v10 }
 0x19d   : > { %2262 = vst [vmem:[%s12378_s27 + $0xc58] sm:$0xff] %v2261_v11  ;;  %v2263_v12 = vld [vmem:[%s12370_s26 + $0x3180] sm:$0xff] }
 0x19e   : > { %v2265_v13 = vld [vmem:[%s12370_s26 + $0x31a0] sm:$0xff]  ;;  %2264 = vst [vmem:[%s12378_s27 + $0xc60] sm:$0xff] %v2263_v12 }
 0x19f   : > { %v2267_v14 = vld [vmem:[%s12370_s26 + $0x31c0] sm:$0xff]  ;;  %2266 = vst [vmem:[%s12378_s27 + $0xc68] sm:$0xff] %v2265_v13 }
 0x1a0   : > { %2268 = vst [vmem:[%s12378_s27 + $0xc70] sm:$0xff] %v2267_v14  ;;  %v2269_v15 = vld [vmem:[%s12370_s26 + $0x31e0] sm:$0xff] }
 0x1a1   : > { %v2271_v16 = vld [vmem:[%s12370_s26 + $0x3200] sm:$0xff]  ;;  %2270 = vst [vmem:[%s12378_s27 + $0xc78] sm:$0xff] %v2269_v15 }
 0x1a2   : > { %v2273_v17 = vld [vmem:[%s12370_s26 + $0x3220] sm:$0xff]  ;;  %2272 = vst [vmem:[%s12378_s27 + $0xc80] sm:$0xff] %v2271_v16 }
 0x1a3   : > { %2274 = vst [vmem:[%s12378_s27 + $0xc88] sm:$0xff] %v2273_v17  ;;  %v2275_v18 = vld [vmem:[%s12370_s26 + $0x3240] sm:$0xff] }
 0x1a4   : > { %v2277_v19 = vld [vmem:[%s12370_s26 + $0x3260] sm:$0xff]  ;;  %2276 = vst [vmem:[%s12378_s27 + $0xc90] sm:$0xff] %v2275_v18 }
 0x1a5   : > { %v2279_v20 = vld [vmem:[%s12370_s26 + $0x3280] sm:$0xff]  ;;  %2278 = vst [vmem:[%s12378_s27 + $0xc98] sm:$0xff] %v2277_v19 }
 0x1a6   : > { %2280 = vst [vmem:[%s12378_s27 + $0xca0] sm:$0xff] %v2279_v20  ;;  %v2281_v21 = vld [vmem:[%s12370_s26 + $0x32a0] sm:$0xff] }
 0x1a7   : > { %v2283_v22 = vld [vmem:[%s12370_s26 + $0x32c0] sm:$0xff]  ;;  %2282 = vst [vmem:[%s12378_s27 + $0xca8] sm:$0xff] %v2281_v21 }
 0x1a8   : > { %v2285_v23 = vld [vmem:[%s12370_s26 + $0x32e0] sm:$0xff]  ;;  %2284 = vst [vmem:[%s12378_s27 + $0xcb0] sm:$0xff] %v2283_v22 }
 0x1a9   : > { %2286 = vst [vmem:[%s12378_s27 + $0xcb8] sm:$0xff] %v2285_v23  ;;  %v2287_v24 = vld [vmem:[%s12370_s26 + $0x3300] sm:$0xff] }
 0x1aa   : > { %v2289_v25 = vld [vmem:[%s12370_s26 + $0x3320] sm:$0xff]  ;;  %2288 = vst [vmem:[%s12378_s27 + $0xcc0] sm:$0xff] %v2287_v24 }
 0x1ab   : > { %v2291_v26 = vld [vmem:[%s12370_s26 + $0x3340] sm:$0xff]  ;;  %2290 = vst [vmem:[%s12378_s27 + $0xcc8] sm:$0xff] %v2289_v25 }
 0x1ac   : > { %2292 = vst [vmem:[%s12378_s27 + $0xcd0] sm:$0xff] %v2291_v26  ;;  %v2293_v27 = vld [vmem:[%s12370_s26 + $0x3360] sm:$0xff] }
 0x1ad   : > { %v2295_v28 = vld [vmem:[%s12370_s26 + $0x3380] sm:$0xff]  ;;  %2294 = vst [vmem:[%s12378_s27 + $0xcd8] sm:$0xff] %v2293_v27 }
 0x1ae   : > { %v2297_v29 = vld [vmem:[%s12370_s26 + $0x33a0] sm:$0xff]  ;;  %2296 = vst [vmem:[%s12378_s27 + $0xce0] sm:$0xff] %v2295_v28 }
 0x1af   : > { %2298 = vst [vmem:[%s12378_s27 + $0xce8] sm:$0xff] %v2297_v29  ;;  %v2299_v30 = vld [vmem:[%s12370_s26 + $0x33c0] sm:$0xff] }
 0x1b0   : > { %v2301_v31 = vld [vmem:[%s12370_s26 + $0x33e0] sm:$0xff]  ;;  %2300 = vst [vmem:[%s12378_s27 + $0xcf0] sm:$0xff] %v2299_v30 }
 0x1b1   : > { %v2303_v32 = vld [vmem:[%s12370_s26 + $0x3400] sm:$0xff]  ;;  %2302 = vst [vmem:[%s12378_s27 + $0xcf8] sm:$0xff] %v2301_v31 }
 0x1b2   : > { %2304 = vst [vmem:[%s12378_s27 + $0xd00] sm:$0xff] %v2303_v32  ;;  %v2305_v33 = vld [vmem:[%s12370_s26 + $0x3420] sm:$0xff] }
 0x1b3   : > { %v2307_v34 = vld [vmem:[%s12370_s26 + $0x3440] sm:$0xff]  ;;  %2306 = vst [vmem:[%s12378_s27 + $0xd08] sm:$0xff] %v2305_v33 }
 0x1b4   : > { %v2309_v35 = vld [vmem:[%s12370_s26 + $0x3460] sm:$0xff]  ;;  %2308 = vst [vmem:[%s12378_s27 + $0xd10] sm:$0xff] %v2307_v34 }
 0x1b5   : > { %2310 = vst [vmem:[%s12378_s27 + $0xd18] sm:$0xff] %v2309_v35  ;;  %v2311_v36 = vld [vmem:[%s12370_s26 + $0x3480] sm:$0xff] }
 0x1b6   : > { %v2313_v37 = vld [vmem:[%s12370_s26 + $0x34a0] sm:$0xff]  ;;  %2312 = vst [vmem:[%s12378_s27 + $0xd20] sm:$0xff] %v2311_v36 }
 0x1b7   : > { %v2315_v38 = vld [vmem:[%s12370_s26 + $0x34c0] sm:$0xff]  ;;  %2314 = vst [vmem:[%s12378_s27 + $0xd28] sm:$0xff] %v2313_v37 }
 0x1b8   : > { %2316 = vst [vmem:[%s12378_s27 + $0xd30] sm:$0xff] %v2315_v38  ;;  %v2317_v39 = vld [vmem:[%s12370_s26 + $0x34e0] sm:$0xff] }
 0x1b9   : > { %v2319_v40 = vld [vmem:[%s12370_s26 + $0x3500] sm:$0xff]  ;;  %2318 = vst [vmem:[%s12378_s27 + $0xd38] sm:$0xff] %v2317_v39 }
 0x1ba   : > { %v2321_v41 = vld [vmem:[%s12370_s26 + $0x3520] sm:$0xff]  ;;  %2320 = vst [vmem:[%s12378_s27 + $0xd40] sm:$0xff] %v2319_v40 }
 0x1bb   : > { %2322 = vst [vmem:[%s12378_s27 + $0xd48] sm:$0xff] %v2321_v41  ;;  %v2323_v42 = vld [vmem:[%s12370_s26 + $0x3540] sm:$0xff] }
 0x1bc   : > { %v2325_v43 = vld [vmem:[%s12370_s26 + $0x3560] sm:$0xff]  ;;  %2324 = vst [vmem:[%s12378_s27 + $0xd50] sm:$0xff] %v2323_v42 }
 0x1bd   : > { %v2327_v44 = vld [vmem:[%s12370_s26 + $0x3580] sm:$0xff]  ;;  %2326 = vst [vmem:[%s12378_s27 + $0xd58] sm:$0xff] %v2325_v43 }
 0x1be   : > { %2328 = vst [vmem:[%s12378_s27 + $0xd60] sm:$0xff] %v2327_v44  ;;  %v2329_v45 = vld [vmem:[%s12370_s26 + $0x35a0] sm:$0xff] }
 0x1bf   : > { %v2331_v46 = vld [vmem:[%s12370_s26 + $0x35c0] sm:$0xff]  ;;  %2330 = vst [vmem:[%s12378_s27 + $0xd68] sm:$0xff] %v2329_v45 }
 0x1c0   : > { %v2333_v47 = vld [vmem:[%s12370_s26 + $0x35e0] sm:$0xff]  ;;  %2332 = vst [vmem:[%s12378_s27 + $0xd70] sm:$0xff] %v2331_v46 }
 0x1c1   : > { %2334 = vst [vmem:[%s12378_s27 + $0xd78] sm:$0xff] %v2333_v47  ;;  %v2335_v48 = vld [vmem:[%s12370_s26 + $0x3600] sm:$0xff] }
 0x1c2   : > { %v2337_v49 = vld [vmem:[%s12370_s26 + $0x3620] sm:$0xff]  ;;  %2336 = vst [vmem:[%s12378_s27 + $0xd80] sm:$0xff] %v2335_v48 }
 0x1c3   : > { %v2339_v50 = vld [vmem:[%s12370_s26 + $0x3640] sm:$0xff]  ;;  %2338 = vst [vmem:[%s12378_s27 + $0xd88] sm:$0xff] %v2337_v49 }
 0x1c4   : > { %2340 = vst [vmem:[%s12378_s27 + $0xd90] sm:$0xff] %v2339_v50  ;;  %v2341_v51 = vld [vmem:[%s12370_s26 + $0x3660] sm:$0xff] }
 0x1c5   : > { %v2343_v52 = vld [vmem:[%s12370_s26 + $0x3680] sm:$0xff]  ;;  %2342 = vst [vmem:[%s12378_s27 + $0xd98] sm:$0xff] %v2341_v51 }
 0x1c6   : > { %v2345_v53 = vld [vmem:[%s12370_s26 + $0x36a0] sm:$0xff]  ;;  %2344 = vst [vmem:[%s12378_s27 + $0xda0] sm:$0xff] %v2343_v52 }
 0x1c7   : > { %2346 = vst [vmem:[%s12378_s27 + $0xda8] sm:$0xff] %v2345_v53  ;;  %v2347_v54 = vld [vmem:[%s12370_s26 + $0x36c0] sm:$0xff] }
 0x1c8   : > { %v2349_v55 = vld [vmem:[%s12370_s26 + $0x36e0] sm:$0xff]  ;;  %2348 = vst [vmem:[%s12378_s27 + $0xdb0] sm:$0xff] %v2347_v54 }
 0x1c9   : > { %v2351_v56 = vld [vmem:[%s12370_s26 + $0x3700] sm:$0xff]  ;;  %2350 = vst [vmem:[%s12378_s27 + $0xdb8] sm:$0xff] %v2349_v55 }
 0x1ca   : > { %2352 = vst [vmem:[%s12378_s27 + $0xdc0] sm:$0xff] %v2351_v56  ;;  %v2353_v57 = vld [vmem:[%s12370_s26 + $0x3720] sm:$0xff] }
 0x1cb   : > { %v2355_v58 = vld [vmem:[%s12370_s26 + $0x3740] sm:$0xff]  ;;  %2354 = vst [vmem:[%s12378_s27 + $0xdc8] sm:$0xff] %v2353_v57 }
 0x1cc   : > { %v2357_v59 = vld [vmem:[%s12370_s26 + $0x3760] sm:$0xff]  ;;  %2356 = vst [vmem:[%s12378_s27 + $0xdd0] sm:$0xff] %v2355_v58 }
 0x1cd   : > { %2358 = vst [vmem:[%s12378_s27 + $0xdd8] sm:$0xff] %v2357_v59  ;;  %v2359_v60 = vld [vmem:[%s12370_s26 + $0x3780] sm:$0xff] }
 0x1ce   : > { %v2361_v61 = vld [vmem:[%s12370_s26 + $0x37a0] sm:$0xff]  ;;  %2360 = vst [vmem:[%s12378_s27 + $0xde0] sm:$0xff] %v2359_v60 }
 0x1cf   : > { %v2363_v62 = vld [vmem:[%s12370_s26 + $0x37c0] sm:$0xff]  ;;  %2362 = vst [vmem:[%s12378_s27 + $0xde8] sm:$0xff] %v2361_v61 }
 0x1d0   : > { %2364 = vst [vmem:[%s12378_s27 + $0xdf0] sm:$0xff] %v2363_v62  ;;  %v2365_v63 = vld [vmem:[%s12370_s26 + $0x37e0] sm:$0xff] }
 0x1d1   : > { %v2367_v0 = vld [vmem:[%s12370_s26 + $0x3800] sm:$0xff]  ;;  %2366 = vst [vmem:[%s12378_s27 + $0xdf8] sm:$0xff] %v2365_v63 }
 0x1d2   : > { %v2369_v1 = vld [vmem:[%s12370_s26 + $0x3820] sm:$0xff]  ;;  %2368 = vst [vmem:[%s12378_s27 + $0xe00] sm:$0xff] %v2367_v0 }
 0x1d3   : > { %2370 = vst [vmem:[%s12378_s27 + $0xe08] sm:$0xff] %v2369_v1  ;;  %v2371_v2 = vld [vmem:[%s12370_s26 + $0x3840] sm:$0xff] }
 0x1d4   : > { %v2373_v3 = vld [vmem:[%s12370_s26 + $0x3860] sm:$0xff]  ;;  %2372 = vst [vmem:[%s12378_s27 + $0xe10] sm:$0xff] %v2371_v2 }
 0x1d5   : > { %v2375_v4 = vld [vmem:[%s12370_s26 + $0x3880] sm:$0xff]  ;;  %2374 = vst [vmem:[%s12378_s27 + $0xe18] sm:$0xff] %v2373_v3 }
 0x1d6   : > { %2376 = vst [vmem:[%s12378_s27 + $0xe20] sm:$0xff] %v2375_v4  ;;  %v2377_v5 = vld [vmem:[%s12370_s26 + $0x38a0] sm:$0xff] }
 0x1d7   : > { %v2379_v6 = vld [vmem:[%s12370_s26 + $0x38c0] sm:$0xff]  ;;  %2378 = vst [vmem:[%s12378_s27 + $0xe28] sm:$0xff] %v2377_v5 }
 0x1d8   : > { %v2381_v7 = vld [vmem:[%s12370_s26 + $0x38e0] sm:$0xff]  ;;  %2380 = vst [vmem:[%s12378_s27 + $0xe30] sm:$0xff] %v2379_v6 }
 0x1d9   : > { %2382 = vst [vmem:[%s12378_s27 + $0xe38] sm:$0xff] %v2381_v7  ;;  %v2383_v8 = vld [vmem:[%s12370_s26 + $0x3900] sm:$0xff] }
 0x1da   : > { %v2385_v9 = vld [vmem:[%s12370_s26 + $0x3920] sm:$0xff]  ;;  %2384 = vst [vmem:[%s12378_s27 + $0xe40] sm:$0xff] %v2383_v8 }
 0x1db   : > { %v2387_v10 = vld [vmem:[%s12370_s26 + $0x3940] sm:$0xff]  ;;  %2386 = vst [vmem:[%s12378_s27 + $0xe48] sm:$0xff] %v2385_v9 }
 0x1dc   : > { %2388 = vst [vmem:[%s12378_s27 + $0xe50] sm:$0xff] %v2387_v10  ;;  %v2389_v11 = vld [vmem:[%s12370_s26 + $0x3960] sm:$0xff] }
 0x1dd   : > { %v2391_v12 = vld [vmem:[%s12370_s26 + $0x3980] sm:$0xff]  ;;  %2390 = vst [vmem:[%s12378_s27 + $0xe58] sm:$0xff] %v2389_v11 }
 0x1de   : > { %v2393_v13 = vld [vmem:[%s12370_s26 + $0x39a0] sm:$0xff]  ;;  %2392 = vst [vmem:[%s12378_s27 + $0xe60] sm:$0xff] %v2391_v12 }
 0x1df   : > { %2394 = vst [vmem:[%s12378_s27 + $0xe68] sm:$0xff] %v2393_v13  ;;  %v2395_v14 = vld [vmem:[%s12370_s26 + $0x39c0] sm:$0xff] }
 0x1e0   : > { %v2397_v15 = vld [vmem:[%s12370_s26 + $0x39e0] sm:$0xff]  ;;  %2396 = vst [vmem:[%s12378_s27 + $0xe70] sm:$0xff] %v2395_v14 }
 0x1e1   : > { %v2399_v16 = vld [vmem:[%s12370_s26 + $0x3a00] sm:$0xff]  ;;  %2398 = vst [vmem:[%s12378_s27 + $0xe78] sm:$0xff] %v2397_v15 }
 0x1e2   : > { %2400 = vst [vmem:[%s12378_s27 + $0xe80] sm:$0xff] %v2399_v16  ;;  %v2401_v17 = vld [vmem:[%s12370_s26 + $0x3a20] sm:$0xff] }
 0x1e3   : > { %v2403_v18 = vld [vmem:[%s12370_s26 + $0x3a40] sm:$0xff]  ;;  %2402 = vst [vmem:[%s12378_s27 + $0xe88] sm:$0xff] %v2401_v17 }
 0x1e4   : > { %v2405_v19 = vld [vmem:[%s12370_s26 + $0x3a60] sm:$0xff]  ;;  %2404 = vst [vmem:[%s12378_s27 + $0xe90] sm:$0xff] %v2403_v18 }
 0x1e5   : > { %2406 = vst [vmem:[%s12378_s27 + $0xe98] sm:$0xff] %v2405_v19  ;;  %v2407_v20 = vld [vmem:[%s12370_s26 + $0x3a80] sm:$0xff] }
 0x1e6   : > { %v2409_v21 = vld [vmem:[%s12370_s26 + $0x3aa0] sm:$0xff]  ;;  %2408 = vst [vmem:[%s12378_s27 + $0xea0] sm:$0xff] %v2407_v20 }
 0x1e7   : > { %v2411_v22 = vld [vmem:[%s12370_s26 + $0x3ac0] sm:$0xff]  ;;  %2410 = vst [vmem:[%s12378_s27 + $0xea8] sm:$0xff] %v2409_v21 }
 0x1e8   : > { %2412 = vst [vmem:[%s12378_s27 + $0xeb0] sm:$0xff] %v2411_v22  ;;  %v2413_v23 = vld [vmem:[%s12370_s26 + $0x3ae0] sm:$0xff] }
 0x1e9   : > { %v2415_v24 = vld [vmem:[%s12370_s26 + $0x3b00] sm:$0xff]  ;;  %2414 = vst [vmem:[%s12378_s27 + $0xeb8] sm:$0xff] %v2413_v23 }
 0x1ea   : > { %v2417_v25 = vld [vmem:[%s12370_s26 + $0x3b20] sm:$0xff]  ;;  %2416 = vst [vmem:[%s12378_s27 + $0xec0] sm:$0xff] %v2415_v24 }
 0x1eb   : > { %2418 = vst [vmem:[%s12378_s27 + $0xec8] sm:$0xff] %v2417_v25  ;;  %v2419_v26 = vld [vmem:[%s12370_s26 + $0x3b40] sm:$0xff] }
 0x1ec   : > { %v2421_v27 = vld [vmem:[%s12370_s26 + $0x3b60] sm:$0xff]  ;;  %2420 = vst [vmem:[%s12378_s27 + $0xed0] sm:$0xff] %v2419_v26 }
 0x1ed   : > { %v2423_v28 = vld [vmem:[%s12370_s26 + $0x3b80] sm:$0xff]  ;;  %2422 = vst [vmem:[%s12378_s27 + $0xed8] sm:$0xff] %v2421_v27 }
 0x1ee   : > { %2424 = vst [vmem:[%s12378_s27 + $0xee0] sm:$0xff] %v2423_v28  ;;  %v2425_v29 = vld [vmem:[%s12370_s26 + $0x3ba0] sm:$0xff] }
 0x1ef   : > { %v2427_v30 = vld [vmem:[%s12370_s26 + $0x3bc0] sm:$0xff]  ;;  %2426 = vst [vmem:[%s12378_s27 + $0xee8] sm:$0xff] %v2425_v29 }
 0x1f0   : > { %v2429_v31 = vld [vmem:[%s12370_s26 + $0x3be0] sm:$0xff]  ;;  %2428 = vst [vmem:[%s12378_s27 + $0xef0] sm:$0xff] %v2427_v30 }
 0x1f1   : > { %2430 = vst [vmem:[%s12378_s27 + $0xef8] sm:$0xff] %v2429_v31  ;;  %v2431_v32 = vld [vmem:[%s12370_s26 + $0x3c00] sm:$0xff] }
 0x1f2   : > { %v2433_v33 = vld [vmem:[%s12370_s26 + $0x3c20] sm:$0xff]  ;;  %2432 = vst [vmem:[%s12378_s27 + $0xf00] sm:$0xff] %v2431_v32 }
 0x1f3   : > { %v2435_v34 = vld [vmem:[%s12370_s26 + $0x3c40] sm:$0xff]  ;;  %2434 = vst [vmem:[%s12378_s27 + $0xf08] sm:$0xff] %v2433_v33 }
 0x1f4   : > { %2436 = vst [vmem:[%s12378_s27 + $0xf10] sm:$0xff] %v2435_v34  ;;  %v2437_v35 = vld [vmem:[%s12370_s26 + $0x3c60] sm:$0xff] }
 0x1f5   : > { %v2439_v36 = vld [vmem:[%s12370_s26 + $0x3c80] sm:$0xff]  ;;  %2438 = vst [vmem:[%s12378_s27 + $0xf18] sm:$0xff] %v2437_v35 }
 0x1f6   : > { %v2441_v37 = vld [vmem:[%s12370_s26 + $0x3ca0] sm:$0xff]  ;;  %2440 = vst [vmem:[%s12378_s27 + $0xf20] sm:$0xff] %v2439_v36 }
 0x1f7   : > { %2442 = vst [vmem:[%s12378_s27 + $0xf28] sm:$0xff] %v2441_v37  ;;  %v2443_v38 = vld [vmem:[%s12370_s26 + $0x3cc0] sm:$0xff] }
 0x1f8   : > { %v2445_v39 = vld [vmem:[%s12370_s26 + $0x3ce0] sm:$0xff]  ;;  %2444 = vst [vmem:[%s12378_s27 + $0xf30] sm:$0xff] %v2443_v38 }
 0x1f9   : > { %v2447_v40 = vld [vmem:[%s12370_s26 + $0x3d00] sm:$0xff]  ;;  %2446 = vst [vmem:[%s12378_s27 + $0xf38] sm:$0xff] %v2445_v39 }
 0x1fa   : > { %2448 = vst [vmem:[%s12378_s27 + $0xf40] sm:$0xff] %v2447_v40  ;;  %v2449_v41 = vld [vmem:[%s12370_s26 + $0x3d20] sm:$0xff] }
 0x1fb   : > { %v2451_v42 = vld [vmem:[%s12370_s26 + $0x3d40] sm:$0xff]  ;;  %2450 = vst [vmem:[%s12378_s27 + $0xf48] sm:$0xff] %v2449_v41 }
 0x1fc   : > { %v2453_v43 = vld [vmem:[%s12370_s26 + $0x3d60] sm:$0xff]  ;;  %2452 = vst [vmem:[%s12378_s27 + $0xf50] sm:$0xff] %v2451_v42 }
 0x1fd   : > { %2454 = vst [vmem:[%s12378_s27 + $0xf58] sm:$0xff] %v2453_v43  ;;  %v2455_v44 = vld [vmem:[%s12370_s26 + $0x3d80] sm:$0xff] }
 0x1fe   : > { %v2457_v45 = vld [vmem:[%s12370_s26 + $0x3da0] sm:$0xff]  ;;  %2456 = vst [vmem:[%s12378_s27 + $0xf60] sm:$0xff] %v2455_v44 }
 0x1ff   : > { %v2459_v46 = vld [vmem:[%s12370_s26 + $0x3dc0] sm:$0xff]  ;;  %2458 = vst [vmem:[%s12378_s27 + $0xf68] sm:$0xff] %v2457_v45 }
 0x200   : > { %2460 = vst [vmem:[%s12378_s27 + $0xf70] sm:$0xff] %v2459_v46  ;;  %v2461_v47 = vld [vmem:[%s12370_s26 + $0x3de0] sm:$0xff] }
 0x201   : > { %v2463_v48 = vld [vmem:[%s12370_s26 + $0x3e00] sm:$0xff]  ;;  %2462 = vst [vmem:[%s12378_s27 + $0xf78] sm:$0xff] %v2461_v47 }
 0x202   : > { %v2465_v49 = vld [vmem:[%s12370_s26 + $0x3e20] sm:$0xff]  ;;  %2464 = vst [vmem:[%s12378_s27 + $0xf80] sm:$0xff] %v2463_v48 }
 0x203   : > { %2466 = vst [vmem:[%s12378_s27 + $0xf88] sm:$0xff] %v2465_v49  ;;  %v2467_v50 = vld [vmem:[%s12370_s26 + $0x3e40] sm:$0xff] }
 0x204   : > { %v2469_v51 = vld [vmem:[%s12370_s26 + $0x3e60] sm:$0xff]  ;;  %2468 = vst [vmem:[%s12378_s27 + $0xf90] sm:$0xff] %v2467_v50 }
 0x205   : > { %v2471_v52 = vld [vmem:[%s12370_s26 + $0x3e80] sm:$0xff]  ;;  %2470 = vst [vmem:[%s12378_s27 + $0xf98] sm:$0xff] %v2469_v51 }
 0x206   : > { %2472 = vst [vmem:[%s12378_s27 + $0xfa0] sm:$0xff] %v2471_v52  ;;  %v2473_v53 = vld [vmem:[%s12370_s26 + $0x3ea0] sm:$0xff] }
 0x207   : > { %v2475_v54 = vld [vmem:[%s12370_s26 + $0x3ec0] sm:$0xff]  ;;  %2474 = vst [vmem:[%s12378_s27 + $0xfa8] sm:$0xff] %v2473_v53 }
 0x208   : > { %v2477_v55 = vld [vmem:[%s12370_s26 + $0x3ee0] sm:$0xff]  ;;  %2476 = vst [vmem:[%s12378_s27 + $0xfb0] sm:$0xff] %v2475_v54 }
 0x209   : > { %2478 = vst [vmem:[%s12378_s27 + $0xfb8] sm:$0xff] %v2477_v55  ;;  %v2479_v56 = vld [vmem:[%s12370_s26 + $0x3f00] sm:$0xff] }
 0x20a   : > { %v2481_v57 = vld [vmem:[%s12370_s26 + $0x3f20] sm:$0xff]  ;;  %2480 = vst [vmem:[%s12378_s27 + $0xfc0] sm:$0xff] %v2479_v56 }
 0x20b   : > { %v2483_v58 = vld [vmem:[%s12370_s26 + $0x3f40] sm:$0xff]  ;;  %2482 = vst [vmem:[%s12378_s27 + $0xfc8] sm:$0xff] %v2481_v57 }
 0x20c   : > { %2484 = vst [vmem:[%s12378_s27 + $0xfd0] sm:$0xff] %v2483_v58  ;;  %v2485_v59 = vld [vmem:[%s12370_s26 + $0x3f60] sm:$0xff] }
 0x20d   : > { %v2487_v60 = vld [vmem:[%s12370_s26 + $0x3f80] sm:$0xff]  ;;  %2486 = vst [vmem:[%s12378_s27 + $0xfd8] sm:$0xff] %v2485_v59 }
 0x20e   : > { %v2489_v61 = vld [vmem:[%s12370_s26 + $0x3fa0] sm:$0xff]  ;;  %2488 = vst [vmem:[%s12378_s27 + $0xfe0] sm:$0xff] %v2487_v60 }
 0x20f   : > { %2490 = vst [vmem:[%s12378_s27 + $0xfe8] sm:$0xff] %v2489_v61  ;;  %v2491_v62 = vld [vmem:[%s12370_s26 + $0x3fc0] sm:$0xff] }
 0x210   : > { %v2493_v63 = vld [vmem:[%s12370_s26 + $0x3fe0] sm:$0xff]  ;;  %2492 = vst [vmem:[%s12378_s27 + $0xff0] sm:$0xff] %v2491_v62 }
 0x211   : > { %v2495_v0 = vld [vmem:[%s12370_s26 + $0x4000] sm:$0xff]  ;;  %2494 = vst [vmem:[%s12378_s27 + $0xff8] sm:$0xff] %v2493_v63 }
 0x212   : > { %2496 = vst [vmem:[%s12378_s27 + $0x1000] sm:$0xff] %v2495_v0  ;;  %v2497_v1 = vld [vmem:[%s12370_s26 + $0x4020] sm:$0xff] }
 0x213   : > { %v2499_v2 = vld [vmem:[%s12370_s26 + $0x4040] sm:$0xff]  ;;  %2498 = vst [vmem:[%s12378_s27 + $0x1008] sm:$0xff] %v2497_v1 }
 0x214   : > { %v2501_v3 = vld [vmem:[%s12370_s26 + $0x4060] sm:$0xff]  ;;  %2500 = vst [vmem:[%s12378_s27 + $0x1010] sm:$0xff] %v2499_v2 }
 0x215   : > { %2502 = vst [vmem:[%s12378_s27 + $0x1018] sm:$0xff] %v2501_v3  ;;  %v2503_v4 = vld [vmem:[%s12370_s26 + $0x4080] sm:$0xff] }
 0x216   : > { %v2505_v5 = vld [vmem:[%s12370_s26 + $0x40a0] sm:$0xff]  ;;  %2504 = vst [vmem:[%s12378_s27 + $0x1020] sm:$0xff] %v2503_v4 }
 0x217   : > { %v2507_v6 = vld [vmem:[%s12370_s26 + $0x40c0] sm:$0xff]  ;;  %2506 = vst [vmem:[%s12378_s27 + $0x1028] sm:$0xff] %v2505_v5 }
 0x218   : > { %2508 = vst [vmem:[%s12378_s27 + $0x1030] sm:$0xff] %v2507_v6  ;;  %v2509_v7 = vld [vmem:[%s12370_s26 + $0x40e0] sm:$0xff] }
 0x219   : > { %v2511_v8 = vld [vmem:[%s12370_s26 + $0x4100] sm:$0xff]  ;;  %2510 = vst [vmem:[%s12378_s27 + $0x1038] sm:$0xff] %v2509_v7 }
 0x21a   : > { %v2513_v9 = vld [vmem:[%s12370_s26 + $0x4120] sm:$0xff]  ;;  %2512 = vst [vmem:[%s12378_s27 + $0x1040] sm:$0xff] %v2511_v8 }
 0x21b   : > { %2514 = vst [vmem:[%s12378_s27 + $0x1048] sm:$0xff] %v2513_v9  ;;  %v2515_v10 = vld [vmem:[%s12370_s26 + $0x4140] sm:$0xff] }
 0x21c   : > { %v2517_v11 = vld [vmem:[%s12370_s26 + $0x4160] sm:$0xff]  ;;  %2516 = vst [vmem:[%s12378_s27 + $0x1050] sm:$0xff] %v2515_v10 }
 0x21d   : > { %v2519_v12 = vld [vmem:[%s12370_s26 + $0x4180] sm:$0xff]  ;;  %2518 = vst [vmem:[%s12378_s27 + $0x1058] sm:$0xff] %v2517_v11 }
 0x21e   : > { %2520 = vst [vmem:[%s12378_s27 + $0x1060] sm:$0xff] %v2519_v12  ;;  %v2521_v13 = vld [vmem:[%s12370_s26 + $0x41a0] sm:$0xff] }
 0x21f   : > { %v2523_v14 = vld [vmem:[%s12370_s26 + $0x41c0] sm:$0xff]  ;;  %2522 = vst [vmem:[%s12378_s27 + $0x1068] sm:$0xff] %v2521_v13 }
 0x220   : > { %v2525_v15 = vld [vmem:[%s12370_s26 + $0x41e0] sm:$0xff]  ;;  %2524 = vst [vmem:[%s12378_s27 + $0x1070] sm:$0xff] %v2523_v14 }
 0x221   : > { %2526 = vst [vmem:[%s12378_s27 + $0x1078] sm:$0xff] %v2525_v15  ;;  %v2527_v16 = vld [vmem:[%s12370_s26 + $0x4200] sm:$0xff] }
 0x222   : > { %v2529_v17 = vld [vmem:[%s12370_s26 + $0x4220] sm:$0xff]  ;;  %2528 = vst [vmem:[%s12378_s27 + $0x1080] sm:$0xff] %v2527_v16 }
 0x223   : > { %v2531_v18 = vld [vmem:[%s12370_s26 + $0x4240] sm:$0xff]  ;;  %2530 = vst [vmem:[%s12378_s27 + $0x1088] sm:$0xff] %v2529_v17 }
 0x224   : > { %2532 = vst [vmem:[%s12378_s27 + $0x1090] sm:$0xff] %v2531_v18  ;;  %v2533_v19 = vld [vmem:[%s12370_s26 + $0x4260] sm:$0xff] }
 0x225   : > { %v2535_v20 = vld [vmem:[%s12370_s26 + $0x4280] sm:$0xff]  ;;  %2534 = vst [vmem:[%s12378_s27 + $0x1098] sm:$0xff] %v2533_v19 }
 0x226   : > { %v2537_v21 = vld [vmem:[%s12370_s26 + $0x42a0] sm:$0xff]  ;;  %2536 = vst [vmem:[%s12378_s27 + $0x10a0] sm:$0xff] %v2535_v20 }
 0x227   : > { %2538 = vst [vmem:[%s12378_s27 + $0x10a8] sm:$0xff] %v2537_v21  ;;  %v2539_v22 = vld [vmem:[%s12370_s26 + $0x42c0] sm:$0xff] }
 0x228   : > { %v2541_v23 = vld [vmem:[%s12370_s26 + $0x42e0] sm:$0xff]  ;;  %2540 = vst [vmem:[%s12378_s27 + $0x10b0] sm:$0xff] %v2539_v22 }
 0x229   : > { %v2543_v24 = vld [vmem:[%s12370_s26 + $0x4300] sm:$0xff]  ;;  %2542 = vst [vmem:[%s12378_s27 + $0x10b8] sm:$0xff] %v2541_v23 }
 0x22a   : > { %2544 = vst [vmem:[%s12378_s27 + $0x10c0] sm:$0xff] %v2543_v24  ;;  %v2545_v25 = vld [vmem:[%s12370_s26 + $0x4320] sm:$0xff] }
 0x22b   : > { %v2547_v26 = vld [vmem:[%s12370_s26 + $0x4340] sm:$0xff]  ;;  %2546 = vst [vmem:[%s12378_s27 + $0x10c8] sm:$0xff] %v2545_v25 }
 0x22c   : > { %v2549_v27 = vld [vmem:[%s12370_s26 + $0x4360] sm:$0xff]  ;;  %2548 = vst [vmem:[%s12378_s27 + $0x10d0] sm:$0xff] %v2547_v26 }
 0x22d   : > { %2550 = vst [vmem:[%s12378_s27 + $0x10d8] sm:$0xff] %v2549_v27  ;;  %v2551_v28 = vld [vmem:[%s12370_s26 + $0x4380] sm:$0xff] }
 0x22e   : > { %v2553_v29 = vld [vmem:[%s12370_s26 + $0x43a0] sm:$0xff]  ;;  %2552 = vst [vmem:[%s12378_s27 + $0x10e0] sm:$0xff] %v2551_v28 }
 0x22f   : > { %v2555_v30 = vld [vmem:[%s12370_s26 + $0x43c0] sm:$0xff]  ;;  %2554 = vst [vmem:[%s12378_s27 + $0x10e8] sm:$0xff] %v2553_v29 }
 0x230   : > { %2556 = vst [vmem:[%s12378_s27 + $0x10f0] sm:$0xff] %v2555_v30  ;;  %v2557_v31 = vld [vmem:[%s12370_s26 + $0x43e0] sm:$0xff] }
 0x231   : > { %v2559_v32 = vld [vmem:[%s12370_s26 + $0x4400] sm:$0xff]  ;;  %2558 = vst [vmem:[%s12378_s27 + $0x10f8] sm:$0xff] %v2557_v31 }
 0x232   : > { %v2561_v33 = vld [vmem:[%s12370_s26 + $0x4420] sm:$0xff]  ;;  %2560 = vst [vmem:[%s12378_s27 + $0x1100] sm:$0xff] %v2559_v32 }
 0x233   : > { %2562 = vst [vmem:[%s12378_s27 + $0x1108] sm:$0xff] %v2561_v33  ;;  %v2563_v34 = vld [vmem:[%s12370_s26 + $0x4440] sm:$0xff] }
 0x234   : > { %v2565_v35 = vld [vmem:[%s12370_s26 + $0x4460] sm:$0xff]  ;;  %2564 = vst [vmem:[%s12378_s27 + $0x1110] sm:$0xff] %v2563_v34 }
 0x235   : > { %v2567_v36 = vld [vmem:[%s12370_s26 + $0x4480] sm:$0xff]  ;;  %2566 = vst [vmem:[%s12378_s27 + $0x1118] sm:$0xff] %v2565_v35 }
 0x236   : > { %2568 = vst [vmem:[%s12378_s27 + $0x1120] sm:$0xff] %v2567_v36  ;;  %v2569_v37 = vld [vmem:[%s12370_s26 + $0x44a0] sm:$0xff] }
 0x237   : > { %v2571_v38 = vld [vmem:[%s12370_s26 + $0x44c0] sm:$0xff]  ;;  %2570 = vst [vmem:[%s12378_s27 + $0x1128] sm:$0xff] %v2569_v37 }
 0x238   : > { %v2573_v39 = vld [vmem:[%s12370_s26 + $0x44e0] sm:$0xff]  ;;  %2572 = vst [vmem:[%s12378_s27 + $0x1130] sm:$0xff] %v2571_v38 }
 0x239   : > { %2574 = vst [vmem:[%s12378_s27 + $0x1138] sm:$0xff] %v2573_v39  ;;  %v2575_v40 = vld [vmem:[%s12370_s26 + $0x4500] sm:$0xff] }
 0x23a   : > { %v2577_v41 = vld [vmem:[%s12370_s26 + $0x4520] sm:$0xff]  ;;  %2576 = vst [vmem:[%s12378_s27 + $0x1140] sm:$0xff] %v2575_v40 }
 0x23b   : > { %v2579_v42 = vld [vmem:[%s12370_s26 + $0x4540] sm:$0xff]  ;;  %2578 = vst [vmem:[%s12378_s27 + $0x1148] sm:$0xff] %v2577_v41 }
 0x23c   : > { %2580 = vst [vmem:[%s12378_s27 + $0x1150] sm:$0xff] %v2579_v42  ;;  %v2581_v43 = vld [vmem:[%s12370_s26 + $0x4560] sm:$0xff] }
 0x23d   : > { %v2583_v44 = vld [vmem:[%s12370_s26 + $0x4580] sm:$0xff]  ;;  %2582 = vst [vmem:[%s12378_s27 + $0x1158] sm:$0xff] %v2581_v43 }
 0x23e   : > { %v2585_v45 = vld [vmem:[%s12370_s26 + $0x45a0] sm:$0xff]  ;;  %2584 = vst [vmem:[%s12378_s27 + $0x1160] sm:$0xff] %v2583_v44 }
 0x23f   : > { %2586 = vst [vmem:[%s12378_s27 + $0x1168] sm:$0xff] %v2585_v45  ;;  %v2587_v46 = vld [vmem:[%s12370_s26 + $0x45c0] sm:$0xff] }
 0x240   : > { %v2589_v47 = vld [vmem:[%s12370_s26 + $0x45e0] sm:$0xff]  ;;  %2588 = vst [vmem:[%s12378_s27 + $0x1170] sm:$0xff] %v2587_v46 }
 0x241   : > { %v2591_v48 = vld [vmem:[%s12370_s26 + $0x4600] sm:$0xff]  ;;  %2590 = vst [vmem:[%s12378_s27 + $0x1178] sm:$0xff] %v2589_v47 }
 0x242   : > { %2592 = vst [vmem:[%s12378_s27 + $0x1180] sm:$0xff] %v2591_v48  ;;  %v2593_v49 = vld [vmem:[%s12370_s26 + $0x4620] sm:$0xff] }
 0x243   : > { %v2595_v50 = vld [vmem:[%s12370_s26 + $0x4640] sm:$0xff]  ;;  %2594 = vst [vmem:[%s12378_s27 + $0x1188] sm:$0xff] %v2593_v49 }
 0x244   : > { %v2597_v51 = vld [vmem:[%s12370_s26 + $0x4660] sm:$0xff]  ;;  %2596 = vst [vmem:[%s12378_s27 + $0x1190] sm:$0xff] %v2595_v50 }
 0x245   : > { %2598 = vst [vmem:[%s12378_s27 + $0x1198] sm:$0xff] %v2597_v51  ;;  %v2599_v52 = vld [vmem:[%s12370_s26 + $0x4680] sm:$0xff] }
 0x246   : > { %v2601_v53 = vld [vmem:[%s12370_s26 + $0x46a0] sm:$0xff]  ;;  %2600 = vst [vmem:[%s12378_s27 + $0x11a0] sm:$0xff] %v2599_v52 }
 0x247   : > { %v2603_v54 = vld [vmem:[%s12370_s26 + $0x46c0] sm:$0xff]  ;;  %2602 = vst [vmem:[%s12378_s27 + $0x11a8] sm:$0xff] %v2601_v53 }
 0x248   : > { %2604 = vst [vmem:[%s12378_s27 + $0x11b0] sm:$0xff] %v2603_v54  ;;  %v2605_v55 = vld [vmem:[%s12370_s26 + $0x46e0] sm:$0xff] }
 0x249   : > { %v2607_v56 = vld [vmem:[%s12370_s26 + $0x4700] sm:$0xff]  ;;  %2606 = vst [vmem:[%s12378_s27 + $0x11b8] sm:$0xff] %v2605_v55 }
 0x24a   : > { %v2609_v57 = vld [vmem:[%s12370_s26 + $0x4720] sm:$0xff]  ;;  %2608 = vst [vmem:[%s12378_s27 + $0x11c0] sm:$0xff] %v2607_v56 }
 0x24b   : > { %2610 = vst [vmem:[%s12378_s27 + $0x11c8] sm:$0xff] %v2609_v57  ;;  %v2611_v58 = vld [vmem:[%s12370_s26 + $0x4740] sm:$0xff] }
 0x24c   : > { %v2613_v59 = vld [vmem:[%s12370_s26 + $0x4760] sm:$0xff]  ;;  %2612 = vst [vmem:[%s12378_s27 + $0x11d0] sm:$0xff] %v2611_v58 }
 0x24d   : > { %v2615_v60 = vld [vmem:[%s12370_s26 + $0x4780] sm:$0xff]  ;;  %2614 = vst [vmem:[%s12378_s27 + $0x11d8] sm:$0xff] %v2613_v59 }
 0x24e   : > { %2616 = vst [vmem:[%s12378_s27 + $0x11e0] sm:$0xff] %v2615_v60  ;;  %v2617_v61 = vld [vmem:[%s12370_s26 + $0x47a0] sm:$0xff] }
 0x24f   : > { %v2619_v62 = vld [vmem:[%s12370_s26 + $0x47c0] sm:$0xff]  ;;  %2618 = vst [vmem:[%s12378_s27 + $0x11e8] sm:$0xff] %v2617_v61 }
 0x250   : > { %v2621_v63 = vld [vmem:[%s12370_s26 + $0x47e0] sm:$0xff]  ;;  %2620 = vst [vmem:[%s12378_s27 + $0x11f0] sm:$0xff] %v2619_v62 }
 0x251   : > { %2622 = vst [vmem:[%s12378_s27 + $0x11f8] sm:$0xff] %v2621_v63  ;;  %v2623_v0 = vld [vmem:[%s12370_s26 + $0x4800] sm:$0xff] }
 0x252   : > { %v2625_v1 = vld [vmem:[%s12370_s26 + $0x4820] sm:$0xff]  ;;  %2624 = vst [vmem:[%s12378_s27 + $0x1200] sm:$0xff] %v2623_v0 }
 0x253   : > { %v2627_v2 = vld [vmem:[%s12370_s26 + $0x4840] sm:$0xff]  ;;  %2626 = vst [vmem:[%s12378_s27 + $0x1208] sm:$0xff] %v2625_v1 }
 0x254   : > { %2628 = vst [vmem:[%s12378_s27 + $0x1210] sm:$0xff] %v2627_v2  ;;  %v2629_v3 = vld [vmem:[%s12370_s26 + $0x4860] sm:$0xff] }
 0x255   : > { %v2631_v4 = vld [vmem:[%s12370_s26 + $0x4880] sm:$0xff]  ;;  %2630 = vst [vmem:[%s12378_s27 + $0x1218] sm:$0xff] %v2629_v3 }
 0x256   : > { %v2633_v5 = vld [vmem:[%s12370_s26 + $0x48a0] sm:$0xff]  ;;  %2632 = vst [vmem:[%s12378_s27 + $0x1220] sm:$0xff] %v2631_v4 }
 0x257   : > { %2634 = vst [vmem:[%s12378_s27 + $0x1228] sm:$0xff] %v2633_v5  ;;  %v2635_v6 = vld [vmem:[%s12370_s26 + $0x48c0] sm:$0xff] }
 0x258   : > { %v2637_v7 = vld [vmem:[%s12370_s26 + $0x48e0] sm:$0xff]  ;;  %2636 = vst [vmem:[%s12378_s27 + $0x1230] sm:$0xff] %v2635_v6 }
 0x259   : > { %v2639_v8 = vld [vmem:[%s12370_s26 + $0x4900] sm:$0xff]  ;;  %2638 = vst [vmem:[%s12378_s27 + $0x1238] sm:$0xff] %v2637_v7 }
 0x25a   : > { %2640 = vst [vmem:[%s12378_s27 + $0x1240] sm:$0xff] %v2639_v8  ;;  %v2641_v9 = vld [vmem:[%s12370_s26 + $0x4920] sm:$0xff] }
 0x25b   : > { %v2643_v10 = vld [vmem:[%s12370_s26 + $0x4940] sm:$0xff]  ;;  %2642 = vst [vmem:[%s12378_s27 + $0x1248] sm:$0xff] %v2641_v9 }
 0x25c   : > { %v2645_v11 = vld [vmem:[%s12370_s26 + $0x4960] sm:$0xff]  ;;  %2644 = vst [vmem:[%s12378_s27 + $0x1250] sm:$0xff] %v2643_v10 }
 0x25d   : > { %2646 = vst [vmem:[%s12378_s27 + $0x1258] sm:$0xff] %v2645_v11  ;;  %v2647_v12 = vld [vmem:[%s12370_s26 + $0x4980] sm:$0xff] }
 0x25e   : > { %v2649_v13 = vld [vmem:[%s12370_s26 + $0x49a0] sm:$0xff]  ;;  %2648 = vst [vmem:[%s12378_s27 + $0x1260] sm:$0xff] %v2647_v12 }
 0x25f   : > { %v2651_v14 = vld [vmem:[%s12370_s26 + $0x49c0] sm:$0xff]  ;;  %2650 = vst [vmem:[%s12378_s27 + $0x1268] sm:$0xff] %v2649_v13 }
 0x260   : > { %2652 = vst [vmem:[%s12378_s27 + $0x1270] sm:$0xff] %v2651_v14  ;;  %v2653_v15 = vld [vmem:[%s12370_s26 + $0x49e0] sm:$0xff] }
 0x261   : > { %v2655_v16 = vld [vmem:[%s12370_s26 + $0x4a00] sm:$0xff]  ;;  %2654 = vst [vmem:[%s12378_s27 + $0x1278] sm:$0xff] %v2653_v15 }
 0x262   : > { %v2657_v17 = vld [vmem:[%s12370_s26 + $0x4a20] sm:$0xff]  ;;  %2656 = vst [vmem:[%s12378_s27 + $0x1280] sm:$0xff] %v2655_v16 }
 0x263   : > { %2658 = vst [vmem:[%s12378_s27 + $0x1288] sm:$0xff] %v2657_v17  ;;  %v2659_v18 = vld [vmem:[%s12370_s26 + $0x4a40] sm:$0xff] }
 0x264   : > { %v2661_v19 = vld [vmem:[%s12370_s26 + $0x4a60] sm:$0xff]  ;;  %2660 = vst [vmem:[%s12378_s27 + $0x1290] sm:$0xff] %v2659_v18 }
 0x265   : > { %v2663_v20 = vld [vmem:[%s12370_s26 + $0x4a80] sm:$0xff]  ;;  %2662 = vst [vmem:[%s12378_s27 + $0x1298] sm:$0xff] %v2661_v19 }
 0x266   : > { %2664 = vst [vmem:[%s12378_s27 + $0x12a0] sm:$0xff] %v2663_v20  ;;  %v2665_v21 = vld [vmem:[%s12370_s26 + $0x4aa0] sm:$0xff] }
 0x267   : > { %v2667_v22 = vld [vmem:[%s12370_s26 + $0x4ac0] sm:$0xff]  ;;  %2666 = vst [vmem:[%s12378_s27 + $0x12a8] sm:$0xff] %v2665_v21 }
 0x268   : > { %v2669_v23 = vld [vmem:[%s12370_s26 + $0x4ae0] sm:$0xff]  ;;  %2668 = vst [vmem:[%s12378_s27 + $0x12b0] sm:$0xff] %v2667_v22 }
 0x269   : > { %2670 = vst [vmem:[%s12378_s27 + $0x12b8] sm:$0xff] %v2669_v23  ;;  %v2671_v24 = vld [vmem:[%s12370_s26 + $0x4b00] sm:$0xff] }
 0x26a   : > { %v2673_v25 = vld [vmem:[%s12370_s26 + $0x4b20] sm:$0xff]  ;;  %2672 = vst [vmem:[%s12378_s27 + $0x12c0] sm:$0xff] %v2671_v24 }
 0x26b   : > { %v2675_v26 = vld [vmem:[%s12370_s26 + $0x4b40] sm:$0xff]  ;;  %2674 = vst [vmem:[%s12378_s27 + $0x12c8] sm:$0xff] %v2673_v25 }
 0x26c   : > { %2676 = vst [vmem:[%s12378_s27 + $0x12d0] sm:$0xff] %v2675_v26  ;;  %v2677_v27 = vld [vmem:[%s12370_s26 + $0x4b60] sm:$0xff] }
 0x26d   : > { %v2679_v28 = vld [vmem:[%s12370_s26 + $0x4b80] sm:$0xff]  ;;  %2678 = vst [vmem:[%s12378_s27 + $0x12d8] sm:$0xff] %v2677_v27 }
 0x26e   : > { %v2681_v29 = vld [vmem:[%s12370_s26 + $0x4ba0] sm:$0xff]  ;;  %2680 = vst [vmem:[%s12378_s27 + $0x12e0] sm:$0xff] %v2679_v28 }
 0x26f   : > { %2682 = vst [vmem:[%s12378_s27 + $0x12e8] sm:$0xff] %v2681_v29  ;;  %v2683_v30 = vld [vmem:[%s12370_s26 + $0x4bc0] sm:$0xff] }
 0x270   : > { %v2685_v31 = vld [vmem:[%s12370_s26 + $0x4be0] sm:$0xff]  ;;  %2684 = vst [vmem:[%s12378_s27 + $0x12f0] sm:$0xff] %v2683_v30 }
 0x271   : > { %v2687_v32 = vld [vmem:[%s12370_s26 + $0x4c00] sm:$0xff]  ;;  %2686 = vst [vmem:[%s12378_s27 + $0x12f8] sm:$0xff] %v2685_v31 }
 0x272   : > { %2688 = vst [vmem:[%s12378_s27 + $0x1300] sm:$0xff] %v2687_v32  ;;  %v2689_v33 = vld [vmem:[%s12370_s26 + $0x4c20] sm:$0xff] }
 0x273   : > { %v2691_v34 = vld [vmem:[%s12370_s26 + $0x4c40] sm:$0xff]  ;;  %2690 = vst [vmem:[%s12378_s27 + $0x1308] sm:$0xff] %v2689_v33 }
 0x274   : > { %v2693_v35 = vld [vmem:[%s12370_s26 + $0x4c60] sm:$0xff]  ;;  %2692 = vst [vmem:[%s12378_s27 + $0x1310] sm:$0xff] %v2691_v34 }
 0x275   : > { %2694 = vst [vmem:[%s12378_s27 + $0x1318] sm:$0xff] %v2693_v35  ;;  %v2695_v36 = vld [vmem:[%s12370_s26 + $0x4c80] sm:$0xff] }
 0x276   : > { %v2697_v37 = vld [vmem:[%s12370_s26 + $0x4ca0] sm:$0xff]  ;;  %2696 = vst [vmem:[%s12378_s27 + $0x1320] sm:$0xff] %v2695_v36 }
 0x277   : > { %v2699_v38 = vld [vmem:[%s12370_s26 + $0x4cc0] sm:$0xff]  ;;  %2698 = vst [vmem:[%s12378_s27 + $0x1328] sm:$0xff] %v2697_v37 }
 0x278   : > { %2700 = vst [vmem:[%s12378_s27 + $0x1330] sm:$0xff] %v2699_v38  ;;  %v2701_v39 = vld [vmem:[%s12370_s26 + $0x4ce0] sm:$0xff] }
 0x279   : > { %v2703_v40 = vld [vmem:[%s12370_s26 + $0x4d00] sm:$0xff]  ;;  %2702 = vst [vmem:[%s12378_s27 + $0x1338] sm:$0xff] %v2701_v39 }
 0x27a   : > { %v2705_v41 = vld [vmem:[%s12370_s26 + $0x4d20] sm:$0xff]  ;;  %2704 = vst [vmem:[%s12378_s27 + $0x1340] sm:$0xff] %v2703_v40 }
 0x27b   : > { %2706 = vst [vmem:[%s12378_s27 + $0x1348] sm:$0xff] %v2705_v41  ;;  %v2707_v42 = vld [vmem:[%s12370_s26 + $0x4d40] sm:$0xff] }
 0x27c   : > { %v2709_v43 = vld [vmem:[%s12370_s26 + $0x4d60] sm:$0xff]  ;;  %2708 = vst [vmem:[%s12378_s27 + $0x1350] sm:$0xff] %v2707_v42 }
 0x27d   : > { %v2711_v44 = vld [vmem:[%s12370_s26 + $0x4d80] sm:$0xff]  ;;  %2710 = vst [vmem:[%s12378_s27 + $0x1358] sm:$0xff] %v2709_v43 }
 0x27e   : > { %2712 = vst [vmem:[%s12378_s27 + $0x1360] sm:$0xff] %v2711_v44  ;;  %v2713_v45 = vld [vmem:[%s12370_s26 + $0x4da0] sm:$0xff] }
 0x27f   : > { %v2715_v46 = vld [vmem:[%s12370_s26 + $0x4dc0] sm:$0xff]  ;;  %2714 = vst [vmem:[%s12378_s27 + $0x1368] sm:$0xff] %v2713_v45 }
 0x280   : > { %v2717_v47 = vld [vmem:[%s12370_s26 + $0x4de0] sm:$0xff]  ;;  %2716 = vst [vmem:[%s12378_s27 + $0x1370] sm:$0xff] %v2715_v46 }
 0x281   : > { %2718 = vst [vmem:[%s12378_s27 + $0x1378] sm:$0xff] %v2717_v47  ;;  %v2719_v48 = vld [vmem:[%s12370_s26 + $0x4e00] sm:$0xff] }
 0x282   : > { %v2721_v49 = vld [vmem:[%s12370_s26 + $0x4e20] sm:$0xff]  ;;  %2720 = vst [vmem:[%s12378_s27 + $0x1380] sm:$0xff] %v2719_v48 }
 0x283   : > { %v2723_v50 = vld [vmem:[%s12370_s26 + $0x4e40] sm:$0xff]  ;;  %2722 = vst [vmem:[%s12378_s27 + $0x1388] sm:$0xff] %v2721_v49 }
 0x284   : > { %2724 = vst [vmem:[%s12378_s27 + $0x1390] sm:$0xff] %v2723_v50  ;;  %v2725_v51 = vld [vmem:[%s12370_s26 + $0x4e60] sm:$0xff] }
 0x285   : > { %v2727_v52 = vld [vmem:[%s12370_s26 + $0x4e80] sm:$0xff]  ;;  %2726 = vst [vmem:[%s12378_s27 + $0x1398] sm:$0xff] %v2725_v51 }
 0x286   : > { %v2729_v53 = vld [vmem:[%s12370_s26 + $0x4ea0] sm:$0xff]  ;;  %2728 = vst [vmem:[%s12378_s27 + $0x13a0] sm:$0xff] %v2727_v52 }
 0x287   : > { %2730 = vst [vmem:[%s12378_s27 + $0x13a8] sm:$0xff] %v2729_v53  ;;  %v2731_v54 = vld [vmem:[%s12370_s26 + $0x4ec0] sm:$0xff] }
 0x288   : > { %v2733_v55 = vld [vmem:[%s12370_s26 + $0x4ee0] sm:$0xff]  ;;  %2732 = vst [vmem:[%s12378_s27 + $0x13b0] sm:$0xff] %v2731_v54 }
 0x289   : > { %v2735_v56 = vld [vmem:[%s12370_s26 + $0x4f00] sm:$0xff]  ;;  %2734 = vst [vmem:[%s12378_s27 + $0x13b8] sm:$0xff] %v2733_v55 }
 0x28a   : > { %2736 = vst [vmem:[%s12378_s27 + $0x13c0] sm:$0xff] %v2735_v56  ;;  %v2737_v57 = vld [vmem:[%s12370_s26 + $0x4f20] sm:$0xff] }
 0x28b   : > { %v2739_v58 = vld [vmem:[%s12370_s26 + $0x4f40] sm:$0xff]  ;;  %2738 = vst [vmem:[%s12378_s27 + $0x13c8] sm:$0xff] %v2737_v57 }
 0x28c   : > { %v2741_v59 = vld [vmem:[%s12370_s26 + $0x4f60] sm:$0xff]  ;;  %2740 = vst [vmem:[%s12378_s27 + $0x13d0] sm:$0xff] %v2739_v58 }
 0x28d   : > { %2742 = vst [vmem:[%s12378_s27 + $0x13d8] sm:$0xff] %v2741_v59  ;;  %v2743_v60 = vld [vmem:[%s12370_s26 + $0x4f80] sm:$0xff] }
 0x28e   : > { %v2745_v61 = vld [vmem:[%s12370_s26 + $0x4fa0] sm:$0xff]  ;;  %2744 = vst [vmem:[%s12378_s27 + $0x13e0] sm:$0xff] %v2743_v60 }
 0x28f   : > { %v2747_v62 = vld [vmem:[%s12370_s26 + $0x4fc0] sm:$0xff]  ;;  %2746 = vst [vmem:[%s12378_s27 + $0x13e8] sm:$0xff] %v2745_v61 }
 0x290   : > { %2748 = vst [vmem:[%s12378_s27 + $0x13f0] sm:$0xff] %v2747_v62  ;;  %v2749_v63 = vld [vmem:[%s12370_s26 + $0x4fe0] sm:$0xff] }
 0x291   : > { %2750 = vst [vmem:[%s12378_s27 + $0x13f8] sm:$0xff] %v2749_v63 }
 0x292 PF: > { %p10530_p6 = scmp.ge.s32.totalorder %s12304_s16, 1  ;;  %p5359_p7 = scmp.lt.s32.totalorder %s12304_s16, 5 }
 0x294   : > { %p5360_p8 = pnand %p10530_p6, %p5359_p7 }
 0x295   : > { %s5366_s28 = sand.u32 (!%p5360_p8), 1, %s12288_s12   ;;  %v6066_v0 = vlaneseq (!%p5360_p8)  ;;  %v5421_v1 = vld [vmem:[%s14543_s0 + $0x10] sm:$0xff] (!%p5360_p8)  ;;  %v12306_v2 = vmov (!%p5360_p8), 1966171168   ;;  %v13665_v5 = vld [vmem:[%s14543_s0] sm:$0xff] (!%p5360_p8)  ;;  %s10531_s24 = sshll.u32 (!%p5360_p8), %s12296_s14, 1 }
 0x296   : > { %5363 = sbr.rel (%p5360_p8) target bundleno = 1531 (0x5fb), region = 80  ;;  %v6083_v3 = vunpack.c.l.s4 (!%p5360_p8), %v12306_v2  ;;  %v6179_v7 = vcombine.high (!%p5360_p8), %v5421_v1, %v5421_v1  ;;  %p5406_p9 = scmp.lt.s32.totalorder (!%p5360_p8), %s10531_s24, 7 }
 0x297   : > { %s11255_s4 = smul.u32 (!%p5360_p8), 5120, %s5366_s28  ;;  %v13660_v4 = vshrl.u32 (!%p5360_p8), %v6066_v0, 7 }
 0x298   : > { %v6084_v6 = vunpack.c.0.s8 (!%p5360_p8), %v6083_v3 }
 0x299   : > { %s13667_s7 = scalar_lea.vmem (!%p5360_p8), [#allocation2], %s11255_s4 }
 0x29a   : > { %v11297_v8 = vld [vmem:[%s13667_s7 + $0x4] ss:$8 sps:$4 sm:$0xff] (!%p5360_p8)   ;;  %v13672_v10 = vsub.s32 (!%p5360_p8), %v6084_v6, %v13660_v4  ;;  %v11301_v11 = vld [vmem:[%s13667_s7] ss:$8 sps:$4 sm:$0xff] (!%p5360_p8)   ;;  %v11303_v13 = vld [vmem:[%s13667_s7 + $0x14] ss:$8 sps:$4 sm:$0xff] (!%p5360_p8)  }
 0x29b   : > { %v11299_v9 = vld [vmem:[%s13667_s7 + $0xa04] ss:$8 sps:$4 sm:$0xff] (!%p5360_p8)   ;;  %9566 = vmatprep.subr.bf16.mxu1 (!%p5360_p8), %v11297_v8  ;;  %v11302_v12 = vld [vmem:[%s13667_s7 + $0xa00] ss:$8 sps:$4 sm:$0xff] (!%p5360_p8)   ;;  %v11305_v16 = vld [vmem:[%s13667_s7 + $0xa14] ss:$8 sps:$4 sm:$0xff] (!%p5360_p8)  }
 0x29c   : > { %9976 = vmatprep.subr.bf16.mxu0 (!%p5360_p8), %v11299_v9  ;;  %v13679_v14 = vrot.slane (!%p5360_p8), %v13665_v5, %v13672_v10  ;;  %v13682_v15 = vrot.slane (!%p5360_p8), %v6179_v7, %v13672_v10  ;;  %9567 = vmatpush1.bf16.msra.mxu1 (!%p5360_p8), %v11301_v11  ;;  %v11307_v17 = vld [vmem:[%s13667_s7 + $0x10] ss:$8 sps:$4 sm:$0xff] (!%p5360_p8)   ;;  %v11309_v21 = vld [vmem:[%s13667_s7 + $0x24] ss:$8 sps:$4 sm:$0xff] (!%p5360_p8)   ;;  %v11313_v23 = vld [vmem:[%s13667_s7 + $0x20] ss:$8 sps:$4 sm:$0xff] (!%p5360_p8)  }
 0x29d   : > { %9977 = vmatpush1.bf16.msra.mxu0 %v11302_v12  ;;  %9568 = vmatprep.subr.bf16.mxu1 %v11303_v13  ;;  %v11308_v18 = vld [vmem:[%s13667_s7 + $0xa10] ss:$8 sps:$4 sm:$0xff]   ;;  %v11311_v22 = vld [vmem:[%s13667_s7 + $0xa24] ss:$8 sps:$4 sm:$0xff]   ;;  %v11314_v24 = vld [vmem:[%s13667_s7 + $0xa20] ss:$8 sps:$4 sm:$0xff]  }
 0x29e   : > { %v6096_v19 = vcombine.high %v13679_v14, %v13679_v14  ;;  %v6195_v20 = vcombine.high %v13682_v15, %v13682_v15  ;;  %9978 = vmatprep.subr.bf16.mxu0 %v11305_v16  ;;  %v11315_v27 = vld [vmem:[%s13667_s7 + $0x34] ss:$8 sps:$4 sm:$0xff]   ;;  %v11319_v29 = vld [vmem:[%s13667_s7 + $0x30] ss:$8 sps:$4 sm:$0xff]   ;;  %v11321_v31 = vld [vmem:[%s13667_s7 + $0x44] ss:$8 sps:$4 sm:$0xff]  }
 0x29f   : > { %v11317_v28 = vld [vmem:[%s13667_s7 + $0xa34] ss:$8 sps:$4 sm:$0xff]   ;;  %v11320_v30 = vld [vmem:[%s13667_s7 + $0xa30] ss:$8 sps:$4 sm:$0xff]   ;;  %v11323_v32 = vld [vmem:[%s13667_s7 + $0xa44] ss:$8 sps:$4 sm:$0xff]  }
 0x2a0   : > { %v13696_v25 = vrot.slane %v6096_v19, %v13672_v10  ;;  %v13699_v26 = vrot.slane %v6195_v20, %v13672_v10  ;;  %9569 = vmatpush1.bf16.msra.mxu1 %v11307_v17  ;;  %v11325_v33 = vld [vmem:[%s13667_s7 + $0x40] ss:$8 sps:$4 sm:$0xff]   ;;  %v11327_v35 = vld [vmem:[%s13667_s7 + $0x54] ss:$8 sps:$4 sm:$0xff]   ;;  %v11331_v37 = vld [vmem:[%s13667_s7 + $0x50] ss:$8 sps:$4 sm:$0xff]  }
 0x2a1   : > { %9979 = vmatpush1.bf16.msra.mxu0 %v11308_v18  ;;  %9570 = vmatprep.subr.bf16.mxu1 %v11309_v21  ;;  %v11326_v34 = vld [vmem:[%s13667_s7 + $0xa40] ss:$8 sps:$4 sm:$0xff]   ;;  %v11329_v36 = vld [vmem:[%s13667_s7 + $0xa54] ss:$8 sps:$4 sm:$0xff]   ;;  %v11332_v38 = vld [vmem:[%s13667_s7 + $0xa50] ss:$8 sps:$4 sm:$0xff]  }
 0x2a2   : > { %9980 = vmatprep.subr.bf16.mxu0 %v11311_v22  ;;  %9598 = vmatprep.mubr.bf16.mxu1 %v13696_v25  ;;  %v11333_v39 = vld [vmem:[%s13667_s7 + $0x64] ss:$8 sps:$4 sm:$0xff]   ;;  %v11337_v41 = vld [vmem:[%s13667_s7 + $0x60] ss:$8 sps:$4 sm:$0xff]   ;;  %v11339_v43 = vld [vmem:[%s13667_s7 + $0x74] ss:$8 sps:$4 sm:$0xff]  }
 0x2a3   : > { %10008 = vmatprep.mubr.bf16.mxu0 %v13699_v26  ;;  %v11335_v40 = vld [vmem:[%s13667_s7 + $0xa64] ss:$8 sps:$4 sm:$0xff]   ;;  %v11338_v42 = vld [vmem:[%s13667_s7 + $0xa60] ss:$8 sps:$4 sm:$0xff]   ;;  %v11341_v44 = vld [vmem:[%s13667_s7 + $0xa74] ss:$8 sps:$4 sm:$0xff]  }
 0x2a4   : > { %9571 = vmatpush1.bf16.msra.mxu1 %v11313_v23  ;;  %v11343_v45 = vld [vmem:[%s13667_s7 + $0x70] ss:$8 sps:$4 sm:$0xff]   ;;  %v11345_v47 = vld [vmem:[%s13667_s7 + $0x84] ss:$8 sps:$4 sm:$0xff]   ;;  %v11349_v49 = vld [vmem:[%s13667_s7 + $0x80] ss:$8 sps:$4 sm:$0xff]  }
 0x2a5   : > { %9981 = vmatpush1.bf16.msra.mxu0 %v11314_v24  ;;  %9572 = vmatprep.subr.bf16.mxu1 %v11315_v27  ;;  %v11344_v46 = vld [vmem:[%s13667_s7 + $0xa70] ss:$8 sps:$4 sm:$0xff]   ;;  %v11347_v48 = vld [vmem:[%s13667_s7 + $0xa84] ss:$8 sps:$4 sm:$0xff]   ;;  %v11350_v50 = vld [vmem:[%s13667_s7 + $0xa80] ss:$8 sps:$4 sm:$0xff]   ;;  %v13761_v24 = vrot.slane %v13679_v14, %v13672_v10  ;;  %v13765_v27 = vrot.slane %v13682_v15, %v13672_v10  ;;  %v6227_v14 = vcombine.high %v13699_v26, %v13699_v26 }
 0x2a6   : > { %9982 = vmatprep.subr.bf16.mxu0 %v11317_v28  ;;  %v11351_v51 = vld [vmem:[%s13667_s7 + $0x94] ss:$8 sps:$4 sm:$0xff]   ;;  %v11355_v53 = vld [vmem:[%s13667_s7 + $0x90] ss:$8 sps:$4 sm:$0xff]   ;;  %v11357_v55 = vld [vmem:[%s13667_s7 + $0xa4] ss:$8 sps:$4 sm:$0xff]  }
 0x2a7   : > { %v11353_v52 = vld [vmem:[%s13667_s7 + $0xa94] ss:$8 sps:$4 sm:$0xff]   ;;  %v11356_v54 = vld [vmem:[%s13667_s7 + $0xa90] ss:$8 sps:$4 sm:$0xff]   ;;  %v11359_v56 = vld [vmem:[%s13667_s7 + $0xaa4] ss:$8 sps:$4 sm:$0xff]  }
 0x2a8   : > { %9573 = vmatpush1.bf16.msra.mxu1 %v11319_v29  ;;  %v11361_v57 = vld [vmem:[%s13667_s7 + $0xa0] ss:$8 sps:$4 sm:$0xff]   ;;  %v11363_v59 = vld [vmem:[%s13667_s7 + $0xb4] ss:$8 sps:$4 sm:$0xff]   ;;  %v11367_v61 = vld [vmem:[%s13667_s7 + $0xb0] ss:$8 sps:$4 sm:$0xff]  }
 0x2a9   : > { %9983 = vmatpush1.bf16.msra.mxu0 %v11320_v30  ;;  %9574 = vmatprep.subr.bf16.mxu1 %v11321_v31  ;;  %v11362_v58 = vld [vmem:[%s13667_s7 + $0xaa0] ss:$8 sps:$4 sm:$0xff]   ;;  %v11365_v60 = vld [vmem:[%s13667_s7 + $0xab4] ss:$8 sps:$4 sm:$0xff]   ;;  %v11368_v62 = vld [vmem:[%s13667_s7 + $0xab0] ss:$8 sps:$4 sm:$0xff]   ;;  %v6128_v30 = vcombine.high %v13696_v25, %v13696_v25 }
 0x2aa   : > { %9984 = vmatprep.subr.bf16.mxu0 %v11323_v32  ;;  %v11369_v63 = vld [vmem:[%s13667_s7 + $0xc4] ss:$8 sps:$4 sm:$0xff]   ;;  %v11373_v1 = vld [vmem:[%s13667_s7 + $0xc0] ss:$8 sps:$4 sm:$0xff]   ;;  %v11375_v3 = vld [vmem:[%s13667_s7 + $0xd4] ss:$8 sps:$4 sm:$0xff]  }
 0x2ab   : > { %v11371_v0 = vld [vmem:[%s13667_s7 + $0xac4] ss:$8 sps:$4 sm:$0xff]   ;;  %v11374_v2 = vld [vmem:[%s13667_s7 + $0xac0] ss:$8 sps:$4 sm:$0xff]   ;;  %v11377_v6 = vld [vmem:[%s13667_s7 + $0xad4] ss:$8 sps:$4 sm:$0xff]  }
 0x2ac   : > { %9575 = vmatpush1.bf16.msra.mxu1 %v11325_v33  ;;  %v11379_v7 = vld [vmem:[%s13667_s7 + $0xd0] ss:$8 sps:$4 sm:$0xff]   ;;  %v11381_v9 = vld [vmem:[%s13667_s7 + $0xe4] ss:$8 sps:$4 sm:$0xff]   ;;  %v11385_v12 = vld [vmem:[%s13667_s7 + $0xe0] ss:$8 sps:$4 sm:$0xff]  }
 0x2ad   : > { %9985 = vmatpush1.bf16.msra.mxu0 %v11326_v34  ;;  %9576 = vmatprep.subr.bf16.mxu1 %v11327_v35  ;;  %v11380_v8 = vld [vmem:[%s13667_s7 + $0xad0] ss:$8 sps:$4 sm:$0xff]   ;;  %v11383_v11 = vld [vmem:[%s13667_s7 + $0xae4] ss:$8 sps:$4 sm:$0xff]   ;;  %v11386_v13 = vld [vmem:[%s13667_s7 + $0xae0] ss:$8 sps:$4 sm:$0xff]  }
 0x2ae   : > { %9986 = vmatprep.subr.bf16.mxu0 %v11329_v36  ;;  %v11387_v16 = vld [vmem:[%s13667_s7 + $0xf4] ss:$8 sps:$4 sm:$0xff]   ;;  %v11391_v18 = vld [vmem:[%s13667_s7 + $0xf0] ss:$8 sps:$4 sm:$0xff]   ;;  %v11396_v20 = vld [vmem:[%s13667_s7 + $0x104] ss:$8 sps:$4 sm:$0xff]  }
 0x2af   : > { %v11389_v17 = vld [vmem:[%s13667_s7 + $0xaf4] ss:$8 sps:$4 sm:$0xff]   ;;  %v11392_v19 = vld [vmem:[%s13667_s7 + $0xaf0] ss:$8 sps:$4 sm:$0xff]   ;;  %v11400_v21 = vld [vmem:[%s13667_s7 + $0xb04] ss:$8 sps:$4 sm:$0xff]  }
 0x2b0   : > { %9577 = vmatpush1.bf16.msra.mxu1 %v11331_v37  ;;  %v11394_v22 = vld [vmem:[%s13667_s7 + $0x100] ss:$8 sps:$4 sm:$0xff]   ;;  %v11403_v28 = vld [vmem:[%s13667_s7 + $0x114] ss:$8 sps:$4 sm:$0xff]   ;;  %v11401_v15 = vld [vmem:[%s13667_s7 + $0x110] ss:$8 sps:$4 sm:$0xff]  }
 0x2b1   : > { %9987 = vmatpush1.bf16.msra.mxu0 %v11332_v38  ;;  %9578 = vmatprep.subr.bf16.mxu1 %v11333_v39  ;;  %v11398_v23 = vld [vmem:[%s13667_s7 + $0xb00] ss:$8 sps:$4 sm:$0xff]   ;;  %v11406_v29 = vld [vmem:[%s13667_s7 + $0xb14] ss:$8 sps:$4 sm:$0xff]   ;;  %v11404_v31 = vld [vmem:[%s13667_s7 + $0xb10] ss:$8 sps:$4 sm:$0xff]  }
 0x2b2   : > { %9988 = vmatprep.subr.bf16.mxu0 %v11335_v40  ;;  %v11409_v32 = vld [vmem:[%s13667_s7 + $0x124] ss:$8 sps:$4 sm:$0xff]   ;;  %v11407_v26 = vld [vmem:[%s13667_s7 + $0x120] ss:$8 sps:$4 sm:$0xff]   ;;  %v11415_v34 = vld [vmem:[%s13667_s7 + $0x134] ss:$8 sps:$4 sm:$0xff]  }
 0x2b3   : > { %v11412_v25 = vld [vmem:[%s13667_s7 + $0xb24] ss:$8 sps:$4 sm:$0xff]   ;;  %v11410_v33 = vld [vmem:[%s13667_s7 + $0xb20] ss:$8 sps:$4 sm:$0xff]   ;;  %v11418_v35 = vld [vmem:[%s13667_s7 + $0xb34] ss:$8 sps:$4 sm:$0xff]  }
 0x2b4   : > { %9579 = vmatpush1.bf16.msra.mxu1 %v11337_v41  ;;  %v11413_v36 = vld [vmem:[%s13667_s7 + $0x130] ss:$8 sps:$4 sm:$0xff]   ;;  %v11421_v38 = vld [vmem:[%s13667_s7 + $0x144] ss:$8 sps:$4 sm:$0xff]   ;;  %v11419_v40 = vld [vmem:[%s13667_s7 + $0x140] ss:$8 sps:$4 sm:$0xff]  }
 0x2b5   : > { %9989 = vmatpush1.bf16.msra.mxu0 %v11338_v42  ;;  %9580 = vmatprep.subr.bf16.mxu1 %v11339_v43  ;;  %v11416_v37 = vld [vmem:[%s13667_s7 + $0xb30] ss:$8 sps:$4 sm:$0xff]   ;;  %v11424_v39 = vld [vmem:[%s13667_s7 + $0xb44] ss:$8 sps:$4 sm:$0xff]   ;;  %v11422_v41 = vld [vmem:[%s13667_s7 + $0xb40] ss:$8 sps:$4 sm:$0xff]  }
 0x2b6   : > { %9990 = vmatprep.subr.bf16.mxu0 %v11341_v44  ;;  %v11427_v42 = vld [vmem:[%s13667_s7 + $0x154] ss:$8 sps:$4 sm:$0xff]   ;;  %v11425_v44 = vld [vmem:[%s13667_s7 + $0x150] ss:$8 sps:$4 sm:$0xff]   ;;  %s14554_s24 = smov (!%p5406_p9, %s10531_s24), 7 }
 0x2b7   : > { %v11430_v43 = vld [vmem:[%s13667_s7 + $0xb54] ss:$8 sps:$4 sm:$0xff]   ;;  %s5408_s27 = scalar_lea.vmem %s14545_s2, %s14554_s24  ;;  %s5417_s29 = scalar_lea.vmem %s14546_s3, %s14554_s24 }
 0x2b8   : > { %9581 = vmatpush1.bf16.msra.mxu1 %v11343_v45  ;;  %v11428_v45 = vld [vmem:[%s13667_s7 + $0xb50] ss:$8 sps:$4 sm:$0xff]  }
 0x2b9   : > { %9991 = vmatpush1.bf16.msra.mxu0 %v11344_v46  ;;  %9582 = vmatprep.subr.bf16.mxu1 %v11345_v47  ;;  %v11433_v46 = vld [vmem:[%s13667_s7 + $0x164] ss:$8 sps:$4 sm:$0xff]  }
 0x2ba   : > { %9992 = vmatprep.subr.bf16.mxu0 %v11347_v48  ;;  %v11436_v47 = vld [vmem:[%s13667_s7 + $0xb64] ss:$8 sps:$4 sm:$0xff]   ;;  %v11431_v48 = vld [vmem:[%s13667_s7 + $0x160] ss:$8 sps:$4 sm:$0xff]  }
 0x2bc   : > { %9583 = vmatpush1.bf16.msra.mxu1 %v11349_v49  ;;  %v11434_v49 = vld [vmem:[%s13667_s7 + $0xb60] ss:$8 sps:$4 sm:$0xff]  }
 0x2bd   : > { %9993 = vmatpush1.bf16.msra.mxu0 %v11350_v50  ;;  %9584 = vmatprep.subr.bf16.mxu1 %v11351_v51  ;;  %v11439_v50 = vld [vmem:[%s13667_s7 + $0x174] ss:$8 sps:$4 sm:$0xff]  }
 0x2be   : > { %9994 = vmatprep.subr.bf16.mxu0 %v11353_v52  ;;  %v11442_v51 = vld [vmem:[%s13667_s7 + $0xb74] ss:$8 sps:$4 sm:$0xff]   ;;  %v11437_v52 = vld [vmem:[%s13667_s7 + $0x170] ss:$8 sps:$4 sm:$0xff]  }
 0x2c0   : > { %9585 = vmatpush1.bf16.msra.mxu1 %v11355_v53  ;;  %v11440_v53 = vld [vmem:[%s13667_s7 + $0xb70] ss:$8 sps:$4 sm:$0xff]  }
 0x2c1   : > { %9995 = vmatpush1.bf16.msra.mxu0 %v11356_v54  ;;  %9586 = vmatprep.subr.bf16.mxu1 %v11357_v55  ;;  %v11445_v54 = vld [vmem:[%s13667_s7 + $0x184] ss:$8 sps:$4 sm:$0xff]  }
 0x2c2   : > { %9996 = vmatprep.subr.bf16.mxu0 %v11359_v56  ;;  %v11448_v55 = vld [vmem:[%s13667_s7 + $0xb84] ss:$8 sps:$4 sm:$0xff]   ;;  %v11443_v56 = vld [vmem:[%s13667_s7 + $0x180] ss:$8 sps:$4 sm:$0xff]  }
 0x2c4   : > { %9587 = vmatpush1.bf16.msra.mxu1 %v11361_v57  ;;  %v11446_v57 = vld [vmem:[%s13667_s7 + $0xb80] ss:$8 sps:$4 sm:$0xff]  }
 0x2c5   : > { %9997 = vmatpush1.bf16.msra.mxu0 %v11362_v58  ;;  %9588 = vmatprep.subr.bf16.mxu1 %v11363_v59  ;;  %v11451_v58 = vld [vmem:[%s13667_s7 + $0x194] ss:$8 sps:$4 sm:$0xff]  }
 0x2c6   : > { %9998 = vmatprep.subr.bf16.mxu0 %v11365_v60  ;;  %v11454_v59 = vld [vmem:[%s13667_s7 + $0xb94] ss:$8 sps:$4 sm:$0xff]   ;;  %v11449_v60 = vld [vmem:[%s13667_s7 + $0x190] ss:$8 sps:$4 sm:$0xff]  }
 0x2c8   : > { %9589 = vmatpush1.bf16.msra.mxu1 %v11367_v61  ;;  %v11452_v61 = vld [vmem:[%s13667_s7 + $0xb90] ss:$8 sps:$4 sm:$0xff]  }
 0x2c9   : > { %9999 = vmatpush1.bf16.msra.mxu0 %v11368_v62  ;;  %9590 = vmatprep.subr.bf16.mxu1 %v11369_v63  ;;  %v11457_v62 = vld [vmem:[%s13667_s7 + $0x1a4] ss:$8 sps:$4 sm:$0xff]  }
 0x2ca   : > { %10000 = vmatprep.subr.bf16.mxu0 %v11371_v0  ;;  %v11460_v63 = vld [vmem:[%s13667_s7 + $0xba4] ss:$8 sps:$4 sm:$0xff]   ;;  %v11455_v0 = vld [vmem:[%s13667_s7 + $0x1a0] ss:$8 sps:$4 sm:$0xff]  }
 0x2cc   : > { %9591 = vmatpush1.bf16.msra.mxu1 %v11373_v1  ;;  %v11458_v1 = vld [vmem:[%s13667_s7 + $0xba0] ss:$8 sps:$4 sm:$0xff]  }
 0x2cd   : > { %10001 = vmatpush1.bf16.msra.mxu0 %v11374_v2  ;;  %9592 = vmatprep.subr.bf16.mxu1 %v11375_v3  ;;  %v11463_v2 = vld [vmem:[%s13667_s7 + $0x1b4] ss:$8 sps:$4 sm:$0xff]  }
 0x2ce   : > { %10002 = vmatprep.subr.bf16.mxu0 %v11377_v6  ;;  %v11466_v3 = vld [vmem:[%s13667_s7 + $0xbb4] ss:$8 sps:$4 sm:$0xff]   ;;  %v11461_v6 = vld [vmem:[%s13667_s7 + $0x1b0] ss:$8 sps:$4 sm:$0xff]  }
 0x2d0   : > { %9593 = vmatpush1.bf16.msra.mxu1 %v11379_v7  ;;  %v11464_v7 = vld [vmem:[%s13667_s7 + $0xbb0] ss:$8 sps:$4 sm:$0xff]  }
 0x2d1   : > { %10003 = vmatpush1.bf16.msra.mxu0 %v11380_v8  ;;  %9594 = vmatprep.subr.bf16.mxu1 %v11381_v9  ;;  %v11469_v8 = vld [vmem:[%s13667_s7 + $0x1c4] ss:$8 sps:$4 sm:$0xff]  }
 0x2d2   : > { %10004 = vmatprep.subr.bf16.mxu0 %v11383_v11  ;;  %v11472_v9 = vld [vmem:[%s13667_s7 + $0xbc4] ss:$8 sps:$4 sm:$0xff]   ;;  %v11467_v11 = vld [vmem:[%s13667_s7 + $0x1c0] ss:$8 sps:$4 sm:$0xff]  }
 0x2d4   : > { %9595 = vmatpush1.bf16.msra.mxu1 %v11385_v12  ;;  %v11470_v12 = vld [vmem:[%s13667_s7 + $0xbc0] ss:$8 sps:$4 sm:$0xff]  }
 0x2d5   : > { %10005 = vmatpush1.bf16.msra.mxu0 %v11386_v13  ;;  %9596 = vmatprep.subr.bf16.mxu1 %v11387_v16  ;;  %v11475_v13 = vld [vmem:[%s13667_s7 + $0x1d4] ss:$8 sps:$4 sm:$0xff]  }
 0x2d6   : > { %10006 = vmatprep.subr.bf16.mxu0 %v11389_v17  ;;  %v11478_v16 = vld [vmem:[%s13667_s7 + $0xbd4] ss:$8 sps:$4 sm:$0xff]   ;;  %v11473_v17 = vld [vmem:[%s13667_s7 + $0x1d0] ss:$8 sps:$4 sm:$0xff]  }
 0x2d8   : > { %9597 = vmatpush1.bf16.msra.mxu1 %v11391_v18  ;;  %v11476_v18 = vld [vmem:[%s13667_s7 + $0xbd0] ss:$8 sps:$4 sm:$0xff]  }
 0x2d9   : > { %10007 = vmatpush1.bf16.msra.mxu0 %v11392_v19  ;;  %9607 = vmatprep.subr.bf16.mxu1 %v11396_v20  ;;  %v11481_v19 = vld [vmem:[%s13667_s7 + $0x1e4] ss:$8 sps:$4 sm:$0xff]  }
 0x2da   : > { %10017 = vmatprep.subr.bf16.mxu0 %v11400_v21  ;;  %v11484_v20 = vld [vmem:[%s13667_s7 + $0xbe4] ss:$8 sps:$4 sm:$0xff]   ;;  %v6081_v21 = vcombine.high %v13665_v5, %v13665_v5 }
 0x2db   : > { %9599 = vmatmul.mubr.bf16.vlgmr.msra.gmra.mrb[0].mxu1 %v13761_v24  ;;  %v11493_v5 = vld [vmem:[%s13667_s7 + $0x204] ss:$8 sps:$4 sm:$0xff]  }
 0x2dc   : > { %10009 = vmatmul.mubr.bf16.vlgmr.msra.gmra.mrb[0].mxu0 %v13765_v27  ;;  %9608 = vmatpush1.bf16.msra.mxu1 %v11394_v22  ;;  %v11479_v22 = vld [vmem:[%s13667_s7 + $0x1e0] ss:$8 sps:$4 sm:$0xff]  }
 0x2dd   : > { %10018 = vmatpush1.bf16.msra.mxu0 %v11398_v23  ;;  %9609 = vmatprep.subr.bf16.mxu1 %v11403_v28  ;;  %v11482_v23 = vld [vmem:[%s13667_s7 + $0xbe0] ss:$8 sps:$4 sm:$0xff]   ;;  %v11487_v28 = vld [vmem:[%s13667_s7 + $0x1f4] ss:$8 sps:$4 sm:$0xff]  }
 0x2de   : > { %10019 = vmatprep.subr.bf16.mxu0 %v11406_v29  ;;  %9639 = vmatprep.mubr.bf16.mxu1 %v6128_v30  ;;  %v11490_v29 = vld [vmem:[%s13667_s7 + $0xbf4] ss:$8 sps:$4 sm:$0xff]   ;;  %v13834_v30 = vrot.slane %v6081_v21, %v13672_v10  ;;  %v11557_v21 = vld [vmem:[%s13667_s7 + $0x2b0] ss:$8 sps:$4 sm:$0xff]  }
 0x2df   : > { %10049 = vmatprep.mubr.bf16.mxu0 %v6227_v14  ;;  %v11485_v14 = vld [vmem:[%s13667_s7 + $0x1f0] ss:$8 sps:$4 sm:$0xff]  }
 0x2e0   : > { %9610 = vmatpush1.bf16.msra.mxu1 %v11401_v15  ;;  %v11488_v15 = vld [vmem:[%s13667_s7 + $0xbf0] ss:$8 sps:$4 sm:$0xff]  }
 0x2e1   : > { %10020 = vmatpush1.bf16.msra.mxu0 %v11404_v31  ;;  %9611 = vmatprep.subr.bf16.mxu1 %v11409_v32  ;;  %v11496_v31 = vld [vmem:[%s13667_s7 + $0xc04] ss:$8 sps:$4 sm:$0xff]   ;;  %v6097_v32 = vcombine.high %v13834_v30, %v13834_v30 }
 0x2e2   : > { %10021 = vmatprep.subr.bf16.mxu0 %v11412_v25  ;;  %v6126_v25 = vcombine.high %v13761_v24, %v13761_v24 }
 0x2e3   : > { %v13856_v24 = vrot.slane %v6097_v32, %v13672_v10  ;;  %v11572_v32 = vld [vmem:[%s13667_s7 + $0xcd0] ss:$8 sps:$4 sm:$0xff]  }
 0x2e4   : > { %9612 = vmatpush1.bf16.msra.mxu1 %v11407_v26  ;;  %v6225_v26 = vcombine.high %v13765_v27, %v13765_v27 }
 0x2e5   : > { %10022 = vmatpush1.bf16.msra.mxu0 %v11410_v33  ;;  %9613 = vmatprep.subr.bf16.mxu1 %v11415_v34  ;;  %v11491_v33 = vld [vmem:[%s13667_s7 + $0x200] ss:$8 sps:$4 sm:$0xff]  }
 0x2e6   : > { %10023 = vmatprep.subr.bf16.mxu0 %v11418_v35  ;;  %v11494_v34 = vld [vmem:[%s13667_s7 + $0xc00] ss:$8 sps:$4 sm:$0xff]   ;;  %v11499_v35 = vld [vmem:[%s13667_s7 + $0x214] ss:$8 sps:$4 sm:$0xff]  }
 0x2e8   : > { %9614 = vmatpush1.bf16.msra.mxu1 %v11413_v36  ;;  %v11502_v36 = vld [vmem:[%s13667_s7 + $0xc14] ss:$8 sps:$4 sm:$0xff]  }
 0x2e9   : > { %10024 = vmatpush1.bf16.msra.mxu0 %v11416_v37  ;;  %9615 = vmatprep.subr.bf16.mxu1 %v11421_v38  ;;  %v13853_v37 = vld [vmem:[%s14543_s0 + $0x18] sm:$0xff] }
 0x2ea   : > { %10025 = vmatprep.subr.bf16.mxu0 %v11424_v39  ;;  %v13860_v27 = vrot.slane %v13853_v37, %v13672_v10  ;;  %v11497_v38 = vld [vmem:[%s13667_s7 + $0x210] ss:$8 sps:$4 sm:$0xff]  }
 0x2eb   : > { %v11500_v39 = vld [vmem:[%s13667_s7 + $0xc10] ss:$8 sps:$4 sm:$0xff]  }
 0x2ec   : > { %9616 = vmatpush1.bf16.msra.mxu1 %v11419_v40  ;;  %v6243_v40 = vcombine.high %v13860_v27, %v13860_v27 }
 0x2ed   : > { %10026 = vmatpush1.bf16.msra.mxu0 %v11422_v41  ;;  %9617 = vmatprep.subr.bf16.mxu1 %v11427_v42  ;;  %v11505_v41 = vld [vmem:[%s13667_s7 + $0x224] ss:$8 sps:$4 sm:$0xff]  }
 0x2ee   : > { %10027 = vmatprep.subr.bf16.mxu0 %v11430_v43  ;;  %v11508_v42 = vld [vmem:[%s13667_s7 + $0xc24] ss:$8 sps:$4 sm:$0xff]   ;;  %v13870_v43 = vrot.slane %v6243_v40, %v13672_v10 }
 0x2ef   : > { %v11589_v40 = vld [vmem:[%s13667_s7 + $0x304] ss:$8 sps:$4 sm:$0xff]  }
 0x2f0   : > { %9618 = vmatpush1.bf16.msra.mxu1 %v11425_v44  ;;  %v11503_v44 = vld [vmem:[%s13667_s7 + $0x220] ss:$8 sps:$4 sm:$0xff]  }
 0x2f1   : > { %10028 = vmatpush1.bf16.msra.mxu0 %v11428_v45  ;;  %9619 = vmatprep.subr.bf16.mxu1 %v11433_v46  ;;  %v11506_v45 = vld [vmem:[%s13667_s7 + $0xc20] ss:$8 sps:$4 sm:$0xff]   ;;  %v11511_v46 = vld [vmem:[%s13667_s7 + $0x234] ss:$8 sps:$4 sm:$0xff]  }
 0x2f2   : > { %10029 = vmatprep.subr.bf16.mxu0 %v11436_v47  ;;  %v11514_v47 = vld [vmem:[%s13667_s7 + $0xc34] ss:$8 sps:$4 sm:$0xff]  }
 0x2f4   : > { %9620 = vmatpush1.bf16.msra.mxu1 %v11431_v48  ;;  %v11509_v48 = vld [vmem:[%s13667_s7 + $0x230] ss:$8 sps:$4 sm:$0xff]  }
 0x2f5   : > { %10030 = vmatpush1.bf16.msra.mxu0 %v11434_v49  ;;  %9621 = vmatprep.subr.bf16.mxu1 %v11439_v50  ;;  %v11512_v49 = vld [vmem:[%s13667_s7 + $0xc30] ss:$8 sps:$4 sm:$0xff]   ;;  %v11517_v50 = vld [vmem:[%s13667_s7 + $0x244] ss:$8 sps:$4 sm:$0xff]  }
 0x2f6   : > { %10031 = vmatprep.subr.bf16.mxu0 %v11442_v51  ;;  %v11520_v51 = vld [vmem:[%s13667_s7 + $0xc44] ss:$8 sps:$4 sm:$0xff]  }
 0x2f8   : > { %9622 = vmatpush1.bf16.msra.mxu1 %v11437_v52  ;;  %v11515_v52 = vld [vmem:[%s13667_s7 + $0x240] ss:$8 sps:$4 sm:$0xff]  }
 0x2f9   : > { %10032 = vmatpush1.bf16.msra.mxu0 %v11440_v53  ;;  %9623 = vmatprep.subr.bf16.mxu1 %v11445_v54  ;;  %v11518_v53 = vld [vmem:[%s13667_s7 + $0xc40] ss:$8 sps:$4 sm:$0xff]   ;;  %v11523_v54 = vld [vmem:[%s13667_s7 + $0x254] ss:$8 sps:$4 sm:$0xff]  }
 0x2fa   : > { %10033 = vmatprep.subr.bf16.mxu0 %v11448_v55  ;;  %v11526_v55 = vld [vmem:[%s13667_s7 + $0xc54] ss:$8 sps:$4 sm:$0xff]  }
 0x2fc   : > { %9624 = vmatpush1.bf16.msra.mxu1 %v11443_v56  ;;  %v11521_v56 = vld [vmem:[%s13667_s7 + $0x250] ss:$8 sps:$4 sm:$0xff]  }
 0x2fd   : > { %10034 = vmatpush1.bf16.msra.mxu0 %v11446_v57  ;;  %9625 = vmatprep.subr.bf16.mxu1 %v11451_v58  ;;  %v11524_v57 = vld [vmem:[%s13667_s7 + $0xc50] ss:$8 sps:$4 sm:$0xff]   ;;  %v11529_v58 = vld [vmem:[%s13667_s7 + $0x264] ss:$8 sps:$4 sm:$0xff]  }
 0x2fe   : > { %10035 = vmatprep.subr.bf16.mxu0 %v11454_v59  ;;  %v11532_v59 = vld [vmem:[%s13667_s7 + $0xc64] ss:$8 sps:$4 sm:$0xff]  }
 0x300   : > { %9626 = vmatpush1.bf16.msra.mxu1 %v11449_v60  ;;  %v11527_v60 = vld [vmem:[%s13667_s7 + $0x260] ss:$8 sps:$4 sm:$0xff]  }
 0x301   : > { %10036 = vmatpush1.bf16.msra.mxu0 %v11452_v61  ;;  %9627 = vmatprep.subr.bf16.mxu1 %v11457_v62  ;;  %v11530_v61 = vld [vmem:[%s13667_s7 + $0xc60] ss:$8 sps:$4 sm:$0xff]   ;;  %v11535_v62 = vld [vmem:[%s13667_s7 + $0x274] ss:$8 sps:$4 sm:$0xff]  }
 0x302   : > { %10037 = vmatprep.subr.bf16.mxu0 %v11460_v63  ;;  %v11538_v63 = vld [vmem:[%s13667_s7 + $0xc74] ss:$8 sps:$4 sm:$0xff]  }
 0x304   : > { %9628 = vmatpush1.bf16.msra.mxu1 %v11455_v0  ;;  %v11533_v0 = vld [vmem:[%s13667_s7 + $0x270] ss:$8 sps:$4 sm:$0xff]  }
 0x305   : > { %10038 = vmatpush1.bf16.msra.mxu0 %v11458_v1  ;;  %9629 = vmatprep.subr.bf16.mxu1 %v11463_v2  ;;  %v11536_v1 = vld [vmem:[%s13667_s7 + $0xc70] ss:$8 sps:$4 sm:$0xff]   ;;  %v11541_v2 = vld [vmem:[%s13667_s7 + $0x284] ss:$8 sps:$4 sm:$0xff]  }
 0x306   : > { %10039 = vmatprep.subr.bf16.mxu0 %v11466_v3  ;;  %v11544_v3 = vld [vmem:[%s13667_s7 + $0xc84] ss:$8 sps:$4 sm:$0xff]  }
 0x308   : > { %9630 = vmatpush1.bf16.msra.mxu1 %v11461_v6  ;;  %v11539_v6 = vld [vmem:[%s13667_s7 + $0x280] ss:$8 sps:$4 sm:$0xff]  }
 0x309   : > { %10040 = vmatpush1.bf16.msra.mxu0 %v11464_v7  ;;  %9631 = vmatprep.subr.bf16.mxu1 %v11469_v8  ;;  %v11542_v7 = vld [vmem:[%s13667_s7 + $0xc80] ss:$8 sps:$4 sm:$0xff]   ;;  %v11547_v8 = vld [vmem:[%s13667_s7 + $0x294] ss:$8 sps:$4 sm:$0xff]  }
 0x30a   : > { %10041 = vmatprep.subr.bf16.mxu0 %v11472_v9  ;;  %v11550_v9 = vld [vmem:[%s13667_s7 + $0xc94] ss:$8 sps:$4 sm:$0xff]  }
 0x30c   : > { %9632 = vmatpush1.bf16.msra.mxu1 %v11467_v11  ;;  %v11545_v11 = vld [vmem:[%s13667_s7 + $0x290] ss:$8 sps:$4 sm:$0xff]  }
 0x30d   : > { %10042 = vmatpush1.bf16.msra.mxu0 %v11470_v12  ;;  %9633 = vmatprep.subr.bf16.mxu1 %v11475_v13  ;;  %v11548_v12 = vld [vmem:[%s13667_s7 + $0xc90] ss:$8 sps:$4 sm:$0xff]   ;;  %v11553_v13 = vld [vmem:[%s13667_s7 + $0x2a4] ss:$8 sps:$4 sm:$0xff]  }
 0x30e   : > { %10043 = vmatprep.subr.bf16.mxu0 %v11478_v16  ;;  %v11556_v16 = vld [vmem:[%s13667_s7 + $0xca4] ss:$8 sps:$4 sm:$0xff]  }
 0x310   : > { %9634 = vmatpush1.bf16.msra.mxu1 %v11473_v17  ;;  %v11551_v17 = vld [vmem:[%s13667_s7 + $0x2a0] ss:$8 sps:$4 sm:$0xff]  }
 0x311   : > { %10044 = vmatpush1.bf16.msra.mxu0 %v11476_v18  ;;  %9635 = vmatprep.subr.bf16.mxu1 %v11481_v19  ;;  %v11554_v18 = vld [vmem:[%s13667_s7 + $0xca0] ss:$8 sps:$4 sm:$0xff]   ;;  %v11559_v19 = vld [vmem:[%s13667_s7 + $0x2b4] ss:$8 sps:$4 sm:$0xff]  }
 0x312   : > { %10045 = vmatprep.subr.bf16.mxu0 %v11484_v20  ;;  %v11562_v20 = vld [vmem:[%s13667_s7 + $0xcb4] ss:$8 sps:$4 sm:$0xff]  }
 0x314   : > { %9636 = vmatpush1.bf16.msra.mxu1 %v11479_v22  ;;  %v11560_v22 = vld [vmem:[%s13667_s7 + $0xcb0] ss:$8 sps:$4 sm:$0xff]  }
 0x315   : > { %10046 = vmatpush1.bf16.msra.mxu0 %v11482_v23  ;;  %9637 = vmatprep.subr.bf16.mxu1 %v11487_v28  ;;  %v11565_v23 = vld [vmem:[%s13667_s7 + $0x2c4] ss:$8 sps:$4 sm:$0xff]  }
 0x316   : > { %10047 = vmatprep.subr.bf16.mxu0 %v11490_v29  ;;  %v11568_v28 = vld [vmem:[%s13667_s7 + $0xcc4] ss:$8 sps:$4 sm:$0xff]   ;;  %v11563_v29 = vld [vmem:[%s13667_s7 + $0x2c0] ss:$8 sps:$4 sm:$0xff]  }
 0x318   : > { %9638 = vmatpush1.bf16.msra.mxu1 %v11485_v14  ;;  %v11566_v14 = vld [vmem:[%s13667_s7 + $0xcc0] ss:$8 sps:$4 sm:$0xff]  }
 0x319   : > { %10048 = vmatpush1.bf16.msra.mxu0 %v11488_v15  ;;  %9648 = vmatprep.subr.bf16.mxu1 %v11493_v5  ;;  %v11571_v15 = vld [vmem:[%s13667_s7 + $0x2d4] ss:$8 sps:$4 sm:$0xff]  }
 0x31a   : > { %10058 = vmatprep.subr.bf16.mxu0 %v11496_v31  ;;  %v11574_v5 = vld [vmem:[%s13667_s7 + $0xcd4] ss:$8 sps:$4 sm:$0xff]   ;;  %v11569_v31 = vld [vmem:[%s13667_s7 + $0x2d0] ss:$8 sps:$4 sm:$0xff]  }
 0x31b   : > { %9640 = vmatmul.mubr.bf16.vlgmr.msra.gmra.mrb[0].mxu1 %v6126_v25  ;;  %v11577_v25 = vld [vmem:[%s13667_s7 + $0x2e4] ss:$8 sps:$4 sm:$0xff]  }
 0x31c   : > { %10050 = vmatmul.mubr.bf16.vlgmr.msra.gmra.mrb[0].mxu0 %v6225_v26  ;;  %9649 = vmatpush1.bf16.msra.mxu1 %v11491_v33  ;;  %v11580_v26 = vld [vmem:[%s13667_s7 + $0xce4] ss:$8 sps:$4 sm:$0xff]   ;;  %v11575_v33 = vld [vmem:[%s13667_s7 + $0x2e0] ss:$8 sps:$4 sm:$0xff]  }
 0x31d   : > { %10059 = vmatpush1.bf16.msra.mxu0 %v11494_v34  ;;  %9650 = vmatprep.subr.bf16.mxu1 %v11499_v35  ;;  %v11578_v34 = vld [vmem:[%s13667_s7 + $0xce0] ss:$8 sps:$4 sm:$0xff]   ;;  %v11583_v35 = vld [vmem:[%s13667_s7 + $0x2f4] ss:$8 sps:$4 sm:$0xff]  }
 0x31e   : > { %10060 = vmatprep.subr.bf16.mxu0 %v11502_v36  ;;  %9680 = vmatprep.mubr.bf16.mxu1 %v13856_v24  ;;  %v11586_v36 = vld [vmem:[%s13667_s7 + $0xcf4] ss:$8 sps:$4 sm:$0xff]  }
 0x31f   : > { %10090 = vmatprep.mubr.bf16.mxu0 %v13870_v43 }
 0x320   : > { %9651 = vmatpush1.bf16.msra.mxu1 %v11497_v38  ;;  %v11581_v38 = vld [vmem:[%s13667_s7 + $0x2f0] ss:$8 sps:$4 sm:$0xff]  }
 0x321   : > { %10061 = vmatpush1.bf16.msra.mxu0 %v11500_v39  ;;  %9652 = vmatprep.subr.bf16.mxu1 %v11505_v41  ;;  %v11584_v39 = vld [vmem:[%s13667_s7 + $0xcf0] ss:$8 sps:$4 sm:$0xff]   ;;  %v11592_v41 = vld [vmem:[%s13667_s7 + $0xd04] ss:$8 sps:$4 sm:$0xff]  }
 0x322   : > { %10062 = vmatprep.subr.bf16.mxu0 %v11508_v42  ;;  %v11587_v42 = vld [vmem:[%s13667_s7 + $0x300] ss:$8 sps:$4 sm:$0xff]  }
 0x324   : > { %9653 = vmatpush1.bf16.msra.mxu1 %v11503_v44  ;;  %v13932_v44 = vrot.slane %v13834_v30, %v13672_v10  ;;  %v6275_v30 = vcombine.high %v13870_v43, %v13870_v43  ;;  %v11599_v43 = vld [vmem:[%s13667_s7 + $0x320] ss:$8 sps:$4 sm:$0xff]  }
 0x325   : > { %10063 = vmatpush1.bf16.msra.mxu0 %v11506_v45  ;;  %9654 = vmatprep.subr.bf16.mxu1 %v11511_v46  ;;  %v13936_v45 = vrot.slane %v13860_v27, %v13672_v10  ;;  %v11590_v46 = vld [vmem:[%s13667_s7 + $0xd00] ss:$8 sps:$4 sm:$0xff]   ;;  %v11593_v27 = vld [vmem:[%s13667_s7 + $0x310] ss:$8 sps:$4 sm:$0xff]  }
 0x326   : > { %10064 = vmatprep.subr.bf16.mxu0 %v11514_v47  ;;  %v11595_v47 = vld [vmem:[%s13667_s7 + $0x314] ss:$8 sps:$4 sm:$0xff]  }
 0x328   : > { %9655 = vmatpush1.bf16.msra.mxu1 %v11509_v48  ;;  %v11598_v48 = vld [vmem:[%s13667_s7 + $0xd14] ss:$8 sps:$4 sm:$0xff]  }
 0x329   : > { %10065 = vmatpush1.bf16.msra.mxu0 %v11512_v49  ;;  %9656 = vmatprep.subr.bf16.mxu1 %v11517_v50  ;;  %v6129_v49 = vcombine.high %v13856_v24, %v13856_v24  ;;  %v11596_v50 = vld [vmem:[%s13667_s7 + $0xd10] ss:$8 sps:$4 sm:$0xff]   ;;  %v11604_v24 = vld [vmem:[%s13667_s7 + $0xd24] ss:$8 sps:$4 sm:$0xff]  }
 0x32a   : > { %10066 = vmatprep.subr.bf16.mxu0 %v11520_v51  ;;  %v11601_v51 = vld [vmem:[%s13667_s7 + $0x324] ss:$8 sps:$4 sm:$0xff]  }
 0x32c   : > { %9657 = vmatpush1.bf16.msra.mxu1 %v11515_v52  ;;  %v11602_v52 = vld [vmem:[%s13667_s7 + $0xd20] ss:$8 sps:$4 sm:$0xff]  }
 0x32d   : > { %10067 = vmatpush1.bf16.msra.mxu0 %v11518_v53  ;;  %9658 = vmatprep.subr.bf16.mxu1 %v11523_v54  ;;  %v11607_v53 = vld [vmem:[%s13667_s7 + $0x334] ss:$8 sps:$4 sm:$0xff]  }
 0x32e   : > { %10068 = vmatprep.subr.bf16.mxu0 %v11526_v55  ;;  %v11610_v54 = vld [vmem:[%s13667_s7 + $0xd34] ss:$8 sps:$4 sm:$0xff]   ;;  %v11605_v55 = vld [vmem:[%s13667_s7 + $0x330] ss:$8 sps:$4 sm:$0xff]  }
 0x330   : > { %9659 = vmatpush1.bf16.msra.mxu1 %v11521_v56  ;;  %v11608_v56 = vld [vmem:[%s13667_s7 + $0xd30] ss:$8 sps:$4 sm:$0xff]  }
 0x331   : > { %10069 = vmatpush1.bf16.msra.mxu0 %v11524_v57  ;;  %9660 = vmatprep.subr.bf16.mxu1 %v11529_v58  ;;  %v11613_v57 = vld [vmem:[%s13667_s7 + $0x344] ss:$8 sps:$4 sm:$0xff]  }
 0x332   : > { %10070 = vmatprep.subr.bf16.mxu0 %v11532_v59  ;;  %v11616_v58 = vld [vmem:[%s13667_s7 + $0xd44] ss:$8 sps:$4 sm:$0xff]   ;;  %v11611_v59 = vld [vmem:[%s13667_s7 + $0x340] ss:$8 sps:$4 sm:$0xff]  }
 0x334   : > { %9661 = vmatpush1.bf16.msra.mxu1 %v11527_v60  ;;  %v11614_v60 = vld [vmem:[%s13667_s7 + $0xd40] ss:$8 sps:$4 sm:$0xff]  }
 0x335   : > { %10071 = vmatpush1.bf16.msra.mxu0 %v11530_v61  ;;  %9662 = vmatprep.subr.bf16.mxu1 %v11535_v62  ;;  %v11619_v61 = vld [vmem:[%s13667_s7 + $0x354] ss:$8 sps:$4 sm:$0xff]  }
 0x336   : > { %10072 = vmatprep.subr.bf16.mxu0 %v11538_v63  ;;  %v11622_v62 = vld [vmem:[%s13667_s7 + $0xd54] ss:$8 sps:$4 sm:$0xff]   ;;  %v11617_v63 = vld [vmem:[%s13667_s7 + $0x350] ss:$8 sps:$4 sm:$0xff]  }
 0x338   : > { %9663 = vmatpush1.bf16.msra.mxu1 %v11533_v0  ;;  %v11620_v0 = vld [vmem:[%s13667_s7 + $0xd50] ss:$8 sps:$4 sm:$0xff]  }
 0x339   : > { %10073 = vmatpush1.bf16.msra.mxu0 %v11536_v1  ;;  %9664 = vmatprep.subr.bf16.mxu1 %v11541_v2  ;;  %v11625_v1 = vld [vmem:[%s13667_s7 + $0x364] ss:$8 sps:$4 sm:$0xff]  }
 0x33a   : > { %10074 = vmatprep.subr.bf16.mxu0 %v11544_v3  ;;  %v11628_v2 = vld [vmem:[%s13667_s7 + $0xd64] ss:$8 sps:$4 sm:$0xff]   ;;  %v11623_v3 = vld [vmem:[%s13667_s7 + $0x360] ss:$8 sps:$4 sm:$0xff]  }
 0x33c   : > { %9665 = vmatpush1.bf16.msra.mxu1 %v11539_v6  ;;  %v11626_v6 = vld [vmem:[%s13667_s7 + $0xd60] ss:$8 sps:$4 sm:$0xff]  }
 0x33d   : > { %10075 = vmatpush1.bf16.msra.mxu0 %v11542_v7  ;;  %9666 = vmatprep.subr.bf16.mxu1 %v11547_v8  ;;  %v11631_v7 = vld [vmem:[%s13667_s7 + $0x374] ss:$8 sps:$4 sm:$0xff]  }
 0x33e   : > { %10076 = vmatprep.subr.bf16.mxu0 %v11550_v9  ;;  %v11634_v8 = vld [vmem:[%s13667_s7 + $0xd74] ss:$8 sps:$4 sm:$0xff]   ;;  %v11629_v9 = vld [vmem:[%s13667_s7 + $0x370] ss:$8 sps:$4 sm:$0xff]  }
 0x340   : > { %9667 = vmatpush1.bf16.msra.mxu1 %v11545_v11  ;;  %v11632_v11 = vld [vmem:[%s13667_s7 + $0xd70] ss:$8 sps:$4 sm:$0xff]  }
 0x341   : > { %10077 = vmatpush1.bf16.msra.mxu0 %v11548_v12  ;;  %9668 = vmatprep.subr.bf16.mxu1 %v11553_v13  ;;  %v11637_v12 = vld [vmem:[%s13667_s7 + $0x384] ss:$8 sps:$4 sm:$0xff]  }
 0x342   : > { %10078 = vmatprep.subr.bf16.mxu0 %v11556_v16  ;;  %v11640_v13 = vld [vmem:[%s13667_s7 + $0xd84] ss:$8 sps:$4 sm:$0xff]   ;;  %v11635_v16 = vld [vmem:[%s13667_s7 + $0x380] ss:$8 sps:$4 sm:$0xff]  }
 0x344   : > { %9669 = vmatpush1.bf16.msra.mxu1 %v11551_v17  ;;  %v11638_v17 = vld [vmem:[%s13667_s7 + $0xd80] ss:$8 sps:$4 sm:$0xff]  }
 0x345   : > { %10079 = vmatpush1.bf16.msra.mxu0 %v11554_v18  ;;  %9670 = vmatprep.subr.bf16.mxu1 %v11559_v19  ;;  %v11643_v18 = vld [vmem:[%s13667_s7 + $0x394] ss:$8 sps:$4 sm:$0xff]  }
 0x346   : > { %10080 = vmatprep.subr.bf16.mxu0 %v11562_v20  ;;  %v11646_v19 = vld [vmem:[%s13667_s7 + $0xd94] ss:$8 sps:$4 sm:$0xff]   ;;  %v11641_v20 = vld [vmem:[%s13667_s7 + $0x390] ss:$8 sps:$4 sm:$0xff]  }
 0x348   : > { %9671 = vmatpush1.bf16.msra.mxu1 %v11557_v21  ;;  %v11644_v21 = vld [vmem:[%s13667_s7 + $0xd90] ss:$8 sps:$4 sm:$0xff]  }
 0x349   : > { %10081 = vmatpush1.bf16.msra.mxu0 %v11560_v22  ;;  %9672 = vmatprep.subr.bf16.mxu1 %v11565_v23  ;;  %v11649_v22 = vld [vmem:[%s13667_s7 + $0x3a4] ss:$8 sps:$4 sm:$0xff]  }
 0x34a   : > { %10082 = vmatprep.subr.bf16.mxu0 %v11568_v28  ;;  %v11652_v23 = vld [vmem:[%s13667_s7 + $0xda4] ss:$8 sps:$4 sm:$0xff]   ;;  %v11647_v28 = vld [vmem:[%s13667_s7 + $0x3a0] ss:$8 sps:$4 sm:$0xff]  }
 0x34c   : > { %9673 = vmatpush1.bf16.msra.mxu1 %v11563_v29  ;;  %v11650_v29 = vld [vmem:[%s13667_s7 + $0xda0] ss:$8 sps:$4 sm:$0xff]  }
 0x34d   : > { %10083 = vmatpush1.bf16.msra.mxu0 %v11566_v14  ;;  %9674 = vmatprep.subr.bf16.mxu1 %v11571_v15  ;;  %v11655_v14 = vld [vmem:[%s13667_s7 + $0x3b4] ss:$8 sps:$4 sm:$0xff]  }
 0x34e   : > { %10084 = vmatprep.subr.bf16.mxu0 %v11574_v5  ;;  %v11658_v15 = vld [vmem:[%s13667_s7 + $0xdb4] ss:$8 sps:$4 sm:$0xff]   ;;  %v11653_v5 = vld [vmem:[%s13667_s7 + $0x3b0] ss:$8 sps:$4 sm:$0xff]  }
 0x350   : > { %9675 = vmatpush1.bf16.msra.mxu1 %v11569_v31  ;;  %v11656_v31 = vld [vmem:[%s13667_s7 + $0xdb0] ss:$8 sps:$4 sm:$0xff]  }
 0x351   : > { %10085 = vmatpush1.bf16.msra.mxu0 %v11572_v32  ;;  %9676 = vmatprep.subr.bf16.mxu1 %v11577_v25  ;;  %v11661_v32 = vld [vmem:[%s13667_s7 + $0x3c4] ss:$8 sps:$4 sm:$0xff]  }
 0x352   : > { %10086 = vmatprep.subr.bf16.mxu0 %v11580_v26  ;;  %v11664_v25 = vld [vmem:[%s13667_s7 + $0xdc4] ss:$8 sps:$4 sm:$0xff]   ;;  %v11659_v26 = vld [vmem:[%s13667_s7 + $0x3c0] ss:$8 sps:$4 sm:$0xff]  }
 0x354   : > { %9677 = vmatpush1.bf16.msra.mxu1 %v11575_v33  ;;  %v11662_v33 = vld [vmem:[%s13667_s7 + $0xdc0] ss:$8 sps:$4 sm:$0xff]  }
 0x355   : > { %10087 = vmatpush1.bf16.msra.mxu0 %v11578_v34  ;;  %9678 = vmatprep.subr.bf16.mxu1 %v11583_v35  ;;  %v11667_v34 = vld [vmem:[%s13667_s7 + $0x3d4] ss:$8 sps:$4 sm:$0xff]  }
 0x356   : > { %10088 = vmatprep.subr.bf16.mxu0 %v11586_v36  ;;  %v11670_v35 = vld [vmem:[%s13667_s7 + $0xdd4] ss:$8 sps:$4 sm:$0xff]   ;;  %v11665_v36 = vld [vmem:[%s13667_s7 + $0x3d0] ss:$8 sps:$4 sm:$0xff]  }
 0x358   : > { %9679 = vmatpush1.bf16.msra.mxu1 %v11581_v38  ;;  %v11668_v38 = vld [vmem:[%s13667_s7 + $0xdd0] ss:$8 sps:$4 sm:$0xff]  }
 0x359   : > { %10089 = vmatpush1.bf16.msra.mxu0 %v11584_v39  ;;  %9689 = vmatprep.subr.bf16.mxu1 %v11589_v40  ;;  %v11673_v39 = vld [vmem:[%s13667_s7 + $0x3e4] ss:$8 sps:$4 sm:$0xff]  }
 0x35a   : > { %10099 = vmatprep.subr.bf16.mxu0 %v11592_v41  ;;  %v11676_v40 = vld [vmem:[%s13667_s7 + $0xde4] ss:$8 sps:$4 sm:$0xff]   ;;  %v6228_v41 = vcombine.high %v13853_v37, %v13853_v37  ;;  %v11677_v37 = vld [vmem:[%s13667_s7 + $0x3f0] ss:$8 sps:$4 sm:$0xff]  }
 0x35b   : > { %9681 = vmatmul.mubr.bf16.vlgmr.msra.gmra.mrb[0].mxu1 %v13932_v44 }
 0x35c   : > { %10091 = vmatmul.mubr.bf16.vlgmr.msra.gmra.mrb[0].mxu0 %v13936_v45  ;;  %9690 = vmatpush1.bf16.msra.mxu1 %v11587_v42  ;;  %v14004_v42 = vld.sshfl [vmem:[%s14543_s0 + $0x8] sm:$0xff pattern:$0x75316420] }
 0x35d   : > { %10100 = vmatpush1.bf16.msra.mxu0 %v11590_v46  ;;  %9691 = vmatprep.subr.bf16.mxu1 %v11595_v47  ;;  %v11671_v46 = vld [vmem:[%s13667_s7 + $0x3e0] ss:$8 sps:$4 sm:$0xff]  }
 0x35e   : > { %10101 = vmatprep.subr.bf16.mxu0 %v11598_v48  ;;  %9721 = vmatprep.mubr.bf16.mxu1 %v6129_v49  ;;  %v11674_v47 = vld [vmem:[%s13667_s7 + $0xde0] ss:$8 sps:$4 sm:$0xff]   ;;  %v11679_v48 = vld [vmem:[%s13667_s7 + $0x3f4] ss:$8 sps:$4 sm:$0xff]  }
 0x35f   : > { %10131 = vmatprep.mubr.bf16.mxu0 %v6275_v30  ;;  %v11682_v49 = vld [vmem:[%s13667_s7 + $0xdf4] ss:$8 sps:$4 sm:$0xff]   ;;  %v14011_v30 = vrot.slane %v6228_v41, %v13672_v10  ;;  %v11752_v41 = vld [vmem:[%s13667_s7 + $0xeb0] ss:$8 sps:$4 sm:$0xff]  }
 0x360   : > { %9692 = vmatpush1.bf16.msra.mxu1 %v11593_v27  ;;  %v11680_v27 = vld [vmem:[%s13667_s7 + $0xdf0] ss:$8 sps:$4 sm:$0xff]  }
 0x361   : > { %10102 = vmatpush1.bf16.msra.mxu0 %v11596_v50  ;;  %9693 = vmatprep.subr.bf16.mxu1 %v11601_v51  ;;  %v11685_v50 = vld [vmem:[%s13667_s7 + $0x404] ss:$8 sps:$4 sm:$0xff]  }
 0x362   : > { %10103 = vmatprep.subr.bf16.mxu0 %v11604_v24  ;;  %v11688_v51 = vld [vmem:[%s13667_s7 + $0xe04] ss:$8 sps:$4 sm:$0xff]   ;;  %v6145_v24 = vcombine.high %v14004_v42, %v14004_v42 }
 0x364   : > { %9694 = vmatpush1.bf16.msra.mxu1 %v11599_v43  ;;  %v6244_v43 = vcombine.high %v14011_v30, %v14011_v30 }
 0x365   : > { %10104 = vmatpush1.bf16.msra.mxu0 %v11602_v52  ;;  %9695 = vmatprep.subr.bf16.mxu1 %v11607_v53  ;;  %v6127_v52 = vcombine.high %v13932_v44, %v13932_v44  ;;  %v6273_v53 = vcombine.high %v13936_v45, %v13936_v45  ;;  %v11689_v45 = vld [vmem:[%s13667_s7 + $0x410] ss:$8 sps:$4 sm:$0xff]  }
 0x366   : > { %10105 = vmatprep.subr.bf16.mxu0 %v11610_v54  ;;  %v11683_v54 = vld [vmem:[%s13667_s7 + $0x400] ss:$8 sps:$4 sm:$0xff]   ;;  %v14033_v44 = vrot.slane %v6244_v43, %v13672_v10  ;;  %v11772_v43 = vld [vmem:[%s13667_s7 + $0xee4] ss:$8 sps:$4 sm:$0xff]  }
 0x368   : > { %9696 = vmatpush1.bf16.msra.mxu1 %v11605_v55  ;;  %v11686_v55 = vld [vmem:[%s13667_s7 + $0xe00] ss:$8 sps:$4 sm:$0xff]  }
 0x369   : > { %10106 = vmatpush1.bf16.msra.mxu0 %v11608_v56  ;;  %9697 = vmatprep.subr.bf16.mxu1 %v11613_v57  ;;  %v11691_v56 = vld [vmem:[%s13667_s7 + $0x414] ss:$8 sps:$4 sm:$0xff]  }
 0x36a   : > { %10107 = vmatprep.subr.bf16.mxu0 %v11616_v58  ;;  %v11694_v57 = vld [vmem:[%s13667_s7 + $0xe14] ss:$8 sps:$4 sm:$0xff]   ;;  %v14030_v58 = vrot.slane %v6145_v24, %v13672_v10  ;;  %v11769_v24 = vld [vmem:[%s13667_s7 + $0x4e4] ss:$8 sps:$4 sm:$0xff]  }
 0x36c   : > { %9698 = vmatpush1.bf16.msra.mxu1 %v11611_v59  ;;  %v11692_v59 = vld [vmem:[%s13667_s7 + $0xe10] ss:$8 sps:$4 sm:$0xff]  }
 0x36d   : > { %10108 = vmatpush1.bf16.msra.mxu0 %v11614_v60  ;;  %9699 = vmatprep.subr.bf16.mxu1 %v11619_v61  ;;  %v11697_v60 = vld [vmem:[%s13667_s7 + $0x424] ss:$8 sps:$4 sm:$0xff]  }
 0x36e   : > { %10109 = vmatprep.subr.bf16.mxu0 %v11622_v62  ;;  %v11700_v61 = vld [vmem:[%s13667_s7 + $0xe24] ss:$8 sps:$4 sm:$0xff]   ;;  %v11695_v62 = vld [vmem:[%s13667_s7 + $0x420] ss:$8 sps:$4 sm:$0xff]  }
 0x370   : > { %9700 = vmatpush1.bf16.msra.mxu1 %v11617_v63  ;;  %v11698_v63 = vld [vmem:[%s13667_s7 + $0xe20] ss:$8 sps:$4 sm:$0xff]  }
 0x371   : > { %10110 = vmatpush1.bf16.msra.mxu0 %v11620_v0  ;;  %9701 = vmatprep.subr.bf16.mxu1 %v11625_v1  ;;  %v11703_v0 = vld [vmem:[%s13667_s7 + $0x434] ss:$8 sps:$4 sm:$0xff]  }
 0x372   : > { %10111 = vmatprep.subr.bf16.mxu0 %v11628_v2  ;;  %v11706_v1 = vld [vmem:[%s13667_s7 + $0xe34] ss:$8 sps:$4 sm:$0xff]   ;;  %v11701_v2 = vld [vmem:[%s13667_s7 + $0x430] ss:$8 sps:$4 sm:$0xff]  }
 0x374   : > { %9702 = vmatpush1.bf16.msra.mxu1 %v11623_v3  ;;  %v11704_v3 = vld [vmem:[%s13667_s7 + $0xe30] ss:$8 sps:$4 sm:$0xff]  }
 0x375   : > { %10112 = vmatpush1.bf16.msra.mxu0 %v11626_v6  ;;  %9703 = vmatprep.subr.bf16.mxu1 %v11631_v7  ;;  %v11709_v6 = vld [vmem:[%s13667_s7 + $0x444] ss:$8 sps:$4 sm:$0xff]  }
 0x376   : > { %10113 = vmatprep.subr.bf16.mxu0 %v11634_v8  ;;  %v11712_v7 = vld [vmem:[%s13667_s7 + $0xe44] ss:$8 sps:$4 sm:$0xff]   ;;  %v11707_v8 = vld [vmem:[%s13667_s7 + $0x440] ss:$8 sps:$4 sm:$0xff]  }
 0x378   : > { %9704 = vmatpush1.bf16.msra.mxu1 %v11629_v9  ;;  %v11710_v9 = vld [vmem:[%s13667_s7 + $0xe40] ss:$8 sps:$4 sm:$0xff]  }
 0x379   : > { %10114 = vmatpush1.bf16.msra.mxu0 %v11632_v11  ;;  %9705 = vmatprep.subr.bf16.mxu1 %v11637_v12  ;;  %v11715_v11 = vld [vmem:[%s13667_s7 + $0x454] ss:$8 sps:$4 sm:$0xff]  }
 0x37a   : > { %10115 = vmatprep.subr.bf16.mxu0 %v11640_v13  ;;  %v11718_v12 = vld [vmem:[%s13667_s7 + $0xe54] ss:$8 sps:$4 sm:$0xff]   ;;  %v11713_v13 = vld [vmem:[%s13667_s7 + $0x450] ss:$8 sps:$4 sm:$0xff]  }
 0x37c   : > { %9706 = vmatpush1.bf16.msra.mxu1 %v11635_v16  ;;  %v11716_v16 = vld [vmem:[%s13667_s7 + $0xe50] ss:$8 sps:$4 sm:$0xff]  }
 0x37d   : > { %10116 = vmatpush1.bf16.msra.mxu0 %v11638_v17  ;;  %9707 = vmatprep.subr.bf16.mxu1 %v11643_v18  ;;  %v11721_v17 = vld [vmem:[%s13667_s7 + $0x464] ss:$8 sps:$4 sm:$0xff]  }
 0x37e   : > { %10117 = vmatprep.subr.bf16.mxu0 %v11646_v19  ;;  %v11724_v18 = vld [vmem:[%s13667_s7 + $0xe64] ss:$8 sps:$4 sm:$0xff]   ;;  %v11719_v19 = vld [vmem:[%s13667_s7 + $0x460] ss:$8 sps:$4 sm:$0xff]  }
 0x380   : > { %9708 = vmatpush1.bf16.msra.mxu1 %v11641_v20  ;;  %v11722_v20 = vld [vmem:[%s13667_s7 + $0xe60] ss:$8 sps:$4 sm:$0xff]  }
 0x381   : > { %10118 = vmatpush1.bf16.msra.mxu0 %v11644_v21  ;;  %9709 = vmatprep.subr.bf16.mxu1 %v11649_v22  ;;  %v11727_v21 = vld [vmem:[%s13667_s7 + $0x474] ss:$8 sps:$4 sm:$0xff]  }
 0x382   : > { %10119 = vmatprep.subr.bf16.mxu0 %v11652_v23  ;;  %v11730_v22 = vld [vmem:[%s13667_s7 + $0xe74] ss:$8 sps:$4 sm:$0xff]   ;;  %v11725_v23 = vld [vmem:[%s13667_s7 + $0x470] ss:$8 sps:$4 sm:$0xff]  }
 0x384   : > { %9710 = vmatpush1.bf16.msra.mxu1 %v11647_v28  ;;  %v11728_v28 = vld [vmem:[%s13667_s7 + $0xe70] ss:$8 sps:$4 sm:$0xff]  }
 0x385   : > { %10120 = vmatpush1.bf16.msra.mxu0 %v11650_v29  ;;  %9711 = vmatprep.subr.bf16.mxu1 %v11655_v14  ;;  %v11733_v29 = vld [vmem:[%s13667_s7 + $0x484] ss:$8 sps:$4 sm:$0xff]  }
 0x386   : > { %10121 = vmatprep.subr.bf16.mxu0 %v11658_v15  ;;  %v11736_v14 = vld [vmem:[%s13667_s7 + $0xe84] ss:$8 sps:$4 sm:$0xff]   ;;  %v11731_v15 = vld [vmem:[%s13667_s7 + $0x480] ss:$8 sps:$4 sm:$0xff]  }
 0x388   : > { %9712 = vmatpush1.bf16.msra.mxu1 %v11653_v5  ;;  %v11734_v5 = vld [vmem:[%s13667_s7 + $0xe80] ss:$8 sps:$4 sm:$0xff]  }
 0x389   : > { %10122 = vmatpush1.bf16.msra.mxu0 %v11656_v31  ;;  %9713 = vmatprep.subr.bf16.mxu1 %v11661_v32  ;;  %v11739_v31 = vld [vmem:[%s13667_s7 + $0x494] ss:$8 sps:$4 sm:$0xff]  }
 0x38a   : > { %10123 = vmatprep.subr.bf16.mxu0 %v11664_v25  ;;  %v11742_v32 = vld [vmem:[%s13667_s7 + $0xe94] ss:$8 sps:$4 sm:$0xff]   ;;  %v11737_v25 = vld [vmem:[%s13667_s7 + $0x490] ss:$8 sps:$4 sm:$0xff]  }
 0x38c   : > { %9714 = vmatpush1.bf16.msra.mxu1 %v11659_v26  ;;  %v11740_v26 = vld [vmem:[%s13667_s7 + $0xe90] ss:$8 sps:$4 sm:$0xff]  }
 0x38d   : > { %10124 = vmatpush1.bf16.msra.mxu0 %v11662_v33  ;;  %9715 = vmatprep.subr.bf16.mxu1 %v11667_v34  ;;  %v11745_v33 = vld [vmem:[%s13667_s7 + $0x4a4] ss:$8 sps:$4 sm:$0xff]  }
 0x38e   : > { %10125 = vmatprep.subr.bf16.mxu0 %v11670_v35  ;;  %v11748_v34 = vld [vmem:[%s13667_s7 + $0xea4] ss:$8 sps:$4 sm:$0xff]   ;;  %v11743_v35 = vld [vmem:[%s13667_s7 + $0x4a0] ss:$8 sps:$4 sm:$0xff]  }
 0x390   : > { %9716 = vmatpush1.bf16.msra.mxu1 %v11665_v36  ;;  %v11746_v36 = vld [vmem:[%s13667_s7 + $0xea0] ss:$8 sps:$4 sm:$0xff]  }
 0x391   : > { %10126 = vmatpush1.bf16.msra.mxu0 %v11668_v38  ;;  %9717 = vmatprep.subr.bf16.mxu1 %v11673_v39  ;;  %v11751_v38 = vld [vmem:[%s13667_s7 + $0x4b4] ss:$8 sps:$4 sm:$0xff]  }
 0x392   : > { %10127 = vmatprep.subr.bf16.mxu0 %v11676_v40  ;;  %v11754_v39 = vld [vmem:[%s13667_s7 + $0xeb4] ss:$8 sps:$4 sm:$0xff]   ;;  %v11749_v40 = vld [vmem:[%s13667_s7 + $0x4b0] ss:$8 sps:$4 sm:$0xff]  }
 0x394   : > { %9718 = vmatpush1.bf16.msra.mxu1 %v11671_v46  ;;  %v11757_v46 = vld [vmem:[%s13667_s7 + $0x4c4] ss:$8 sps:$4 sm:$0xff]  }
 0x395   : > { %10128 = vmatpush1.bf16.msra.mxu0 %v11674_v47  ;;  %9719 = vmatprep.subr.bf16.mxu1 %v11679_v48  ;;  %v11760_v47 = vld [vmem:[%s13667_s7 + $0xec4] ss:$8 sps:$4 sm:$0xff]   ;;  %v11755_v48 = vld [vmem:[%s13667_s7 + $0x4c0] ss:$8 sps:$4 sm:$0xff]  }
 0x396   : > { %10129 = vmatprep.subr.bf16.mxu0 %v11682_v49  ;;  %v11758_v49 = vld [vmem:[%s13667_s7 + $0xec0] ss:$8 sps:$4 sm:$0xff]  }
 0x398   : > { %9720 = vmatpush1.bf16.msra.mxu1 %v11677_v37  ;;  %v11763_v37 = vld [vmem:[%s13667_s7 + $0x4d4] ss:$8 sps:$4 sm:$0xff]  }
 0x399   : > { %10130 = vmatpush1.bf16.msra.mxu0 %v11680_v27  ;;  %9730 = vmatprep.subr.bf16.mxu1 %v11685_v50  ;;  %v11766_v27 = vld [vmem:[%s13667_s7 + $0xed4] ss:$8 sps:$4 sm:$0xff]   ;;  %v11761_v50 = vld [vmem:[%s13667_s7 + $0x4d0] ss:$8 sps:$4 sm:$0xff]  }
 0x39a   : > { %10140 = vmatprep.subr.bf16.mxu0 %v11688_v51  ;;  %v11764_v51 = vld [vmem:[%s13667_s7 + $0xed0] ss:$8 sps:$4 sm:$0xff]  }
 0x39b   : > { %9722 = vmatmul.mubr.bf16.vlgmr.msra.gmra.mrb[0].mxu1 %v6127_v52  ;;  %v11767_v52 = vld [vmem:[%s13667_s7 + $0x4e0] ss:$8 sps:$4 sm:$0xff]  }
 0x39c   : > { %10132 = vmatmul.mubr.bf16.vlgmr.msra.gmra.mrb[0].mxu0 %v6273_v53  ;;  %9731 = vmatpush1.bf16.msra.mxu1 %v11683_v54  ;;  %v11770_v53 = vld [vmem:[%s13667_s7 + $0xee0] ss:$8 sps:$4 sm:$0xff]   ;;  %v11775_v54 = vld [vmem:[%s13667_s7 + $0x4f4] ss:$8 sps:$4 sm:$0xff]  }
 0x39d   : > { %10141 = vmatpush1.bf16.msra.mxu0 %v11686_v55  ;;  %9732 = vmatprep.subr.bf16.mxu1 %v11691_v56  ;;  %v11778_v55 = vld [vmem:[%s13667_s7 + $0xef4] ss:$8 sps:$4 sm:$0xff]   ;;  %v11773_v56 = vld [vmem:[%s13667_s7 + $0x4f0] ss:$8 sps:$4 sm:$0xff]  }
 0x39e   : > { %10142 = vmatprep.subr.bf16.mxu0 %v11694_v57  ;;  %9762 = vmatprep.mubr.bf16.mxu1 %v14030_v58  ;;  %v11776_v57 = vld [vmem:[%s13667_s7 + $0xef0] ss:$8 sps:$4 sm:$0xff]  }
 0x39f   : > { %10172 = vmatprep.mubr.bf16.mxu0 %v14033_v44 }
 0x3a0   : > { %9733 = vmatpush1.bf16.msra.mxu1 %v11689_v45  ;;  %v11781_v45 = vld [vmem:[%s13667_s7 + $0x504] ss:$8 sps:$4 sm:$0xff]  }
 0x3a1   : > { %10143 = vmatpush1.bf16.msra.mxu0 %v11692_v59  ;;  %9734 = vmatprep.subr.bf16.mxu1 %v11697_v60  ;;  %v11785_v59 = vld [vmem:[%s13667_s7 + $0xf04] ss:$8 sps:$4 sm:$0xff]   ;;  %v14099_v60 = vrot.slane %v14004_v42, %v13672_v10  ;;  %v6177_v42 = vcombine.high %v14030_v58, %v14030_v58 }
 0x3a2   : > { %10144 = vmatprep.subr.bf16.mxu0 %v11700_v61  ;;  %v14103_v61 = vrot.slane %v14011_v30, %v13672_v10  ;;  %v11786_v30 = vld [vmem:[%s13667_s7 + $0x510] ss:$8 sps:$4 sm:$0xff]   ;;  %v11794_v58 = vld [vmem:[%s13667_s7 + $0x524] ss:$8 sps:$4 sm:$0xff]  }
 0x3a4   : > { %9735 = vmatpush1.bf16.msra.mxu1 %v11695_v62  ;;  %v11779_v62 = vld [vmem:[%s13667_s7 + $0x500] ss:$8 sps:$4 sm:$0xff]  }
 0x3a5   : > { %10145 = vmatpush1.bf16.msra.mxu0 %v11698_v63  ;;  %9736 = vmatprep.subr.bf16.mxu1 %v11703_v0  ;;  %v11783_v63 = vld [vmem:[%s13667_s7 + $0xf00] ss:$8 sps:$4 sm:$0xff]   ;;  %v11788_v0 = vld [vmem:[%s13667_s7 + $0x514] ss:$8 sps:$4 sm:$0xff]  }
 0x3a6   : > { %10146 = vmatprep.subr.bf16.mxu0 %v11706_v1  ;;  %v11791_v1 = vld [vmem:[%s13667_s7 + $0xf14] ss:$8 sps:$4 sm:$0xff]  }
 0x3a8   : > { %9737 = vmatpush1.bf16.msra.mxu1 %v11701_v2  ;;  %v6276_v2 = vcombine.high %v14033_v44, %v14033_v44  ;;  %v11792_v44 = vld [vmem:[%s13667_s7 + $0x520] ss:$8 sps:$4 sm:$0xff]  }
 0x3a9   : > { %10147 = vmatpush1.bf16.msra.mxu0 %v11704_v3  ;;  %9738 = vmatprep.subr.bf16.mxu1 %v11709_v6  ;;  %v11789_v3 = vld [vmem:[%s13667_s7 + $0xf10] ss:$8 sps:$4 sm:$0xff]   ;;  %v11797_v6 = vld [vmem:[%s13667_s7 + $0xf24] ss:$8 sps:$4 sm:$0xff]  }
 0x3aa   : > { %10148 = vmatprep.subr.bf16.mxu0 %v11712_v7  ;;  %v11795_v7 = vld [vmem:[%s13667_s7 + $0xf20] ss:$8 sps:$4 sm:$0xff]  }
 0x3ac   : > { %9739 = vmatpush1.bf16.msra.mxu1 %v11707_v8  ;;  %v11800_v8 = vld [vmem:[%s13667_s7 + $0x534] ss:$8 sps:$4 sm:$0xff]  }
 0x3ad   : > { %10149 = vmatpush1.bf16.msra.mxu0 %v11710_v9  ;;  %9740 = vmatprep.subr.bf16.mxu1 %v11715_v11  ;;  %v11803_v9 = vld [vmem:[%s13667_s7 + $0xf34] ss:$8 sps:$4 sm:$0xff]   ;;  %v11798_v11 = vld [vmem:[%s13667_s7 + $0x530] ss:$8 sps:$4 sm:$0xff]  }
 0x3ae   : > { %10150 = vmatprep.subr.bf16.mxu0 %v11718_v12  ;;  %v11801_v12 = vld [vmem:[%s13667_s7 + $0xf30] ss:$8 sps:$4 sm:$0xff]  }
 0x3b0   : > { %9741 = vmatpush1.bf16.msra.mxu1 %v11713_v13  ;;  %v11806_v13 = vld [vmem:[%s13667_s7 + $0x544] ss:$8 sps:$4 sm:$0xff]  }
 0x3b1   : > { %10151 = vmatpush1.bf16.msra.mxu0 %v11716_v16  ;;  %9742 = vmatprep.subr.bf16.mxu1 %v11721_v17  ;;  %v11809_v16 = vld [vmem:[%s13667_s7 + $0xf44] ss:$8 sps:$4 sm:$0xff]   ;;  %v11804_v17 = vld [vmem:[%s13667_s7 + $0x540] ss:$8 sps:$4 sm:$0xff]  }
 0x3b2   : > { %10152 = vmatprep.subr.bf16.mxu0 %v11724_v18  ;;  %v11807_v18 = vld [vmem:[%s13667_s7 + $0xf40] ss:$8 sps:$4 sm:$0xff]  }
 0x3b4   : > { %9743 = vmatpush1.bf16.msra.mxu1 %v11719_v19  ;;  %v11812_v19 = vld [vmem:[%s13667_s7 + $0x554] ss:$8 sps:$4 sm:$0xff]  }
 0x3b5   : > { %10153 = vmatpush1.bf16.msra.mxu0 %v11722_v20  ;;  %9744 = vmatprep.subr.bf16.mxu1 %v11727_v21  ;;  %v11815_v20 = vld [vmem:[%s13667_s7 + $0xf54] ss:$8 sps:$4 sm:$0xff]   ;;  %v11810_v21 = vld [vmem:[%s13667_s7 + $0x550] ss:$8 sps:$4 sm:$0xff]  }
 0x3b6   : > { %10154 = vmatprep.subr.bf16.mxu0 %v11730_v22  ;;  %v11813_v22 = vld [vmem:[%s13667_s7 + $0xf50] ss:$8 sps:$4 sm:$0xff]  }
 0x3b8   : > { %9745 = vmatpush1.bf16.msra.mxu1 %v11725_v23  ;;  %v11818_v23 = vld [vmem:[%s13667_s7 + $0x564] ss:$8 sps:$4 sm:$0xff]  }
 0x3b9   : > { %10155 = vmatpush1.bf16.msra.mxu0 %v11728_v28  ;;  %9746 = vmatprep.subr.bf16.mxu1 %v11733_v29  ;;  %v11821_v28 = vld [vmem:[%s13667_s7 + $0xf64] ss:$8 sps:$4 sm:$0xff]   ;;  %v11816_v29 = vld [vmem:[%s13667_s7 + $0x560] ss:$8 sps:$4 sm:$0xff]  }
 0x3ba   : > { %10156 = vmatprep.subr.bf16.mxu0 %v11736_v14  ;;  %v11819_v14 = vld [vmem:[%s13667_s7 + $0xf60] ss:$8 sps:$4 sm:$0xff]  }
 0x3bc   : > { %9747 = vmatpush1.bf16.msra.mxu1 %v11731_v15  ;;  %v11824_v15 = vld [vmem:[%s13667_s7 + $0x574] ss:$8 sps:$4 sm:$0xff]  }
 0x3bd   : > { %10157 = vmatpush1.bf16.msra.mxu0 %v11734_v5  ;;  %9748 = vmatprep.subr.bf16.mxu1 %v11739_v31  ;;  %v11827_v5 = vld [vmem:[%s13667_s7 + $0xf74] ss:$8 sps:$4 sm:$0xff]   ;;  %v11822_v31 = vld [vmem:[%s13667_s7 + $0x570] ss:$8 sps:$4 sm:$0xff]  }
 0x3be   : > { %10158 = vmatprep.subr.bf16.mxu0 %v11742_v32  ;;  %v11825_v32 = vld [vmem:[%s13667_s7 + $0xf70] ss:$8 sps:$4 sm:$0xff]  }
 0x3c0   : > { %9749 = vmatpush1.bf16.msra.mxu1 %v11737_v25  ;;  %v11830_v25 = vld [vmem:[%s13667_s7 + $0x584] ss:$8 sps:$4 sm:$0xff]  }
 0x3c1   : > { %10159 = vmatpush1.bf16.msra.mxu0 %v11740_v26  ;;  %9750 = vmatprep.subr.bf16.mxu1 %v11745_v33  ;;  %v11833_v26 = vld [vmem:[%s13667_s7 + $0xf84] ss:$8 sps:$4 sm:$0xff]   ;;  %v11828_v33 = vld [vmem:[%s13667_s7 + $0x580] ss:$8 sps:$4 sm:$0xff]  }
 0x3c2   : > { %10160 = vmatprep.subr.bf16.mxu0 %v11748_v34  ;;  %v11831_v34 = vld [vmem:[%s13667_s7 + $0xf80] ss:$8 sps:$4 sm:$0xff]  }
 0x3c4   : > { %9751 = vmatpush1.bf16.msra.mxu1 %v11743_v35  ;;  %v11836_v35 = vld [vmem:[%s13667_s7 + $0x594] ss:$8 sps:$4 sm:$0xff]  }
 0x3c5   : > { %10161 = vmatpush1.bf16.msra.mxu0 %v11746_v36  ;;  %9752 = vmatprep.subr.bf16.mxu1 %v11751_v38  ;;  %v11839_v36 = vld [vmem:[%s13667_s7 + $0xf94] ss:$8 sps:$4 sm:$0xff]   ;;  %v11834_v38 = vld [vmem:[%s13667_s7 + $0x590] ss:$8 sps:$4 sm:$0xff]  }
 0x3c6   : > { %10162 = vmatprep.subr.bf16.mxu0 %v11754_v39  ;;  %v11837_v39 = vld [vmem:[%s13667_s7 + $0xf90] ss:$8 sps:$4 sm:$0xff]  }
 0x3c8   : > { %9753 = vmatpush1.bf16.msra.mxu1 %v11749_v40  ;;  %v11842_v40 = vld [vmem:[%s13667_s7 + $0x5a4] ss:$8 sps:$4 sm:$0xff]  }
 0x3c9   : > { %10163 = vmatpush1.bf16.msra.mxu0 %v11752_v41  ;;  %9754 = vmatprep.subr.bf16.mxu1 %v11757_v46  ;;  %v11845_v41 = vld [vmem:[%s13667_s7 + $0xfa4] ss:$8 sps:$4 sm:$0xff]   ;;  %v11840_v46 = vld [vmem:[%s13667_s7 + $0x5a0] ss:$8 sps:$4 sm:$0xff]  }
 0x3ca   : > { %10164 = vmatprep.subr.bf16.mxu0 %v11760_v47  ;;  %v11843_v47 = vld [vmem:[%s13667_s7 + $0xfa0] ss:$8 sps:$4 sm:$0xff]  }
 0x3cc   : > { %9755 = vmatpush1.bf16.msra.mxu1 %v11755_v48  ;;  %v11848_v48 = vld [vmem:[%s13667_s7 + $0x5b4] ss:$8 sps:$4 sm:$0xff]  }
 0x3cd   : > { %10165 = vmatpush1.bf16.msra.mxu0 %v11758_v49  ;;  %9756 = vmatprep.subr.bf16.mxu1 %v11763_v37  ;;  %v11851_v49 = vld [vmem:[%s13667_s7 + $0xfb4] ss:$8 sps:$4 sm:$0xff]   ;;  %v11846_v37 = vld [vmem:[%s13667_s7 + $0x5b0] ss:$8 sps:$4 sm:$0xff]  }
 0x3ce   : > { %10166 = vmatprep.subr.bf16.mxu0 %v11766_v27  ;;  %v11849_v27 = vld [vmem:[%s13667_s7 + $0xfb0] ss:$8 sps:$4 sm:$0xff]  }
 0x3d0   : > { %9757 = vmatpush1.bf16.msra.mxu1 %v11761_v50  ;;  %v11854_v50 = vld [vmem:[%s13667_s7 + $0x5c4] ss:$8 sps:$4 sm:$0xff]  }
 0x3d1   : > { %10167 = vmatpush1.bf16.msra.mxu0 %v11764_v51  ;;  %9758 = vmatprep.subr.bf16.mxu1 %v11769_v24  ;;  %v11857_v51 = vld [vmem:[%s13667_s7 + $0xfc4] ss:$8 sps:$4 sm:$0xff]   ;;  %v11852_v24 = vld [vmem:[%s13667_s7 + $0x5c0] ss:$8 sps:$4 sm:$0xff]  }
 0x3d2   : > { %10168 = vmatprep.subr.bf16.mxu0 %v11772_v43  ;;  %v11855_v43 = vld [vmem:[%s13667_s7 + $0xfc0] ss:$8 sps:$4 sm:$0xff]  }
 0x3d4   : > { %9759 = vmatpush1.bf16.msra.mxu1 %v11767_v52  ;;  %v11860_v52 = vld [vmem:[%s13667_s7 + $0x5d4] ss:$8 sps:$4 sm:$0xff]  }
 0x3d5   : > { %10169 = vmatpush1.bf16.msra.mxu0 %v11770_v53  ;;  %9760 = vmatprep.subr.bf16.mxu1 %v11775_v54  ;;  %v11863_v53 = vld [vmem:[%s13667_s7 + $0xfd4] ss:$8 sps:$4 sm:$0xff]   ;;  %v11858_v54 = vld [vmem:[%s13667_s7 + $0x5d0] ss:$8 sps:$4 sm:$0xff]  }
 0x3d6   : > { %10170 = vmatprep.subr.bf16.mxu0 %v11778_v55  ;;  %v11861_v55 = vld [vmem:[%s13667_s7 + $0xfd0] ss:$8 sps:$4 sm:$0xff]  }
 0x3d8   : > { %9761 = vmatpush1.bf16.msra.mxu1 %v11773_v56  ;;  %v11866_v56 = vld [vmem:[%s13667_s7 + $0x5e4] ss:$8 sps:$4 sm:$0xff]  }
 0x3d9   : > { %10171 = vmatpush1.bf16.msra.mxu0 %v11776_v57  ;;  %9771 = vmatprep.subr.bf16.mxu1 %v11781_v45  ;;  %v11869_v57 = vld [vmem:[%s13667_s7 + $0xfe4] ss:$8 sps:$4 sm:$0xff]  }
 0x3da   : > { %10181 = vmatprep.subr.bf16.mxu0 %v11785_v59  ;;  %v14170_v45 = vld [vmem:[%s14543_s0 + $0x20] sm:$0xff]  ;;  %v12262_v59 = vld [vmem:[%s14543_s0 + $0x8] sm:$0xff] }
 0x3db   : > { %9763 = vmatmul.mubr.bf16.vlgmr.msra.gmra.mrb[0].mxu1 %v14099_v60 }
 0x3dc   : > { %10173 = vmatmul.mubr.bf16.vlgmr.msra.gmra.mrb[0].mxu0 %v14103_v61  ;;  %9772 = vmatpush1.bf16.msra.mxu1 %v11779_v62  ;;  %v6130_v62 = vcombine.high %v12262_v59, %v12262_v59  ;;  %v11947_v59 = vld [vmem:[%s13667_s7 + $0x10b4] ss:$8 sps:$4 sm:$0xff]  }
 0x3dd   : > { %10182 = vmatpush1.bf16.msra.mxu0 %v11783_v63  ;;  %9773 = vmatprep.subr.bf16.mxu1 %v11788_v0  ;;  %v11864_v63 = vld [vmem:[%s13667_s7 + $0x5e0] ss:$8 sps:$4 sm:$0xff]  }
 0x3de   : > { %10183 = vmatprep.subr.bf16.mxu0 %v11791_v1  ;;  %9803 = vmatprep.mubr.bf16.mxu1 %v6177_v42  ;;  %v11867_v0 = vld [vmem:[%s13667_s7 + $0xfe0] ss:$8 sps:$4 sm:$0xff]   ;;  %v11872_v1 = vld [vmem:[%s13667_s7 + $0x5f4] ss:$8 sps:$4 sm:$0xff]  }
 0x3df   : > { %10213 = vmatprep.mubr.bf16.mxu0 %v6276_v2  ;;  %v11875_v42 = vld [vmem:[%s13667_s7 + $0xff4] ss:$8 sps:$4 sm:$0xff]   ;;  %v14180_v2 = vrot.slane %v6130_v62, %v13672_v10  ;;  %v11942_v62 = vld [vmem:[%s13667_s7 + $0x6b0] ss:$8 sps:$4 sm:$0xff]  }
 0x3e0   : > { %9774 = vmatpush1.bf16.msra.mxu1 %v11786_v30  ;;  %v14184_v30 = vrot.slane %v14170_v45, %v13672_v10 }
 0x3e1   : > { %10184 = vmatpush1.bf16.msra.mxu0 %v11789_v3  ;;  %9775 = vmatprep.subr.bf16.mxu1 %v11794_v58  ;;  %v11870_v3 = vld [vmem:[%s13667_s7 + $0x5f0] ss:$8 sps:$4 sm:$0xff]  }
 0x3e2   : > { %10185 = vmatprep.subr.bf16.mxu0 %v11797_v6  ;;  %v11873_v58 = vld [vmem:[%s13667_s7 + $0xff0] ss:$8 sps:$4 sm:$0xff]   ;;  %v11878_v6 = vld [vmem:[%s13667_s7 + $0x604] ss:$8 sps:$4 sm:$0xff]  }
 0x3e4   : > { %9776 = vmatpush1.bf16.msra.mxu1 %v11792_v44  ;;  %v11881_v44 = vld [vmem:[%s13667_s7 + $0x1004] ss:$8 sps:$4 sm:$0xff]  }
 0x3e5   : > { %10186 = vmatpush1.bf16.msra.mxu0 %v11795_v7  ;;  %9777 = vmatprep.subr.bf16.mxu1 %v11800_v8  ;;  %v6146_v7 = vcombine.high %v14180_v2, %v14180_v2  ;;  %v6292_v8 = vcombine.high %v14184_v30, %v14184_v30 }
 0x3e6   : > { %10187 = vmatprep.subr.bf16.mxu0 %v11803_v9  ;;  %v6175_v9 = vcombine.high %v14099_v60, %v14099_v60 }
 0x3e7   : > { %v14206_v60 = vrot.slane %v6292_v8, %v13672_v10  ;;  %v11962_v8 = vld [vmem:[%s13667_s7 + $0x6e4] ss:$8 sps:$4 sm:$0xff]  }
 0x3e8   : > { %9778 = vmatpush1.bf16.msra.mxu1 %v11798_v11  ;;  %v6274_v11 = vcombine.high %v14103_v61, %v14103_v61  ;;  %v11882_v61 = vld [vmem:[%s13667_s7 + $0x610] ss:$8 sps:$4 sm:$0xff]  }
 0x3e9   : > { %10188 = vmatpush1.bf16.msra.mxu0 %v11801_v12  ;;  %9779 = vmatprep.subr.bf16.mxu1 %v11806_v13  ;;  %v11876_v12 = vld [vmem:[%s13667_s7 + $0x600] ss:$8 sps:$4 sm:$0xff]  }
 0x3ea   : > { %10189 = vmatprep.subr.bf16.mxu0 %v11809_v16  ;;  %v11879_v13 = vld [vmem:[%s13667_s7 + $0x1000] ss:$8 sps:$4 sm:$0xff]   ;;  %v11884_v16 = vld [vmem:[%s13667_s7 + $0x614] ss:$8 sps:$4 sm:$0xff]  }
 0x3ec   : > { %9780 = vmatpush1.bf16.msra.mxu1 %v11804_v17  ;;  %v11887_v17 = vld [vmem:[%s13667_s7 + $0x1014] ss:$8 sps:$4 sm:$0xff]  }
 0x3ed   : > { %10190 = vmatpush1.bf16.msra.mxu0 %v11807_v18  ;;  %9781 = vmatprep.subr.bf16.mxu1 %v11812_v19  ;;  %v14203_v18 = vrot.slane %v6146_v7, %v13672_v10  ;;  %v11885_v19 = vld [vmem:[%s13667_s7 + $0x1010] ss:$8 sps:$4 sm:$0xff]  }
 0x3ee   : > { %10191 = vmatprep.subr.bf16.mxu0 %v11815_v20  ;;  %v11890_v20 = vld [vmem:[%s13667_s7 + $0x624] ss:$8 sps:$4 sm:$0xff]   ;;  %v11957_v7 = vld [vmem:[%s13667_s7 + $0x10d0] ss:$8 sps:$4 sm:$0xff]  }
 0x3f0   : > { %9782 = vmatpush1.bf16.msra.mxu1 %v11810_v21  ;;  %v11893_v21 = vld [vmem:[%s13667_s7 + $0x1024] ss:$8 sps:$4 sm:$0xff]  }
 0x3f1   : > { %10192 = vmatpush1.bf16.msra.mxu0 %v11813_v22  ;;  %9783 = vmatprep.subr.bf16.mxu1 %v11818_v23  ;;  %v11888_v22 = vld [vmem:[%s13667_s7 + $0x620] ss:$8 sps:$4 sm:$0xff]  }
 0x3f2   : > { %10193 = vmatprep.subr.bf16.mxu0 %v11821_v28  ;;  %v11891_v23 = vld [vmem:[%s13667_s7 + $0x1020] ss:$8 sps:$4 sm:$0xff]   ;;  %v11896_v28 = vld [vmem:[%s13667_s7 + $0x634] ss:$8 sps:$4 sm:$0xff]  }
 0x3f4   : > { %9784 = vmatpush1.bf16.msra.mxu1 %v11816_v29  ;;  %v11899_v29 = vld [vmem:[%s13667_s7 + $0x1034] ss:$8 sps:$4 sm:$0xff]  }
 0x3f5   : > { %10194 = vmatpush1.bf16.msra.mxu0 %v11819_v14  ;;  %9785 = vmatprep.subr.bf16.mxu1 %v11824_v15  ;;  %v11894_v14 = vld [vmem:[%s13667_s7 + $0x630] ss:$8 sps:$4 sm:$0xff]  }
 0x3f6   : > { %10195 = vmatprep.subr.bf16.mxu0 %v11827_v5  ;;  %v11897_v15 = vld [vmem:[%s13667_s7 + $0x1030] ss:$8 sps:$4 sm:$0xff]   ;;  %v11902_v5 = vld [vmem:[%s13667_s7 + $0x644] ss:$8 sps:$4 sm:$0xff]  }
 0x3f8   : > { %9786 = vmatpush1.bf16.msra.mxu1 %v11822_v31  ;;  %v11905_v31 = vld [vmem:[%s13667_s7 + $0x1044] ss:$8 sps:$4 sm:$0xff]  }
 0x3f9   : > { %10196 = vmatpush1.bf16.msra.mxu0 %v11825_v32  ;;  %9787 = vmatprep.subr.bf16.mxu1 %v11830_v25  ;;  %v11900_v32 = vld [vmem:[%s13667_s7 + $0x640] ss:$8 sps:$4 sm:$0xff]  }
 0x3fa   : > { %10197 = vmatprep.subr.bf16.mxu0 %v11833_v26  ;;  %v11903_v25 = vld [vmem:[%s13667_s7 + $0x1040] ss:$8 sps:$4 sm:$0xff]   ;;  %v11908_v26 = vld [vmem:[%s13667_s7 + $0x654] ss:$8 sps:$4 sm:$0xff]  }
 0x3fc   : > { %9788 = vmatpush1.bf16.msra.mxu1 %v11828_v33  ;;  %v11911_v33 = vld [vmem:[%s13667_s7 + $0x1054] ss:$8 sps:$4 sm:$0xff]  }
 0x3fd   : > { %10198 = vmatpush1.bf16.msra.mxu0 %v11831_v34  ;;  %9789 = vmatprep.subr.bf16.mxu1 %v11836_v35  ;;  %v11906_v34 = vld [vmem:[%s13667_s7 + $0x650] ss:$8 sps:$4 sm:$0xff]  }
 0x3fe   : > { %10199 = vmatprep.subr.bf16.mxu0 %v11839_v36  ;;  %v11909_v35 = vld [vmem:[%s13667_s7 + $0x1050] ss:$8 sps:$4 sm:$0xff]   ;;  %v11914_v36 = vld [vmem:[%s13667_s7 + $0x664] ss:$8 sps:$4 sm:$0xff]  }
 0x400   : > { %9790 = vmatpush1.bf16.msra.mxu1 %v11834_v38  ;;  %v11917_v38 = vld [vmem:[%s13667_s7 + $0x1064] ss:$8 sps:$4 sm:$0xff]  }
 0x401   : > { %10200 = vmatpush1.bf16.msra.mxu0 %v11837_v39  ;;  %9791 = vmatprep.subr.bf16.mxu1 %v11842_v40  ;;  %v11912_v39 = vld [vmem:[%s13667_s7 + $0x660] ss:$8 sps:$4 sm:$0xff]  }
 0x402   : > { %10201 = vmatprep.subr.bf16.mxu0 %v11845_v41  ;;  %v11915_v40 = vld [vmem:[%s13667_s7 + $0x1060] ss:$8 sps:$4 sm:$0xff]   ;;  %v11920_v41 = vld [vmem:[%s13667_s7 + $0x674] ss:$8 sps:$4 sm:$0xff]  }
 0x404   : > { %9792 = vmatpush1.bf16.msra.mxu1 %v11840_v46  ;;  %v11923_v46 = vld [vmem:[%s13667_s7 + $0x1074] ss:$8 sps:$4 sm:$0xff]  }
 0x405   : > { %10202 = vmatpush1.bf16.msra.mxu0 %v11843_v47  ;;  %9793 = vmatprep.subr.bf16.mxu1 %v11848_v48  ;;  %v11918_v47 = vld [vmem:[%s13667_s7 + $0x670] ss:$8 sps:$4 sm:$0xff]  }
 0x406   : > { %10203 = vmatprep.subr.bf16.mxu0 %v11851_v49  ;;  %v11921_v48 = vld [vmem:[%s13667_s7 + $0x1070] ss:$8 sps:$4 sm:$0xff]   ;;  %v11926_v49 = vld [vmem:[%s13667_s7 + $0x684] ss:$8 sps:$4 sm:$0xff]  }
 0x408   : > { %9794 = vmatpush1.bf16.msra.mxu1 %v11846_v37  ;;  %v11929_v37 = vld [vmem:[%s13667_s7 + $0x1084] ss:$8 sps:$4 sm:$0xff]  }
 0x409   : > { %10204 = vmatpush1.bf16.msra.mxu0 %v11849_v27  ;;  %9795 = vmatprep.subr.bf16.mxu1 %v11854_v50  ;;  %v11924_v27 = vld [vmem:[%s13667_s7 + $0x680] ss:$8 sps:$4 sm:$0xff]  }
 0x40a   : > { %10205 = vmatprep.subr.bf16.mxu0 %v11857_v51  ;;  %v11927_v50 = vld [vmem:[%s13667_s7 + $0x1080] ss:$8 sps:$4 sm:$0xff]   ;;  %v11932_v51 = vld [vmem:[%s13667_s7 + $0x694] ss:$8 sps:$4 sm:$0xff]  }
 0x40c   : > { %9796 = vmatpush1.bf16.msra.mxu1 %v11852_v24  ;;  %v11935_v24 = vld [vmem:[%s13667_s7 + $0x1094] ss:$8 sps:$4 sm:$0xff]  }
 0x40d   : > { %10206 = vmatpush1.bf16.msra.mxu0 %v11855_v43  ;;  %9797 = vmatprep.subr.bf16.mxu1 %v11860_v52  ;;  %v11930_v43 = vld [vmem:[%s13667_s7 + $0x690] ss:$8 sps:$4 sm:$0xff]  }
 0x40e   : > { %10207 = vmatprep.subr.bf16.mxu0 %v11863_v53  ;;  %v11933_v52 = vld [vmem:[%s13667_s7 + $0x1090] ss:$8 sps:$4 sm:$0xff]   ;;  %v11938_v53 = vld [vmem:[%s13667_s7 + $0x6a4] ss:$8 sps:$4 sm:$0xff]  }
 0x410   : > { %9798 = vmatpush1.bf16.msra.mxu1 %v11858_v54  ;;  %v11941_v54 = vld [vmem:[%s13667_s7 + $0x10a4] ss:$8 sps:$4 sm:$0xff]  }
 0x411   : > { %10208 = vmatpush1.bf16.msra.mxu0 %v11861_v55  ;;  %9799 = vmatprep.subr.bf16.mxu1 %v11866_v56  ;;  %v11936_v55 = vld [vmem:[%s13667_s7 + $0x6a0] ss:$8 sps:$4 sm:$0xff]  }
 0x412   : > { %10209 = vmatprep.subr.bf16.mxu0 %v11869_v57  ;;  %v11939_v56 = vld [vmem:[%s13667_s7 + $0x10a0] ss:$8 sps:$4 sm:$0xff]   ;;  %v11944_v57 = vld [vmem:[%s13667_s7 + $0x6b4] ss:$8 sps:$4 sm:$0xff]  }
 0x414   : > { %9800 = vmatpush1.bf16.msra.mxu1 %v11864_v63  ;;  %v11945_v63 = vld [vmem:[%s13667_s7 + $0x10b0] ss:$8 sps:$4 sm:$0xff]  }
 0x415   : > { %10210 = vmatpush1.bf16.msra.mxu0 %v11867_v0  ;;  %9801 = vmatprep.subr.bf16.mxu1 %v11872_v1  ;;  %v11950_v0 = vld [vmem:[%s13667_s7 + $0x6c4] ss:$8 sps:$4 sm:$0xff]  }
 0x416   : > { %10211 = vmatprep.subr.bf16.mxu0 %v11875_v42  ;;  %v11953_v1 = vld [vmem:[%s13667_s7 + $0x10c4] ss:$8 sps:$4 sm:$0xff]   ;;  %v11948_v42 = vld [vmem:[%s13667_s7 + $0x6c0] ss:$8 sps:$4 sm:$0xff]  }
 0x418   : > { %9802 = vmatpush1.bf16.msra.mxu1 %v11870_v3  ;;  %v11951_v3 = vld [vmem:[%s13667_s7 + $0x10c0] ss:$8 sps:$4 sm:$0xff]  }
 0x419   : > { %10212 = vmatpush1.bf16.msra.mxu0 %v11873_v58  ;;  %9812 = vmatprep.subr.bf16.mxu1 %v11878_v6  ;;  %v11956_v58 = vld [vmem:[%s13667_s7 + $0x6d4] ss:$8 sps:$4 sm:$0xff]  }
 0x41a   : > { %10222 = vmatprep.subr.bf16.mxu0 %v11881_v44  ;;  %v11959_v6 = vld [vmem:[%s13667_s7 + $0x10d4] ss:$8 sps:$4 sm:$0xff]   ;;  %v11954_v44 = vld [vmem:[%s13667_s7 + $0x6d0] ss:$8 sps:$4 sm:$0xff]  }
 0x41b   : > { %9804 = vmatmul.mubr.bf16.vlgmr.msra.gmra.mrb[0].mxu1 %v6175_v9  ;;  %v11965_v9 = vld [vmem:[%s13667_s7 + $0x10e4] ss:$8 sps:$4 sm:$0xff]  }
 0x41c   : > { %10214 = vmatmul.mubr.bf16.vlgmr.msra.gmra.mrb[0].mxu0 %v6274_v11  ;;  %9813 = vmatpush1.bf16.msra.mxu1 %v11876_v12  ;;  %v11960_v11 = vld [vmem:[%s13667_s7 + $0x6e0] ss:$8 sps:$4 sm:$0xff]  }
 0x41d   : > { %10223 = vmatpush1.bf16.msra.mxu0 %v11879_v13  ;;  %9814 = vmatprep.subr.bf16.mxu1 %v11884_v16  ;;  %v11963_v12 = vld [vmem:[%s13667_s7 + $0x10e0] ss:$8 sps:$4 sm:$0xff]   ;;  %v11968_v13 = vld [vmem:[%s13667_s7 + $0x6f4] ss:$8 sps:$4 sm:$0xff]  }
 0x41e   : > { %10224 = vmatprep.subr.bf16.mxu0 %v11887_v17  ;;  %9844 = vmatprep.mubr.bf16.mxu1 %v14203_v18  ;;  %v11971_v16 = vld [vmem:[%s13667_s7 + $0x10f4] ss:$8 sps:$4 sm:$0xff]   ;;  %v11966_v17 = vld [vmem:[%s13667_s7 + $0x6f0] ss:$8 sps:$4 sm:$0xff]  }
 0x41f   : > { %10254 = vmatprep.mubr.bf16.mxu0 %v14206_v60 }
 0x420   : > { %9815 = vmatpush1.bf16.msra.mxu1 %v11882_v61  ;;  %v11969_v61 = vld [vmem:[%s13667_s7 + $0x10f0] ss:$8 sps:$4 sm:$0xff]  }
 0x421   : > { %10225 = vmatpush1.bf16.msra.mxu0 %v11885_v19  ;;  %9816 = vmatprep.subr.bf16.mxu1 %v11890_v20  ;;  %v11975_v19 = vld [vmem:[%s13667_s7 + $0x704] ss:$8 sps:$4 sm:$0xff]  }
 0x422   : > { %10226 = vmatprep.subr.bf16.mxu0 %v11893_v21  ;;  %v11978_v20 = vld [vmem:[%s13667_s7 + $0x1104] ss:$8 sps:$4 sm:$0xff]   ;;  %v14272_v21 = vrot.slane %v14180_v2, %v13672_v10  ;;  %v6178_v2 = vcombine.high %v14203_v18, %v14203_v18 }
 0x423   : > { %v11987_v18 = vld [vmem:[%s13667_s7 + $0x724] ss:$8 sps:$4 sm:$0xff]  }
 0x424   : > { %9817 = vmatpush1.bf16.msra.mxu1 %v11888_v22  ;;  %v14276_v22 = vrot.slane %v14184_v30, %v13672_v10  ;;  %v11979_v30 = vld [vmem:[%s13667_s7 + $0x710] ss:$8 sps:$4 sm:$0xff]  }
 0x425   : > { %10227 = vmatpush1.bf16.msra.mxu0 %v11891_v23  ;;  %9818 = vmatprep.subr.bf16.mxu1 %v11896_v28  ;;  %v11973_v23 = vld [vmem:[%s13667_s7 + $0x700] ss:$8 sps:$4 sm:$0xff]  }
 0x426   : > { %10228 = vmatprep.subr.bf16.mxu0 %v11899_v29  ;;  %v11976_v28 = vld [vmem:[%s13667_s7 + $0x1100] ss:$8 sps:$4 sm:$0xff]   ;;  %v11981_v29 = vld [vmem:[%s13667_s7 + $0x714] ss:$8 sps:$4 sm:$0xff]  }
 0x428   : > { %9819 = vmatpush1.bf16.msra.mxu1 %v11894_v14  ;;  %v11984_v14 = vld [vmem:[%s13667_s7 + $0x1114] ss:$8 sps:$4 sm:$0xff]  }
 0x429   : > { %10229 = vmatpush1.bf16.msra.mxu0 %v11897_v15  ;;  %9820 = vmatprep.subr.bf16.mxu1 %v11902_v5  ;;  %v6324_v15 = vcombine.high %v14206_v60, %v14206_v60  ;;  %v11982_v5 = vld [vmem:[%s13667_s7 + $0x1110] ss:$8 sps:$4 sm:$0xff]   ;;  %v11985_v60 = vld [vmem:[%s13667_s7 + $0x720] ss:$8 sps:$4 sm:$0xff]  }
 0x42a   : > { %10230 = vmatprep.subr.bf16.mxu0 %v11905_v31  ;;  %v11990_v31 = vld [vmem:[%s13667_s7 + $0x1124] ss:$8 sps:$4 sm:$0xff]  }
 0x42c   : > { %9821 = vmatpush1.bf16.msra.mxu1 %v11900_v32  ;;  %v11988_v32 = vld [vmem:[%s13667_s7 + $0x1120] ss:$8 sps:$4 sm:$0xff]  }
 0x42d   : > { %10231 = vmatpush1.bf16.msra.mxu0 %v11903_v25  ;;  %9822 = vmatprep.subr.bf16.mxu1 %v11908_v26  ;;  %v11993_v25 = vld [vmem:[%s13667_s7 + $0x734] ss:$8 sps:$4 sm:$0xff]  }
 0x42e   : > { %10232 = vmatprep.subr.bf16.mxu0 %v11911_v33  ;;  %v11996_v26 = vld [vmem:[%s13667_s7 + $0x1134] ss:$8 sps:$4 sm:$0xff]   ;;  %v11991_v33 = vld [vmem:[%s13667_s7 + $0x730] ss:$8 sps:$4 sm:$0xff]  }
 0x430   : > { %9823 = vmatpush1.bf16.msra.mxu1 %v11906_v34  ;;  %v11994_v34 = vld [vmem:[%s13667_s7 + $0x1130] ss:$8 sps:$4 sm:$0xff]  }
 0x431   : > { %10233 = vmatpush1.bf16.msra.mxu0 %v11909_v35  ;;  %9824 = vmatprep.subr.bf16.mxu1 %v11914_v36  ;;  %v11999_v35 = vld [vmem:[%s13667_s7 + $0x744] ss:$8 sps:$4 sm:$0xff]  }
 0x432   : > { %10234 = vmatprep.subr.bf16.mxu0 %v11917_v38  ;;  %v12002_v36 = vld [vmem:[%s13667_s7 + $0x1144] ss:$8 sps:$4 sm:$0xff]   ;;  %v11997_v38 = vld [vmem:[%s13667_s7 + $0x740] ss:$8 sps:$4 sm:$0xff]  }
 0x434   : > { %9825 = vmatpush1.bf16.msra.mxu1 %v11912_v39  ;;  %v12000_v39 = vld [vmem:[%s13667_s7 + $0x1140] ss:$8 sps:$4 sm:$0xff]  }
 0x435   : > { %10235 = vmatpush1.bf16.msra.mxu0 %v11915_v40  ;;  %9826 = vmatprep.subr.bf16.mxu1 %v11920_v41  ;;  %v12005_v40 = vld [vmem:[%s13667_s7 + $0x754] ss:$8 sps:$4 sm:$0xff]  }
 0x436   : > { %10236 = vmatprep.subr.bf16.mxu0 %v11923_v46  ;;  %v12008_v41 = vld [vmem:[%s13667_s7 + $0x1154] ss:$8 sps:$4 sm:$0xff]   ;;  %v12003_v46 = vld [vmem:[%s13667_s7 + $0x750] ss:$8 sps:$4 sm:$0xff]  }
 0x438   : > { %9827 = vmatpush1.bf16.msra.mxu1 %v11918_v47  ;;  %v12006_v47 = vld [vmem:[%s13667_s7 + $0x1150] ss:$8 sps:$4 sm:$0xff]  }
 0x439   : > { %10237 = vmatpush1.bf16.msra.mxu0 %v11921_v48  ;;  %9828 = vmatprep.subr.bf16.mxu1 %v11926_v49  ;;  %v12011_v48 = vld [vmem:[%s13667_s7 + $0x764] ss:$8 sps:$4 sm:$0xff]  }
 0x43a   : > { %10238 = vmatprep.subr.bf16.mxu0 %v11929_v37  ;;  %v12014_v49 = vld [vmem:[%s13667_s7 + $0x1164] ss:$8 sps:$4 sm:$0xff]   ;;  %v12009_v37 = vld [vmem:[%s13667_s7 + $0x760] ss:$8 sps:$4 sm:$0xff]  }
 0x43c   : > { %9829 = vmatpush1.bf16.msra.mxu1 %v11924_v27  ;;  %v12012_v27 = vld [vmem:[%s13667_s7 + $0x1160] ss:$8 sps:$4 sm:$0xff]  }
 0x43d   : > { %10239 = vmatpush1.bf16.msra.mxu0 %v11927_v50  ;;  %9830 = vmatprep.subr.bf16.mxu1 %v11932_v51  ;;  %v12017_v50 = vld [vmem:[%s13667_s7 + $0x774] ss:$8 sps:$4 sm:$0xff]  }
 0x43e   : > { %10240 = vmatprep.subr.bf16.mxu0 %v11935_v24  ;;  %v12020_v51 = vld [vmem:[%s13667_s7 + $0x1174] ss:$8 sps:$4 sm:$0xff]   ;;  %v12015_v24 = vld [vmem:[%s13667_s7 + $0x770] ss:$8 sps:$4 sm:$0xff]  }
 0x440   : > { %9831 = vmatpush1.bf16.msra.mxu1 %v11930_v43  ;;  %v12018_v43 = vld [vmem:[%s13667_s7 + $0x1170] ss:$8 sps:$4 sm:$0xff]  }
 0x441   : > { %10241 = vmatpush1.bf16.msra.mxu0 %v11933_v52  ;;  %9832 = vmatprep.subr.bf16.mxu1 %v11938_v53  ;;  %v12023_v52 = vld [vmem:[%s13667_s7 + $0x784] ss:$8 sps:$4 sm:$0xff]  }
 0x442   : > { %10242 = vmatprep.subr.bf16.mxu0 %v11941_v54  ;;  %v12026_v53 = vld [vmem:[%s13667_s7 + $0x1184] ss:$8 sps:$4 sm:$0xff]   ;;  %v12021_v54 = vld [vmem:[%s13667_s7 + $0x780] ss:$8 sps:$4 sm:$0xff]  }
 0x444   : > { %9833 = vmatpush1.bf16.msra.mxu1 %v11936_v55  ;;  %v12024_v55 = vld [vmem:[%s13667_s7 + $0x1180] ss:$8 sps:$4 sm:$0xff]  }
 0x445   : > { %10243 = vmatpush1.bf16.msra.mxu0 %v11939_v56  ;;  %9834 = vmatprep.subr.bf16.mxu1 %v11944_v57  ;;  %v12029_v56 = vld [vmem:[%s13667_s7 + $0x794] ss:$8 sps:$4 sm:$0xff]  }
 0x446   : > { %10244 = vmatprep.subr.bf16.mxu0 %v11947_v59  ;;  %v12032_v57 = vld [vmem:[%s13667_s7 + $0x1194] ss:$8 sps:$4 sm:$0xff]   ;;  %v12027_v59 = vld [vmem:[%s13667_s7 + $0x790] ss:$8 sps:$4 sm:$0xff]  }
 0x448   : > { %9835 = vmatpush1.bf16.msra.mxu1 %v11942_v62  ;;  %v12030_v62 = vld [vmem:[%s13667_s7 + $0x1190] ss:$8 sps:$4 sm:$0xff]  }
 0x449   : > { %10245 = vmatpush1.bf16.msra.mxu0 %v11945_v63  ;;  %9836 = vmatprep.subr.bf16.mxu1 %v11950_v0  ;;  %v12035_v63 = vld [vmem:[%s13667_s7 + $0x7a4] ss:$8 sps:$4 sm:$0xff]  }
 0x44a   : > { %10246 = vmatprep.subr.bf16.mxu0 %v11953_v1  ;;  %v12038_v0 = vld [vmem:[%s13667_s7 + $0x11a4] ss:$8 sps:$4 sm:$0xff]   ;;  %v12033_v1 = vld [vmem:[%s13667_s7 + $0x7a0] ss:$8 sps:$4 sm:$0xff]  }
 0x44c   : > { %9837 = vmatpush1.bf16.msra.mxu1 %v11948_v42  ;;  %v12036_v42 = vld [vmem:[%s13667_s7 + $0x11a0] ss:$8 sps:$4 sm:$0xff]  }
 0x44d   : > { %10247 = vmatpush1.bf16.msra.mxu0 %v11951_v3  ;;  %9838 = vmatprep.subr.bf16.mxu1 %v11956_v58  ;;  %v12041_v3 = vld [vmem:[%s13667_s7 + $0x7b4] ss:$8 sps:$4 sm:$0xff]  }
 0x44e   : > { %10248 = vmatprep.subr.bf16.mxu0 %v11959_v6  ;;  %v12044_v58 = vld [vmem:[%s13667_s7 + $0x11b4] ss:$8 sps:$4 sm:$0xff]   ;;  %v12039_v6 = vld [vmem:[%s13667_s7 + $0x7b0] ss:$8 sps:$4 sm:$0xff]  }
 0x450   : > { %9839 = vmatpush1.bf16.msra.mxu1 %v11954_v44  ;;  %v12042_v44 = vld [vmem:[%s13667_s7 + $0x11b0] ss:$8 sps:$4 sm:$0xff]  }
 0x451   : > { %10249 = vmatpush1.bf16.msra.mxu0 %v11957_v7  ;;  %9840 = vmatprep.subr.bf16.mxu1 %v11962_v8  ;;  %v12047_v7 = vld [vmem:[%s13667_s7 + $0x7c4] ss:$8 sps:$4 sm:$0xff]  }
 0x452   : > { %10250 = vmatprep.subr.bf16.mxu0 %v11965_v9  ;;  %v12050_v8 = vld [vmem:[%s13667_s7 + $0x11c4] ss:$8 sps:$4 sm:$0xff]   ;;  %v12045_v9 = vld [vmem:[%s13667_s7 + $0x7c0] ss:$8 sps:$4 sm:$0xff]  }
 0x454   : > { %9841 = vmatpush1.bf16.msra.mxu1 %v11960_v11  ;;  %v12048_v11 = vld [vmem:[%s13667_s7 + $0x11c0] ss:$8 sps:$4 sm:$0xff]  }
 0x455   : > { %10251 = vmatpush1.bf16.msra.mxu0 %v11963_v12  ;;  %9842 = vmatprep.subr.bf16.mxu1 %v11968_v13  ;;  %v12053_v12 = vld [vmem:[%s13667_s7 + $0x7d4] ss:$8 sps:$4 sm:$0xff]  }
 0x456   : > { %10252 = vmatprep.subr.bf16.mxu0 %v11971_v16  ;;  %v12056_v13 = vld [vmem:[%s13667_s7 + $0x11d4] ss:$8 sps:$4 sm:$0xff]   ;;  %v12051_v16 = vld [vmem:[%s13667_s7 + $0x7d0] ss:$8 sps:$4 sm:$0xff]  }
 0x458   : > { %9843 = vmatpush1.bf16.msra.mxu1 %v11966_v17  ;;  %v12054_v17 = vld [vmem:[%s13667_s7 + $0x11d0] ss:$8 sps:$4 sm:$0xff]  }
 0x459   : > { %10253 = vmatpush1.bf16.msra.mxu0 %v11969_v61  ;;  %9853 = vmatprep.subr.bf16.mxu1 %v11975_v19  ;;  %v12059_v61 = vld [vmem:[%s13667_s7 + $0x7e4] ss:$8 sps:$4 sm:$0xff]  }
 0x45a   : > { %10263 = vmatprep.subr.bf16.mxu0 %v11978_v20  ;;  %v12062_v19 = vld [vmem:[%s13667_s7 + $0x11e4] ss:$8 sps:$4 sm:$0xff]   ;;  %v6277_v20 = vcombine.high %v14170_v45, %v14170_v45  ;;  %v12063_v45 = vld [vmem:[%s13667_s7 + $0x7f0] ss:$8 sps:$4 sm:$0xff]  }
 0x45b   : > { %9845 = vmatmul.mubr.bf16.vlgmr.msra.gmra.mrb[0].mxu1 %v14272_v21 }
 0x45c   : > { %10255 = vmatmul.mubr.bf16.vlgmr.msra.gmra.mrb[0].mxu0 %v14276_v22  ;;  %9854 = vmatpush1.bf16.msra.mxu1 %v11973_v23  ;;  %v12057_v23 = vld [vmem:[%s13667_s7 + $0x7e0] ss:$8 sps:$4 sm:$0xff]  }
 0x45d   : > { %10264 = vmatpush1.bf16.msra.mxu0 %v11976_v28  ;;  %9855 = vmatprep.subr.bf16.mxu1 %v11981_v29  ;;  %v12060_v28 = vld [vmem:[%s13667_s7 + $0x11e0] ss:$8 sps:$4 sm:$0xff]   ;;  %v12065_v29 = vld [vmem:[%s13667_s7 + $0x7f4] ss:$8 sps:$4 sm:$0xff]  }
 0x45e   : > { %10265 = vmatprep.subr.bf16.mxu0 %v11984_v14  ;;  %9885 = vmatprep.mubr.bf16.mxu1 %v6178_v2  ;;  %v12068_v14 = vld [vmem:[%s13667_s7 + $0x11f4] ss:$8 sps:$4 sm:$0xff]  }
 0x45f   : > { %10295 = vmatprep.mubr.bf16.mxu0 %v6324_v15  ;;  %v14349_v2 = vld.sshfl [vmem:[%s14543_s0 + $0x10] sm:$0xff pattern:$0x75316420]  ;;  %v14352_v15 = vrot.slane %v6277_v20, %v13672_v10 }
 0x460   : > { %9856 = vmatpush1.bf16.msra.mxu1 %v11979_v30  ;;  %v12066_v30 = vld [vmem:[%s13667_s7 + $0x11f0] ss:$8 sps:$4 sm:$0xff]  }
 0x461   : > { %10266 = vmatpush1.bf16.msra.mxu0 %v11982_v5  ;;  %9857 = vmatprep.subr.bf16.mxu1 %v11987_v18  ;;  %v12071_v5 = vld [vmem:[%s13667_s7 + $0x804] ss:$8 sps:$4 sm:$0xff]   ;;  %v12138_v20 = vld [vmem:[%s13667_s7 + $0x12b0] ss:$8 sps:$4 sm:$0xff]  }
 0x462   : > { %10267 = vmatprep.subr.bf16.mxu0 %v11990_v31  ;;  %v12074_v18 = vld [vmem:[%s13667_s7 + $0x1204] ss:$8 sps:$4 sm:$0xff]   ;;  %v6194_v31 = vcombine.high %v14349_v2, %v14349_v2 }
 0x464   : > { %9858 = vmatpush1.bf16.msra.mxu1 %v11985_v60  ;;  %v6293_v60 = vcombine.high %v14352_v15, %v14352_v15 }
 0x465   : > { %10268 = vmatpush1.bf16.msra.mxu0 %v11988_v32  ;;  %9859 = vmatprep.subr.bf16.mxu1 %v11993_v25  ;;  %v6176_v32 = vcombine.high %v14272_v21, %v14272_v21  ;;  %v6322_v25 = vcombine.high %v14276_v22, %v14276_v22  ;;  %v12075_v22 = vld [vmem:[%s13667_s7 + $0x810] ss:$8 sps:$4 sm:$0xff]  }
 0x466   : > { %10269 = vmatprep.subr.bf16.mxu0 %v11996_v26  ;;  %v12069_v26 = vld [vmem:[%s13667_s7 + $0x800] ss:$8 sps:$4 sm:$0xff]   ;;  %v14374_v21 = vrot.slane %v6293_v60, %v13672_v10  ;;  %v12158_v60 = vld [vmem:[%s13667_s7 + $0x12e4] ss:$8 sps:$4 sm:$0xff]  }
 0x468   : > { %9860 = vmatpush1.bf16.msra.mxu1 %v11991_v33  ;;  %v12072_v33 = vld [vmem:[%s13667_s7 + $0x1200] ss:$8 sps:$4 sm:$0xff]  }
 0x469   : > { %10270 = vmatpush1.bf16.msra.mxu0 %v11994_v34  ;;  %9861 = vmatprep.subr.bf16.mxu1 %v11999_v35  ;;  %v12077_v34 = vld [vmem:[%s13667_s7 + $0x814] ss:$8 sps:$4 sm:$0xff]  }
 0x46a   : > { %10271 = vmatprep.subr.bf16.mxu0 %v12002_v36  ;;  %v12080_v35 = vld [vmem:[%s13667_s7 + $0x1214] ss:$8 sps:$4 sm:$0xff]   ;;  %v14371_v36 = vrot.slane %v6194_v31, %v13672_v10  ;;  %v12155_v31 = vld [vmem:[%s13667_s7 + $0x8e4] ss:$8 sps:$4 sm:$0xff]  }
 0x46c   : > { %9862 = vmatpush1.bf16.msra.mxu1 %v11997_v38  ;;  %v12078_v38 = vld [vmem:[%s13667_s7 + $0x1210] ss:$8 sps:$4 sm:$0xff]  }
 0x46d   : > { %10272 = vmatpush1.bf16.msra.mxu0 %v12000_v39  ;;  %9863 = vmatprep.subr.bf16.mxu1 %v12005_v40  ;;  %v12083_v39 = vld [vmem:[%s13667_s7 + $0x824] ss:$8 sps:$4 sm:$0xff]  }
 0x46e   : > { %10273 = vmatprep.subr.bf16.mxu0 %v12008_v41  ;;  %v12086_v40 = vld [vmem:[%s13667_s7 + $0x1224] ss:$8 sps:$4 sm:$0xff]   ;;  %v12081_v41 = vld [vmem:[%s13667_s7 + $0x820] ss:$8 sps:$4 sm:$0xff]  }
 0x470   : > { %9864 = vmatpush1.bf16.msra.mxu1 %v12003_v46  ;;  %v12084_v46 = vld [vmem:[%s13667_s7 + $0x1220] ss:$8 sps:$4 sm:$0xff]  }
 0x471   : > { %10274 = vmatpush1.bf16.msra.mxu0 %v12006_v47  ;;  %9865 = vmatprep.subr.bf16.mxu1 %v12011_v48  ;;  %v12089_v47 = vld [vmem:[%s13667_s7 + $0x834] ss:$8 sps:$4 sm:$0xff]  }
 0x472   : > { %10275 = vmatprep.subr.bf16.mxu0 %v12014_v49  ;;  %v12092_v48 = vld [vmem:[%s13667_s7 + $0x1234] ss:$8 sps:$4 sm:$0xff]   ;;  %v12087_v49 = vld [vmem:[%s13667_s7 + $0x830] ss:$8 sps:$4 sm:$0xff]  }
 0x474   : > { %9866 = vmatpush1.bf16.msra.mxu1 %v12009_v37  ;;  %v12090_v37 = vld [vmem:[%s13667_s7 + $0x1230] ss:$8 sps:$4 sm:$0xff]  }
 0x475   : > { %10276 = vmatpush1.bf16.msra.mxu0 %v12012_v27  ;;  %9867 = vmatprep.subr.bf16.mxu1 %v12017_v50  ;;  %v12095_v27 = vld [vmem:[%s13667_s7 + $0x844] ss:$8 sps:$4 sm:$0xff]  }
 0x476   : > { %10277 = vmatprep.subr.bf16.mxu0 %v12020_v51  ;;  %v12098_v50 = vld [vmem:[%s13667_s7 + $0x1244] ss:$8 sps:$4 sm:$0xff]   ;;  %v12093_v51 = vld [vmem:[%s13667_s7 + $0x840] ss:$8 sps:$4 sm:$0xff]  }
 0x478   : > { %9868 = vmatpush1.bf16.msra.mxu1 %v12015_v24  ;;  %v12096_v24 = vld [vmem:[%s13667_s7 + $0x1240] ss:$8 sps:$4 sm:$0xff]  }
 0x479   : > { %10278 = vmatpush1.bf16.msra.mxu0 %v12018_v43  ;;  %9869 = vmatprep.subr.bf16.mxu1 %v12023_v52  ;;  %v12101_v43 = vld [vmem:[%s13667_s7 + $0x854] ss:$8 sps:$4 sm:$0xff]  }
 0x47a   : > { %10279 = vmatprep.subr.bf16.mxu0 %v12026_v53  ;;  %v12104_v52 = vld [vmem:[%s13667_s7 + $0x1254] ss:$8 sps:$4 sm:$0xff]   ;;  %v12099_v53 = vld [vmem:[%s13667_s7 + $0x850] ss:$8 sps:$4 sm:$0xff]  }
 0x47c   : > { %9870 = vmatpush1.bf16.msra.mxu1 %v12021_v54  ;;  %v12102_v54 = vld [vmem:[%s13667_s7 + $0x1250] ss:$8 sps:$4 sm:$0xff]  }
 0x47d   : > { %10280 = vmatpush1.bf16.msra.mxu0 %v12024_v55  ;;  %9871 = vmatprep.subr.bf16.mxu1 %v12029_v56  ;;  %v12107_v55 = vld [vmem:[%s13667_s7 + $0x864] ss:$8 sps:$4 sm:$0xff]  }
 0x47e   : > { %10281 = vmatprep.subr.bf16.mxu0 %v12032_v57  ;;  %v12110_v56 = vld [vmem:[%s13667_s7 + $0x1264] ss:$8 sps:$4 sm:$0xff]   ;;  %v12105_v57 = vld [vmem:[%s13667_s7 + $0x860] ss:$8 sps:$4 sm:$0xff]  }
 0x480   : > { %9872 = vmatpush1.bf16.msra.mxu1 %v12027_v59  ;;  %v12108_v59 = vld [vmem:[%s13667_s7 + $0x1260] ss:$8 sps:$4 sm:$0xff]  }
 0x481   : > { %10282 = vmatpush1.bf16.msra.mxu0 %v12030_v62  ;;  %9873 = vmatprep.subr.bf16.mxu1 %v12035_v63  ;;  %v12113_v62 = vld [vmem:[%s13667_s7 + $0x874] ss:$8 sps:$4 sm:$0xff]  }
 0x482   : > { %10283 = vmatprep.subr.bf16.mxu0 %v12038_v0  ;;  %v12116_v63 = vld [vmem:[%s13667_s7 + $0x1274] ss:$8 sps:$4 sm:$0xff]   ;;  %v12111_v0 = vld [vmem:[%s13667_s7 + $0x870] ss:$8 sps:$4 sm:$0xff]  }
 0x484   : > { %9874 = vmatpush1.bf16.msra.mxu1 %v12033_v1  ;;  %v12114_v1 = vld [vmem:[%s13667_s7 + $0x1270] ss:$8 sps:$4 sm:$0xff]  }
 0x485   : > { %10284 = vmatpush1.bf16.msra.mxu0 %v12036_v42  ;;  %9875 = vmatprep.subr.bf16.mxu1 %v12041_v3  ;;  %v12119_v42 = vld [vmem:[%s13667_s7 + $0x884] ss:$8 sps:$4 sm:$0xff]  }
 0x486   : > { %10285 = vmatprep.subr.bf16.mxu0 %v12044_v58  ;;  %v12122_v3 = vld [vmem:[%s13667_s7 + $0x1284] ss:$8 sps:$4 sm:$0xff]   ;;  %v12117_v58 = vld [vmem:[%s13667_s7 + $0x880] ss:$8 sps:$4 sm:$0xff]  }
 0x488   : > { %9876 = vmatpush1.bf16.msra.mxu1 %v12039_v6  ;;  %v12120_v6 = vld [vmem:[%s13667_s7 + $0x1280] ss:$8 sps:$4 sm:$0xff]  }
 0x489   : > { %10286 = vmatpush1.bf16.msra.mxu0 %v12042_v44  ;;  %9877 = vmatprep.subr.bf16.mxu1 %v12047_v7  ;;  %v12125_v44 = vld [vmem:[%s13667_s7 + $0x894] ss:$8 sps:$4 sm:$0xff]  }
 0x48a   : > { %10287 = vmatprep.subr.bf16.mxu0 %v12050_v8  ;;  %v12128_v7 = vld [vmem:[%s13667_s7 + $0x1294] ss:$8 sps:$4 sm:$0xff]   ;;  %v12123_v8 = vld [vmem:[%s13667_s7 + $0x890] ss:$8 sps:$4 sm:$0xff]  }
 0x48c   : > { %9878 = vmatpush1.bf16.msra.mxu1 %v12045_v9  ;;  %v12126_v9 = vld [vmem:[%s13667_s7 + $0x1290] ss:$8 sps:$4 sm:$0xff]  }
 0x48d   : > { %10288 = vmatpush1.bf16.msra.mxu0 %v12048_v11  ;;  %9879 = vmatprep.subr.bf16.mxu1 %v12053_v12  ;;  %v12131_v11 = vld [vmem:[%s13667_s7 + $0x8a4] ss:$8 sps:$4 sm:$0xff]  }
 0x48e   : > { %10289 = vmatprep.subr.bf16.mxu0 %v12056_v13  ;;  %v12134_v12 = vld [vmem:[%s13667_s7 + $0x12a4] ss:$8 sps:$4 sm:$0xff]   ;;  %v12129_v13 = vld [vmem:[%s13667_s7 + $0x8a0] ss:$8 sps:$4 sm:$0xff]  }
 0x490   : > { %9880 = vmatpush1.bf16.msra.mxu1 %v12051_v16  ;;  %v12132_v16 = vld [vmem:[%s13667_s7 + $0x12a0] ss:$8 sps:$4 sm:$0xff]  }
 0x491   : > { %10290 = vmatpush1.bf16.msra.mxu0 %v12054_v17  ;;  %9881 = vmatprep.subr.bf16.mxu1 %v12059_v61  ;;  %v12137_v17 = vld [vmem:[%s13667_s7 + $0x8b4] ss:$8 sps:$4 sm:$0xff]  }
 0x492   : > { %10291 = vmatprep.subr.bf16.mxu0 %v12062_v19  ;;  %v12140_v61 = vld [vmem:[%s13667_s7 + $0x12b4] ss:$8 sps:$4 sm:$0xff]   ;;  %v12135_v19 = vld [vmem:[%s13667_s7 + $0x8b0] ss:$8 sps:$4 sm:$0xff]  }
 0x494   : > { %9882 = vmatpush1.bf16.msra.mxu1 %v12057_v23  ;;  %v12143_v23 = vld [vmem:[%s13667_s7 + $0x8c4] ss:$8 sps:$4 sm:$0xff]  }
 0x495   : > { %10292 = vmatpush1.bf16.msra.mxu0 %v12060_v28  ;;  %9883 = vmatprep.subr.bf16.mxu1 %v12065_v29  ;;  %v12146_v28 = vld [vmem:[%s13667_s7 + $0x12c4] ss:$8 sps:$4 sm:$0xff]   ;;  %v12141_v29 = vld [vmem:[%s13667_s7 + $0x8c0] ss:$8 sps:$4 sm:$0xff]  }
 0x496   : > { %10293 = vmatprep.subr.bf16.mxu0 %v12068_v14  ;;  %v12144_v14 = vld [vmem:[%s13667_s7 + $0x12c0] ss:$8 sps:$4 sm:$0xff]  }
 0x498   : > { %9884 = vmatpush1.bf16.msra.mxu1 %v12063_v45  ;;  %v12149_v45 = vld [vmem:[%s13667_s7 + $0x8d4] ss:$8 sps:$4 sm:$0xff]  }
 0x499   : > { %10294 = vmatpush1.bf16.msra.mxu0 %v12066_v30  ;;  %9894 = vmatprep.subr.bf16.mxu1 %v12071_v5  ;;  %v12152_v30 = vld [vmem:[%s13667_s7 + $0x12d4] ss:$8 sps:$4 sm:$0xff]   ;;  %v12147_v5 = vld [vmem:[%s13667_s7 + $0x8d0] ss:$8 sps:$4 sm:$0xff]  }
 0x49a   : > { %10304 = vmatprep.subr.bf16.mxu0 %v12074_v18  ;;  %v12150_v18 = vld [vmem:[%s13667_s7 + $0x12d0] ss:$8 sps:$4 sm:$0xff]  }
 0x49b   : > { %9886 = vmatmul.mubr.bf16.vlgmr.msra.gmra.mrb[0].mxu1 %v6176_v32  ;;  %v12153_v32 = vld [vmem:[%s13667_s7 + $0x8e0] ss:$8 sps:$4 sm:$0xff]  }
 0x49c   : > { %10296 = vmatmul.mubr.bf16.vlgmr.msra.gmra.mrb[0].mxu0 %v6322_v25  ;;  %9895 = vmatpush1.bf16.msra.mxu1 %v12069_v26  ;;  %v12156_v25 = vld [vmem:[%s13667_s7 + $0x12e0] ss:$8 sps:$4 sm:$0xff]   ;;  %v12161_v26 = vld [vmem:[%s13667_s7 + $0x8f4] ss:$8 sps:$4 sm:$0xff]  }
 0x49d   : > { %10305 = vmatpush1.bf16.msra.mxu0 %v12072_v33  ;;  %9896 = vmatprep.subr.bf16.mxu1 %v12077_v34  ;;  %v12164_v33 = vld [vmem:[%s13667_s7 + $0x12f4] ss:$8 sps:$4 sm:$0xff]   ;;  %v12159_v34 = vld [vmem:[%s13667_s7 + $0x8f0] ss:$8 sps:$4 sm:$0xff]  }
 0x49e   : > { %10306 = vmatprep.subr.bf16.mxu0 %v12080_v35  ;;  %9926 = vmatprep.mubr.bf16.mxu1 %v14371_v36  ;;  %v12162_v35 = vld [vmem:[%s13667_s7 + $0x12f0] ss:$8 sps:$4 sm:$0xff]  }
 0x49f   : > { %10336 = vmatprep.mubr.bf16.mxu0 %v14374_v21 }
 0x4a0   : > { %9897 = vmatpush1.bf16.msra.mxu1 %v12075_v22  ;;  %v12167_v22 = vld [vmem:[%s13667_s7 + $0x904] ss:$8 sps:$4 sm:$0xff]  }
 0x4a1   : > { %10307 = vmatpush1.bf16.msra.mxu0 %v12078_v38  ;;  %9898 = vmatprep.subr.bf16.mxu1 %v12083_v39  ;;  %v12171_v38 = vld [vmem:[%s13667_s7 + $0x1304] ss:$8 sps:$4 sm:$0xff]   ;;  %v14440_v39 = vrot.slane %v14349_v2, %v13672_v10  ;;  %v6226_v2 = vcombine.high %v14371_v36, %v14371_v36 }
 0x4a2   : > { %10308 = vmatprep.subr.bf16.mxu0 %v12086_v40  ;;  %v14444_v40 = vrot.slane %v14352_v15, %v13672_v10  ;;  %v12172_v15 = vld [vmem:[%s13667_s7 + $0x910] ss:$8 sps:$4 sm:$0xff]   ;;  %v12180_v36 = vld [vmem:[%s13667_s7 + $0x924] ss:$8 sps:$4 sm:$0xff]  }
 0x4a4   : > { %9899 = vmatpush1.bf16.msra.mxu1 %v12081_v41  ;;  %v12165_v41 = vld [vmem:[%s13667_s7 + $0x900] ss:$8 sps:$4 sm:$0xff]  }
 0x4a5   : > { %10309 = vmatpush1.bf16.msra.mxu0 %v12084_v46  ;;  %9900 = vmatprep.subr.bf16.mxu1 %v12089_v47  ;;  %v12169_v46 = vld [vmem:[%s13667_s7 + $0x1300] ss:$8 sps:$4 sm:$0xff]   ;;  %v12174_v47 = vld [vmem:[%s13667_s7 + $0x914] ss:$8 sps:$4 sm:$0xff]  }
 0x4a6   : > { %10310 = vmatprep.subr.bf16.mxu0 %v12092_v48  ;;  %v12177_v48 = vld [vmem:[%s13667_s7 + $0x1314] ss:$8 sps:$4 sm:$0xff]  }
 0x4a8   : > { %9901 = vmatpush1.bf16.msra.mxu1 %v12087_v49  ;;  %v6325_v49 = vcombine.high %v14374_v21, %v14374_v21  ;;  %v12178_v21 = vld [vmem:[%s13667_s7 + $0x920] ss:$8 sps:$4 sm:$0xff]  }
 0x4a9   : > { %10311 = vmatpush1.bf16.msra.mxu0 %v12090_v37  ;;  %9902 = vmatprep.subr.bf16.mxu1 %v12095_v27  ;;  %v12175_v37 = vld [vmem:[%s13667_s7 + $0x1310] ss:$8 sps:$4 sm:$0xff]   ;;  %v12183_v27 = vld [vmem:[%s13667_s7 + $0x1324] ss:$8 sps:$4 sm:$0xff]  }
 0x4aa   : > { %10312 = vmatprep.subr.bf16.mxu0 %v12098_v50  ;;  %v12181_v50 = vld [vmem:[%s13667_s7 + $0x1320] ss:$8 sps:$4 sm:$0xff]  }
 0x4ac   : > { %9903 = vmatpush1.bf16.msra.mxu1 %v12093_v51  ;;  %v12186_v51 = vld [vmem:[%s13667_s7 + $0x934] ss:$8 sps:$4 sm:$0xff]  }
 0x4ad   : > { %10313 = vmatpush1.bf16.msra.mxu0 %v12096_v24  ;;  %9904 = vmatprep.subr.bf16.mxu1 %v12101_v43  ;;  %v12189_v24 = vld [vmem:[%s13667_s7 + $0x1334] ss:$8 sps:$4 sm:$0xff]   ;;  %v12184_v43 = vld [vmem:[%s13667_s7 + $0x930] ss:$8 sps:$4 sm:$0xff]  }
 0x4ae   : > { %10314 = vmatprep.subr.bf16.mxu0 %v12104_v52  ;;  %v12187_v52 = vld [vmem:[%s13667_s7 + $0x1330] ss:$8 sps:$4 sm:$0xff]  }
 0x4b0   : > { %9905 = vmatpush1.bf16.msra.mxu1 %v12099_v53  ;;  %v12192_v53 = vld [vmem:[%s13667_s7 + $0x944] ss:$8 sps:$4 sm:$0xff]  }
 0x4b1   : > { %10315 = vmatpush1.bf16.msra.mxu0 %v12102_v54  ;;  %9906 = vmatprep.subr.bf16.mxu1 %v12107_v55  ;;  %v12195_v54 = vld [vmem:[%s13667_s7 + $0x1344] ss:$8 sps:$4 sm:$0xff]   ;;  %v12190_v55 = vld [vmem:[%s13667_s7 + $0x940] ss:$8 sps:$4 sm:$0xff]  }
 0x4b2   : > { %10316 = vmatprep.subr.bf16.mxu0 %v12110_v56  ;;  %v12193_v56 = vld [vmem:[%s13667_s7 + $0x1340] ss:$8 sps:$4 sm:$0xff]  }
 0x4b4   : > { %9907 = vmatpush1.bf16.msra.mxu1 %v12105_v57  ;;  %v12198_v57 = vld [vmem:[%s13667_s7 + $0x954] ss:$8 sps:$4 sm:$0xff]  }
 0x4b5   : > { %10317 = vmatpush1.bf16.msra.mxu0 %v12108_v59  ;;  %9908 = vmatprep.subr.bf16.mxu1 %v12113_v62  ;;  %v12201_v59 = vld [vmem:[%s13667_s7 + $0x1354] ss:$8 sps:$4 sm:$0xff]   ;;  %v12196_v62 = vld [vmem:[%s13667_s7 + $0x950] ss:$8 sps:$4 sm:$0xff]  }
 0x4b6   : > { %10318 = vmatprep.subr.bf16.mxu0 %v12116_v63  ;;  %v12199_v63 = vld [vmem:[%s13667_s7 + $0x1350] ss:$8 sps:$4 sm:$0xff]  }
 0x4b8   : > { %9909 = vmatpush1.bf16.msra.mxu1 %v12111_v0  ;;  %v12204_v0 = vld [vmem:[%s13667_s7 + $0x964] ss:$8 sps:$4 sm:$0xff]  }
 0x4b9   : > { %10319 = vmatpush1.bf16.msra.mxu0 %v12114_v1  ;;  %9910 = vmatprep.subr.bf16.mxu1 %v12119_v42  ;;  %v12207_v1 = vld [vmem:[%s13667_s7 + $0x1364] ss:$8 sps:$4 sm:$0xff]   ;;  %v12202_v42 = vld [vmem:[%s13667_s7 + $0x960] ss:$8 sps:$4 sm:$0xff]  }
 0x4ba   : > { %10320 = vmatprep.subr.bf16.mxu0 %v12122_v3  ;;  %v12205_v3 = vld [vmem:[%s13667_s7 + $0x1360] ss:$8 sps:$4 sm:$0xff]  }
 0x4bc   : > { %9911 = vmatpush1.bf16.msra.mxu1 %v12117_v58  ;;  %v12210_v58 = vld [vmem:[%s13667_s7 + $0x974] ss:$8 sps:$4 sm:$0xff]  }
 0x4bd   : > { %10321 = vmatpush1.bf16.msra.mxu0 %v12120_v6  ;;  %9912 = vmatprep.subr.bf16.mxu1 %v12125_v44  ;;  %v12213_v6 = vld [vmem:[%s13667_s7 + $0x1374] ss:$8 sps:$4 sm:$0xff]   ;;  %v12208_v44 = vld [vmem:[%s13667_s7 + $0x970] ss:$8 sps:$4 sm:$0xff]  }
 0x4be   : > { %10322 = vmatprep.subr.bf16.mxu0 %v12128_v7  ;;  %v12211_v7 = vld [vmem:[%s13667_s7 + $0x1370] ss:$8 sps:$4 sm:$0xff]  }
 0x4c0   : > { %9913 = vmatpush1.bf16.msra.mxu1 %v12123_v8  ;;  %v12216_v8 = vld [vmem:[%s13667_s7 + $0x984] ss:$8 sps:$4 sm:$0xff]  }
 0x4c1   : > { %10323 = vmatpush1.bf16.msra.mxu0 %v12126_v9  ;;  %9914 = vmatprep.subr.bf16.mxu1 %v12131_v11  ;;  %v12219_v9 = vld [vmem:[%s13667_s7 + $0x1384] ss:$8 sps:$4 sm:$0xff]   ;;  %v12214_v11 = vld [vmem:[%s13667_s7 + $0x980] ss:$8 sps:$4 sm:$0xff]  }
 0x4c2   : > { %10324 = vmatprep.subr.bf16.mxu0 %v12134_v12  ;;  %v12217_v12 = vld [vmem:[%s13667_s7 + $0x1380] ss:$8 sps:$4 sm:$0xff]  }
 0x4c4   : > { %9915 = vmatpush1.bf16.msra.mxu1 %v12129_v13  ;;  %v12222_v13 = vld [vmem:[%s13667_s7 + $0x994] ss:$8 sps:$4 sm:$0xff]  }
 0x4c5   : > { %10325 = vmatpush1.bf16.msra.mxu0 %v12132_v16  ;;  %9916 = vmatprep.subr.bf16.mxu1 %v12137_v17  ;;  %v12225_v16 = vld [vmem:[%s13667_s7 + $0x1394] ss:$8 sps:$4 sm:$0xff]   ;;  %v12220_v17 = vld [vmem:[%s13667_s7 + $0x990] ss:$8 sps:$4 sm:$0xff]  }
 0x4c6   : > { %10326 = vmatprep.subr.bf16.mxu0 %v12140_v61  ;;  %v12223_v61 = vld [vmem:[%s13667_s7 + $0x1390] ss:$8 sps:$4 sm:$0xff]  }
 0x4c8   : > { %9917 = vmatpush1.bf16.msra.mxu1 %v12135_v19  ;;  %v12228_v19 = vld [vmem:[%s13667_s7 + $0x9a4] ss:$8 sps:$4 sm:$0xff]  }
 0x4c9   : > { %10327 = vmatpush1.bf16.msra.mxu0 %v12138_v20  ;;  %9918 = vmatprep.subr.bf16.mxu1 %v12143_v23  ;;  %v12231_v20 = vld [vmem:[%s13667_s7 + $0x13a4] ss:$8 sps:$4 sm:$0xff]   ;;  %v12226_v23 = vld [vmem:[%s13667_s7 + $0x9a0] ss:$8 sps:$4 sm:$0xff]  }
 0x4ca   : > { %10328 = vmatprep.subr.bf16.mxu0 %v12146_v28  ;;  %v12229_v28 = vld [vmem:[%s13667_s7 + $0x13a0] ss:$8 sps:$4 sm:$0xff]  }
 0x4cc   : > { %9919 = vmatpush1.bf16.msra.mxu1 %v12141_v29  ;;  %v12234_v29 = vld [vmem:[%s13667_s7 + $0x9b4] ss:$8 sps:$4 sm:$0xff]  }
 0x4cd   : > { %10329 = vmatpush1.bf16.msra.mxu0 %v12144_v14  ;;  %9920 = vmatprep.subr.bf16.mxu1 %v12149_v45  ;;  %v12237_v14 = vld [vmem:[%s13667_s7 + $0x13b4] ss:$8 sps:$4 sm:$0xff]   ;;  %v12232_v45 = vld [vmem:[%s13667_s7 + $0x9b0] ss:$8 sps:$4 sm:$0xff]  }
 0x4ce   : > { %10330 = vmatprep.subr.bf16.mxu0 %v12152_v30  ;;  %v12235_v30 = vld [vmem:[%s13667_s7 + $0x13b0] ss:$8 sps:$4 sm:$0xff]  }
 0x4d0   : > { %9921 = vmatpush1.bf16.msra.mxu1 %v12147_v5  ;;  %v12240_v5 = vld [vmem:[%s13667_s7 + $0x9c4] ss:$8 sps:$4 sm:$0xff]  }
 0x4d1   : > { %10331 = vmatpush1.bf16.msra.mxu0 %v12150_v18  ;;  %9922 = vmatprep.subr.bf16.mxu1 %v12155_v31  ;;  %v12243_v18 = vld [vmem:[%s13667_s7 + $0x13c4] ss:$8 sps:$4 sm:$0xff]   ;;  %v12238_v31 = vld [vmem:[%s13667_s7 + $0x9c0] ss:$8 sps:$4 sm:$0xff]  }
 0x4d2   : > { %10332 = vmatprep.subr.bf16.mxu0 %v12158_v60  ;;  %v12241_v60 = vld [vmem:[%s13667_s7 + $0x13c0] ss:$8 sps:$4 sm:$0xff]  }
 0x4d4   : > { %9923 = vmatpush1.bf16.msra.mxu1 %v12153_v32  ;;  %v12246_v32 = vld [vmem:[%s13667_s7 + $0x9d4] ss:$8 sps:$4 sm:$0xff]  }
 0x4d5   : > { %10333 = vmatpush1.bf16.msra.mxu0 %v12156_v25  ;;  %9924 = vmatprep.subr.bf16.mxu1 %v12161_v26  ;;  %v12249_v25 = vld [vmem:[%s13667_s7 + $0x13d4] ss:$8 sps:$4 sm:$0xff]   ;;  %v12244_v26 = vld [vmem:[%s13667_s7 + $0x9d0] ss:$8 sps:$4 sm:$0xff]  }
 0x4d6   : > { %10334 = vmatprep.subr.bf16.mxu0 %v12164_v33  ;;  %v12247_v33 = vld [vmem:[%s13667_s7 + $0x13d0] ss:$8 sps:$4 sm:$0xff]  }
 0x4d8   : > { %9925 = vmatpush1.bf16.msra.mxu1 %v12159_v34  ;;  %v12252_v34 = vld [vmem:[%s13667_s7 + $0x9e4] ss:$8 sps:$4 sm:$0xff]  }
 0x4d9   : > { %10335 = vmatpush1.bf16.msra.mxu0 %v12162_v35  ;;  %9935 = vmatprep.subr.bf16.mxu1 %v12167_v22  ;;  %v12255_v35 = vld [vmem:[%s13667_s7 + $0x13e4] ss:$8 sps:$4 sm:$0xff]   ;;  %v12250_v22 = vld [vmem:[%s13667_s7 + $0x9e0] ss:$8 sps:$4 sm:$0xff]  }
 0x4da   : > { %10345 = vmatprep.subr.bf16.mxu0 %v12171_v38  ;;  %v12253_v38 = vld [vmem:[%s13667_s7 + $0x13e0] ss:$8 sps:$4 sm:$0xff]  }
 0x4db   : > { %9927 = vmatmul.mubr.bf16.vlgmr.msra.gmra.mrb[0].mxu1 %v14440_v39 }
 0x4dc   : > { %10337 = vmatmul.mubr.bf16.vlgmr.msra.gmra.mrb[0].mxu0 %v14444_v40  ;;  %9936 = vmatpush1.bf16.msra.mxu1 %v12165_v41  ;;  %v12258_v41 = vld [vmem:[%s13667_s7 + $0x9f4] ss:$8 sps:$4 sm:$0xff]  }
 0x4dd   : > { %10346 = vmatpush1.bf16.msra.mxu0 %v12169_v46  ;;  %9937 = vmatprep.subr.bf16.mxu1 %v12174_v47  ;;  %v12261_v46 = vld [vmem:[%s13667_s7 + $0x13f4] ss:$8 sps:$4 sm:$0xff]   ;;  %v12256_v47 = vld [vmem:[%s13667_s7 + $0x9f0] ss:$8 sps:$4 sm:$0xff]  }
 0x4de   : > { %10347 = vmatprep.subr.bf16.mxu0 %v12177_v48  ;;  %9967 = vmatprep.mubr.bf16.mxu1 %v6226_v2  ;;  %v12259_v48 = vld [vmem:[%s13667_s7 + $0x13f0] ss:$8 sps:$4 sm:$0xff]   ;;  %v6224_v2 = vcombine.high %v14440_v39, %v14440_v39 }
 0x4df   : > { %10377 = vmatprep.mubr.bf16.mxu0 %v6325_v49  ;;  %v6323_v49 = vcombine.high %v14444_v40, %v14444_v40 }
 0x4e0   : > { %9938 = vmatpush1.bf16.msra.mxu1 %v12172_v15  ;;  %v6068_v15 = vsub.s32 0, %v13660_v4 }
 0x4e1   : > { %10348 = vmatpush1.bf16.msra.mxu0 %v12175_v37  ;;  %9939 = vmatprep.subr.bf16.mxu1 %v12180_v36  ;;  %v6064_v37 = vld [vmem:[%s5408_s27] sm:$0x3]  ;;  %v6072_v36 = vsub.s32 1, %v13660_v4 }
 0x4e2   : > { %10349 = vmatprep.subr.bf16.mxu0 %v12183_v27  ;;  %v6069_v39 = vrot.slane %v6064_v37, %v6068_v15 }
 0x4e3   : > { %v6073_v27 = vrot.slane %v6064_v37, %v6072_v36 }
 0x4e4   : > { %9940 = vmatpush1.bf16.msra.mxu1 %v12178_v21 }
 0x4e5   : > { %10350 = vmatpush1.bf16.msra.mxu0 %v12181_v50  ;;  %9941 = vmatprep.subr.bf16.mxu1 %v12186_v51 }
 0x4e6   : > { %10351 = vmatprep.subr.bf16.mxu0 %v12189_v24 }
 0x4e8   : > { %9942 = vmatpush1.bf16.msra.mxu1 %v12184_v43 }
 0x4e9   : > { %10352 = vmatpush1.bf16.msra.mxu0 %v12187_v52  ;;  %9943 = vmatprep.subr.bf16.mxu1 %v12192_v53 }
 0x4ea   : > { %10353 = vmatprep.subr.bf16.mxu0 %v12195_v54 }
 0x4ec   : > { %9944 = vmatpush1.bf16.msra.mxu1 %v12190_v55 }
 0x4ed   : > { %10354 = vmatpush1.bf16.msra.mxu0 %v12193_v56  ;;  %9945 = vmatprep.subr.bf16.mxu1 %v12198_v57 }
 0x4ee   : > { %10355 = vmatprep.subr.bf16.mxu0 %v12201_v59 }
 0x4f0   : > { %9946 = vmatpush1.bf16.msra.mxu1 %v12196_v62 }
 0x4f1   : > { %10356 = vmatpush1.bf16.msra.mxu0 %v12199_v63  ;;  %9947 = vmatprep.subr.bf16.mxu1 %v12204_v0 }
 0x4f2   : > { %10357 = vmatprep.subr.bf16.mxu0 %v12207_v1 }
 0x4f4   : > { %9948 = vmatpush1.bf16.msra.mxu1 %v12202_v42 }
 0x4f5   : > { %10358 = vmatpush1.bf16.msra.mxu0 %v12205_v3  ;;  %9949 = vmatprep.subr.bf16.mxu1 %v12210_v58 }
 0x4f6   : > { %10359 = vmatprep.subr.bf16.mxu0 %v12213_v6 }
 0x4f8   : > { %9950 = vmatpush1.bf16.msra.mxu1 %v12208_v44 }
 0x4f9   : > { %10360 = vmatpush1.bf16.msra.mxu0 %v12211_v7  ;;  %9951 = vmatprep.subr.bf16.mxu1 %v12216_v8 }
 0x4fa   : > { %10361 = vmatprep.subr.bf16.mxu0 %v12219_v9 }
 0x4fc   : > { %9952 = vmatpush1.bf16.msra.mxu1 %v12214_v11 }
 0x4fd   : > { %10362 = vmatpush1.bf16.msra.mxu0 %v12217_v12  ;;  %9953 = vmatprep.subr.bf16.mxu1 %v12222_v13 }
 0x4fe   : > { %10363 = vmatprep.subr.bf16.mxu0 %v12225_v16 }
 0x500   : > { %9954 = vmatpush1.bf16.msra.mxu1 %v12220_v17 }
 0x501   : > { %10364 = vmatpush1.bf16.msra.mxu0 %v12223_v61  ;;  %9955 = vmatprep.subr.bf16.mxu1 %v12228_v19 }
 0x502   : > { %10365 = vmatprep.subr.bf16.mxu0 %v12231_v20 }
 0x504   : > { %9956 = vmatpush1.bf16.msra.mxu1 %v12226_v23 }
 0x505   : > { %10366 = vmatpush1.bf16.msra.mxu0 %v12229_v28  ;;  %9957 = vmatprep.subr.bf16.mxu1 %v12234_v29 }
 0x506   : > { %10367 = vmatprep.subr.bf16.mxu0 %v12237_v14 }
 0x508   : > { %9958 = vmatpush1.bf16.msra.mxu1 %v12232_v45 }
 0x509   : > { %10368 = vmatpush1.bf16.msra.mxu0 %v12235_v30  ;;  %9959 = vmatprep.subr.bf16.mxu1 %v12240_v5 }
 0x50a   : > { %10369 = vmatprep.subr.bf16.mxu0 %v12243_v18 }
 0x50c   : > { %9960 = vmatpush1.bf16.msra.mxu1 %v12238_v31 }
 0x50d   : > { %10370 = vmatpush1.bf16.msra.mxu0 %v12241_v60  ;;  %9961 = vmatprep.subr.bf16.mxu1 %v12246_v32 }
 0x50e   : > { %10371 = vmatprep.subr.bf16.mxu0 %v12249_v25 }
 0x510   : > { %9962 = vmatpush1.bf16.msra.mxu1 %v12244_v26 }
 0x511   : > { %10372 = vmatpush1.bf16.msra.mxu0 %v12247_v33  ;;  %9963 = vmatprep.subr.bf16.mxu1 %v12252_v34 }
 0x512   : > { %10373 = vmatprep.subr.bf16.mxu0 %v12255_v35 }
 0x514   : > { %9964 = vmatpush1.bf16.msra.mxu1 %v12250_v22 }
 0x515   : > { %10374 = vmatpush1.bf16.msra.mxu0 %v12253_v38  ;;  %9965 = vmatprep.subr.bf16.mxu1 %v12258_v41 }
 0x516   : > { %10375 = vmatprep.subr.bf16.mxu0 %v12261_v46 }
 0x518   : > { %9966 = vmatpush1.bf16.msra.mxu1 %v12256_v47 }
 0x519   : > { %10376 = vmatpush1.bf16.msra.mxu0 %v12259_v48 }
 0x51b   : > { %9968 = vmatmul.mubr.bf16.vlgmr.msra.gmra.mrb[0].mxu1 %v6224_v2 }
 0x51c   : > { %10378 = vmatmul.mubr.bf16.vlgmr.msra.gmra.mrb[0].mxu0 %v6323_v49 }
 0x5ee   : > { %v9969_v21 = vpop.f32.mrb[0].mxu1 }
 0x5ef   : > { %v10379_v40 = vpop.f32.mrb[0].mxu0  ;;  %v11178_v50 = vadd.f32 %v9969_v21, %v6069_v39  ;;  %v9971_v51 = vpop.f32.mrb[1].mxu1 }
 0x5f0   : > { %v10381_v24 = vpop.f32.mrb[1].mxu0  ;;  %v11180_v43 = vadd.f32 %v9971_v51, %v6073_v27  ;;  %v9973_v52 = vpop.f32.mrb[2].mxu1 }
 0x5f1   : > { %v10383_v53 = vpop.f32.mrb[2].mxu0  ;;  %v11179_v54 = vadd.f32 %v11178_v50, %v10379_v40  ;;  %v9974_v55 = vpop.f32.mrb[3].mxu1 }
 0x5f2   : > { %v10384_v56 = vpop.f32.mrb[3].mxu0  ;;  %v11181_v57 = vadd.f32 %v11180_v43, %v10381_v24 }
 0x5f3   : > { %v10386_v59 = vmax.f32 %v11179_v54, 0.0 }
 0x5f4   : > { %v10387_v62 = vmax.f32 %v11181_v57, 0.0 }
 0x5f6   : > { %v11173_v63 = vpack.c.bf16 %v10387_v62, %v10386_v59 }
 0x5f8   : > { %v10399_v4 = vrot.slane %v11173_v63, %v13672_v10 }
 0x5fa   : > { %11174 = vst.sshfl [vmem:[%s5417_s29] sm:$0x5 pattern:$0x73625140] %v10399_v4 }
 0x5fb PF: > { %s13_s16 = sadd.s32 1, %s12304_s16   ;;  %s14547_s12 = smov %s12292_s13 }
 0x5fc   : > { %p10_p10 = scmp.ge.s32.totalorder %s13_s16, 6   ;;  %s14548_s13 = smov %s12362_s20 }
 0x5fd   : > { %s14549_s14 = smov %s12300_s15  ;;  %s14550_s15 = smov %s14552_s17 }
 0x5fe   :  { %12 = sbr.rel (!%p10_p10) target bundleno = 3 (0x3), region = 131 }

// kernel: capsule_net_forward.10
= control target key start
LH: loop header
LB: loop body
LE: loop exit
PB: predicated region body
PF: predicated region fallthrough
CT: control target
= control target key end

     0   :  { %s2355_s12 = smov 0   ;;  %s2357_s13 = smov 0   ;;  %s2860_s0 = inlined_call_operand.vmem [shape: bf16[2,1024], index: 0, kind: input, shape index: {}]   ;;  %s2861_s1 = inlined_call_operand.vmem [shape: bf16[1024,512], index: 1, kind: input, shape index: {}]   ;;  %s2862_s2 = inlined_call_operand.vmem [shape: f32[1,512], index: 2, kind: input, shape index: {}]   ;;  %s2863_s3 = inlined_call_operand.vmem [shape: bf16[2,512], index: 3, kind: output, shape index: {}]  }
   0x1   :  { %s2359_s14 = smov 0   ;;  %s2361_s15 = smov 0  }
   0x2   :  { %s2363_s16 = smov 0  }
   0x3 LB: > { %s22_s17 = sadd.s32 1, %s2328_s15  ;;  %p65_p1 = scmp.ne.s32.totalorder %s2320_s13, %s2316_s12  ;;  %s2332_s16 = sphi %s2363_s16, %s13_s16   ;;  %s2328_s15 = sphi %s2361_s15, %s2867_s15   ;;  %s2324_s14 = sphi %s2359_s14, %s2866_s14   ;;  %s2320_s13 = sphi %s2357_s13, %s2865_s13   ;;  %s2316_s12 = sphi %s2355_s12, %s2864_s12  }
   0x4   : > { %p23_p0 = scmp.ge.s32.totalorder %s22_s17, 2  ;;  %p66_p2 = scmp.eq.s32.totalorder %s2332_s16, 0 }
   0x5   : > { %s58_s19 = sadd.s32 1, %s2320_s13  ;;  %p1907_p5 = scmp.ge.s32.totalorder %s2332_s16, 2 }
   0x6   : > { %s2869_s17 = smov (%p23_p0, %s22_s17), 0  ;;  %p67_p3 = por %p66_p2, %p65_p1 }
   0x7   : > { %s55_s18 = ssub.s32 %s2328_s15, %s2869_s17  ;;  %152 = sbr.rel (%p1907_p5) target bundleno = 82 (0x52), region = 20 }
   0x8   : > { %p56_p4 = scmp.eq.s32.totalorder %s55_s18, 0 }
   0xa   : > { %s2390_s20 = scalar_select %p56_p4, %s2320_s13, %s58_s19  }
   0xe   : > { %155 = sbr.rel (!%p67_p3) target bundleno = 82 (0x52), region = 24  ;;  %s157_s21 = sand.u32 (%p67_p3), 1, %s2320_s13  }
   0xf   : > { %s2047_s22 = sshll.u32 (%p67_p3), %s2328_s15, 3  ;;  %s1908_s23 = sshll.u32 (%p67_p3), %s157_s21, 10 }
  0x10   : > { %s2398_s26 = scalar_lea.vmem (%p67_p3), %s2861_s1, %s2047_s22  ;;  %s2403_s27 = scalar_lea.vmem (%p67_p3), [#allocation2], %s1908_s23 }
  0x11   : > { %v444_v0 = vld [vmem:[%s2398_s26] sm:$0xff] (%p67_p3)  ;;  %v446_v1 = vld [vmem:[%s2398_s26 + $0x10] sm:$0xff] (%p67_p3) }
  0x12   : > { %v448_v2 = vld [vmem:[%s2398_s26 + $0x20] sm:$0xff] (%p67_p3)  ;;  %445 = vst [vmem:[%s2403_s27] sm:$0xff] (%p67_p3), %v444_v0  ;;  %447 = vst [vmem:[%s2403_s27 + $0x8] sm:$0xff] (%p67_p3), %v446_v1  ;;  %v450_v3 = vld [vmem:[%s2398_s26 + $0x30] sm:$0xff] (%p67_p3) }
  0x13   : > { %449 = vst [vmem:[%s2403_s27 + $0x10] sm:$0xff] (%p67_p3), %v448_v2  ;;  %v452_v4 = vld [vmem:[%s2398_s26 + $0x40] sm:$0xff] (%p67_p3)  ;;  %v454_v5 = vld [vmem:[%s2398_s26 + $0x50] sm:$0xff] (%p67_p3)  ;;  %451 = vst [vmem:[%s2403_s27 + $0x18] sm:$0xff] (%p67_p3), %v450_v3 }
  0x14   : > { %453 = vst [vmem:[%s2403_s27 + $0x20] sm:$0xff] (%p67_p3), %v452_v4  ;;  %455 = vst [vmem:[%s2403_s27 + $0x28] sm:$0xff] (%p67_p3), %v454_v5  ;;  %v456_v6 = vld [vmem:[%s2398_s26 + $0x60] sm:$0xff] (%p67_p3)  ;;  %v458_v7 = vld [vmem:[%s2398_s26 + $0x70] sm:$0xff] (%p67_p3) }
  0x15   : > { %v460_v8 = vld [vmem:[%s2398_s26 + $0x80] sm:$0xff]  ;;  %457 = vst [vmem:[%s2403_s27 + $0x30] sm:$0xff] %v456_v6  ;;  %459 = vst [vmem:[%s2403_s27 + $0x38] sm:$0xff] %v458_v7  ;;  %v462_v9 = vld [vmem:[%s2398_s26 + $0x90] sm:$0xff] }
  0x16   : > { %461 = vst [vmem:[%s2403_s27 + $0x40] sm:$0xff] %v460_v8  ;;  %v464_v10 = vld [vmem:[%s2398_s26 + $0xa0] sm:$0xff]  ;;  %v466_v11 = vld [vmem:[%s2398_s26 + $0xb0] sm:$0xff]  ;;  %463 = vst [vmem:[%s2403_s27 + $0x48] sm:$0xff] %v462_v9 }
  0x17   : > { %465 = vst [vmem:[%s2403_s27 + $0x50] sm:$0xff] %v464_v10  ;;  %467 = vst [vmem:[%s2403_s27 + $0x58] sm:$0xff] %v466_v11  ;;  %v468_v12 = vld [vmem:[%s2398_s26 + $0xc0] sm:$0xff]  ;;  %v470_v13 = vld [vmem:[%s2398_s26 + $0xd0] sm:$0xff] }
  0x18   : > { %v472_v14 = vld [vmem:[%s2398_s26 + $0xe0] sm:$0xff]  ;;  %469 = vst [vmem:[%s2403_s27 + $0x60] sm:$0xff] %v468_v12  ;;  %471 = vst [vmem:[%s2403_s27 + $0x68] sm:$0xff] %v470_v13  ;;  %v474_v15 = vld [vmem:[%s2398_s26 + $0xf0] sm:$0xff] }
  0x19   : > { %473 = vst [vmem:[%s2403_s27 + $0x70] sm:$0xff] %v472_v14  ;;  %v476_v16 = vld [vmem:[%s2398_s26 + $0x100] sm:$0xff]  ;;  %v478_v17 = vld [vmem:[%s2398_s26 + $0x110] sm:$0xff]  ;;  %475 = vst [vmem:[%s2403_s27 + $0x78] sm:$0xff] %v474_v15 }
  0x1a   : > { %477 = vst [vmem:[%s2403_s27 + $0x80] sm:$0xff] %v476_v16  ;;  %479 = vst [vmem:[%s2403_s27 + $0x88] sm:$0xff] %v478_v17  ;;  %v480_v18 = vld [vmem:[%s2398_s26 + $0x120] sm:$0xff]  ;;  %v482_v19 = vld [vmem:[%s2398_s26 + $0x130] sm:$0xff] }
  0x1b   : > { %v484_v20 = vld [vmem:[%s2398_s26 + $0x140] sm:$0xff]  ;;  %481 = vst [vmem:[%s2403_s27 + $0x90] sm:$0xff] %v480_v18  ;;  %483 = vst [vmem:[%s2403_s27 + $0x98] sm:$0xff] %v482_v19  ;;  %v486_v21 = vld [vmem:[%s2398_s26 + $0x150] sm:$0xff] }
  0x1c   : > { %485 = vst [vmem:[%s2403_s27 + $0xa0] sm:$0xff] %v484_v20  ;;  %v488_v22 = vld [vmem:[%s2398_s26 + $0x160] sm:$0xff]  ;;  %v490_v23 = vld [vmem:[%s2398_s26 + $0x170] sm:$0xff]  ;;  %487 = vst [vmem:[%s2403_s27 + $0xa8] sm:$0xff] %v486_v21 }
  0x1d   : > { %489 = vst [vmem:[%s2403_s27 + $0xb0] sm:$0xff] %v488_v22  ;;  %491 = vst [vmem:[%s2403_s27 + $0xb8] sm:$0xff] %v490_v23  ;;  %v492_v24 = vld [vmem:[%s2398_s26 + $0x180] sm:$0xff]  ;;  %v494_v25 = vld [vmem:[%s2398_s26 + $0x190] sm:$0xff] }
  0x1e   : > { %v496_v26 = vld [vmem:[%s2398_s26 + $0x1a0] sm:$0xff]  ;;  %493 = vst [vmem:[%s2403_s27 + $0xc0] sm:$0xff] %v492_v24  ;;  %495 = vst [vmem:[%s2403_s27 + $0xc8] sm:$0xff] %v494_v25  ;;  %v498_v27 = vld [vmem:[%s2398_s26 + $0x1b0] sm:$0xff] }
  0x1f   : > { %497 = vst [vmem:[%s2403_s27 + $0xd0] sm:$0xff] %v496_v26  ;;  %v500_v28 = vld [vmem:[%s2398_s26 + $0x1c0] sm:$0xff]  ;;  %v502_v29 = vld [vmem:[%s2398_s26 + $0x1d0] sm:$0xff]  ;;  %499 = vst [vmem:[%s2403_s27 + $0xd8] sm:$0xff] %v498_v27 }
  0x20   : > { %501 = vst [vmem:[%s2403_s27 + $0xe0] sm:$0xff] %v500_v28  ;;  %503 = vst [vmem:[%s2403_s27 + $0xe8] sm:$0xff] %v502_v29  ;;  %v504_v30 = vld [vmem:[%s2398_s26 + $0x1e0] sm:$0xff]  ;;  %v506_v31 = vld [vmem:[%s2398_s26 + $0x1f0] sm:$0xff] }
  0x21   : > { %v508_v32 = vld [vmem:[%s2398_s26 + $0x200] sm:$0xff]  ;;  %505 = vst [vmem:[%s2403_s27 + $0xf0] sm:$0xff] %v504_v30  ;;  %507 = vst [vmem:[%s2403_s27 + $0xf8] sm:$0xff] %v506_v31  ;;  %v510_v33 = vld [vmem:[%s2398_s26 + $0x210] sm:$0xff] }
  0x22   : > { %509 = vst [vmem:[%s2403_s27 + $0x100] sm:$0xff] %v508_v32  ;;  %v512_v34 = vld [vmem:[%s2398_s26 + $0x220] sm:$0xff]  ;;  %v514_v35 = vld [vmem:[%s2398_s26 + $0x230] sm:$0xff]  ;;  %511 = vst [vmem:[%s2403_s27 + $0x108] sm:$0xff] %v510_v33 }
  0x23   : > { %513 = vst [vmem:[%s2403_s27 + $0x110] sm:$0xff] %v512_v34  ;;  %515 = vst [vmem:[%s2403_s27 + $0x118] sm:$0xff] %v514_v35  ;;  %v516_v36 = vld [vmem:[%s2398_s26 + $0x240] sm:$0xff]  ;;  %v518_v37 = vld [vmem:[%s2398_s26 + $0x250] sm:$0xff] }
  0x24   : > { %v520_v38 = vld [vmem:[%s2398_s26 + $0x260] sm:$0xff]  ;;  %517 = vst [vmem:[%s2403_s27 + $0x120] sm:$0xff] %v516_v36  ;;  %519 = vst [vmem:[%s2403_s27 + $0x128] sm:$0xff] %v518_v37  ;;  %v522_v39 = vld [vmem:[%s2398_s26 + $0x270] sm:$0xff] }
  0x25   : > { %521 = vst [vmem:[%s2403_s27 + $0x130] sm:$0xff] %v520_v38  ;;  %v524_v40 = vld [vmem:[%s2398_s26 + $0x280] sm:$0xff]  ;;  %v526_v41 = vld [vmem:[%s2398_s26 + $0x290] sm:$0xff]  ;;  %523 = vst [vmem:[%s2403_s27 + $0x138] sm:$0xff] %v522_v39 }
  0x26   : > { %525 = vst [vmem:[%s2403_s27 + $0x140] sm:$0xff] %v524_v40  ;;  %527 = vst [vmem:[%s2403_s27 + $0x148] sm:$0xff] %v526_v41  ;;  %v528_v42 = vld [vmem:[%s2398_s26 + $0x2a0] sm:$0xff]  ;;  %v530_v43 = vld [vmem:[%s2398_s26 + $0x2b0] sm:$0xff] }
  0x27   : > { %v532_v44 = vld [vmem:[%s2398_s26 + $0x2c0] sm:$0xff]  ;;  %529 = vst [vmem:[%s2403_s27 + $0x150] sm:$0xff] %v528_v42  ;;  %531 = vst [vmem:[%s2403_s27 + $0x158] sm:$0xff] %v530_v43  ;;  %v534_v45 = vld [vmem:[%s2398_s26 + $0x2d0] sm:$0xff] }
  0x28   : > { %533 = vst [vmem:[%s2403_s27 + $0x160] sm:$0xff] %v532_v44  ;;  %v536_v46 = vld [vmem:[%s2398_s26 + $0x2e0] sm:$0xff]  ;;  %v538_v47 = vld [vmem:[%s2398_s26 + $0x2f0] sm:$0xff]  ;;  %535 = vst [vmem:[%s2403_s27 + $0x168] sm:$0xff] %v534_v45 }
  0x29   : > { %537 = vst [vmem:[%s2403_s27 + $0x170] sm:$0xff] %v536_v46  ;;  %539 = vst [vmem:[%s2403_s27 + $0x178] sm:$0xff] %v538_v47  ;;  %v540_v48 = vld [vmem:[%s2398_s26 + $0x300] sm:$0xff]  ;;  %v542_v49 = vld [vmem:[%s2398_s26 + $0x310] sm:$0xff] }
  0x2a   : > { %v544_v50 = vld [vmem:[%s2398_s26 + $0x320] sm:$0xff]  ;;  %541 = vst [vmem:[%s2403_s27 + $0x180] sm:$0xff] %v540_v48  ;;  %543 = vst [vmem:[%s2403_s27 + $0x188] sm:$0xff] %v542_v49  ;;  %v546_v51 = vld [vmem:[%s2398_s26 + $0x330] sm:$0xff] }
  0x2b   : > { %545 = vst [vmem:[%s2403_s27 + $0x190] sm:$0xff] %v544_v50  ;;  %v548_v52 = vld [vmem:[%s2398_s26 + $0x340] sm:$0xff]  ;;  %v550_v53 = vld [vmem:[%s2398_s26 + $0x350] sm:$0xff]  ;;  %547 = vst [vmem:[%s2403_s27 + $0x198] sm:$0xff] %v546_v51 }
  0x2c   : > { %549 = vst [vmem:[%s2403_s27 + $0x1a0] sm:$0xff] %v548_v52  ;;  %551 = vst [vmem:[%s2403_s27 + $0x1a8] sm:$0xff] %v550_v53  ;;  %v552_v54 = vld [vmem:[%s2398_s26 + $0x360] sm:$0xff]  ;;  %v554_v55 = vld [vmem:[%s2398_s26 + $0x370] sm:$0xff] }
  0x2d   : > { %v556_v56 = vld [vmem:[%s2398_s26 + $0x380] sm:$0xff]  ;;  %553 = vst [vmem:[%s2403_s27 + $0x1b0] sm:$0xff] %v552_v54  ;;  %555 = vst [vmem:[%s2403_s27 + $0x1b8] sm:$0xff] %v554_v55  ;;  %v558_v57 = vld [vmem:[%s2398_s26 + $0x390] sm:$0xff] }
  0x2e   : > { %557 = vst [vmem:[%s2403_s27 + $0x1c0] sm:$0xff] %v556_v56  ;;  %v560_v58 = vld [vmem:[%s2398_s26 + $0x3a0] sm:$0xff]  ;;  %v562_v59 = vld [vmem:[%s2398_s26 + $0x3b0] sm:$0xff]  ;;  %559 = vst [vmem:[%s2403_s27 + $0x1c8] sm:$0xff] %v558_v57 }
  0x2f   : > { %561 = vst [vmem:[%s2403_s27 + $0x1d0] sm:$0xff] %v560_v58  ;;  %563 = vst [vmem:[%s2403_s27 + $0x1d8] sm:$0xff] %v562_v59  ;;  %v564_v60 = vld [vmem:[%s2398_s26 + $0x3c0] sm:$0xff]  ;;  %v566_v61 = vld [vmem:[%s2398_s26 + $0x3d0] sm:$0xff] }
  0x30   : > { %v568_v62 = vld [vmem:[%s2398_s26 + $0x3e0] sm:$0xff]  ;;  %565 = vst [vmem:[%s2403_s27 + $0x1e0] sm:$0xff] %v564_v60  ;;  %567 = vst [vmem:[%s2403_s27 + $0x1e8] sm:$0xff] %v566_v61  ;;  %v570_v63 = vld [vmem:[%s2398_s26 + $0x3f0] sm:$0xff] }
  0x31   : > { %569 = vst [vmem:[%s2403_s27 + $0x1f0] sm:$0xff] %v568_v62  ;;  %v572_v0 = vld [vmem:[%s2398_s26 + $0x400] sm:$0xff]  ;;  %v574_v1 = vld [vmem:[%s2398_s26 + $0x410] sm:$0xff]  ;;  %571 = vst [vmem:[%s2403_s27 + $0x1f8] sm:$0xff] %v570_v63 }
  0x32   : > { %573 = vst [vmem:[%s2403_s27 + $0x200] sm:$0xff] %v572_v0  ;;  %575 = vst [vmem:[%s2403_s27 + $0x208] sm:$0xff] %v574_v1  ;;  %v576_v2 = vld [vmem:[%s2398_s26 + $0x420] sm:$0xff]  ;;  %v578_v3 = vld [vmem:[%s2398_s26 + $0x430] sm:$0xff] }
  0x33   : > { %v580_v4 = vld [vmem:[%s2398_s26 + $0x440] sm:$0xff]  ;;  %577 = vst [vmem:[%s2403_s27 + $0x210] sm:$0xff] %v576_v2  ;;  %579 = vst [vmem:[%s2403_s27 + $0x218] sm:$0xff] %v578_v3  ;;  %v582_v5 = vld [vmem:[%s2398_s26 + $0x450] sm:$0xff] }
  0x34   : > { %581 = vst [vmem:[%s2403_s27 + $0x220] sm:$0xff] %v580_v4  ;;  %v584_v6 = vld [vmem:[%s2398_s26 + $0x460] sm:$0xff]  ;;  %v586_v7 = vld [vmem:[%s2398_s26 + $0x470] sm:$0xff]  ;;  %583 = vst [vmem:[%s2403_s27 + $0x228] sm:$0xff] %v582_v5 }
  0x35   : > { %585 = vst [vmem:[%s2403_s27 + $0x230] sm:$0xff] %v584_v6  ;;  %587 = vst [vmem:[%s2403_s27 + $0x238] sm:$0xff] %v586_v7  ;;  %v588_v8 = vld [vmem:[%s2398_s26 + $0x480] sm:$0xff]  ;;  %v590_v9 = vld [vmem:[%s2398_s26 + $0x490] sm:$0xff] }
  0x36   : > { %v592_v10 = vld [vmem:[%s2398_s26 + $0x4a0] sm:$0xff]  ;;  %589 = vst [vmem:[%s2403_s27 + $0x240] sm:$0xff] %v588_v8  ;;  %591 = vst [vmem:[%s2403_s27 + $0x248] sm:$0xff] %v590_v9  ;;  %v594_v11 = vld [vmem:[%s2398_s26 + $0x4b0] sm:$0xff] }
  0x37   : > { %593 = vst [vmem:[%s2403_s27 + $0x250] sm:$0xff] %v592_v10  ;;  %v596_v12 = vld [vmem:[%s2398_s26 + $0x4c0] sm:$0xff]  ;;  %v598_v13 = vld [vmem:[%s2398_s26 + $0x4d0] sm:$0xff]  ;;  %595 = vst [vmem:[%s2403_s27 + $0x258] sm:$0xff] %v594_v11 }
  0x38   : > { %597 = vst [vmem:[%s2403_s27 + $0x260] sm:$0xff] %v596_v12  ;;  %599 = vst [vmem:[%s2403_s27 + $0x268] sm:$0xff] %v598_v13  ;;  %v600_v14 = vld [vmem:[%s2398_s26 + $0x4e0] sm:$0xff]  ;;  %v602_v15 = vld [vmem:[%s2398_s26 + $0x4f0] sm:$0xff] }
  0x39   : > { %v604_v16 = vld [vmem:[%s2398_s26 + $0x500] sm:$0xff]  ;;  %601 = vst [vmem:[%s2403_s27 + $0x270] sm:$0xff] %v600_v14  ;;  %603 = vst [vmem:[%s2403_s27 + $0x278] sm:$0xff] %v602_v15  ;;  %v606_v17 = vld [vmem:[%s2398_s26 + $0x510] sm:$0xff] }
  0x3a   : > { %605 = vst [vmem:[%s2403_s27 + $0x280] sm:$0xff] %v604_v16  ;;  %v608_v18 = vld [vmem:[%s2398_s26 + $0x520] sm:$0xff]  ;;  %v610_v19 = vld [vmem:[%s2398_s26 + $0x530] sm:$0xff]  ;;  %607 = vst [vmem:[%s2403_s27 + $0x288] sm:$0xff] %v606_v17 }
  0x3b   : > { %609 = vst [vmem:[%s2403_s27 + $0x290] sm:$0xff] %v608_v18  ;;  %611 = vst [vmem:[%s2403_s27 + $0x298] sm:$0xff] %v610_v19  ;;  %v612_v20 = vld [vmem:[%s2398_s26 + $0x540] sm:$0xff]  ;;  %v614_v21 = vld [vmem:[%s2398_s26 + $0x550] sm:$0xff] }
  0x3c   : > { %v616_v22 = vld [vmem:[%s2398_s26 + $0x560] sm:$0xff]  ;;  %613 = vst [vmem:[%s2403_s27 + $0x2a0] sm:$0xff] %v612_v20  ;;  %615 = vst [vmem:[%s2403_s27 + $0x2a8] sm:$0xff] %v614_v21  ;;  %v618_v23 = vld [vmem:[%s2398_s26 + $0x570] sm:$0xff] }
  0x3d   : > { %617 = vst [vmem:[%s2403_s27 + $0x2b0] sm:$0xff] %v616_v22  ;;  %v620_v24 = vld [vmem:[%s2398_s26 + $0x580] sm:$0xff]  ;;  %v622_v25 = vld [vmem:[%s2398_s26 + $0x590] sm:$0xff]  ;;  %619 = vst [vmem:[%s2403_s27 + $0x2b8] sm:$0xff] %v618_v23 }
  0x3e   : > { %621 = vst [vmem:[%s2403_s27 + $0x2c0] sm:$0xff] %v620_v24  ;;  %623 = vst [vmem:[%s2403_s27 + $0x2c8] sm:$0xff] %v622_v25  ;;  %v624_v26 = vld [vmem:[%s2398_s26 + $0x5a0] sm:$0xff]  ;;  %v626_v27 = vld [vmem:[%s2398_s26 + $0x5b0] sm:$0xff] }
  0x3f   : > { %v628_v28 = vld [vmem:[%s2398_s26 + $0x5c0] sm:$0xff]  ;;  %625 = vst [vmem:[%s2403_s27 + $0x2d0] sm:$0xff] %v624_v26  ;;  %627 = vst [vmem:[%s2403_s27 + $0x2d8] sm:$0xff] %v626_v27  ;;  %v630_v29 = vld [vmem:[%s2398_s26 + $0x5d0] sm:$0xff] }
  0x40   : > { %629 = vst [vmem:[%s2403_s27 + $0x2e0] sm:$0xff] %v628_v28  ;;  %v632_v30 = vld [vmem:[%s2398_s26 + $0x5e0] sm:$0xff]  ;;  %v634_v31 = vld [vmem:[%s2398_s26 + $0x5f0] sm:$0xff]  ;;  %631 = vst [vmem:[%s2403_s27 + $0x2e8] sm:$0xff] %v630_v29 }
  0x41   : > { %633 = vst [vmem:[%s2403_s27 + $0x2f0] sm:$0xff] %v632_v30  ;;  %635 = vst [vmem:[%s2403_s27 + $0x2f8] sm:$0xff] %v634_v31  ;;  %v636_v32 = vld [vmem:[%s2398_s26 + $0x600] sm:$0xff]  ;;  %v638_v33 = vld [vmem:[%s2398_s26 + $0x610] sm:$0xff] }
  0x42   : > { %v640_v34 = vld [vmem:[%s2398_s26 + $0x620] sm:$0xff]  ;;  %637 = vst [vmem:[%s2403_s27 + $0x300] sm:$0xff] %v636_v32  ;;  %639 = vst [vmem:[%s2403_s27 + $0x308] sm:$0xff] %v638_v33  ;;  %v642_v35 = vld [vmem:[%s2398_s26 + $0x630] sm:$0xff] }
  0x43   : > { %641 = vst [vmem:[%s2403_s27 + $0x310] sm:$0xff] %v640_v34  ;;  %v644_v36 = vld [vmem:[%s2398_s26 + $0x640] sm:$0xff]  ;;  %v646_v37 = vld [vmem:[%s2398_s26 + $0x650] sm:$0xff]  ;;  %643 = vst [vmem:[%s2403_s27 + $0x318] sm:$0xff] %v642_v35 }
  0x44   : > { %645 = vst [vmem:[%s2403_s27 + $0x320] sm:$0xff] %v644_v36  ;;  %647 = vst [vmem:[%s2403_s27 + $0x328] sm:$0xff] %v646_v37  ;;  %v648_v38 = vld [vmem:[%s2398_s26 + $0x660] sm:$0xff]  ;;  %v650_v39 = vld [vmem:[%s2398_s26 + $0x670] sm:$0xff] }
  0x45   : > { %v652_v40 = vld [vmem:[%s2398_s26 + $0x680] sm:$0xff]  ;;  %649 = vst [vmem:[%s2403_s27 + $0x330] sm:$0xff] %v648_v38  ;;  %651 = vst [vmem:[%s2403_s27 + $0x338] sm:$0xff] %v650_v39  ;;  %v654_v41 = vld [vmem:[%s2398_s26 + $0x690] sm:$0xff] }
  0x46   : > { %653 = vst [vmem:[%s2403_s27 + $0x340] sm:$0xff] %v652_v40  ;;  %v656_v42 = vld [vmem:[%s2398_s26 + $0x6a0] sm:$0xff]  ;;  %v658_v43 = vld [vmem:[%s2398_s26 + $0x6b0] sm:$0xff]  ;;  %655 = vst [vmem:[%s2403_s27 + $0x348] sm:$0xff] %v654_v41 }
  0x47   : > { %657 = vst [vmem:[%s2403_s27 + $0x350] sm:$0xff] %v656_v42  ;;  %659 = vst [vmem:[%s2403_s27 + $0x358] sm:$0xff] %v658_v43  ;;  %v660_v44 = vld [vmem:[%s2398_s26 + $0x6c0] sm:$0xff]  ;;  %v662_v45 = vld [vmem:[%s2398_s26 + $0x6d0] sm:$0xff] }
  0x48   : > { %v664_v46 = vld [vmem:[%s2398_s26 + $0x6e0] sm:$0xff]  ;;  %661 = vst [vmem:[%s2403_s27 + $0x360] sm:$0xff] %v660_v44  ;;  %663 = vst [vmem:[%s2403_s27 + $0x368] sm:$0xff] %v662_v45  ;;  %v666_v47 = vld [vmem:[%s2398_s26 + $0x6f0] sm:$0xff] }
  0x49   : > { %665 = vst [vmem:[%s2403_s27 + $0x370] sm:$0xff] %v664_v46  ;;  %v668_v48 = vld [vmem:[%s2398_s26 + $0x700] sm:$0xff]  ;;  %v670_v49 = vld [vmem:[%s2398_s26 + $0x710] sm:$0xff]  ;;  %667 = vst [vmem:[%s2403_s27 + $0x378] sm:$0xff] %v666_v47 }
  0x4a   : > { %669 = vst [vmem:[%s2403_s27 + $0x380] sm:$0xff] %v668_v48  ;;  %671 = vst [vmem:[%s2403_s27 + $0x388] sm:$0xff] %v670_v49  ;;  %v672_v50 = vld [vmem:[%s2398_s26 + $0x720] sm:$0xff]  ;;  %v674_v51 = vld [vmem:[%s2398_s26 + $0x730] sm:$0xff] }
  0x4b   : > { %v676_v52 = vld [vmem:[%s2398_s26 + $0x740] sm:$0xff]  ;;  %673 = vst [vmem:[%s2403_s27 + $0x390] sm:$0xff] %v672_v50  ;;  %675 = vst [vmem:[%s2403_s27 + $0x398] sm:$0xff] %v674_v51  ;;  %v678_v53 = vld [vmem:[%s2398_s26 + $0x750] sm:$0xff] }
  0x4c   : > { %677 = vst [vmem:[%s2403_s27 + $0x3a0] sm:$0xff] %v676_v52  ;;  %v680_v54 = vld [vmem:[%s2398_s26 + $0x760] sm:$0xff]  ;;  %v682_v55 = vld [vmem:[%s2398_s26 + $0x770] sm:$0xff]  ;;  %679 = vst [vmem:[%s2403_s27 + $0x3a8] sm:$0xff] %v678_v53 }
  0x4d   : > { %681 = vst [vmem:[%s2403_s27 + $0x3b0] sm:$0xff] %v680_v54  ;;  %683 = vst [vmem:[%s2403_s27 + $0x3b8] sm:$0xff] %v682_v55  ;;  %v684_v56 = vld [vmem:[%s2398_s26 + $0x780] sm:$0xff]  ;;  %v686_v57 = vld [vmem:[%s2398_s26 + $0x790] sm:$0xff] }
  0x4e   : > { %v688_v58 = vld [vmem:[%s2398_s26 + $0x7a0] sm:$0xff]  ;;  %685 = vst [vmem:[%s2403_s27 + $0x3c0] sm:$0xff] %v684_v56  ;;  %687 = vst [vmem:[%s2403_s27 + $0x3c8] sm:$0xff] %v686_v57  ;;  %v690_v59 = vld [vmem:[%s2398_s26 + $0x7b0] sm:$0xff] }
  0x4f   : > { %689 = vst [vmem:[%s2403_s27 + $0x3d0] sm:$0xff] %v688_v58  ;;  %v692_v60 = vld [vmem:[%s2398_s26 + $0x7c0] sm:$0xff]  ;;  %v694_v61 = vld [vmem:[%s2398_s26 + $0x7d0] sm:$0xff]  ;;  %691 = vst [vmem:[%s2403_s27 + $0x3d8] sm:$0xff] %v690_v59 }
  0x50   : > { %693 = vst [vmem:[%s2403_s27 + $0x3e0] sm:$0xff] %v692_v60  ;;  %695 = vst [vmem:[%s2403_s27 + $0x3e8] sm:$0xff] %v694_v61  ;;  %v696_v62 = vld [vmem:[%s2398_s26 + $0x7e0] sm:$0xff]  ;;  %v698_v63 = vld [vmem:[%s2398_s26 + $0x7f0] sm:$0xff] }
  0x51   : > { %697 = vst [vmem:[%s2403_s27 + $0x3f0] sm:$0xff] %v696_v62  ;;  %699 = vst [vmem:[%s2403_s27 + $0x3f8] sm:$0xff] %v698_v63 }
  0x52 PF: > { %p1911_p6 = scmp.ge.s32.totalorder %s2332_s16, 1  ;;  %p712_p7 = scmp.lt.s32.totalorder %s2332_s16, 3 }
  0x54   : > { %p713_p8 = pnand %p1911_p6, %p712_p7 }
  0x55   : > { %s719_s28 = sand.u32 (!%p713_p8), 1, %s2316_s12   ;;  %v772_v0 = vld [vmem:[%s2860_s0] sm:$0xff] (!%p713_p8)  ;;  %v903_v1 = vlaneseq (!%p713_p8)  ;;  %v2334_v2 = vmov (!%p713_p8), 1966171168   ;;  %s1913_s6 = sshll.u32 (!%p713_p8), %s2324_s14, 1 }
  0x56   : > { %716 = sbr.rel (%p713_p8) target bundleno = 442 (0x1ba), region = 66  ;;  %s1912_s4 = sshll.u32 (!%p713_p8), %s719_s28, 10  ;;  %v916_v3 = vunpack.c.l.s4 (!%p713_p8), %v2334_v2  ;;  %v914_v7 = vcombine.high (!%p713_p8), %v772_v0, %v772_v0 }
  0x57   : > { %v2664_v4 = vshrl.u32 (!%p713_p8), %v903_v1, 7  ;;  %s2666_s5 = scalar_lea.vmem (!%p713_p8), [#allocation2], %s1912_s4  ;;  %p759_p9 = scmp.lt.s32.totalorder (!%p713_p8), %s1913_s6, 3 }
  0x58   : > { %v2101_v5 = vld [vmem:[%s2666_s5 + $0x4] ss:$8 sps:$4 sm:$0xff] (!%p713_p8)   ;;  %v917_v6 = vunpack.c.0.s8 (!%p713_p8), %v916_v3  ;;  %v2105_v9 = vld [vmem:[%s2666_s5] ss:$8 sps:$4 sm:$0xff] (!%p713_p8)   ;;  %v2107_v12 = vld [vmem:[%s2666_s5 + $0x14] ss:$8 sps:$4 sm:$0xff] (!%p713_p8)  }
  0x59   : > { %v2103_v8 = vld [vmem:[%s2666_s5 + $0x204] ss:$8 sps:$4 sm:$0xff] (!%p713_p8)   ;;  %1611 = vmatprep.subr.bf16.mxu1 (!%p713_p8), %v2101_v5  ;;  %v2106_v10 = vld [vmem:[%s2666_s5 + $0x200] ss:$8 sps:$4 sm:$0xff] (!%p713_p8)   ;;  %v2109_v13 = vld [vmem:[%s2666_s5 + $0x214] ss:$8 sps:$4 sm:$0xff] (!%p713_p8)  }
  0x5a   : > { %v2673_v11 = vsub.s32 (!%p713_p8), %v917_v6, %v2664_v4  ;;  %1693 = vmatprep.subr.bf16.mxu0 (!%p713_p8), %v2103_v8  ;;  %1612 = vmatpush1.bf16.msra.mxu1 (!%p713_p8), %v2105_v9  ;;  %v2111_v14 = vld [vmem:[%s2666_s5 + $0x10] ss:$8 sps:$4 sm:$0xff] (!%p713_p8)   ;;  %v2113_v18 = vld [vmem:[%s2666_s5 + $0x24] ss:$8 sps:$4 sm:$0xff] (!%p713_p8)   ;;  %v2117_v22 = vld [vmem:[%s2666_s5 + $0x20] ss:$8 sps:$4 sm:$0xff] (!%p713_p8)  }
  0x5b   : > { %1694 = vmatpush1.bf16.msra.mxu0 (!%p713_p8), %v2106_v10  ;;  %1613 = vmatprep.subr.bf16.mxu1 (!%p713_p8), %v2107_v12  ;;  %v2112_v17 = vld [vmem:[%s2666_s5 + $0x210] ss:$8 sps:$4 sm:$0xff] (!%p713_p8)   ;;  %v2115_v21 = vld [vmem:[%s2666_s5 + $0x224] ss:$8 sps:$4 sm:$0xff] (!%p713_p8)   ;;  %v2118_v23 = vld [vmem:[%s2666_s5 + $0x220] ss:$8 sps:$4 sm:$0xff] (!%p713_p8)  }
  0x5c   : > { %v2679_v15 = vrot.slane (!%p713_p8), %v772_v0, %v2673_v11  ;;  %v2682_v16 = vrot.slane (!%p713_p8), %v914_v7, %v2673_v11  ;;  %1695 = vmatprep.subr.bf16.mxu0 (!%p713_p8), %v2109_v13  ;;  %v2119_v24 = vld [vmem:[%s2666_s5 + $0x34] ss:$8 sps:$4 sm:$0xff] (!%p713_p8)   ;;  %v2123_v28 = vld [vmem:[%s2666_s5 + $0x30] ss:$8 sps:$4 sm:$0xff] (!%p713_p8)   ;;  %v2125_v30 = vld [vmem:[%s2666_s5 + $0x44] ss:$8 sps:$4 sm:$0xff] (!%p713_p8)  }
  0x5d   : > { %v2121_v27 = vld [vmem:[%s2666_s5 + $0x234] ss:$8 sps:$4 sm:$0xff]   ;;  %v2124_v29 = vld [vmem:[%s2666_s5 + $0x230] ss:$8 sps:$4 sm:$0xff]   ;;  %v2127_v31 = vld [vmem:[%s2666_s5 + $0x244] ss:$8 sps:$4 sm:$0xff]  }
  0x5e   : > { %v929_v19 = vcombine.high %v2679_v15, %v2679_v15  ;;  %v930_v20 = vcombine.high %v2682_v16, %v2682_v16  ;;  %1614 = vmatpush1.bf16.msra.mxu1 %v2111_v14  ;;  %v2129_v32 = vld [vmem:[%s2666_s5 + $0x40] ss:$8 sps:$4 sm:$0xff]   ;;  %v2131_v34 = vld [vmem:[%s2666_s5 + $0x54] ss:$8 sps:$4 sm:$0xff]   ;;  %v2135_v36 = vld [vmem:[%s2666_s5 + $0x50] ss:$8 sps:$4 sm:$0xff]  }
  0x5f   : > { %1696 = vmatpush1.bf16.msra.mxu0 %v2112_v17  ;;  %1615 = vmatprep.subr.bf16.mxu1 %v2113_v18  ;;  %v2130_v33 = vld [vmem:[%s2666_s5 + $0x240] ss:$8 sps:$4 sm:$0xff]   ;;  %v2133_v35 = vld [vmem:[%s2666_s5 + $0x254] ss:$8 sps:$4 sm:$0xff]   ;;  %v2136_v37 = vld [vmem:[%s2666_s5 + $0x250] ss:$8 sps:$4 sm:$0xff]  }
  0x60   : > { %v2695_v25 = vrot.slane %v929_v19, %v2673_v11  ;;  %v2698_v26 = vrot.slane %v930_v20, %v2673_v11  ;;  %1697 = vmatprep.subr.bf16.mxu0 %v2115_v21  ;;  %v2137_v38 = vld [vmem:[%s2666_s5 + $0x64] ss:$8 sps:$4 sm:$0xff]   ;;  %v2141_v40 = vld [vmem:[%s2666_s5 + $0x60] ss:$8 sps:$4 sm:$0xff]   ;;  %v2143_v42 = vld [vmem:[%s2666_s5 + $0x74] ss:$8 sps:$4 sm:$0xff]  }
  0x61   : > { %v2139_v39 = vld [vmem:[%s2666_s5 + $0x264] ss:$8 sps:$4 sm:$0xff]   ;;  %v2142_v41 = vld [vmem:[%s2666_s5 + $0x260] ss:$8 sps:$4 sm:$0xff]   ;;  %v2145_v43 = vld [vmem:[%s2666_s5 + $0x274] ss:$8 sps:$4 sm:$0xff]  }
  0x62   : > { %1643 = vmatprep.mubr.bf16.mxu1 %v2695_v25  ;;  %1725 = vmatprep.mubr.bf16.mxu0 %v2698_v26  ;;  %v2147_v44 = vld [vmem:[%s2666_s5 + $0x70] ss:$8 sps:$4 sm:$0xff]   ;;  %v2149_v46 = vld [vmem:[%s2666_s5 + $0x84] ss:$8 sps:$4 sm:$0xff]   ;;  %v2153_v48 = vld [vmem:[%s2666_s5 + $0x80] ss:$8 sps:$4 sm:$0xff]  }
  0x63   : > { %1616 = vmatpush1.bf16.msra.mxu1 %v2117_v22  ;;  %1698 = vmatpush1.bf16.msra.mxu0 %v2118_v23  ;;  %v2148_v45 = vld [vmem:[%s2666_s5 + $0x270] ss:$8 sps:$4 sm:$0xff]   ;;  %v2151_v47 = vld [vmem:[%s2666_s5 + $0x284] ss:$8 sps:$4 sm:$0xff]   ;;  %v2154_v49 = vld [vmem:[%s2666_s5 + $0x280] ss:$8 sps:$4 sm:$0xff]   ;;  %v2759_v22 = vrot.slane %v2679_v15, %v2673_v11  ;;  %v2763_v23 = vrot.slane %v2682_v16, %v2673_v11  ;;  %v962_v15 = vcombine.high %v2698_v26, %v2698_v26 }
  0x64   : > { %1617 = vmatprep.subr.bf16.mxu1 %v2119_v24  ;;  %1699 = vmatprep.subr.bf16.mxu0 %v2121_v27  ;;  %v2155_v50 = vld [vmem:[%s2666_s5 + $0x94] ss:$8 sps:$4 sm:$0xff]   ;;  %v2159_v52 = vld [vmem:[%s2666_s5 + $0x90] ss:$8 sps:$4 sm:$0xff]   ;;  %v2161_v54 = vld [vmem:[%s2666_s5 + $0xa4] ss:$8 sps:$4 sm:$0xff]  }
  0x65   : > { %v2157_v51 = vld [vmem:[%s2666_s5 + $0x294] ss:$8 sps:$4 sm:$0xff]   ;;  %v2160_v53 = vld [vmem:[%s2666_s5 + $0x290] ss:$8 sps:$4 sm:$0xff]   ;;  %v2163_v55 = vld [vmem:[%s2666_s5 + $0x2a4] ss:$8 sps:$4 sm:$0xff]  }
  0x66   : > { %v2165_v56 = vld [vmem:[%s2666_s5 + $0xa0] ss:$8 sps:$4 sm:$0xff]   ;;  %v2167_v58 = vld [vmem:[%s2666_s5 + $0xb4] ss:$8 sps:$4 sm:$0xff]   ;;  %v2171_v60 = vld [vmem:[%s2666_s5 + $0xb0] ss:$8 sps:$4 sm:$0xff]  }
  0x67   : > { %1618 = vmatpush1.bf16.msra.mxu1 %v2123_v28  ;;  %1700 = vmatpush1.bf16.msra.mxu0 %v2124_v29  ;;  %v2166_v57 = vld [vmem:[%s2666_s5 + $0x2a0] ss:$8 sps:$4 sm:$0xff]   ;;  %v2169_v59 = vld [vmem:[%s2666_s5 + $0x2b4] ss:$8 sps:$4 sm:$0xff]   ;;  %v2172_v61 = vld [vmem:[%s2666_s5 + $0x2b0] ss:$8 sps:$4 sm:$0xff]   ;;  %v961_v28 = vcombine.high %v2695_v25, %v2695_v25 }
  0x68   : > { %1619 = vmatprep.subr.bf16.mxu1 %v2125_v30  ;;  %1701 = vmatprep.subr.bf16.mxu0 %v2127_v31  ;;  %v2173_v62 = vld [vmem:[%s2666_s5 + $0xc4] ss:$8 sps:$4 sm:$0xff]   ;;  %v2177_v0 = vld [vmem:[%s2666_s5 + $0xc0] ss:$8 sps:$4 sm:$0xff]   ;;  %v2179_v2 = vld [vmem:[%s2666_s5 + $0xd4] ss:$8 sps:$4 sm:$0xff]  }
  0x69   : > { %v2175_v63 = vld [vmem:[%s2666_s5 + $0x2c4] ss:$8 sps:$4 sm:$0xff]   ;;  %v2178_v1 = vld [vmem:[%s2666_s5 + $0x2c0] ss:$8 sps:$4 sm:$0xff]   ;;  %v2181_v3 = vld [vmem:[%s2666_s5 + $0x2d4] ss:$8 sps:$4 sm:$0xff]  }
  0x6a   : > { %v2183_v5 = vld [vmem:[%s2666_s5 + $0xd0] ss:$8 sps:$4 sm:$0xff]   ;;  %v2185_v7 = vld [vmem:[%s2666_s5 + $0xe4] ss:$8 sps:$4 sm:$0xff]   ;;  %v2189_v9 = vld [vmem:[%s2666_s5 + $0xe0] ss:$8 sps:$4 sm:$0xff]  }
  0x6b   : > { %1620 = vmatpush1.bf16.msra.mxu1 %v2129_v32  ;;  %1702 = vmatpush1.bf16.msra.mxu0 %v2130_v33  ;;  %v2184_v6 = vld [vmem:[%s2666_s5 + $0x2d0] ss:$8 sps:$4 sm:$0xff]   ;;  %v2187_v8 = vld [vmem:[%s2666_s5 + $0x2e4] ss:$8 sps:$4 sm:$0xff]   ;;  %v2190_v10 = vld [vmem:[%s2666_s5 + $0x2e0] ss:$8 sps:$4 sm:$0xff]  }
  0x6c   : > { %1621 = vmatprep.subr.bf16.mxu1 %v2131_v34  ;;  %1703 = vmatprep.subr.bf16.mxu0 %v2133_v35  ;;  %v2191_v12 = vld [vmem:[%s2666_s5 + $0xf4] ss:$8 sps:$4 sm:$0xff]   ;;  %v2195_v14 = vld [vmem:[%s2666_s5 + $0xf0] ss:$8 sps:$4 sm:$0xff]   ;;  %v2199_v18 = vld [vmem:[%s2666_s5 + $0x104] ss:$8 sps:$4 sm:$0xff]  }
  0x6d   : > { %v2193_v13 = vld [vmem:[%s2666_s5 + $0x2f4] ss:$8 sps:$4 sm:$0xff]   ;;  %v2196_v17 = vld [vmem:[%s2666_s5 + $0x2f0] ss:$8 sps:$4 sm:$0xff]   ;;  %v2203_v19 = vld [vmem:[%s2666_s5 + $0x304] ss:$8 sps:$4 sm:$0xff]  }
  0x6e   : > { %v2197_v20 = vld [vmem:[%s2666_s5 + $0x100] ss:$8 sps:$4 sm:$0xff]   ;;  %v2206_v24 = vld [vmem:[%s2666_s5 + $0x114] ss:$8 sps:$4 sm:$0xff]   ;;  %v2204_v16 = vld [vmem:[%s2666_s5 + $0x110] ss:$8 sps:$4 sm:$0xff]  }
  0x6f   : > { %1622 = vmatpush1.bf16.msra.mxu1 %v2135_v36  ;;  %1704 = vmatpush1.bf16.msra.mxu0 %v2136_v37  ;;  %v2201_v21 = vld [vmem:[%s2666_s5 + $0x300] ss:$8 sps:$4 sm:$0xff]   ;;  %v2209_v27 = vld [vmem:[%s2666_s5 + $0x314] ss:$8 sps:$4 sm:$0xff]   ;;  %v2207_v29 = vld [vmem:[%s2666_s5 + $0x310] ss:$8 sps:$4 sm:$0xff]  }
  0x70   : > { %1623 = vmatprep.subr.bf16.mxu1 %v2137_v38  ;;  %1705 = vmatprep.subr.bf16.mxu0 %v2139_v39  ;;  %v2212_v30 = vld [vmem:[%s2666_s5 + $0x124] ss:$8 sps:$4 sm:$0xff]   ;;  %v2210_v26 = vld [vmem:[%s2666_s5 + $0x120] ss:$8 sps:$4 sm:$0xff]   ;;  %v2218_v32 = vld [vmem:[%s2666_s5 + $0x134] ss:$8 sps:$4 sm:$0xff]  }
  0x71   : > { %v2215_v25 = vld [vmem:[%s2666_s5 + $0x324] ss:$8 sps:$4 sm:$0xff]   ;;  %v2213_v31 = vld [vmem:[%s2666_s5 + $0x320] ss:$8 sps:$4 sm:$0xff]   ;;  %v2221_v33 = vld [vmem:[%s2666_s5 + $0x334] ss:$8 sps:$4 sm:$0xff]  }
  0x72   : > { %v2216_v34 = vld [vmem:[%s2666_s5 + $0x130] ss:$8 sps:$4 sm:$0xff]   ;;  %v2224_v36 = vld [vmem:[%s2666_s5 + $0x144] ss:$8 sps:$4 sm:$0xff]   ;;  %v2222_v38 = vld [vmem:[%s2666_s5 + $0x140] ss:$8 sps:$4 sm:$0xff]  }
  0x73   : > { %1624 = vmatpush1.bf16.msra.mxu1 %v2141_v40  ;;  %1706 = vmatpush1.bf16.msra.mxu0 %v2142_v41  ;;  %v2219_v35 = vld [vmem:[%s2666_s5 + $0x330] ss:$8 sps:$4 sm:$0xff]   ;;  %v2227_v37 = vld [vmem:[%s2666_s5 + $0x344] ss:$8 sps:$4 sm:$0xff]   ;;  %v2225_v39 = vld [vmem:[%s2666_s5 + $0x340] ss:$8 sps:$4 sm:$0xff]  }
  0x74   : > { %1625 = vmatprep.subr.bf16.mxu1 %v2143_v42  ;;  %1707 = vmatprep.subr.bf16.mxu0 %v2145_v43  ;;  %v2230_v40 = vld [vmem:[%s2666_s5 + $0x154] ss:$8 sps:$4 sm:$0xff]   ;;  %v2228_v42 = vld [vmem:[%s2666_s5 + $0x150] ss:$8 sps:$4 sm:$0xff]   ;;  %s2871_s6 = smov (!%p759_p9, %s1913_s6), 3 }
  0x75   : > { %v2233_v41 = vld [vmem:[%s2666_s5 + $0x354] ss:$8 sps:$4 sm:$0xff]   ;;  %v2231_v43 = vld [vmem:[%s2666_s5 + $0x350] ss:$8 sps:$4 sm:$0xff]   ;;  %s761_s9 = scalar_lea.vmem %s2862_s2, %s2871_s6  ;;  %s770_s12 = scalar_lea.vmem %s2863_s3, %s2871_s6 }
  0x77   : > { %1626 = vmatpush1.bf16.msra.mxu1 %v2147_v44  ;;  %1708 = vmatpush1.bf16.msra.mxu0 %v2148_v45  ;;  %v2236_v44 = vld [vmem:[%s2666_s5 + $0x164] ss:$8 sps:$4 sm:$0xff]  }
  0x78   : > { %1627 = vmatprep.subr.bf16.mxu1 %v2149_v46  ;;  %1709 = vmatprep.subr.bf16.mxu0 %v2151_v47  ;;  %v2239_v45 = vld [vmem:[%s2666_s5 + $0x364] ss:$8 sps:$4 sm:$0xff]   ;;  %v2234_v46 = vld [vmem:[%s2666_s5 + $0x160] ss:$8 sps:$4 sm:$0xff]  }
  0x79   : > { %v2237_v47 = vld [vmem:[%s2666_s5 + $0x360] ss:$8 sps:$4 sm:$0xff]  }
  0x7b   : > { %1628 = vmatpush1.bf16.msra.mxu1 %v2153_v48  ;;  %1710 = vmatpush1.bf16.msra.mxu0 %v2154_v49  ;;  %v2242_v48 = vld [vmem:[%s2666_s5 + $0x174] ss:$8 sps:$4 sm:$0xff]  }
  0x7c   : > { %1629 = vmatprep.subr.bf16.mxu1 %v2155_v50  ;;  %1711 = vmatprep.subr.bf16.mxu0 %v2157_v51  ;;  %v2245_v49 = vld [vmem:[%s2666_s5 + $0x374] ss:$8 sps:$4 sm:$0xff]   ;;  %v2240_v50 = vld [vmem:[%s2666_s5 + $0x170] ss:$8 sps:$4 sm:$0xff]  }
  0x7d   : > { %v2243_v51 = vld [vmem:[%s2666_s5 + $0x370] ss:$8 sps:$4 sm:$0xff]  }
  0x7f   : > { %1630 = vmatpush1.bf16.msra.mxu1 %v2159_v52  ;;  %1712 = vmatpush1.bf16.msra.mxu0 %v2160_v53  ;;  %v2248_v52 = vld [vmem:[%s2666_s5 + $0x184] ss:$8 sps:$4 sm:$0xff]  }
  0x80   : > { %1631 = vmatprep.subr.bf16.mxu1 %v2161_v54  ;;  %1713 = vmatprep.subr.bf16.mxu0 %v2163_v55  ;;  %v2251_v53 = vld [vmem:[%s2666_s5 + $0x384] ss:$8 sps:$4 sm:$0xff]   ;;  %v2246_v54 = vld [vmem:[%s2666_s5 + $0x180] ss:$8 sps:$4 sm:$0xff]  }
  0x81   : > { %v2249_v55 = vld [vmem:[%s2666_s5 + $0x380] ss:$8 sps:$4 sm:$0xff]  }
  0x83   : > { %1632 = vmatpush1.bf16.msra.mxu1 %v2165_v56  ;;  %1714 = vmatpush1.bf16.msra.mxu0 %v2166_v57  ;;  %v2254_v56 = vld [vmem:[%s2666_s5 + $0x194] ss:$8 sps:$4 sm:$0xff]  }
  0x84   : > { %1633 = vmatprep.subr.bf16.mxu1 %v2167_v58  ;;  %1715 = vmatprep.subr.bf16.mxu0 %v2169_v59  ;;  %v2257_v57 = vld [vmem:[%s2666_s5 + $0x394] ss:$8 sps:$4 sm:$0xff]   ;;  %v2252_v58 = vld [vmem:[%s2666_s5 + $0x190] ss:$8 sps:$4 sm:$0xff]  }
  0x85   : > { %v2255_v59 = vld [vmem:[%s2666_s5 + $0x390] ss:$8 sps:$4 sm:$0xff]  }
  0x87   : > { %1634 = vmatpush1.bf16.msra.mxu1 %v2171_v60  ;;  %1716 = vmatpush1.bf16.msra.mxu0 %v2172_v61  ;;  %v2260_v60 = vld [vmem:[%s2666_s5 + $0x1a4] ss:$8 sps:$4 sm:$0xff]  }
  0x88   : > { %1635 = vmatprep.subr.bf16.mxu1 %v2173_v62  ;;  %1717 = vmatprep.subr.bf16.mxu0 %v2175_v63  ;;  %v2263_v61 = vld [vmem:[%s2666_s5 + $0x3a4] ss:$8 sps:$4 sm:$0xff]   ;;  %v2258_v62 = vld [vmem:[%s2666_s5 + $0x1a0] ss:$8 sps:$4 sm:$0xff]  }
  0x89   : > { %v2261_v63 = vld [vmem:[%s2666_s5 + $0x3a0] ss:$8 sps:$4 sm:$0xff]  }
  0x8b   : > { %1636 = vmatpush1.bf16.msra.mxu1 %v2177_v0  ;;  %1718 = vmatpush1.bf16.msra.mxu0 %v2178_v1  ;;  %v2266_v0 = vld [vmem:[%s2666_s5 + $0x1b4] ss:$8 sps:$4 sm:$0xff]  }
  0x8c   : > { %1637 = vmatprep.subr.bf16.mxu1 %v2179_v2  ;;  %1719 = vmatprep.subr.bf16.mxu0 %v2181_v3  ;;  %v2269_v1 = vld [vmem:[%s2666_s5 + $0x3b4] ss:$8 sps:$4 sm:$0xff]   ;;  %v2264_v2 = vld [vmem:[%s2666_s5 + $0x1b0] ss:$8 sps:$4 sm:$0xff]  }
  0x8d   : > { %v2267_v3 = vld [vmem:[%s2666_s5 + $0x3b0] ss:$8 sps:$4 sm:$0xff]  }
  0x8f   : > { %1638 = vmatpush1.bf16.msra.mxu1 %v2183_v5  ;;  %1720 = vmatpush1.bf16.msra.mxu0 %v2184_v6  ;;  %v2272_v5 = vld [vmem:[%s2666_s5 + $0x1c4] ss:$8 sps:$4 sm:$0xff]  }
  0x90   : > { %1639 = vmatprep.subr.bf16.mxu1 %v2185_v7  ;;  %1721 = vmatprep.subr.bf16.mxu0 %v2187_v8  ;;  %v2275_v6 = vld [vmem:[%s2666_s5 + $0x3c4] ss:$8 sps:$4 sm:$0xff]   ;;  %v2270_v7 = vld [vmem:[%s2666_s5 + $0x1c0] ss:$8 sps:$4 sm:$0xff]  }
  0x91   : > { %v2273_v8 = vld [vmem:[%s2666_s5 + $0x3c0] ss:$8 sps:$4 sm:$0xff]  }
  0x93   : > { %1640 = vmatpush1.bf16.msra.mxu1 %v2189_v9  ;;  %1722 = vmatpush1.bf16.msra.mxu0 %v2190_v10  ;;  %v2278_v9 = vld [vmem:[%s2666_s5 + $0x1d4] ss:$8 sps:$4 sm:$0xff]  }
  0x94   : > { %1641 = vmatprep.subr.bf16.mxu1 %v2191_v12  ;;  %1723 = vmatprep.subr.bf16.mxu0 %v2193_v13  ;;  %v2281_v10 = vld [vmem:[%s2666_s5 + $0x3d4] ss:$8 sps:$4 sm:$0xff]   ;;  %v2276_v12 = vld [vmem:[%s2666_s5 + $0x1d0] ss:$8 sps:$4 sm:$0xff]  }
  0x95   : > { %v2279_v13 = vld [vmem:[%s2666_s5 + $0x3d0] ss:$8 sps:$4 sm:$0xff]  }
  0x97   : > { %1642 = vmatpush1.bf16.msra.mxu1 %v2195_v14  ;;  %1724 = vmatpush1.bf16.msra.mxu0 %v2196_v17  ;;  %v2284_v14 = vld [vmem:[%s2666_s5 + $0x1e4] ss:$8 sps:$4 sm:$0xff]  }
  0x98   : > { %1652 = vmatprep.subr.bf16.mxu1 %v2199_v18  ;;  %1734 = vmatprep.subr.bf16.mxu0 %v2203_v19  ;;  %v2287_v17 = vld [vmem:[%s2666_s5 + $0x3e4] ss:$8 sps:$4 sm:$0xff]   ;;  %v2282_v18 = vld [vmem:[%s2666_s5 + $0x1e0] ss:$8 sps:$4 sm:$0xff]  }
  0x99   : > { %v2285_v19 = vld [vmem:[%s2666_s5 + $0x3e0] ss:$8 sps:$4 sm:$0xff]  }
  0x9a   : > { %1644 = vmatmul.mubr.bf16.vlgmr.msra.gmra.mrb[0].mxu1 %v2759_v22  ;;  %1726 = vmatmul.mubr.bf16.vlgmr.msra.gmra.mrb[0].mxu0 %v2763_v23 }
  0x9b   : > { %1653 = vmatpush1.bf16.msra.mxu1 %v2197_v20  ;;  %1735 = vmatpush1.bf16.msra.mxu0 %v2201_v21  ;;  %v2290_v20 = vld [vmem:[%s2666_s5 + $0x1f4] ss:$8 sps:$4 sm:$0xff]  }
  0x9c   : > { %1654 = vmatprep.subr.bf16.mxu1 %v2206_v24  ;;  %1736 = vmatprep.subr.bf16.mxu0 %v2209_v27  ;;  %v2293_v21 = vld [vmem:[%s2666_s5 + $0x3f4] ss:$8 sps:$4 sm:$0xff]   ;;  %v2288_v24 = vld [vmem:[%s2666_s5 + $0x1f0] ss:$8 sps:$4 sm:$0xff]  }
  0x9d   : > { %1684 = vmatprep.mubr.bf16.mxu1 %v961_v28  ;;  %1766 = vmatprep.mubr.bf16.mxu0 %v962_v15  ;;  %v2291_v27 = vld [vmem:[%s2666_s5 + $0x3f0] ss:$8 sps:$4 sm:$0xff]   ;;  %v959_v28 = vcombine.high %v2759_v22, %v2759_v22  ;;  %v960_v15 = vcombine.high %v2763_v23, %v2763_v23 }
  0x9f   : > { %1655 = vmatpush1.bf16.msra.mxu1 %v2204_v16  ;;  %1737 = vmatpush1.bf16.msra.mxu0 %v2207_v29  ;;  %v905_v16 = vsub.s32 0, %v2664_v4  ;;  %v901_v29 = vld [vmem:[%s761_s9] sm:$0x3] }
  0xa0   : > { %1656 = vmatprep.subr.bf16.mxu1 %v2212_v30  ;;  %1738 = vmatprep.subr.bf16.mxu0 %v2215_v25  ;;  %v909_v30 = vsub.s32 1, %v2664_v4 }
  0xa1   : > { %v906_v22 = vrot.slane %v901_v29, %v905_v16 }
  0xa2   : > { %v910_v25 = vrot.slane %v901_v29, %v909_v30 }
  0xa3   : > { %1657 = vmatpush1.bf16.msra.mxu1 %v2210_v26  ;;  %1739 = vmatpush1.bf16.msra.mxu0 %v2213_v31 }
  0xa4   : > { %1658 = vmatprep.subr.bf16.mxu1 %v2218_v32  ;;  %1740 = vmatprep.subr.bf16.mxu0 %v2221_v33 }
  0xa7   : > { %1659 = vmatpush1.bf16.msra.mxu1 %v2216_v34  ;;  %1741 = vmatpush1.bf16.msra.mxu0 %v2219_v35 }
  0xa8   : > { %1660 = vmatprep.subr.bf16.mxu1 %v2224_v36  ;;  %1742 = vmatprep.subr.bf16.mxu0 %v2227_v37 }
  0xab   : > { %1661 = vmatpush1.bf16.msra.mxu1 %v2222_v38  ;;  %1743 = vmatpush1.bf16.msra.mxu0 %v2225_v39 }
  0xac   : > { %1662 = vmatprep.subr.bf16.mxu1 %v2230_v40  ;;  %1744 = vmatprep.subr.bf16.mxu0 %v2233_v41 }
  0xaf   : > { %1663 = vmatpush1.bf16.msra.mxu1 %v2228_v42  ;;  %1745 = vmatpush1.bf16.msra.mxu0 %v2231_v43 }
  0xb0   : > { %1664 = vmatprep.subr.bf16.mxu1 %v2236_v44  ;;  %1746 = vmatprep.subr.bf16.mxu0 %v2239_v45 }
  0xb3   : > { %1665 = vmatpush1.bf16.msra.mxu1 %v2234_v46  ;;  %1747 = vmatpush1.bf16.msra.mxu0 %v2237_v47 }
  0xb4   : > { %1666 = vmatprep.subr.bf16.mxu1 %v2242_v48  ;;  %1748 = vmatprep.subr.bf16.mxu0 %v2245_v49 }
  0xb7   : > { %1667 = vmatpush1.bf16.msra.mxu1 %v2240_v50  ;;  %1749 = vmatpush1.bf16.msra.mxu0 %v2243_v51 }
  0xb8   : > { %1668 = vmatprep.subr.bf16.mxu1 %v2248_v52  ;;  %1750 = vmatprep.subr.bf16.mxu0 %v2251_v53 }
  0xbb   : > { %1669 = vmatpush1.bf16.msra.mxu1 %v2246_v54  ;;  %1751 = vmatpush1.bf16.msra.mxu0 %v2249_v55 }
  0xbc   : > { %1670 = vmatprep.subr.bf16.mxu1 %v2254_v56  ;;  %1752 = vmatprep.subr.bf16.mxu0 %v2257_v57 }
  0xbf   : > { %1671 = vmatpush1.bf16.msra.mxu1 %v2252_v58  ;;  %1753 = vmatpush1.bf16.msra.mxu0 %v2255_v59 }
  0xc0   : > { %1672 = vmatprep.subr.bf16.mxu1 %v2260_v60  ;;  %1754 = vmatprep.subr.bf16.mxu0 %v2263_v61 }
  0xc3   : > { %1673 = vmatpush1.bf16.msra.mxu1 %v2258_v62  ;;  %1755 = vmatpush1.bf16.msra.mxu0 %v2261_v63 }
  0xc4   : > { %1674 = vmatprep.subr.bf16.mxu1 %v2266_v0  ;;  %1756 = vmatprep.subr.bf16.mxu0 %v2269_v1 }
  0xc7   : > { %1675 = vmatpush1.bf16.msra.mxu1 %v2264_v2  ;;  %1757 = vmatpush1.bf16.msra.mxu0 %v2267_v3 }
  0xc8   : > { %1676 = vmatprep.subr.bf16.mxu1 %v2272_v5  ;;  %1758 = vmatprep.subr.bf16.mxu0 %v2275_v6 }
  0xcb   : > { %1677 = vmatpush1.bf16.msra.mxu1 %v2270_v7  ;;  %1759 = vmatpush1.bf16.msra.mxu0 %v2273_v8 }
  0xcc   : > { %1678 = vmatprep.subr.bf16.mxu1 %v2278_v9  ;;  %1760 = vmatprep.subr.bf16.mxu0 %v2281_v10 }
  0xcf   : > { %1679 = vmatpush1.bf16.msra.mxu1 %v2276_v12  ;;  %1761 = vmatpush1.bf16.msra.mxu0 %v2279_v13 }
  0xd0   : > { %1680 = vmatprep.subr.bf16.mxu1 %v2284_v14  ;;  %1762 = vmatprep.subr.bf16.mxu0 %v2287_v17 }
  0xd3   : > { %1681 = vmatpush1.bf16.msra.mxu1 %v2282_v18  ;;  %1763 = vmatpush1.bf16.msra.mxu0 %v2285_v19 }
  0xd4   : > { %1682 = vmatprep.subr.bf16.mxu1 %v2290_v20  ;;  %1764 = vmatprep.subr.bf16.mxu0 %v2293_v21 }
  0xd7   : > { %1683 = vmatpush1.bf16.msra.mxu1 %v2288_v24  ;;  %1765 = vmatpush1.bf16.msra.mxu0 %v2291_v27 }
  0xda   : > { %1685 = vmatmul.mubr.bf16.vlgmr.msra.gmra.mrb[0].mxu1 %v959_v28  ;;  %1767 = vmatmul.mubr.bf16.vlgmr.msra.gmra.mrb[0].mxu0 %v960_v15 }
 0x1ad   : > { %v1686_v26 = vpop.f32.mrb[0].mxu1  ;;  %v1768_v23 = vpop.f32.mrb[0].mxu0 }
 0x1ae   : > { %v2048_v31 = vadd.f32 %v1686_v26, %v906_v22  ;;  %v1688_v32 = vpop.f32.mrb[1].mxu1  ;;  %v1770_v33 = vpop.f32.mrb[1].mxu0 }
 0x1af   : > { %v2050_v34 = vadd.f32 %v1688_v32, %v910_v25  ;;  %v1690_v35 = vpop.f32.mrb[2].mxu1  ;;  %v1772_v36 = vpop.f32.mrb[2].mxu0 }
 0x1b0   : > { %v2049_v37 = vadd.f32 %v2048_v31, %v1768_v23  ;;  %v1691_v38 = vpop.f32.mrb[3].mxu1  ;;  %v1773_v39 = vpop.f32.mrb[3].mxu0 }
 0x1b1   : > { %v2051_v40 = vadd.f32 %v2050_v34, %v1770_v33 }
 0x1b2   : > { %v1775_v41 = vmax.f32 %v2049_v37, 0.0 }
 0x1b3   : > { %v1776_v42 = vmax.f32 %v2051_v40, 0.0 }
 0x1b5   : > { %v2043_v43 = vpack.c.bf16 %v1776_v42, %v1775_v41 }
 0x1b7   : > { %v1788_v4 = vrot.slane %v2043_v43, %v2673_v11 }
 0x1b9   : > { %2044 = vst.sshfl [vmem:[%s770_s12] sm:$0x5 pattern:$0x73625140] %v1788_v4 }
 0x1ba PF: > { %s13_s16 = sadd.s32 1, %s2332_s16   ;;  %s2864_s12 = smov %s2320_s13 }
 0x1bb   : > { %p10_p10 = scmp.ge.s32.totalorder %s13_s16, 4   ;;  %s2865_s13 = smov %s2390_s20 }
 0x1bc   : > { %s2866_s14 = smov %s2328_s15  ;;  %s2867_s15 = smov %s2869_s17 }
 0x1bd   :  { %12 = sbr.rel (!%p10_p10) target bundleno = 3 (0x3), region = 111 }

// kernel: capsule_net_forward.11
= control target key start
LH: loop header
LB: loop body
LE: loop exit
PB: predicated region body
PF: predicated region fallthrough
CT: control target
= control target key end

     0   :  { %v100_v30 = vlaneseq  ;;  %v551_v34 = vmov 1966171168   ;;  %s687_s0 = inlined_call_operand.vmem [shape: bf16[2,512], index: 0, kind: input, shape index: {}]   ;;  %s688_s1 = inlined_call_operand.vmem [shape: bf16[512,128], index: 1, kind: input, shape index: {}]   ;;  %s689_s2 = inlined_call_operand.vmem [shape: f32[1,128], index: 2, kind: input, shape index: {}]   ;;  %s690_s3 = inlined_call_operand.hbm [shape: f32[2,128], index: 3, kind: output, shape index: {}]  }
   0x1   :  { %v491_v0 = vld [vmem:[%s688_s1 + $0x40] sm:$0xff]   ;;  %v495_v4 = vld [vmem:[%s688_s1 + $0x48] sm:$0xff]   ;;  %v499_v8 = vld [vmem:[%s688_s1 + $0x50] sm:$0xff]   ;;  %v98_v35 = vunpack.c.l.s4 %v551_v34 }
   0x2   :  { %v492_v1 = vld [vmem:[%s688_s1 + $0xc0] sm:$0xff]   ;;  %445 = vmatprep.subr.bf16.mxu0 %v491_v0  ;;  %v496_v5 = vld [vmem:[%s688_s1 + $0xc8] sm:$0xff]   ;;  %v500_v9 = vld [vmem:[%s688_s1 + $0xd0] sm:$0xff]   ;;  %v101_v36 = vshrl.u32 %v100_v30, 7 }
   0x3   :  { %v493_v2 = vld [vmem:[%s688_s1] sm:$0xff]   ;;  %467 = vmatprep.subr.bf16.mxu1 %v492_v1  ;;  %v497_v6 = vld [vmem:[%s688_s1 + $0x8] sm:$0xff]   ;;  %v501_v10 = vld [vmem:[%s688_s1 + $0x10] sm:$0xff]  }
   0x4   :  { %v494_v3 = vld [vmem:[%s688_s1 + $0x80] sm:$0xff]   ;;  %446 = vmatpush3.bf16.msra.mxu0 %v493_v2  ;;  %v498_v7 = vld [vmem:[%s688_s1 + $0x88] sm:$0xff]   ;;  %v502_v11 = vld [vmem:[%s688_s1 + $0x90] sm:$0xff]  }
   0x5   :  { %468 = vmatpush3.bf16.msra.mxu1 %v494_v3  ;;  %447 = vmatprep.subr.bf16.mxu0 %v495_v4  ;;  %v503_v12 = vld [vmem:[%s688_s1 + $0x58] sm:$0xff]   ;;  %v507_v16 = vld [vmem:[%s688_s1 + $0x60] sm:$0xff]   ;;  %v511_v20 = vld [vmem:[%s688_s1 + $0x68] sm:$0xff]  }
   0x6   :  { %469 = vmatprep.subr.bf16.mxu1 %v496_v5  ;;  %v504_v13 = vld [vmem:[%s688_s1 + $0xd8] sm:$0xff]   ;;  %v508_v17 = vld [vmem:[%s688_s1 + $0xe0] sm:$0xff]   ;;  %v512_v21 = vld [vmem:[%s688_s1 + $0xe8] sm:$0xff]  }
   0x7   :  { %v505_v14 = vld [vmem:[%s688_s1 + $0x18] sm:$0xff]   ;;  %v509_v18 = vld [vmem:[%s688_s1 + $0x20] sm:$0xff]   ;;  %v513_v22 = vld [vmem:[%s688_s1 + $0x28] sm:$0xff]  }
   0x8   :  { %448 = vmatpush3.bf16.msra.mxu0 %v497_v6  ;;  %v506_v15 = vld [vmem:[%s688_s1 + $0x98] sm:$0xff]   ;;  %v510_v19 = vld [vmem:[%s688_s1 + $0xa0] sm:$0xff]   ;;  %v514_v23 = vld [vmem:[%s688_s1 + $0xa8] sm:$0xff]  }
   0x9   :  { %470 = vmatpush3.bf16.msra.mxu1 %v498_v7  ;;  %449 = vmatprep.subr.bf16.mxu0 %v499_v8  ;;  %v515_v24 = vld [vmem:[%s688_s1 + $0x70] sm:$0xff]   ;;  %v519_v28 = vld [vmem:[%s688_s1 + $0x78] sm:$0xff]   ;;  %v411_v33 = vld.sshfl [vmem:[%s687_s0] sm:$0x33 pattern:$0x75316420] }
   0xa   :  { %471 = vmatprep.subr.bf16.mxu1 %v500_v9  ;;  %v516_v25 = vld [vmem:[%s688_s1 + $0xf0] sm:$0xff]   ;;  %v520_v29 = vld [vmem:[%s688_s1 + $0xf8] sm:$0xff]  }
   0xb   :  { %v517_v26 = vld [vmem:[%s688_s1 + $0x30] sm:$0xff]   ;;  %v521_v31 = vld [vmem:[%s688_s1 + $0x38] sm:$0xff]  }
   0xc   :  { %450 = vmatpush3.bf16.msra.mxu0 %v501_v10  ;;  %v518_v27 = vld [vmem:[%s688_s1 + $0xb0] sm:$0xff]   ;;  %v522_v32 = vld [vmem:[%s688_s1 + $0xb8] sm:$0xff]  }
   0xd   :  { %472 = vmatpush3.bf16.msra.mxu1 %v502_v11  ;;  %451 = vmatprep.subr.bf16.mxu0 %v503_v12 }
   0xe   :  { %473 = vmatprep.subr.bf16.mxu1 %v504_v13 }
  0x10   :  { %452 = vmatpush3.bf16.msra.mxu0 %v505_v14 }
  0x11   :  { %474 = vmatpush3.bf16.msra.mxu1 %v506_v15  ;;  %453 = vmatprep.subr.bf16.mxu0 %v507_v16 }
  0x12   :  { %475 = vmatprep.subr.bf16.mxu1 %v508_v17 }
  0x14   :  { %454 = vmatpush3.bf16.msra.mxu0 %v509_v18 }
  0x15   :  { %476 = vmatpush3.bf16.msra.mxu1 %v510_v19  ;;  %455 = vmatprep.subr.bf16.mxu0 %v511_v20 }
  0x16   :  { %477 = vmatprep.subr.bf16.mxu1 %v512_v21 }
  0x18   :  { %456 = vmatpush3.bf16.msra.mxu0 %v513_v22 }
  0x19   :  { %478 = vmatpush3.bf16.msra.mxu1 %v514_v23  ;;  %457 = vmatprep.subr.bf16.mxu0 %v515_v24 }
  0x1a   :  { %479 = vmatprep.subr.bf16.mxu1 %v516_v25 }
  0x1c   :  { %458 = vmatpush3.bf16.msra.mxu0 %v517_v26 }
  0x1d   :  { %480 = vmatpush3.bf16.msra.mxu1 %v518_v27  ;;  %459 = vmatprep.subr.bf16.mxu0 %v519_v28 }
  0x1e   :  { %481 = vmatprep.subr.bf16.mxu1 %v520_v29 }
  0x20   :  { %460 = vmatpush3.bf16.msra.mxu0 %v521_v31 }
  0x21   :  { %482 = vmatpush3.bf16.msra.mxu1 %v522_v32 }
  0x22   :  { %8 = vsyncpa [#allocation3], 0  ;;  %v96_v37 = vcombine.high %v411_v33, %v411_v33  ;;  %v99_v38 = vunpack.c.0.s8 %v98_v35  ;;  %v410_v45 = vld [vmem:[%s689_s2] ss:$0 sm:$0xff]  ;;  %s552_s0 = smov [#allocation2]  }
  0x23   :  { %s402_s25 = sshll.u32 %s552_s0, 4  ;;  %s403_s25 = int_to_ptr.vmem [resolvable:$true] %s402_s25 }
  0x24   :  { %v102_v39 = vsub.s32 %v99_v38, %v101_v36  ;;  %s527_s2 = scalar_lea.vmem %s403_s25, 32  ;;  %p532_p1 = scmp.lt.s32.totalorder %s403_s25, %s403_s25 }
  0x25   :  { %p528_p0 = scmp.ne.s32.totalorder %s403_s25, %s527_s2  ;;  %p533_p2 = scmp.lt.s32.totalorder %s527_s2, %s527_s2 }
  0x26   :  { %v110_v40 = vrot.slane %v96_v37, %v102_v39  ;;  %v103_v41 = vrot.slane %v411_v33, %v102_v39 }
  0x27   :  { %p534_p3 = por %p533_p2, %p532_p1 }
  0x28   :  { %341 = vmatprep.mubr.bf16.mxu0 %v110_v40  ;;  %v112_v42 = vcombine.high %v110_v40, %v110_v40  ;;  %v111_v43 = vcombine.high %v103_v41, %v103_v41 }
  0x29   :  { %342 = vmatmul.mubr.bf16.vlgmr.msra.gmra.mrb[0].mxu0 %v103_v41  ;;  %p535_p4 = pnand %p534_p3, %p528_p0 }
  0x2a   :  { %381 = vmatprep.mubr.bf16.mxu1 %v112_v42 }
  0x2b   :  { %382 = vmatmul.mubr.bf16.vlgmr.msra.gmra.mrb[0].mxu1 %v111_v43 }
  0xfc   :  { %v461_v44 = vpop.f32.mrb[0].mxu0 }
  0xfd   :  { %v462_v46 = vpop.f32.mrb[1].mxu0 }
  0xfe   :  { %v483_v47 = vpop.f32.mrb[0].mxu1  ;;  %v463_v48 = vadd.f32 %v462_v46, %v461_v44  ;;  %v464_v49 = vpop.f32.mrb[2].mxu0 }
  0xff   :  { %v484_v50 = vpop.f32.mrb[1].mxu1  ;;  %v465_v51 = vpop.f32.mrb[3].mxu0 }
 0x100   :  { %v344_v52 = vadd.f32 %v463_v48, %v410_v45  ;;  %v485_v53 = vadd.f32 %v484_v50, %v483_v47  ;;  %v486_v54 = vpop.f32.mrb[2].mxu1 }
 0x101   :  { %v487_v55 = vpop.f32.mrb[3].mxu1 }
 0x102   :  { %v384_v56 = vadd.f32 %v485_v53, %v344_v52 }
 0x104   :  { %v444_v57 = vmul.f32 -1.442695, %v384_v56 }
 0x106   :  { %523 = vpow2.f32 %v444_v57 }
 0x110   :  { %v524_v58 = vpop.eup %523 }
 0x111   :  { %v392_v59 = vadd.f32 1.0, %v524_v58 }
 0x113   :  { %525 = vrcp.f32 %v392_v59 }
 0x11d   :  { %v526_v60 = vpop.eup %525 }
 0x11e   :  { %395 = vst [vmem:[#allocation2] sm:$0x3] %v526_v60 }
 0x11f   :  { %538 = shalt.err (!%p535_p4)
}
 0x120   :  { %s539_s28 = scalar_lea.hbm %s690_s3, 32 }
 0x121   :  { %p540_p5 = scmp.ne.s32.totalorder %s690_s3, %s539_s28  ;;  %p543_p6 = scmp.lt.u32.totalorder %s539_s28, %s690_s3 }
 0x123   :  { %p545_p7 = pnand %p543_p6, %p540_p5 }
 0x125   :  { %548 = shalt.err (!%p545_p7)
}
 0x126   :  { %405 = dma.vmem_to_hbm [thread:$0]  %s403_s25, 32, %s690_s3, [#allocation3]  }
 0x127   :  { %549 = dma.done.wait [#allocation3], 32  }
 0x128   :  { %550 = vsyncadd [#allocation3], 4294967264 }
 0x129   :  { %409 = vsyncpa [#allocation3], 1 }

</bundles_post_ra>
